<compile_context>
chip_gen: v7x
topology: tpu7x:2x2x1
jax: 0.10.0
libtpu: 0.0.40
codegen_flags: <defaults>
</compile_context>

<pallas_src>
import jax
import jax.numpy as jnp
from jax.experimental import pallas as pl
from jax.experimental.pallas import tpu as pltpu

D_FF = 2048                 # module-level constant from the PyTorch code
LN_EPS = 1e-5               # nn.LayerNorm default
COMPUTE_DTYPE = jnp.bfloat16  # MXU operand dtype (f32 accumulation)


def ffn_ln_kernel(x_ref, w1_ref, w2_ref, o_ref):
    # x_ref:  (tm, d_model)    current tile of tokens (f32)
    # w1_ref: (d_model, d_ff)  full weight, bf16, resident in VMEM
    # w2_ref: (d_ff, d_model)  full weight, bf16, resident in VMEM
    x = x_ref[...]
    x_res = x.astype(jnp.float32)          # no-op when input is already f32

    # fc1 + ReLU: bf16 operands, f32 accumulate on the MXU
    h = jnp.dot(x.astype(COMPUTE_DTYPE), w1_ref[...],
                preferred_element_type=jnp.float32)
    h = jnp.maximum(h, 0.0)

    # fc2: bf16 operands, f32 accumulate
    y = jnp.dot(h.astype(COMPUTE_DTYPE), w2_ref[...],
                preferred_element_type=jnp.float32)

    # residual add + LayerNorm over d_model (biased variance, gamma=1, beta=0)
    z = y + x_res
    mean = jnp.mean(z, axis=-1, keepdims=True)
    zc = z - mean                          # formed once, reused below
    var = jnp.mean(zc * zc, axis=-1, keepdims=True)
    o_ref[...] = (zc * jax.lax.rsqrt(var + LN_EPS)).astype(o_ref.dtype)


def poswise_ffn(x, w1_t, w2_t, *, tm=256):
    """x: [B, S, d_model]; w1_t: [d_model, d_ff]; w2_t: [d_ff, d_model].

    Weights are passed pre-transposed so the kernel does plain row-major
    matmuls on the MXU.
    """
    B, S, D = x.shape
    M = B * S
    n_tiles = pl.cdiv(M, tm)
    m_pad = n_tiles * tm

    x2d = x.reshape(M, D)
    if m_pad != M:
        # Zero-pad extra token rows; LayerNorm is per-row so padding rows are
        # harmless (they produce finite zeros) and are sliced off below.
        x2d = jnp.pad(x2d, ((0, m_pad - M), (0, 0)))

    # bf16 weights: halves resident VMEM + HBM->VMEM DMA for the weights.
    w1_c = w1_t.astype(COMPUTE_DTYPE)
    w2_c = w2_t.astype(COMPUTE_DTYPE)

    out2d = pl.pallas_call(
        ffn_ln_kernel,
        out_shape=jax.ShapeDtypeStruct((m_pad, D), x.dtype),
        grid_spec=pltpu.PrefetchScalarGridSpec(
            num_scalar_prefetch=0,
            grid=(n_tiles,),
            in_specs=[
                pl.BlockSpec((tm, D), lambda i: (i, 0)),     # token tile
                pl.BlockSpec((D, D_FF), lambda i: (0, 0)),   # W1^T, whole, resident
                pl.BlockSpec((D_FF, D), lambda i: (0, 0)),   # W2^T, whole, resident
            ],
            out_specs=pl.BlockSpec((tm, D), lambda i: (i, 0)),
        ),
        compiler_params=pltpu.CompilerParams(
            dimension_semantics=("parallel",),
        ),
    )(x2d, w1_c, w2_c)

    return out2d[:M].reshape(B, S, D)


def reference(x, w1_t, w2_t):
    """Pure-JAX reference mirroring the kernel numerics (bf16 matmul operands,
    f32 accumulation, f32 residual + LayerNorm)."""
    xf = x.astype(jnp.float32)
    h = jnp.maximum(
        jnp.dot(x.astype(COMPUTE_DTYPE), w1_t.astype(COMPUTE_DTYPE),
                preferred_element_type=jnp.float32), 0.0)
    y = jnp.dot(h.astype(COMPUTE_DTYPE), w2_t.astype(COMPUTE_DTYPE),
                preferred_element_type=jnp.float32)
    z = y + xf
    mean = jnp.mean(z, axis=-1, keepdims=True)
    zc = z - mean
    var = jnp.mean(zc * zc, axis=-1, keepdims=True)
    return (zc * jax.lax.rsqrt(var + LN_EPS)).astype(x.dtype)


if __name__ == "__main__":
    D_MODEL = 128

    key = jax.random.PRNGKey(0)
    kx1, kx2, k1, k2 = jax.random.split(key, 4)

    # Deterministic weight init (Kaiming-uniform-like bound = 1/sqrt(fan_in),
    # matching nn.Linear); stored pre-transposed for the kernel.
    bound1 = 1.0 / (D_MODEL ** 0.5)
    bound2 = 1.0 / (D_FF ** 0.5)
    w1_t = jax.random.uniform(k1, (D_MODEL, D_FF), jnp.float32, -bound1, bound1)
    w2_t = jax.random.uniform(k2, (D_FF, D_MODEL), jnp.float32, -bound2, bound2)

    # Case 1: small shape consistent with the module (batch=2, seq=8).
    x_small = jax.random.normal(kx1, (2, 8, D_MODEL), dtype=jnp.float32)
    out_small = jax.block_until_ready(poswise_ffn(x_small, w1_t, w2_t))
    ref_small = reference(x_small, w1_t, w2_t)
    assert out_small.shape == x_small.shape
    assert jnp.allclose(out_small, ref_small, atol=2e-2, rtol=2e-2), \
        "small-shape mismatch vs reference"

    # Case 2: token count not divisible by the tile -> exercises padding and a
    # multi-step grid (400 tokens -> 2 tiles of 256).
    x_big = jax.random.normal(kx2, (4, 100, D_MODEL), dtype=jnp.float32)
    out_big = jax.block_until_ready(poswise_ffn(x_big, w1_t, w2_t))
    ref_big = reference(x_big, w1_t, w2_t)
    assert out_big.shape == x_big.shape
    assert jnp.allclose(out_big, ref_big, atol=2e-2, rtol=2e-2), \
        "padded-shape mismatch vs reference"

    print("KERNEL_OK")
</pallas_src>

<mosaic_0001>
module attributes {stable_mosaic.version = 11 : i64} {
  func.func @ffn_ln_kernel(%arg0: i32, %arg1: memref<256x128xf32, #tpu.memory_space<vmem>>, %arg2: memref<128x2048xbf16, #tpu.memory_space<vmem>>, %arg3: memref<2048x128xbf16, #tpu.memory_space<vmem>>, %arg4: memref<256x128xf32, #tpu.memory_space<vmem>>) attributes {dimension_semantics = [#tpu.dimension_semantics<parallel>], iteration_bounds = array<i64: 1>, scalar_prefetch = 0 : i64, scratch_operands = 0 : i64, tpu.core_type = #tpu.core_type<tc>, window_params = [{transform_indices = @transform_0, window_bounds = array<i64: 256, 128>}, {pipeline_mode = #tpu.pipeline_mode<synchronous>, transform_indices = @transform_1, window_bounds = array<i64: 128, 2048>}, {pipeline_mode = #tpu.pipeline_mode<synchronous>, transform_indices = @transform_2, window_bounds = array<i64: 2048, 128>}, {transform_indices = @transform_3, window_bounds = array<i64: 256, 128>}]} {
    %c0 = arith.constant 0 : index
    %c0_0 = arith.constant 0 : index
    %0 = vector.load %arg1[%c0, %c0_0] : memref<256x128xf32, #tpu.memory_space<vmem>>, vector<256x128xf32>
    %1 = arith.truncf %0 : vector<256x128xf32> to vector<256x128xbf16>
    %c0_1 = arith.constant 0 : index
    %c0_2 = arith.constant 0 : index
    %2 = vector.load %arg2[%c0_1, %c0_2] : memref<128x2048xbf16, #tpu.memory_space<vmem>>, vector<128x2048xbf16>
    %cst = arith.constant dense<0.000000e+00> : vector<256x2048xf32>
    %3 = tpu.matmul %1, %2, %cst {dimension_numbers = #tpu.dot_dimension_numbers<[1], [0], [0], [1], [0, 0, 1, 1], [], []>} : vector<256x128xbf16>, vector<128x2048xbf16>, vector<256x2048xf32> -> vector<256x2048xf32>
    %cst_3 = arith.constant 0.000000e+00 : f32
    %4 = vector.broadcast %cst_3 : f32 to vector<256x2048xf32>
    %5 = arith.maximumf %3, %4 : vector<256x2048xf32>
    %6 = arith.truncf %5 : vector<256x2048xf32> to vector<256x2048xbf16>
    %c0_4 = arith.constant 0 : index
    %c0_5 = arith.constant 0 : index
    %7 = vector.load %arg3[%c0_4, %c0_5] : memref<2048x128xbf16, #tpu.memory_space<vmem>>, vector<2048x128xbf16>
    %cst_6 = arith.constant dense<0.000000e+00> : vector<256x128xf32>
    %8 = tpu.matmul %6, %7, %cst_6 {dimension_numbers = #tpu.dot_dimension_numbers<[1], [0], [0], [1], [0, 0, 1, 1], [], []>} : vector<256x2048xbf16>, vector<2048x128xbf16>, vector<256x128xf32> -> vector<256x128xf32>
    %9 = arith.addf %8, %0 : vector<256x128xf32>
    %cst_7 = arith.constant dense<0.000000e+00> : vector<256xf32>
    %10 = vector.multi_reduction <add>, %9, %cst_7 [1] : vector<256x128xf32> to vector<256xf32>
    %11 = vector.shape_cast %10 : vector<256xf32> to vector<256x1xf32>
    %cst_8 = arith.constant 1.280000e+02 : f32
    %12 = vector.broadcast %cst_8 : f32 to vector<256x1xf32>
    %13 = arith.divf %11, %12 : vector<256x1xf32>
    %14 = vector.broadcast %13 : vector<256x1xf32> to vector<256x128xf32>
    %15 = arith.subf %9, %14 : vector<256x128xf32>
    %16 = arith.mulf %15, %15 : vector<256x128xf32>
    %cst_9 = arith.constant dense<0.000000e+00> : vector<256xf32>
    %17 = vector.multi_reduction <add>, %16, %cst_9 [1] : vector<256x128xf32> to vector<256xf32>
    %18 = vector.shape_cast %17 : vector<256xf32> to vector<256x1xf32>
    %cst_10 = arith.constant 1.280000e+02 : f32
    %19 = vector.broadcast %cst_10 : f32 to vector<256x1xf32>
    %20 = arith.divf %18, %19 : vector<256x1xf32>
    %cst_11 = arith.constant 9.99999974E-6 : f32
    %21 = vector.broadcast %cst_11 : f32 to vector<256x1xf32>
    %22 = arith.addf %20, %21 : vector<256x1xf32>
    %23 = math.rsqrt %22 : vector<256x1xf32>
    %24 = vector.broadcast %23 : vector<256x1xf32> to vector<256x128xf32>
    %25 = arith.mulf %15, %24 : vector<256x128xf32>
    %c0_12 = arith.constant 0 : index
    %c0_13 = arith.constant 0 : index
    %26 = vector.load %arg4[%c0_12, %c0_13] : memref<256x128xf32, #tpu.memory_space<vmem>>, vector<256x128xf32>
    tpu.vector_store %arg4[%c0_12, %c0_13], %25 {strides = array<i32>} : memref<256x128xf32, #tpu.memory_space<vmem>>, vector<256x128xf32>,
    return
  }
  func.func @transform_0(%arg0: i32) -> (i32, i32) {
    %c0_i32 = arith.constant 0 : i32
    %c0_i32_0 = arith.constant 0 : i32
    return %arg0, %c0_i32 : i32, i32
  }
  func.func @transform_1(%arg0: i32) -> (i32, i32) {
    %c0_i32 = arith.constant 0 : i32
    %c0_i32_0 = arith.constant 0 : i32
    %c0_i32_1 = arith.constant 0 : i32
    return %c0_i32, %c0_i32_0 : i32, i32
  }
  func.func @transform_2(%arg0: i32) -> (i32, i32) {
    %c0_i32 = arith.constant 0 : i32
    %c0_i32_0 = arith.constant 0 : i32
    %c0_i32_1 = arith.constant 0 : i32
    return %c0_i32, %c0_i32_0 : i32, i32
  }
  func.func @transform_3(%arg0: i32) -> (i32, i32) {
    %c0_i32 = arith.constant 0 : i32
    %c0_i32_0 = arith.constant 0 : i32
    return %arg0, %c0_i32 : i32, i32
  }
}

</mosaic_0001>

<bundles_post_ra>
// kernel: tpu_custom_call.1
= control target key start
LH: loop header
LB: loop body
LE: loop exit
PB: predicated region body
PF: predicated region fallthrough
CT: control target
= control target key end

     0   :  { %8 = vsyncpa [#allocation3], 0  ;;  %s9143_s0 = inlined_call_operand.hbm [shape: f32[256,128], index: 0, kind: input, shape index: {}]   ;;  %s9144_s1 = inlined_call_operand.hbm [shape: bf16[128,2048], index: 1, kind: input, shape index: {}]   ;;  %s9145_s2 = inlined_call_operand.hbm [shape: bf16[2048,128], index: 2, kind: input, shape index: {}]   ;;  %s9146_s3 = inlined_call_operand.hbm [shape: f32[256,128], index: 3, kind: output, shape index: {}]  }
   0x1   :  { %9 = vsyncpa [#allocation6], 0 }
   0x2   :  { %10 = vsyncpa [#allocation4], 0  ;;  %s7380_s12 = smov [#allocation5]   ;;  %s7286_s16 = scalar_lea.hbm %s9144_s1, 16384 }
   0x3   :  { %s28_s13 = sshll.u32 %s7380_s12, 4  ;;  %p7287_p0 = scmp.ne.s32.totalorder %s9144_s1, %s7286_s16  ;;  %s29_s13 = int_to_ptr.vmem [resolvable:$true] %s28_s13 }
   0x4   :  { %p7290_p1 = scmp.lt.u32.totalorder %s7286_s16, %s9144_s1 }
   0x6   :  { %p7292_p2 = pnand %p7290_p1, %p7287_p0 }
   0x8   :  { %7295 = shalt.err (!%p7292_p2)
}
   0x9   :  { %s7296_s21 = scalar_lea.vmem %s29_s13, 16384  ;;  %p7301_p4 = scmp.lt.s32.totalorder %s29_s13, %s29_s13 }
   0xa   :  { %p7297_p3 = scmp.ne.s32.totalorder %s29_s13, %s7296_s21  ;;  %p7302_p5 = scmp.lt.s32.totalorder %s7296_s21, %s7296_s21 }
   0xc   :  { %p7303_p6 = por %p7302_p5, %p7301_p4 }
   0xe   :  { %p7304_p7 = pnand %p7303_p6, %p7297_p3 }
  0x10   :  { %7307 = shalt.err (!%p7304_p7)
}
  0x11   :  { %s7381_s22 = smov 1024   ;;  %s7382_s23 = smov 64  }
  0x12   :  { %34 = dma.hbm_to_vmem [thread:$0]  %s9144_s1, 16384, %s29_s13, [#allocation6], %s7381_s22, %s7381_s22, %s7382_s23  }
  0x13   :  { %s7383_s26 = smov [#allocation2]   ;;  %s7308_s30 = scalar_lea.hbm %s9143_s0, 4096 }
  0x14   :  { %s16_s27 = sshll.u32 %s7383_s26, 4  ;;  %p7309_p8 = scmp.ne.s32.totalorder %s9143_s0, %s7308_s30  ;;  %s17_s27 = int_to_ptr.vmem [resolvable:$true] %s16_s27 }
  0x15   :  { %p7312_p9 = scmp.lt.u32.totalorder %s7308_s30, %s9143_s0 }
  0x17   :  { %p7314_p10 = pnand %p7312_p9, %p7309_p8 }
  0x19   :  { %7317 = shalt.err (!%p7314_p10)
}
  0x1a   :  { %s7318_s8 = scalar_lea.vmem %s17_s27, 4096  ;;  %p7323_p12 = scmp.lt.s32.totalorder %s17_s27, %s17_s27 }
  0x1b   :  { %p7319_p11 = scmp.ne.s32.totalorder %s17_s27, %s7318_s8  ;;  %p7324_p13 = scmp.lt.s32.totalorder %s7318_s8, %s7318_s8 }
  0x1d   :  { %p7325_p0 = por %p7324_p13, %p7323_p12 }
  0x1f   :  { %p7326_p1 = pnand %p7325_p0, %p7319_p11 }
  0x21   :  { %7329 = shalt.err (!%p7326_p1)
}
  0x22   :  { %s7384_s1 = smov 128   ;;  %s7385_s9 = smov 8  }
  0x23   :  { %22 = dma.hbm_to_vmem [thread:$0]  %s9143_s0, 4096, %s17_s27, [#allocation3], %s7384_s1, %s7384_s1, %s7385_s9  }
  0x24   :  { %s7386_s12 = smov [#allocation7]   ;;  %s7330_s16 = scalar_lea.hbm %s9145_s2, 16384 }
  0x25   :  { %s40_s13 = sshll.u32 %s7386_s12, 4  ;;  %p7331_p2 = scmp.ne.s32.totalorder %s9145_s2, %s7330_s16  ;;  %s41_s13 = int_to_ptr.vmem [resolvable:$true] %s40_s13 }
  0x26   :  { %p7334_p3 = scmp.lt.u32.totalorder %s7330_s16, %s9145_s2 }
  0x28   :  { %p7336_p4 = pnand %p7334_p3, %p7331_p2 }
  0x2a   :  { %7339 = shalt.err (!%p7336_p4)
}
  0x2b   :  { %s7340_s21 = scalar_lea.vmem %s41_s13, 16384  ;;  %p7345_p6 = scmp.lt.s32.totalorder %s41_s13, %s41_s13 }
  0x2c   :  { %p7341_p5 = scmp.ne.s32.totalorder %s41_s13, %s7340_s21  ;;  %p7346_p7 = scmp.lt.s32.totalorder %s7340_s21, %s7340_s21 }
  0x2e   :  { %p7347_p8 = por %p7346_p7, %p7345_p6 }
  0x30   :  { %p7348_p9 = pnand %p7347_p8, %p7341_p5 }
  0x32   :  { %7351 = shalt.err (!%p7348_p9)
}
  0x33   :  { %s7387_s0 = smov 4  }
  0x34   :  { %46 = dma.hbm_to_vmem [thread:$0]  %s9145_s2, 16384, %s41_s13, [#allocation6], %s7382_s23, %s7382_s23, %s7387_s0  }
  0x35   :  { %7374 = dma.done.wait [#allocation3], 4096  }
  0x36   :  { %7375 = vsyncadd [#allocation3], 4294963200 }
  0x37   :  { %7376 = dma.done.wait [#allocation6], 32768  }
  0x38   :  { %7377 = vsyncadd [#allocation6], 4294934528  ;;  %v9147_v0 = vmov 0   ;;  %v105_v1 = vld [vmem:[#allocation5] sm:$0xff]  ;;  %v106_v3 = vld [vmem:[#allocation5 + $0x8] sm:$0xff]  ;;  %s7389_s2 = smov [#allocation8]  }
  0x39   :  { %905 = vmatprep.mubr.bf16.mxu0 %v9147_v0  ;;  %1098 = vmatprep.mubr.bf16.mxu1 %v9147_v0  ;;  %v113_v2 = vld [vmem:[#allocation5 + $0x40] sm:$0xff]  ;;  %v114_v5 = vld [vmem:[#allocation5 + $0x48] sm:$0xff]  ;;  %v107_v63 = vld [vmem:[#allocation5 + $0x10] sm:$0xff]  ;;  %s5887_s23 = sshll.u32 %s7389_s2, 4  ;;  %s5888_s23 = int_to_ptr.vmem [resolvable:$true] %s5887_s23 }
  0x3a   :  { %v5901_v4 = vcombine.high %v105_v1, %v113_v2  ;;  %v5900_v6 = vcombine.low %v105_v1, %v113_v2  ;;  %v121_v7 = vld [vmem:[#allocation5 + $0x80] sm:$0xff]  ;;  %v5903_v9 = vcombine.high %v106_v3, %v114_v5  ;;  %v5902_v10 = vcombine.low %v106_v3, %v114_v5  ;;  %v122_v12 = vld [vmem:[#allocation5 + $0x88] sm:$0xff]  ;;  %v115_v1 = vld [vmem:[#allocation5 + $0x50] sm:$0xff]  ;;  %s7352_s25 = scalar_lea.vmem %s5888_s23, 4096  ;;  %p7357_p11 = scmp.lt.s32.totalorder %s5888_s23, %s5888_s23 }
  0x3b   :  { %v129_v8 = vld [vmem:[#allocation5 + $0xc0] sm:$0xff]  ;;  %v130_v13 = vld [vmem:[#allocation5 + $0xc8] sm:$0xff]  ;;  %v108_v2 = vld [vmem:[#allocation5 + $0x18] sm:$0xff]  ;;  %p7353_p10 = scmp.ne.s32.totalorder %s5888_s23, %s7352_s25  ;;  %p7358_p12 = scmp.lt.s32.totalorder %s7352_s25, %s7352_s25 }
  0x3c   :  { %v5917_v11 = vcombine.high %v121_v7, %v129_v8  ;;  %v137_v14 = vld [vmem:[#allocation5 + $0x100] sm:$0xff]  ;;  %873 = vmatprep.subr.bf16.mxu0 %v5901_v4  ;;  %v5919_v15 = vcombine.high %v122_v12, %v130_v13  ;;  %v138_v17 = vld [vmem:[#allocation5 + $0x108] sm:$0xff]  ;;  %1066 = vmatprep.subr.bf16.mxu1 %v5903_v9  ;;  %v5916_v19 = vcombine.low %v121_v7, %v129_v8  ;;  %v116_v3 = vld [vmem:[#allocation5 + $0x58] sm:$0xff] }
  0x3d   :  { %v145_v16 = vld [vmem:[#allocation5 + $0x140] sm:$0xff]  ;;  %v146_v18 = vld [vmem:[#allocation5 + $0x148] sm:$0xff]  ;;  %874 = vmatpush1.bf16.msra.mxu0 %v5900_v6  ;;  %1067 = vmatpush1.bf16.msra.mxu1 %v5902_v10  ;;  %v5918_v20 = vcombine.low %v122_v12, %v130_v13  ;;  %v5905_v8 = vcombine.high %v107_v63, %v115_v1  ;;  %v5907_v9 = vcombine.high %v108_v2, %v116_v3  ;;  %v123_v10 = vld [vmem:[#allocation5 + $0x90] sm:$0xff]  ;;  %p7359_p13 = por %p7358_p12, %p7357_p11 }
  0x3e   :  { %875 = vmatprep.subr.bf16.mxu0 %v5917_v11  ;;  %v5933_v21 = vcombine.high %v137_v14, %v145_v16  ;;  %1068 = vmatprep.subr.bf16.mxu1 %v5919_v15  ;;  %v5935_v22 = vcombine.high %v138_v17, %v146_v18  ;;  %v153_v23 = vld [vmem:[#allocation5 + $0x180] sm:$0xff]  ;;  %v154_v25 = vld [vmem:[#allocation5 + $0x188] sm:$0xff]  ;;  %v5932_v27 = vcombine.low %v137_v14, %v145_v16  ;;  %v131_v12 = vld [vmem:[#allocation5 + $0xd0] sm:$0xff] }
  0x3f   :  { %v161_v24 = vld [vmem:[#allocation5 + $0x1c0] sm:$0xff]  ;;  %v162_v26 = vld [vmem:[#allocation5 + $0x1c8] sm:$0xff]  ;;  %v5934_v28 = vcombine.low %v138_v17, %v146_v18  ;;  %v124_v13 = vld [vmem:[#allocation5 + $0x98] sm:$0xff]  ;;  %v5904_v15 = vcombine.low %v107_v63, %v115_v1  ;;  %v5906_v18 = vcombine.low %v108_v2, %v116_v3  ;;  %p7360_p0 = pnand %p7359_p13, %p7353_p10 }
  0x40   :  { %v5949_v29 = vcombine.high %v153_v23, %v161_v24  ;;  %v5951_v30 = vcombine.high %v154_v25, %v162_v26  ;;  %v169_v31 = vld [vmem:[#allocation5 + $0x200] sm:$0xff]  ;;  %v170_v33 = vld [vmem:[#allocation5 + $0x208] sm:$0xff]  ;;  %v5948_v35 = vcombine.low %v153_v23, %v161_v24  ;;  %v5950_v36 = vcombine.low %v154_v25, %v162_v26  ;;  %v132_v14 = vld [vmem:[#allocation5 + $0xd8] sm:$0xff] }
  0x41   :  { %876 = vmatpush1.bf16.msra.mxu0 %v5916_v19  ;;  %1069 = vmatpush1.bf16.msra.mxu1 %v5918_v20  ;;  %v177_v32 = vld [vmem:[#allocation5 + $0x240] sm:$0xff]  ;;  %v178_v34 = vld [vmem:[#allocation5 + $0x248] sm:$0xff]  ;;  %v139_v16 = vld [vmem:[#allocation5 + $0x110] sm:$0xff]  ;;  %v5921_v23 = vcombine.high %v123_v10, %v131_v12  ;;  %v5923_v24 = vcombine.high %v124_v13, %v132_v14  ;;  %v5920_v25 = vcombine.low %v123_v10, %v131_v12 }
  0x42   :  { %877 = vmatprep.subr.bf16.mxu0 %v5933_v21  ;;  %1070 = vmatprep.subr.bf16.mxu1 %v5935_v22  ;;  %v5965_v37 = vcombine.high %v169_v31, %v177_v32  ;;  %v5967_v38 = vcombine.high %v170_v33, %v178_v34  ;;  %v185_v39 = vld [vmem:[#allocation5 + $0x280] sm:$0xff]  ;;  %v186_v41 = vld [vmem:[#allocation5 + $0x288] sm:$0xff]  ;;  %v5964_v43 = vcombine.low %v169_v31, %v177_v32  ;;  %v147_v17 = vld [vmem:[#allocation5 + $0x150] sm:$0xff] }
  0x43   :  { %v193_v40 = vld [vmem:[#allocation5 + $0x2c0] sm:$0xff]  ;;  %v194_v42 = vld [vmem:[#allocation5 + $0x2c8] sm:$0xff]  ;;  %v5966_v44 = vcombine.low %v170_v33, %v178_v34  ;;  %v140_v19 = vld [vmem:[#allocation5 + $0x118] sm:$0xff] }
  0x44   :  { %v5981_v45 = vcombine.high %v185_v39, %v193_v40  ;;  %v5983_v46 = vcombine.high %v186_v41, %v194_v42  ;;  %v201_v47 = vld [vmem:[#allocation5 + $0x300] sm:$0xff]  ;;  %v202_v49 = vld [vmem:[#allocation5 + $0x308] sm:$0xff]  ;;  %v5980_v51 = vcombine.low %v185_v39, %v193_v40  ;;  %v5982_v52 = vcombine.low %v186_v41, %v194_v42  ;;  %v148_v20 = vld [vmem:[#allocation5 + $0x158] sm:$0xff] }
  0x45   :  { %878 = vmatpush1.bf16.msra.mxu0 %v5932_v27  ;;  %1071 = vmatpush1.bf16.msra.mxu1 %v5934_v28  ;;  %v209_v48 = vld [vmem:[#allocation5 + $0x340] sm:$0xff]  ;;  %v210_v50 = vld [vmem:[#allocation5 + $0x348] sm:$0xff]  ;;  %v59_v21 = vld [vmem:[#allocation2 + $0x10] sm:$0xff]  ;;  %v5936_v40 = vcombine.low %v139_v16, %v147_v17 }
  0x46   :  { %879 = vmatprep.subr.bf16.mxu0 %v5949_v29  ;;  %1072 = vmatprep.subr.bf16.mxu1 %v5951_v30  ;;  %v5997_v53 = vcombine.high %v201_v47, %v209_v48  ;;  %v5999_v54 = vcombine.high %v202_v49, %v210_v50  ;;  %v217_v55 = vld [vmem:[#allocation5 + $0x380] sm:$0xff]  ;;  %v218_v57 = vld [vmem:[#allocation5 + $0x388] sm:$0xff]  ;;  %v5996_v59 = vcombine.low %v201_v47, %v209_v48  ;;  %v60_v22 = vld [vmem:[#allocation2 + $0x18] sm:$0xff] }
  0x47   :  { %v225_v56 = vld [vmem:[#allocation5 + $0x3c0] sm:$0xff]  ;;  %v226_v58 = vld [vmem:[#allocation5 + $0x3c8] sm:$0xff]  ;;  %v5998_v60 = vcombine.low %v202_v49, %v210_v50  ;;  %v5922_v29 = vcombine.low %v124_v13, %v132_v14  ;;  %v5937_v30 = vcombine.high %v139_v16, %v147_v17  ;;  %v155_v31 = vld [vmem:[#allocation5 + $0x190] sm:$0xff]  ;;  %v7472_v39 = vpack.c.bf16 %v60_v22, %v59_v21 }
  0x48   :  { %v6013_v61 = vcombine.high %v217_v55, %v225_v56  ;;  %v6015_v62 = vcombine.high %v218_v57, %v226_v58  ;;  %v6012_v4 = vcombine.low %v217_v55, %v225_v56  ;;  %v57_v5 = vld [vmem:[#allocation2] sm:$0xff]  ;;  %v58_v6 = vld [vmem:[#allocation2 + $0x8] sm:$0xff]  ;;  %v6014_v7 = vcombine.low %v218_v57, %v226_v58  ;;  %v163_v32 = vld [vmem:[#allocation5 + $0x1d0] sm:$0xff] }
  0x49   :  { %880 = vmatpush1.bf16.msra.mxu0 %v5948_v35  ;;  %1073 = vmatpush1.bf16.msra.mxu1 %v5950_v36  ;;  %v7454_v11 = vpack.c.bf16 %v58_v6, %v57_v5  ;;  %v7458_v26 = vld [vmem:[#allocation5 + $0x20] sm:$0xff]  ;;  %v7462_v28 = vld [vmem:[#allocation5 + $0x28] sm:$0xff]  ;;  %v5939_v35 = vcombine.high %v140_v19, %v148_v20  ;;  %v156_v36 = vld [vmem:[#allocation5 + $0x198] sm:$0xff]  ;;  %v5952_v50 = vcombine.low %v155_v31, %v163_v32 }
  0x4a   :  { %881 = vmatprep.subr.bf16.mxu0 %v5965_v37  ;;  %1074 = vmatprep.subr.bf16.mxu1 %v5967_v38  ;;  %v7460_v27 = vld [vmem:[#allocation5 + $0x60] sm:$0xff]  ;;  %v7467_v34 = vld [vmem:[#allocation5 + $0x68] sm:$0xff]  ;;  %v164_v37 = vld [vmem:[#allocation5 + $0x1d8] sm:$0xff] }
  0x4b   :  { %v5908_v33 = vcombine.low %v7458_v26, %v7460_v27  ;;  %v5910_v38 = vcombine.low %v7462_v28, %v7467_v34  ;;  %v171_v41 = vld [vmem:[#allocation5 + $0x210] sm:$0xff]  ;;  %v172_v47 = vld [vmem:[#allocation5 + $0x218] sm:$0xff]  ;;  %v5955_v49 = vcombine.high %v156_v36, %v164_v37  ;;  %v65_v17 = vld [vmem:[#allocation2 + $0x40] sm:$0xff] }
  0x4c   :  { %v179_v42 = vld [vmem:[#allocation5 + $0x250] sm:$0xff]  ;;  %v180_v48 = vld [vmem:[#allocation5 + $0x258] sm:$0xff] }
  0x4d   :  { %882 = vmatpush1.bf16.msra.mxu0 %v5964_v43  ;;  %1075 = vmatpush1.bf16.msra.mxu1 %v5966_v44  ;;  %v61_v43 = vld [vmem:[#allocation2 + $0x20] sm:$0xff]  ;;  %v62_v44 = vld [vmem:[#allocation2 + $0x28] sm:$0xff]  ;;  %v188_v55 = vld [vmem:[#allocation5 + $0x298] sm:$0xff]  ;;  %v5971_v58 = vcombine.high %v172_v47, %v180_v48  ;;  %v5970_v63 = vcombine.low %v172_v47, %v180_v48 }
  0x4e   :  { %883 = vmatprep.subr.bf16.mxu0 %v5981_v45  ;;  %1076 = vmatprep.subr.bf16.mxu1 %v5983_v46  ;;  %v5938_v45 = vcombine.low %v140_v19, %v148_v20  ;;  %v5953_v46 = vcombine.high %v155_v31, %v163_v32  ;;  %v196_v56 = vld [vmem:[#allocation5 + $0x2d8] sm:$0xff]  ;;  %v7478_v57 = vpack.c.bf16 %v62_v44, %v61_v43  ;;  %v73_v43 = vld [vmem:[#allocation2 + $0x80] sm:$0xff]  ;;  %v74_v44 = vld [vmem:[#allocation2 + $0x88] sm:$0xff] }
  0x4f   :  { %v5987_v2 = vcombine.high %v188_v55, %v196_v56  ;;  %v64_v3 = vld [vmem:[#allocation2 + $0x38] sm:$0xff] }
  0x50   :  { %v212_v5 = vld [vmem:[#allocation5 + $0x358] sm:$0xff] }
  0x51   :  { %884 = vmatpush1.bf16.msra.mxu0 %v5980_v51  ;;  %1077 = vmatpush1.bf16.msra.mxu1 %v5982_v52  ;;  %v187_v51 = vld [vmem:[#allocation5 + $0x290] sm:$0xff]  ;;  %v220_v12 = vld [vmem:[#allocation5 + $0x398] sm:$0xff] }
  0x52   :  { %885 = vmatprep.subr.bf16.mxu0 %v5997_v53  ;;  %1078 = vmatprep.subr.bf16.mxu1 %v5999_v54  ;;  %v195_v52 = vld [vmem:[#allocation5 + $0x2d0] sm:$0xff]  ;;  %v5954_v53 = vcombine.low %v156_v36, %v164_v37  ;;  %v5969_v54 = vcombine.high %v171_v41, %v179_v42  ;;  %v228_v13 = vld [vmem:[#allocation5 + $0x3d8] sm:$0xff]  ;;  %v70_v36 = vld [vmem:[#allocation2 + $0x68] sm:$0xff] }
  0x53   :  { %v5985_v1 = vcombine.high %v187_v51, %v195_v52  ;;  %v5984_v6 = vcombine.low %v187_v51, %v195_v52  ;;  %v6019_v21 = vcombine.high %v220_v12, %v228_v13  ;;  %v68_v31 = vld [vmem:[#allocation2 + $0x58] sm:$0xff]  ;;  %v79_v52 = vld [vmem:[#allocation2 + $0xb0] sm:$0xff] }
  0x54   :  { %v76_v47 = vld [vmem:[#allocation2 + $0x98] sm:$0xff] }
  0x55   :  { %886 = vmatpush1.bf16.msra.mxu0 %v5996_v59  ;;  %1079 = vmatpush1.bf16.msra.mxu1 %v5998_v60  ;;  %v5968_v59 = vcombine.low %v171_v41, %v179_v42  ;;  %v203_v60 = vld [vmem:[#allocation5 + $0x310] sm:$0xff]  ;;  %v72_v41 = vld [vmem:[#allocation2 + $0x78] sm:$0xff] }
  0x56   :  { %887 = vmatprep.subr.bf16.mxu0 %v6013_v61  ;;  %1080 = vmatprep.subr.bf16.mxu1 %v6015_v62  ;;  %v211_v61 = vld [vmem:[#allocation5 + $0x350] sm:$0xff] }
  0x57   :  { %v63_v62 = vld [vmem:[#allocation2 + $0x30] sm:$0xff]  ;;  %v6001_v10 = vcombine.high %v203_v60, %v211_v61  ;;  %v6000_v16 = vcombine.low %v203_v60, %v211_v61  ;;  %v84_v60 = vld [vmem:[#allocation2 + $0xd8] sm:$0xff] }
  0x58   :  { %v7484_v14 = vpack.c.bf16 %v64_v3, %v63_v62  ;;  %v85_v62 = vld [vmem:[#allocation2 + $0xe0] sm:$0xff]  ;;  %v88_v3 = vld [vmem:[#allocation2 + $0xf8] sm:$0xff] }
  0x59   :  { %888 = vmatpush1.bf16.msra.mxu0 %v6012_v4  ;;  %1081 = vmatpush1.bf16.msra.mxu1 %v6014_v7  ;;  %v204_v4 = vld [vmem:[#allocation5 + $0x318] sm:$0xff]  ;;  %v219_v7 = vld [vmem:[#allocation5 + $0x390] sm:$0xff] }
  0x5a   :  { %1259 = vmatprep.subr.bf16.mxu0 %v5905_v8  ;;  %1452 = vmatprep.subr.bf16.mxu1 %v5907_v9  ;;  %v227_v8 = vld [vmem:[#allocation5 + $0x3d0] sm:$0xff]  ;;  %v5986_v9 = vcombine.low %v188_v55, %v196_v56  ;;  %v6002_v19 = vcombine.low %v204_v4, %v212_v5  ;;  %v81_v55 = vld [vmem:[#allocation2 + $0xc0] sm:$0xff]  ;;  %v82_v56 = vld [vmem:[#allocation2 + $0xc8] sm:$0xff] }
  0x5b   :  { %v6017_v20 = vcombine.high %v219_v7, %v227_v8  ;;  %v6016_v22 = vcombine.low %v219_v7, %v227_v8  ;;  %v126_v7 = vld [vmem:[#allocation5 + $0xa8] sm:$0xff] }
  0x5c   :  { %906 = vmatmul.mubr.bf16.vlgmr.msra.gmra.mrb[0].mxu0 %v7454_v11  ;;  %1099 = vmatmul.mubr.bf16.vlgmr.msra.gmra.mrb[0].mxu1 %v7454_v11  ;;  %v134_v8 = vld [vmem:[#allocation5 + $0xe8] sm:$0xff] }
  0x5d   :  { %1260 = vmatpush1.bf16.msra.mxu0 %v5904_v15  ;;  %1453 = vmatpush1.bf16.msra.mxu1 %v5906_v18  ;;  %v6003_v15 = vcombine.high %v204_v4, %v212_v5  ;;  %v66_v18 = vld [vmem:[#allocation2 + $0x48] sm:$0xff]  ;;  %v125_v5 = vld [vmem:[#allocation5 + $0xa0] sm:$0xff] }
  0x5e   :  { %915 = vmatprep.mubr.bf16.mxu0 %v9147_v0  ;;  %1108 = vmatprep.mubr.bf16.mxu1 %v9147_v0 }
  0x5f   :  { %1261 = vmatprep.subr.bf16.mxu0 %v5921_v23  ;;  %1454 = vmatprep.subr.bf16.mxu1 %v5923_v24  ;;  %v6018_v23 = vcombine.low %v220_v12, %v228_v13  ;;  %v5909_v24 = vcombine.high %v7458_v26, %v7460_v27  ;;  %v149_v12 = vld [vmem:[#allocation5 + $0x160] sm:$0xff]  ;;  %v5927_v13 = vcombine.high %v126_v7, %v134_v8  ;;  %v7583_v26 = vld [vmem:[#allocation5 + $0x78] sm:$0xff] }
  0x61   :  { %1262 = vmatpush1.bf16.msra.mxu0 %v5920_v25  ;;  %1455 = vmatpush1.bf16.msra.mxu1 %v5922_v29  ;;  %v7492_v25 = vpack.c.bf16 %v66_v18, %v65_v17  ;;  %v5911_v29 = vcombine.high %v7462_v28, %v7467_v34  ;;  %v7571_v18 = vld [vmem:[#allocation5 + $0x30] sm:$0xff]  ;;  %v165_v28 = vld [vmem:[#allocation5 + $0x1e0] sm:$0xff]  ;;  %v158_v34 = vld [vmem:[#allocation5 + $0x1a8] sm:$0xff] }
  0x62   :  { %1263 = vmatprep.subr.bf16.mxu0 %v5937_v30  ;;  %1456 = vmatprep.subr.bf16.mxu1 %v5939_v35  ;;  %v67_v30 = vld [vmem:[#allocation2 + $0x50] sm:$0xff]  ;;  %v69_v35 = vld [vmem:[#allocation2 + $0x60] sm:$0xff] }
  0x63   :  { %v7500_v32 = vpack.c.bf16 %v68_v31, %v67_v30  ;;  %v7506_v37 = vpack.c.bf16 %v70_v36, %v69_v35  ;;  %v173_v36 = vld [vmem:[#allocation5 + $0x220] sm:$0xff] }
  0x64   :  { %916 = vmatmul.mubr.bf16.gmra.mrb[4].mxu0 %v7472_v39  ;;  %1109 = vmatmul.mubr.bf16.gmra.mrb[4].mxu1 %v7472_v39 }
  0x65   :  { %925 = vmatprep.mubr.bf16.mxu0 %v9147_v0  ;;  %1118 = vmatprep.mubr.bf16.mxu1 %v9147_v0 }
  0x66   :  { %1264 = vmatpush1.bf16.msra.mxu0 %v5936_v40  ;;  %1457 = vmatpush1.bf16.msra.mxu1 %v5938_v45  ;;  %v71_v40 = vld [vmem:[#allocation2 + $0x70] sm:$0xff]  ;;  %v7518_v45 = vpack.c.bf16 %v74_v44, %v73_v43  ;;  %v182_v43 = vld [vmem:[#allocation5 + $0x268] sm:$0xff] }
  0x67   :  { %1265 = vmatprep.subr.bf16.mxu0 %v5953_v46  ;;  %1458 = vmatprep.subr.bf16.mxu1 %v5955_v49  ;;  %v7512_v42 = vpack.c.bf16 %v72_v41, %v71_v40  ;;  %v75_v46 = vld [vmem:[#allocation2 + $0x90] sm:$0xff]  ;;  %v77_v49 = vld [vmem:[#allocation2 + $0xa0] sm:$0xff]  ;;  %v174_v41 = vld [vmem:[#allocation5 + $0x228] sm:$0xff] }
  0x68   :  { %v7524_v48 = vpack.c.bf16 %v76_v47, %v75_v46  ;;  %v181_v40 = vld [vmem:[#allocation5 + $0x260] sm:$0xff] }
  0x69   :  { %v5973_v47 = vcombine.high %v173_v36, %v181_v40 }
  0x6a   :  { %1266 = vmatpush1.bf16.msra.mxu0 %v5952_v50  ;;  %1459 = vmatpush1.bf16.msra.mxu1 %v5954_v53  ;;  %v78_v50 = vld [vmem:[#allocation2 + $0xa8] sm:$0xff]  ;;  %v80_v53 = vld [vmem:[#allocation2 + $0xb8] sm:$0xff] }
  0x6b   :  { %1267 = vmatprep.subr.bf16.mxu0 %v5969_v54  ;;  %1460 = vmatprep.subr.bf16.mxu1 %v5971_v58  ;;  %v7530_v51 = vpack.c.bf16 %v78_v50, %v77_v49  ;;  %v7536_v54 = vpack.c.bf16 %v80_v53, %v79_v52  ;;  %v7542_v58 = vpack.c.bf16 %v82_v56, %v81_v55  ;;  %v189_v50 = vld [vmem:[#allocation5 + $0x2a0] sm:$0xff]  ;;  %v190_v53 = vld [vmem:[#allocation5 + $0x2a8] sm:$0xff] }
  0x6c   :  { %926 = vmatmul.mubr.bf16.gmra.mrb[8].mxu0 %v7478_v57  ;;  %1119 = vmatmul.mubr.bf16.gmra.mrb[8].mxu1 %v7478_v57  ;;  %v5975_v49 = vcombine.high %v174_v41, %v182_v43  ;;  %v197_v52 = vld [vmem:[#allocation5 + $0x2e0] sm:$0xff]  ;;  %v198_v55 = vld [vmem:[#allocation5 + $0x2e8] sm:$0xff]  ;;  %v5972_v56 = vcombine.low %v173_v36, %v181_v40 }
  0x6d   :  { %935 = vmatprep.mubr.bf16.mxu0 %v9147_v0  ;;  %1128 = vmatprep.mubr.bf16.mxu1 %v9147_v0 }
  0x6e   :  { %1268 = vmatpush1.bf16.msra.mxu0 %v5968_v59  ;;  %1461 = vmatpush1.bf16.msra.mxu1 %v5970_v63  ;;  %v83_v59 = vld [vmem:[#allocation2 + $0xd0] sm:$0xff]  ;;  %v86_v63 = vld [vmem:[#allocation2 + $0xe8] sm:$0xff] }
  0x6f   :  { %1269 = vmatprep.subr.bf16.mxu0 %v5985_v1  ;;  %1462 = vmatprep.subr.bf16.mxu1 %v5987_v2  ;;  %v7548_v61 = vpack.c.bf16 %v84_v60, %v83_v59  ;;  %v7554_v1 = vpack.c.bf16 %v86_v63, %v85_v62  ;;  %v87_v2 = vld [vmem:[#allocation2 + $0xf0] sm:$0xff]  ;;  %v5974_v59 = vcombine.low %v174_v41, %v182_v43  ;;  %v205_v63 = vld [vmem:[#allocation5 + $0x320] sm:$0xff] }
  0x70   :  { %v7560_v4 = vpack.c.bf16 %v88_v3, %v87_v2  ;;  %v5989_v60 = vcombine.high %v189_v50, %v197_v52  ;;  %v5991_v62 = vcombine.high %v190_v53, %v198_v55  ;;  %v213_v2 = vld [vmem:[#allocation5 + $0x360] sm:$0xff]  ;;  %v206_v3 = vld [vmem:[#allocation5 + $0x328] sm:$0xff] }
  0x72   :  { %1270 = vmatpush1.bf16.msra.mxu0 %v5984_v6  ;;  %1463 = vmatpush1.bf16.msra.mxu1 %v5986_v9  ;;  %v133_v6 = vld [vmem:[#allocation5 + $0xe0] sm:$0xff] }
  0x73   :  { %1271 = vmatprep.subr.bf16.mxu0 %v6001_v10  ;;  %1464 = vmatprep.subr.bf16.mxu1 %v6003_v15  ;;  %v5925_v9 = vcombine.high %v125_v5, %v133_v6  ;;  %v141_v10 = vld [vmem:[#allocation5 + $0x120] sm:$0xff]  ;;  %v142_v15 = vld [vmem:[#allocation5 + $0x128] sm:$0xff]  ;;  %v5924_v17 = vcombine.low %v125_v5, %v133_v6  ;;  %v5988_v6 = vcombine.low %v189_v50, %v197_v52 }
  0x74   :  { %936 = vmatmul.mubr.bf16.gmra.mrb[12].mxu0 %v7484_v14  ;;  %1129 = vmatmul.mubr.bf16.gmra.mrb[12].mxu1 %v7484_v14  ;;  %v214_v5 = vld [vmem:[#allocation5 + $0x368] sm:$0xff] }
  0x75   :  { %945 = vmatprep.mubr.bf16.mxu0 %v9147_v0  ;;  %1138 = vmatprep.mubr.bf16.mxu1 %v9147_v0 }
  0x76   :  { %1272 = vmatpush1.bf16.msra.mxu0 %v6000_v16  ;;  %1465 = vmatpush1.bf16.msra.mxu1 %v6002_v19  ;;  %v150_v16 = vld [vmem:[#allocation5 + $0x168] sm:$0xff]  ;;  %v7573_v19 = vld [vmem:[#allocation5 + $0x70] sm:$0xff] }
  0x77   :  { %1273 = vmatprep.subr.bf16.mxu0 %v6017_v20  ;;  %1466 = vmatprep.subr.bf16.mxu1 %v6019_v21  ;;  %v7575_v20 = vld [vmem:[#allocation5 + $0x38] sm:$0xff]  ;;  %v5926_v21 = vcombine.low %v126_v7, %v134_v8  ;;  %v5943_v27 = vcombine.high %v142_v15, %v150_v16  ;;  %v5942_v30 = vcombine.low %v142_v15, %v150_v16  ;;  %v230_v15 = vld [vmem:[#allocation5 + $0x3e8] sm:$0xff] }
  0x78   :  { %v5990_v7 = vcombine.low %v190_v53, %v198_v55  ;;  %v6005_v8 = vcombine.high %v205_v63, %v213_v2  ;;  %v6004_v16 = vcombine.low %v205_v63, %v213_v2 }
  0x7a   :  { %1274 = vmatpush1.bf16.msra.mxu0 %v6016_v22  ;;  %1467 = vmatpush1.bf16.msra.mxu1 %v6018_v23  ;;  %v5941_v22 = vcombine.high %v141_v10, %v149_v12 }
  0x7b   :  { %1645 = vmatprep.subr.bf16.mxu0 %v5909_v24  ;;  %1838 = vmatprep.subr.bf16.mxu1 %v5911_v29  ;;  %v157_v24 = vld [vmem:[#allocation5 + $0x1a0] sm:$0xff]  ;;  %v5940_v29 = vcombine.low %v141_v10, %v149_v12 }
  0x7c   :  { %946 = vmatmul.mubr.bf16.gmra.mrb[16].mxu0 %v7492_v25  ;;  %1139 = vmatmul.mubr.bf16.gmra.mrb[16].mxu1 %v7492_v25  ;;  %v5957_v31 = vcombine.high %v157_v24, %v165_v28  ;;  %v5956_v44 = vcombine.low %v157_v24, %v165_v28  ;;  %v221_v10 = vld [vmem:[#allocation5 + $0x3a0] sm:$0xff]  ;;  %v5913_v28 = vcombine.high %v7571_v18, %v7573_v19 }
  0x7d   :  { %955 = vmatprep.mubr.bf16.mxu0 %v9147_v0  ;;  %1148 = vmatprep.mubr.bf16.mxu1 %v9147_v0  ;;  %v229_v12 = vld [vmem:[#allocation5 + $0x3e0] sm:$0xff] }
  0x84   :  { %956 = vmatmul.mubr.bf16.gmra.mrb[20].mxu0 %v7500_v32  ;;  %1149 = vmatmul.mubr.bf16.gmra.mrb[20].mxu1 %v7500_v32 }
  0x85   :  { %965 = vmatprep.mubr.bf16.mxu0 %v9147_v0  ;;  %1158 = vmatprep.mubr.bf16.mxu1 %v9147_v0 }
  0x8c   :  { %966 = vmatmul.mubr.bf16.gmra.mrb[24].mxu0 %v7506_v37  ;;  %1159 = vmatmul.mubr.bf16.gmra.mrb[24].mxu1 %v7506_v37 }
  0x8d   :  { %975 = vmatprep.mubr.bf16.mxu0 %v9147_v0  ;;  %1168 = vmatprep.mubr.bf16.mxu1 %v9147_v0 }
  0x94   :  { %976 = vmatmul.mubr.bf16.gmra.mrb[28].mxu0 %v7512_v42  ;;  %1169 = vmatmul.mubr.bf16.gmra.mrb[28].mxu1 %v7512_v42 }
  0x95   :  { %985 = vmatprep.mubr.bf16.mxu0 %v9147_v0  ;;  %1178 = vmatprep.mubr.bf16.mxu1 %v9147_v0 }
  0x9c   :  { %986 = vmatmul.mubr.bf16.gmra.mrb[32].mxu0 %v7518_v45  ;;  %1179 = vmatmul.mubr.bf16.gmra.mrb[32].mxu1 %v7518_v45 }
  0x9d   :  { %995 = vmatprep.mubr.bf16.mxu0 %v9147_v0  ;;  %1188 = vmatprep.mubr.bf16.mxu1 %v9147_v0 }
  0xa4   :  { %996 = vmatmul.mubr.bf16.gmra.mrb[36].mxu0 %v7524_v48  ;;  %1189 = vmatmul.mubr.bf16.gmra.mrb[36].mxu1 %v7524_v48 }
  0xa5   :  { %1005 = vmatprep.mubr.bf16.mxu0 %v9147_v0  ;;  %1198 = vmatprep.mubr.bf16.mxu1 %v9147_v0 }
  0xac   :  { %1006 = vmatmul.mubr.bf16.gmra.mrb[40].mxu0 %v7530_v51  ;;  %1199 = vmatmul.mubr.bf16.gmra.mrb[40].mxu1 %v7530_v51 }
  0xad   :  { %1015 = vmatprep.mubr.bf16.mxu0 %v9147_v0  ;;  %1208 = vmatprep.mubr.bf16.mxu1 %v9147_v0 }
  0xb4   :  { %1016 = vmatmul.mubr.bf16.gmra.mrb[44].mxu0 %v7536_v54  ;;  %1209 = vmatmul.mubr.bf16.gmra.mrb[44].mxu1 %v7536_v54 }
  0xb5   :  { %1025 = vmatprep.mubr.bf16.mxu0 %v9147_v0  ;;  %1218 = vmatprep.mubr.bf16.mxu1 %v9147_v0 }
  0xbc   :  { %1026 = vmatmul.mubr.bf16.gmra.mrb[48].mxu0 %v7542_v58  ;;  %1219 = vmatmul.mubr.bf16.gmra.mrb[48].mxu1 %v7542_v58 }
  0xbd   :  { %1035 = vmatprep.mubr.bf16.mxu0 %v9147_v0  ;;  %1228 = vmatprep.mubr.bf16.mxu1 %v9147_v0 }
  0xc4   :  { %1036 = vmatmul.mubr.bf16.gmra.mrb[52].mxu0 %v7548_v61  ;;  %1229 = vmatmul.mubr.bf16.gmra.mrb[52].mxu1 %v7548_v61 }
  0xc5   :  { %1045 = vmatprep.mubr.bf16.mxu0 %v9147_v0  ;;  %1238 = vmatprep.mubr.bf16.mxu1 %v9147_v0 }
  0xcc   :  { %1046 = vmatmul.mubr.bf16.gmra.mrb[56].mxu0 %v7554_v1  ;;  %1239 = vmatmul.mubr.bf16.gmra.mrb[56].mxu1 %v7554_v1 }
  0xcd   :  { %1055 = vmatprep.mubr.bf16.mxu0 %v9147_v0  ;;  %1248 = vmatprep.mubr.bf16.mxu1 %v9147_v0 }
  0xd4   :  { %1056 = vmatmul.mubr.bf16.gmra.mrb[60].mxu0 %v7560_v4  ;;  %1249 = vmatmul.mubr.bf16.gmra.mrb[60].mxu1 %v7560_v4 }
  0xd5   :  { %1291 = vmatprep.mubr.bf16.mxu0 %v9147_v0  ;;  %1484 = vmatprep.mubr.bf16.mxu1 %v9147_v0 }
  0xdc   :  { %1292 = vmatmul.mubr.bf16.vlgmr.msra.gmra.mrb[64].mxu0 %v7454_v11  ;;  %1485 = vmatmul.mubr.bf16.vlgmr.msra.gmra.mrb[64].mxu1 %v7454_v11 }
  0xdd   :  { %1646 = vmatpush1.bf16.msra.mxu0 %v5908_v33  ;;  %1839 = vmatpush1.bf16.msra.mxu1 %v5910_v38  ;;  %v166_v38 = vld [vmem:[#allocation5 + $0x1e8] sm:$0xff] }
  0xde   :  { %1301 = vmatprep.mubr.bf16.mxu0 %v9147_v0  ;;  %1494 = vmatprep.mubr.bf16.mxu1 %v9147_v0  ;;  %v5959_v35 = vcombine.high %v158_v34, %v166_v38  ;;  %v5958_v46 = vcombine.low %v158_v34, %v166_v38  ;;  %v5915_v34 = vcombine.high %v7575_v20, %v7583_v26 }
  0xdf   :  { %1647 = vmatprep.subr.bf16.mxu0 %v5925_v9  ;;  %1840 = vmatprep.subr.bf16.mxu1 %v5927_v13  ;;  %v6007_v9 = vcombine.high %v206_v3, %v214_v5  ;;  %v222_v13 = vld [vmem:[#allocation5 + $0x3a8] sm:$0xff] }
  0xe0   :  { %v6022_v24 = vcombine.low %v222_v13, %v230_v15 }
  0xe1   :  { %1648 = vmatpush1.bf16.msra.mxu0 %v5924_v17  ;;  %1841 = vmatpush1.bf16.msra.mxu1 %v5926_v21  ;;  %v6006_v17 = vcombine.low %v206_v3, %v214_v5  ;;  %v6021_v21 = vcombine.high %v221_v10, %v229_v12 }
  0xe2   :  { %1649 = vmatprep.subr.bf16.mxu0 %v5941_v22  ;;  %1842 = vmatprep.subr.bf16.mxu1 %v5943_v27  ;;  %v6023_v22 = vcombine.high %v222_v13, %v230_v15  ;;  %v6020_v27 = vcombine.low %v221_v10, %v229_v12 }
  0xe4   :  { %1302 = vmatmul.mubr.bf16.gmra.mrb[68].mxu0 %v7472_v39  ;;  %1495 = vmatmul.mubr.bf16.gmra.mrb[68].mxu1 %v7472_v39 }
  0xe5   :  { %1311 = vmatprep.mubr.bf16.mxu0 %v9147_v0  ;;  %1504 = vmatprep.mubr.bf16.mxu1 %v9147_v0 }
  0xe6   :  { %1650 = vmatpush1.bf16.msra.mxu0 %v5940_v29  ;;  %1843 = vmatpush1.bf16.msra.mxu1 %v5942_v30 }
  0xe7   :  { %1651 = vmatprep.subr.bf16.mxu0 %v5957_v31  ;;  %1844 = vmatprep.subr.bf16.mxu1 %v5959_v35 }
  0xea   :  { %1652 = vmatpush1.bf16.msra.mxu0 %v5956_v44  ;;  %1845 = vmatpush1.bf16.msra.mxu1 %v5958_v46 }
  0xeb   :  { %1653 = vmatprep.subr.bf16.mxu0 %v5973_v47  ;;  %1846 = vmatprep.subr.bf16.mxu1 %v5975_v49 }
  0xec   :  { %1312 = vmatmul.mubr.bf16.gmra.mrb[72].mxu0 %v7478_v57  ;;  %1505 = vmatmul.mubr.bf16.gmra.mrb[72].mxu1 %v7478_v57 }
  0xed   :  { %1321 = vmatprep.mubr.bf16.mxu0 %v9147_v0  ;;  %1514 = vmatprep.mubr.bf16.mxu1 %v9147_v0 }
  0xee   :  { %1654 = vmatpush1.bf16.msra.mxu0 %v5972_v56  ;;  %1847 = vmatpush1.bf16.msra.mxu1 %v5974_v59 }
  0xef   :  { %1655 = vmatprep.subr.bf16.mxu0 %v5989_v60  ;;  %1848 = vmatprep.subr.bf16.mxu1 %v5991_v62 }
  0xf2   :  { %1656 = vmatpush1.bf16.msra.mxu0 %v5988_v6  ;;  %1849 = vmatpush1.bf16.msra.mxu1 %v5990_v7 }
  0xf3   :  { %1657 = vmatprep.subr.bf16.mxu0 %v6005_v8  ;;  %1850 = vmatprep.subr.bf16.mxu1 %v6007_v9 }
  0xf4   :  { %1322 = vmatmul.mubr.bf16.gmra.mrb[76].mxu0 %v7484_v14  ;;  %1515 = vmatmul.mubr.bf16.gmra.mrb[76].mxu1 %v7484_v14 }
  0xf5   :  { %1331 = vmatprep.mubr.bf16.mxu0 %v9147_v0  ;;  %1524 = vmatprep.mubr.bf16.mxu1 %v9147_v0 }
  0xf6   :  { %1658 = vmatpush1.bf16.msra.mxu0 %v6004_v16  ;;  %1851 = vmatpush1.bf16.msra.mxu1 %v6006_v17 }
  0xf7   :  { %1659 = vmatprep.subr.bf16.mxu0 %v6021_v21  ;;  %1852 = vmatprep.subr.bf16.mxu1 %v6023_v22 }
  0xfa   :  { %1660 = vmatpush1.bf16.msra.mxu0 %v6020_v27  ;;  %1853 = vmatpush1.bf16.msra.mxu1 %v6022_v24 }
  0xfb   :  { %2031 = vmatprep.subr.bf16.mxu0 %v5913_v28  ;;  %2224 = vmatprep.subr.bf16.mxu1 %v5915_v34 }
  0xfc   :  { %1332 = vmatmul.mubr.bf16.gmra.mrb[80].mxu0 %v7492_v25  ;;  %1525 = vmatmul.mubr.bf16.gmra.mrb[80].mxu1 %v7492_v25 }
  0xfd   :  { %1341 = vmatprep.mubr.bf16.mxu0 %v9147_v0  ;;  %1534 = vmatprep.mubr.bf16.mxu1 %v9147_v0 }
 0x104   :  { %1342 = vmatmul.mubr.bf16.gmra.mrb[84].mxu0 %v7500_v32  ;;  %1535 = vmatmul.mubr.bf16.gmra.mrb[84].mxu1 %v7500_v32 }
 0x105   :  { %1351 = vmatprep.mubr.bf16.mxu0 %v9147_v0  ;;  %1544 = vmatprep.mubr.bf16.mxu1 %v9147_v0 }
 0x10c   :  { %1352 = vmatmul.mubr.bf16.gmra.mrb[88].mxu0 %v7506_v37  ;;  %1545 = vmatmul.mubr.bf16.gmra.mrb[88].mxu1 %v7506_v37 }
 0x10d   :  { %1361 = vmatprep.mubr.bf16.mxu0 %v9147_v0  ;;  %1554 = vmatprep.mubr.bf16.mxu1 %v9147_v0 }
 0x114   :  { %1362 = vmatmul.mubr.bf16.gmra.mrb[92].mxu0 %v7512_v42  ;;  %1555 = vmatmul.mubr.bf16.gmra.mrb[92].mxu1 %v7512_v42 }
 0x115   :  { %1371 = vmatprep.mubr.bf16.mxu0 %v9147_v0  ;;  %1564 = vmatprep.mubr.bf16.mxu1 %v9147_v0 }
 0x11c   :  { %1372 = vmatmul.mubr.bf16.gmra.mrb[96].mxu0 %v7518_v45  ;;  %1565 = vmatmul.mubr.bf16.gmra.mrb[96].mxu1 %v7518_v45 }
 0x11d   :  { %1381 = vmatprep.mubr.bf16.mxu0 %v9147_v0  ;;  %1574 = vmatprep.mubr.bf16.mxu1 %v9147_v0 }
 0x124   :  { %1382 = vmatmul.mubr.bf16.gmra.mrb[100].mxu0 %v7524_v48  ;;  %1575 = vmatmul.mubr.bf16.gmra.mrb[100].mxu1 %v7524_v48 }
 0x125   :  { %1391 = vmatprep.mubr.bf16.mxu0 %v9147_v0  ;;  %1584 = vmatprep.mubr.bf16.mxu1 %v9147_v0 }
 0x12c   :  { %1392 = vmatmul.mubr.bf16.gmra.mrb[104].mxu0 %v7530_v51  ;;  %1585 = vmatmul.mubr.bf16.gmra.mrb[104].mxu1 %v7530_v51 }
 0x12d   :  { %1401 = vmatprep.mubr.bf16.mxu0 %v9147_v0  ;;  %1594 = vmatprep.mubr.bf16.mxu1 %v9147_v0 }
 0x12f   :  { %v907_v38 = vpop.f32.mrb[0].mxu0  ;;  %v1100_v29 = vpop.f32.mrb[0].mxu1 }
 0x130   :  { %v909_v30 = vpop.f32.mrb[1].mxu0  ;;  %v2419_v31 = vmax.f32 %v1100_v29, 0.0  ;;  %v1102_v35 = vpop.f32.mrb[1].mxu1  ;;  %v2417_v40 = vmax.f32 %v907_v38, 0.0 }
 0x131   :  { %v911_v36 = vpop.f32.mrb[2].mxu0  ;;  %v2420_v41 = vmax.f32 %v1102_v35, 0.0  ;;  %v1104_v44 = vpop.f32.mrb[2].mxu1  ;;  %v2418_v47 = vmax.f32 %v909_v30, 0.0 }
 0x132   :  { %v2433_v43 = vmax.f32 %v911_v36, 0.0  ;;  %v913_v46 = vpop.f32.mrb[3].mxu0  ;;  %v2435_v49 = vmax.f32 %v1104_v44, 0.0  ;;  %v1106_v52 = vpop.f32.mrb[3].mxu1 }
 0x133   :  { %v2434_v50 = vmax.f32 %v913_v46, 0.0  ;;  %v2436_v55 = vmax.f32 %v1106_v52, 0.0 }
 0x134   :  { %v7632_v53 = vpack.c.bf16 %v2433_v43, %v2417_v40  ;;  %1402 = vmatmul.mubr.bf16.gmra.mrb[108].mxu0 %v7536_v54  ;;  %v7635_v56 = vpack.c.bf16 %v2435_v49, %v2419_v31  ;;  %1595 = vmatmul.mubr.bf16.gmra.mrb[108].mxu1 %v7536_v54 }
 0x135   :  { %1411 = vmatprep.mubr.bf16.mxu0 %v9147_v0  ;;  %v7639_v59 = vpack.c.bf16 %v2434_v50, %v2418_v47  ;;  %1604 = vmatprep.mubr.bf16.mxu1 %v9147_v0  ;;  %v7642_v60 = vpack.c.bf16 %v2436_v55, %v2420_v41 }
 0x137   :  { %v917_v62 = vpop.f32.mrb[4].mxu0  ;;  %v1110_v63 = vpop.f32.mrb[4].mxu1 }
 0x138   :  { %v919_v2 = vpop.f32.mrb[5].mxu0  ;;  %v2451_v3 = vmax.f32 %v1110_v63, 0.0  ;;  %v1112_v5 = vpop.f32.mrb[5].mxu1  ;;  %v2449_v7 = vmax.f32 %v917_v62, 0.0 }
 0x139   :  { %v921_v6 = vpop.f32.mrb[6].mxu0  ;;  %v2452_v8 = vmax.f32 %v1112_v5, 0.0  ;;  %v1114_v10 = vpop.f32.mrb[6].mxu1  ;;  %v2450_v13 = vmax.f32 %v919_v2, 0.0 }
 0x13a   :  { %v2465_v9 = vmax.f32 %v921_v6, 0.0  ;;  %v923_v12 = vpop.f32.mrb[7].mxu0  ;;  %v2467_v15 = vmax.f32 %v1114_v10, 0.0  ;;  %v1116_v17 = vpop.f32.mrb[7].mxu1 }
 0x13b   :  { %v2466_v16 = vmax.f32 %v923_v12, 0.0  ;;  %v2468_v22 = vmax.f32 %v1116_v17, 0.0 }
 0x13c   :  { %v7644_v21 = vpack.c.bf16 %v2465_v9, %v2449_v7  ;;  %1412 = vmatmul.mubr.bf16.gmra.mrb[112].mxu0 %v7542_v58  ;;  %v7647_v27 = vpack.c.bf16 %v2467_v15, %v2451_v3  ;;  %1605 = vmatmul.mubr.bf16.gmra.mrb[112].mxu1 %v7542_v58 }
 0x13d   :  { %1421 = vmatprep.mubr.bf16.mxu0 %v9147_v0  ;;  %v7651_v24 = vpack.c.bf16 %v2466_v16, %v2450_v13  ;;  %1614 = vmatprep.mubr.bf16.mxu1 %v9147_v0  ;;  %v7654_v28 = vpack.c.bf16 %v2468_v22, %v2452_v8 }
 0x13f   :  { %v927_v34 = vpop.f32.mrb[8].mxu0  ;;  %v1120_v38 = vpop.f32.mrb[8].mxu1 }
 0x140   :  { %v929_v29 = vpop.f32.mrb[9].mxu0  ;;  %v2483_v30 = vmax.f32 %v1120_v38, 0.0  ;;  %v1122_v31 = vpop.f32.mrb[9].mxu1  ;;  %v2481_v36 = vmax.f32 %v927_v34, 0.0 }
 0x141   :  { %v931_v35 = vpop.f32.mrb[10].mxu0  ;;  %v2484_v40 = vmax.f32 %v1122_v31, 0.0  ;;  %v1124_v43 = vpop.f32.mrb[10].mxu1  ;;  %v2482_v46 = vmax.f32 %v929_v29, 0.0 }
 0x142   :  { %v2497_v41 = vmax.f32 %v931_v35, 0.0  ;;  %v933_v44 = vpop.f32.mrb[11].mxu0  ;;  %v2499_v47 = vmax.f32 %v1124_v43, 0.0  ;;  %v1126_v50 = vpop.f32.mrb[11].mxu1 }
 0x143   :  { %v2498_v49 = vmax.f32 %v933_v44, 0.0  ;;  %v2500_v55 = vmax.f32 %v1126_v50, 0.0 }
 0x144   :  { %v7656_v52 = vpack.c.bf16 %v2497_v41, %v2481_v36  ;;  %1422 = vmatmul.mubr.bf16.gmra.mrb[116].mxu0 %v7548_v61  ;;  %v7659_v62 = vpack.c.bf16 %v2499_v47, %v2483_v30  ;;  %1615 = vmatmul.mubr.bf16.gmra.mrb[116].mxu1 %v7548_v61 }
 0x145   :  { %1431 = vmatprep.mubr.bf16.mxu0 %v9147_v0  ;;  %v7663_v63 = vpack.c.bf16 %v2498_v49, %v2482_v46  ;;  %1624 = vmatprep.mubr.bf16.mxu1 %v9147_v0  ;;  %v7666_v2 = vpack.c.bf16 %v2500_v55, %v2484_v40 }
 0x147   :  { %v937_v3 = vpop.f32.mrb[12].mxu0  ;;  %v1130_v5 = vpop.f32.mrb[12].mxu1 }
 0x148   :  { %v939_v6 = vpop.f32.mrb[13].mxu0  ;;  %v2515_v7 = vmax.f32 %v1130_v5, 0.0  ;;  %v1132_v8 = vpop.f32.mrb[13].mxu1  ;;  %v2513_v10 = vmax.f32 %v937_v3, 0.0 }
 0x149   :  { %v941_v9 = vpop.f32.mrb[14].mxu0  ;;  %v2516_v12 = vmax.f32 %v1132_v8, 0.0  ;;  %v1134_v15 = vpop.f32.mrb[14].mxu1  ;;  %v2514_v17 = vmax.f32 %v939_v6, 0.0 }
 0x14a   :  { %v2529_v13 = vmax.f32 %v941_v9, 0.0  ;;  %v943_v16 = vpop.f32.mrb[15].mxu0  ;;  %v2531_v22 = vmax.f32 %v1134_v15, 0.0  ;;  %v1136_v38 = vpop.f32.mrb[15].mxu1 }
 0x14b   :  { %v2530_v34 = vmax.f32 %v943_v16, 0.0  ;;  %v2532_v30 = vmax.f32 %v1136_v38, 0.0  ;;  %v127_v38 = vld [vmem:[#allocation5 + $0xb0] sm:$0xff] }
 0x14c   :  { %v7668_v29 = vpack.c.bf16 %v2529_v13, %v2513_v10  ;;  %1432 = vmatmul.mubr.bf16.gmra.mrb[120].mxu0 %v7554_v1  ;;  %v7671_v31 = vpack.c.bf16 %v2531_v22, %v2515_v7  ;;  %1625 = vmatmul.mubr.bf16.gmra.mrb[120].mxu1 %v7554_v1 }
 0x14d   :  { %1441 = vmatprep.mubr.bf16.mxu0 %v9147_v0  ;;  %v7675_v35 = vpack.c.bf16 %v2530_v34, %v2514_v17  ;;  %1634 = vmatprep.mubr.bf16.mxu1 %v9147_v0  ;;  %v7678_v36 = vpack.c.bf16 %v2532_v30, %v2516_v12  ;;  %v135_v30 = vld [vmem:[#allocation5 + $0xf0] sm:$0xff] }
 0x14f   :  { %v947_v40 = vpop.f32.mrb[16].mxu0  ;;  %v1140_v41 = vpop.f32.mrb[16].mxu1 }
 0x150   :  { %v949_v43 = vpop.f32.mrb[17].mxu0  ;;  %v2547_v44 = vmax.f32 %v1140_v41, 0.0  ;;  %v1142_v46 = vpop.f32.mrb[17].mxu1  ;;  %v2545_v49 = vmax.f32 %v947_v40, 0.0 }
 0x151   :  { %v951_v47 = vpop.f32.mrb[18].mxu0  ;;  %v2548_v50 = vmax.f32 %v1142_v46, 0.0  ;;  %v1144_v3 = vpop.f32.mrb[18].mxu1  ;;  %v2546_v6 = vmax.f32 %v949_v43, 0.0  ;;  %v136_v46 = vld [vmem:[#allocation5 + $0xf8] sm:$0xff] }
 0x152   :  { %v2561_v55 = vmax.f32 %v951_v47, 0.0  ;;  %v953_v5 = vpop.f32.mrb[19].mxu0  ;;  %v2563_v7 = vmax.f32 %v1144_v3, 0.0  ;;  %v1146_v9 = vpop.f32.mrb[19].mxu1 }
 0x153   :  { %v2562_v8 = vmax.f32 %v953_v5, 0.0  ;;  %v2564_v13 = vmax.f32 %v1146_v9, 0.0  ;;  %v5929_v9 = vcombine.high %v127_v38, %v135_v30 }
 0x154   :  { %v7680_v10 = vpack.c.bf16 %v2561_v55, %v2545_v49  ;;  %1442 = vmatmul.mubr.bf16.gmra.mrb[124].mxu0 %v7560_v4  ;;  %v7683_v12 = vpack.c.bf16 %v2563_v7, %v2547_v44  ;;  %1635 = vmatmul.mubr.bf16.gmra.mrb[124].mxu1 %v7560_v4  ;;  %v128_v44 = vld [vmem:[#allocation5 + $0xb8] sm:$0xff] }
 0x155   :  { %1677 = vmatprep.mubr.bf16.mxu0 %v9147_v0  ;;  %v7687_v15 = vpack.c.bf16 %v2562_v8, %v2546_v6  ;;  %1870 = vmatprep.mubr.bf16.mxu1 %v9147_v0  ;;  %v7690_v16 = vpack.c.bf16 %v2564_v13, %v2548_v50  ;;  %v143_v13 = vld [vmem:[#allocation5 + $0x130] sm:$0xff] }
 0x156   :  { %9149 = vst [vmem:[#allocation12_spill] sm:$0xff] %v7680_v10  ;;  %9150 = vst [vmem:[#allocation13_spill] sm:$0xff] %v7683_v12  ;;  %v151_v0 = vld [vmem:[#allocation5 + $0x170] sm:$0xff]  ;;  %v144_v12 = vld [vmem:[#allocation5 + $0x138] sm:$0xff] }
 0x157   :  { %9151 = vst [vmem:[#allocation14_spill] sm:$0xff] %v7687_v15  ;;  %9152 = vst [vmem:[#allocation15_spill] sm:$0xff] %v7690_v16  ;;  %v957_v17 = vpop.f32.mrb[20].mxu0  ;;  %v1150_v22 = vpop.f32.mrb[20].mxu1  ;;  %v152_v10 = vld [vmem:[#allocation5 + $0x178] sm:$0xff] }
 0x158   :  { %v959_v34 = vpop.f32.mrb[21].mxu0  ;;  %v2579_v40 = vmax.f32 %v1150_v22, 0.0  ;;  %v1152_v41 = vpop.f32.mrb[21].mxu1  ;;  %v2577_v47 = vmax.f32 %v957_v17, 0.0  ;;  %v5931_v22 = vcombine.high %v128_v44, %v136_v46 }
 0x159   :  { %v961_v43 = vpop.f32.mrb[22].mxu0  ;;  %v2580_v49 = vmax.f32 %v1152_v41, 0.0  ;;  %v1154_v3 = vpop.f32.mrb[22].mxu1  ;;  %v2578_v6 = vmax.f32 %v959_v34, 0.0  ;;  %v9155_v34 = vcombine.low %v7571_v18, %v7573_v19  ;;  %v5928_v41 = vcombine.low %v127_v38, %v135_v30  ;;  %v159_v38 = vld [vmem:[#allocation5 + $0x1b0] sm:$0xff] }
 0x15a   :  { %v2593_v55 = vmax.f32 %v961_v43, 0.0  ;;  %v963_v5 = vpop.f32.mrb[23].mxu0  ;;  %v2595_v7 = vmax.f32 %v1154_v3, 0.0  ;;  %v1156_v50 = vpop.f32.mrb[23].mxu1  ;;  %v5930_v3 = vcombine.low %v128_v44, %v136_v46  ;;  %v167_v30 = vld [vmem:[#allocation5 + $0x1f0] sm:$0xff]  ;;  %v168_v44 = vld [vmem:[#allocation5 + $0x1f8] sm:$0xff] }
 0x15b   :  { %v2594_v8 = vmax.f32 %v963_v5, 0.0  ;;  %v2596_v23 = vmax.f32 %v1156_v50, 0.0  ;;  %v5945_v5 = vcombine.high %v143_v13, %v151_v0 }
 0x15c   :  { %v7692_v33 = vpack.c.bf16 %v2593_v55, %v2577_v47  ;;  %1678 = vmatmul.mubr.bf16.vlgmr.msra.gmra.mrb[128].mxu0 %v7454_v11  ;;  %v7695_v17 = vpack.c.bf16 %v2595_v7, %v2579_v40  ;;  %1871 = vmatmul.mubr.bf16.vlgmr.msra.gmra.mrb[128].mxu1 %v7454_v11  ;;  %v9157_v47 = vcombine.low %v7575_v20, %v7583_v26  ;;  %v9158_v55 = vmov 0  }
 0x15d   :  { %2032 = vmatpush1.bf16.msra.mxu0 %v9155_v34  ;;  %v7701_v43 = vpack.c.bf16 %v2594_v8, %v2578_v6  ;;  %1687 = vmatprep.mubr.bf16.mxu0 %v9158_v55  ;;  %v7707_v50 = vpack.c.bf16 %v2596_v23, %v2580_v49  ;;  %v5947_v7 = vcombine.high %v144_v12, %v152_v10  ;;  %v160_v34 = vld [vmem:[#allocation5 + $0x1b8] sm:$0xff] }
 0x15e   :  { %9153 = vst [vmem:[#allocation16_spill] sm:$0xff] %v7692_v33  ;;  %9154 = vst [vmem:[#allocation17_spill] sm:$0xff] %v7695_v17  ;;  %2225 = vmatpush1.bf16.msra.mxu1 %v9157_v47  ;;  %1880 = vmatprep.mubr.bf16.mxu1 %v9158_v55  ;;  %v5944_v26 = vcombine.low %v143_v13, %v151_v0  ;;  %v5963_v0 = vcombine.high %v160_v34, %v168_v44  ;;  %v175_v13 = vld [vmem:[#allocation5 + $0x230] sm:$0xff] }
 0x15f   :  { %9156 = vst [vmem:[#allocation18_spill] sm:$0xff] %v7701_v43  ;;  %9159 = vst [vmem:[#allocation19_spill] sm:$0xff] %v7707_v50  ;;  %v967_v40 = vpop.f32.mrb[24].mxu0  ;;  %2033 = vmatprep.subr.bf16.mxu0 %v5929_v9  ;;  %v1160_v18 = vpop.f32.mrb[24].mxu1  ;;  %2226 = vmatprep.subr.bf16.mxu1 %v5931_v22  ;;  %v5946_v9 = vcombine.low %v144_v12, %v152_v10  ;;  %v176_v10 = vld [vmem:[#allocation5 + $0x238] sm:$0xff] }
 0x160   :  { %v969_v19 = vpop.f32.mrb[25].mxu0  ;;  %v2611_v6 = vmax.f32 %v1160_v18, 0.0  ;;  %v1162_v8 = vpop.f32.mrb[25].mxu1  ;;  %v2609_v46 = vmax.f32 %v967_v40, 0.0  ;;  %v5961_v18 = vcombine.high %v159_v38, %v167_v30  ;;  %v183_v40 = vld [vmem:[#allocation5 + $0x270] sm:$0xff]  ;;  %v184_v12 = vld [vmem:[#allocation5 + $0x278] sm:$0xff] }
 0x161   :  { %v971_v20 = vpop.f32.mrb[26].mxu0  ;;  %2034 = vmatpush1.bf16.msra.mxu0 %v5928_v41  ;;  %v2612_v23 = vmax.f32 %v1162_v8, 0.0  ;;  %v1164_v47 = vpop.f32.mrb[26].mxu1  ;;  %v2610_v33 = vmax.f32 %v969_v19, 0.0 }
 0x162   :  { %v2625_v49 = vmax.f32 %v971_v20, 0.0  ;;  %v973_v17 = vpop.f32.mrb[27].mxu0  ;;  %2227 = vmatpush1.bf16.msra.mxu1 %v5930_v3  ;;  %2035 = vmatprep.subr.bf16.mxu0 %v5945_v5  ;;  %v2627_v50 = vmax.f32 %v1164_v47, 0.0  ;;  %v1166_v43 = vpop.f32.mrb[27].mxu1  ;;  %v5960_v3 = vcombine.low %v159_v38, %v167_v30  ;;  %v5979_v20 = vcombine.high %v176_v10, %v184_v12 }
 0x163   :  { %v2626_v22 = vmax.f32 %v973_v17, 0.0  ;;  %2228 = vmatprep.subr.bf16.mxu1 %v5947_v7  ;;  %v2628_v41 = vmax.f32 %v1166_v43, 0.0  ;;  %v5962_v7 = vcombine.low %v160_v34, %v168_v44  ;;  %v5978_v34 = vcombine.low %v176_v10, %v184_v12  ;;  %v208_v10 = vld [vmem:[#allocation5 + $0x338] sm:$0xff] }
 0x164   :  { %v7710_v16 = vpack.c.bf16 %v2625_v49, %v2609_v46  ;;  %1688 = vmatmul.mubr.bf16.gmra.mrb[132].mxu0 %v7472_v39  ;;  %v7713_v8 = vpack.c.bf16 %v2627_v50, %v2611_v6  ;;  %1881 = vmatmul.mubr.bf16.gmra.mrb[132].mxu1 %v7472_v39  ;;  %v5977_v50 = vcombine.high %v175_v13, %v183_v40  ;;  %v191_v46 = vld [vmem:[#allocation5 + $0x2b0] sm:$0xff]  ;;  %v216_v12 = vld [vmem:[#allocation5 + $0x378] sm:$0xff] }
 0x165   :  { %1697 = vmatprep.mubr.bf16.mxu0 %v9158_v55  ;;  %v7717_v17 = vpack.c.bf16 %v2626_v22, %v2610_v33  ;;  %1890 = vmatprep.mubr.bf16.mxu1 %v9158_v55  ;;  %v7720_v43 = vpack.c.bf16 %v2628_v41, %v2612_v23  ;;  %v199_v49 = vld [vmem:[#allocation5 + $0x2f0] sm:$0xff] }
 0x166   :  { %9160 = vst [vmem:[#allocation20_spill] sm:$0xff] %v7710_v16  ;;  %9161 = vst [vmem:[#allocation21_spill] sm:$0xff] %v7713_v8  ;;  %2036 = vmatpush1.bf16.msra.mxu0 %v5944_v26  ;;  %2229 = vmatpush1.bf16.msra.mxu1 %v5946_v9  ;;  %v5976_v8 = vcombine.low %v175_v13, %v183_v40  ;;  %v192_v16 = vld [vmem:[#allocation5 + $0x2b8] sm:$0xff]  ;;  %v207_v40 = vld [vmem:[#allocation5 + $0x330] sm:$0xff] }
 0x167   :  { %9162 = vst [vmem:[#allocation22_spill] sm:$0xff] %v7717_v17  ;;  %9163 = vst [vmem:[#allocation23_spill] sm:$0xff] %v7720_v43  ;;  %v977_v5 = vpop.f32.mrb[28].mxu0  ;;  %2037 = vmatprep.subr.bf16.mxu0 %v5961_v18  ;;  %v1170_v19 = vpop.f32.mrb[28].mxu1  ;;  %2230 = vmatprep.subr.bf16.mxu1 %v5963_v0  ;;  %v200_v26 = vld [vmem:[#allocation5 + $0x2f8] sm:$0xff]  ;;  %v5993_v17 = vcombine.high %v191_v46, %v199_v49 }
 0x168   :  { %v979_v6 = vpop.f32.mrb[29].mxu0  ;;  %v2643_v47 = vmax.f32 %v1170_v19, 0.0  ;;  %v1172_v33 = vpop.f32.mrb[29].mxu1  ;;  %v2641_v38 = vmax.f32 %v977_v5, 0.0  ;;  %v5995_v13 = vcombine.high %v192_v16, %v200_v26  ;;  %v215_v5 = vld [vmem:[#allocation5 + $0x370] sm:$0xff] }
 0x169   :  { %v981_v22 = vpop.f32.mrb[30].mxu0  ;;  %v2644_v30 = vmax.f32 %v1172_v33, 0.0  ;;  %v1174_v41 = vpop.f32.mrb[30].mxu1  ;;  %v2642_v44 = vmax.f32 %v979_v6, 0.0 }
 0x16a   :  { %v2657_v23 = vmax.f32 %v981_v22, 0.0  ;;  %v983_v9 = vpop.f32.mrb[31].mxu0  ;;  %2038 = vmatpush1.bf16.msra.mxu0 %v5960_v3  ;;  %v2659_v18 = vmax.f32 %v1174_v41, 0.0  ;;  %v1176_v0 = vpop.f32.mrb[31].mxu1  ;;  %2231 = vmatpush1.bf16.msra.mxu1 %v5962_v7  ;;  %v5992_v7 = vcombine.low %v191_v46, %v199_v49  ;;  %v223_v41 = vld [vmem:[#allocation5 + $0x3b0] sm:$0xff] }
 0x16b   :  { %v2658_v43 = vmax.f32 %v983_v9, 0.0  ;;  %2039 = vmatprep.subr.bf16.mxu0 %v5977_v50  ;;  %v2660_v15 = vmax.f32 %v1176_v0, 0.0  ;;  %2232 = vmatprep.subr.bf16.mxu1 %v5979_v20  ;;  %v5994_v20 = vcombine.low %v192_v16, %v200_v26  ;;  %v231_v9 = vld [vmem:[#allocation5 + $0x3f0] sm:$0xff]  ;;  %v6008_v0 = vcombine.low %v207_v40, %v215_v5 }
 0x16c   :  { %v7722_v19 = vpack.c.bf16 %v2657_v23, %v2641_v38  ;;  %1698 = vmatmul.mubr.bf16.gmra.mrb[136].mxu0 %v7478_v57  ;;  %v7725_v33 = vpack.c.bf16 %v2659_v18, %v2643_v47  ;;  %1891 = vmatmul.mubr.bf16.gmra.mrb[136].mxu1 %v7478_v57  ;;  %v6009_v47 = vcombine.high %v207_v40, %v215_v5 }
 0x16d   :  { %1707 = vmatprep.mubr.bf16.mxu0 %v9158_v55  ;;  %v7729_v3 = vpack.c.bf16 %v2658_v43, %v2642_v44  ;;  %1900 = vmatprep.mubr.bf16.mxu1 %v9158_v55  ;;  %v7732_v50 = vpack.c.bf16 %v2660_v15, %v2644_v30  ;;  %v6011_v23 = vcombine.high %v208_v10, %v216_v12 }
 0x16e   :  { %9164 = vst [vmem:[#allocation24_spill] sm:$0xff] %v7722_v19  ;;  %9165 = vst [vmem:[#allocation25_spill] sm:$0xff] %v7725_v33  ;;  %2040 = vmatpush1.bf16.msra.mxu0 %v5976_v8  ;;  %2233 = vmatpush1.bf16.msra.mxu1 %v5978_v34  ;;  %v224_v33 = vld [vmem:[#allocation5 + $0x3b8] sm:$0xff]  ;;  %v6010_v16 = vcombine.low %v208_v10, %v216_v12  ;;  %v6024_v12 = vcombine.low %v223_v41, %v231_v9 }
 0x16f   :  { %9166 = vst [vmem:[#allocation26_spill] sm:$0xff] %v7729_v3  ;;  %9167 = vst [vmem:[#allocation27_spill] sm:$0xff] %v7732_v50  ;;  %v987_v6 = vpop.f32.mrb[32].mxu0  ;;  %2041 = vmatprep.subr.bf16.mxu0 %v5993_v17  ;;  %v1180_v22 = vpop.f32.mrb[32].mxu1  ;;  %2234 = vmatprep.subr.bf16.mxu1 %v5995_v13  ;;  %v232_v8 = vld [vmem:[#allocation5 + $0x3f8] sm:$0xff]  ;;  %v6025_v50 = vcombine.high %v223_v41, %v231_v9 }
 0x170   :  { %v989_v38 = vpop.f32.mrb[33].mxu0  ;;  %v2675_v18 = vmax.f32 %v1180_v22, 0.0  ;;  %v1182_v43 = vpop.f32.mrb[33].mxu1  ;;  %v2673_v46 = vmax.f32 %v987_v6, 0.0  ;;  %v6027_v40 = vcombine.high %v224_v33, %v232_v8 }
 0x171   :  { %v991_v44 = vpop.f32.mrb[34].mxu0  ;;  %v2676_v15 = vmax.f32 %v1182_v43, 0.0  ;;  %v1184_v30 = vpop.f32.mrb[34].mxu1  ;;  %v2674_v17 = vmax.f32 %v989_v38, 0.0 }
 0x172   :  { %v2689_v49 = vmax.f32 %v991_v44, 0.0  ;;  %v993_v34 = vpop.f32.mrb[35].mxu0  ;;  %2042 = vmatpush1.bf16.msra.mxu0 %v5992_v7  ;;  %v2691_v26 = vmax.f32 %v1184_v30, 0.0  ;;  %v1186_v13 = vpop.f32.mrb[35].mxu1  ;;  %2235 = vmatpush1.bf16.msra.mxu1 %v5994_v20  ;;  %v6026_v20 = vcombine.low %v224_v33, %v232_v8 }
 0x173   :  { %v2690_v19 = vmax.f32 %v993_v34, 0.0  ;;  %2043 = vmatprep.subr.bf16.mxu0 %v6009_v47  ;;  %v2692_v3 = vmax.f32 %v1186_v13, 0.0  ;;  %2236 = vmatprep.subr.bf16.mxu1 %v6011_v23  ;;  %v7062_v47 = vld [vmem:[#allocation7 + $0x40] sm:$0xff]  }
 0x174   :  { %v7734_v22 = vpack.c.bf16 %v2689_v49, %v2673_v46  ;;  %1708 = vmatmul.mubr.bf16.gmra.mrb[140].mxu0 %v7484_v14  ;;  %v7737_v5 = vpack.c.bf16 %v2691_v26, %v2675_v18  ;;  %1901 = vmatmul.mubr.bf16.gmra.mrb[140].mxu1 %v7484_v14  ;;  %v7064_v18 = vld [vmem:[#allocation7 + $0xc0] sm:$0xff]  }
 0x175   :  { %1717 = vmatprep.mubr.bf16.mxu0 %v9158_v55  ;;  %v7741_v10 = vpack.c.bf16 %v2690_v19, %v2674_v17  ;;  %1910 = vmatprep.mubr.bf16.mxu1 %v9158_v55  ;;  %v7744_v7 = vpack.c.bf16 %v2692_v3, %v2676_v15 }
 0x176   :  { %2044 = vmatpush1.bf16.msra.mxu0 %v6008_v0  ;;  %2237 = vmatpush1.bf16.msra.mxu1 %v6010_v16 }
 0x177   :  { %v997_v6 = vpop.f32.mrb[36].mxu0  ;;  %2045 = vmatprep.subr.bf16.mxu0 %v6025_v50  ;;  %v1190_v38 = vpop.f32.mrb[36].mxu1  ;;  %2238 = vmatprep.subr.bf16.mxu1 %v6027_v40 }
 0x178   :  { %v999_v23 = vpop.f32.mrb[37].mxu0  ;;  %v2707_v43 = vmax.f32 %v1190_v38, 0.0  ;;  %v1192_v44 = vpop.f32.mrb[37].mxu1  ;;  %v2705_v19 = vmax.f32 %v997_v6, 0.0 }
 0x179   :  { %v1001_v46 = vpop.f32.mrb[38].mxu0  ;;  %v2708_v49 = vmax.f32 %v1192_v44, 0.0  ;;  %v1194_v34 = vpop.f32.mrb[38].mxu1  ;;  %v2706_v3 = vmax.f32 %v999_v23, 0.0 }
 0x17a   :  { %v2721_v30 = vmax.f32 %v1001_v46, 0.0  ;;  %v1003_v0 = vpop.f32.mrb[39].mxu0  ;;  %2046 = vmatpush1.bf16.msra.mxu0 %v6024_v12  ;;  %v2723_v41 = vmax.f32 %v1194_v34, 0.0  ;;  %v1196_v15 = vpop.f32.mrb[39].mxu1  ;;  %2239 = vmatpush1.bf16.msra.mxu1 %v6026_v20 }
 0x17b   :  { %v2722_v9 = vmax.f32 %v1003_v0, 0.0  ;;  %6156 = vmatprep.subr.bf16.mxu0 %v7062_v47  ;;  %v2724_v50 = vmax.f32 %v1196_v15, 0.0  ;;  %6268 = vmatprep.subr.bf16.mxu1 %v7064_v18 }
 0x17c   :  { %v7746_v33 = vpack.c.bf16 %v2721_v30, %v2705_v19  ;;  %1718 = vmatmul.mubr.bf16.gmra.mrb[144].mxu0 %v7492_v25  ;;  %v7749_v8 = vpack.c.bf16 %v2723_v41, %v2707_v43  ;;  %1911 = vmatmul.mubr.bf16.gmra.mrb[144].mxu1 %v7492_v25 }
 0x17d   :  { %1727 = vmatprep.mubr.bf16.mxu0 %v9158_v55  ;;  %v7753_v16 = vpack.c.bf16 %v2722_v9, %v2706_v3  ;;  %1920 = vmatprep.mubr.bf16.mxu1 %v9158_v55  ;;  %v7756_v17 = vpack.c.bf16 %v2724_v50, %v2708_v49 }
 0x17f   :  { %v1007_v26 = vpop.f32.mrb[40].mxu0  ;;  %v1200_v13 = vpop.f32.mrb[40].mxu1 }
 0x180   :  { %v1009_v40 = vpop.f32.mrb[41].mxu0  ;;  %v2739_v12 = vmax.f32 %v1200_v13, 0.0  ;;  %v1202_v6 = vpop.f32.mrb[41].mxu1  ;;  %v2737_v47 = vmax.f32 %v1007_v26, 0.0 }
 0x181   :  { %v1011_v20 = vpop.f32.mrb[42].mxu0  ;;  %v2740_v38 = vmax.f32 %v1202_v6, 0.0  ;;  %v1204_v18 = vpop.f32.mrb[42].mxu1  ;;  %v2738_v44 = vmax.f32 %v1009_v40, 0.0 }
 0x182   :  { %v2753_v23 = vmax.f32 %v1011_v20, 0.0  ;;  %v1013_v43 = vpop.f32.mrb[43].mxu0  ;;  %v2755_v46 = vmax.f32 %v1204_v18, 0.0  ;;  %v1206_v30 = vpop.f32.mrb[43].mxu1 }
 0x183   :  { %v2754_v19 = vmax.f32 %v1013_v43, 0.0  ;;  %v2756_v0 = vmax.f32 %v1206_v30, 0.0 }
 0x184   :  { %v7758_v34 = vpack.c.bf16 %v2753_v23, %v2737_v47  ;;  %1728 = vmatmul.mubr.bf16.gmra.mrb[148].mxu0 %v7500_v32  ;;  %v7761_v49 = vpack.c.bf16 %v2755_v46, %v2739_v12  ;;  %1921 = vmatmul.mubr.bf16.gmra.mrb[148].mxu1 %v7500_v32 }
 0x185   :  { %1737 = vmatprep.mubr.bf16.mxu0 %v9158_v55  ;;  %v7765_v3 = vpack.c.bf16 %v2754_v19, %v2738_v44  ;;  %1930 = vmatprep.mubr.bf16.mxu1 %v9158_v55  ;;  %v7768_v41 = vpack.c.bf16 %v2756_v0, %v2740_v38 }
 0x186   :  { %9168 = vst [vmem:[#allocation28_spill] sm:$0xff] %v7758_v34  ;;  %9169 = vst [vmem:[#allocation29_spill] sm:$0xff] %v7761_v49  ;;  %v7066_v34 = vld [vmem:[#allocation7 + $0x48] sm:$0xff]  }
 0x187   :  { %9170 = vst [vmem:[#allocation30_spill] sm:$0xff] %v7768_v41  ;;  %v1017_v9 = vpop.f32.mrb[44].mxu0  ;;  %v1210_v15 = vpop.f32.mrb[44].mxu1  ;;  %v7074_v41 = vld [vmem:[#allocation7 + $0x58] sm:$0xff]  }
 0x188   :  { %v1019_v50 = vpop.f32.mrb[45].mxu0  ;;  %v2771_v26 = vmax.f32 %v1210_v15, 0.0  ;;  %v1212_v13 = vpop.f32.mrb[45].mxu1  ;;  %v2769_v6 = vmax.f32 %v1017_v9, 0.0 }
 0x189   :  { %v1021_v40 = vpop.f32.mrb[46].mxu0  ;;  %v2772_v20 = vmax.f32 %v1212_v13, 0.0  ;;  %v1214_v47 = vpop.f32.mrb[46].mxu1  ;;  %v2770_v18 = vmax.f32 %v1019_v50, 0.0 }
 0x18a   :  { %v2785_v12 = vmax.f32 %v1021_v40, 0.0  ;;  %v1023_v23 = vpop.f32.mrb[47].mxu0  ;;  %v2787_v43 = vmax.f32 %v1214_v47, 0.0  ;;  %v1216_v44 = vpop.f32.mrb[47].mxu1 }
 0x18b   :  { %v2786_v46 = vmax.f32 %v1023_v23, 0.0  ;;  %v2788_v30 = vmax.f32 %v1216_v44, 0.0 }
 0x18c   :  { %v7770_v19 = vpack.c.bf16 %v2785_v12, %v2769_v6  ;;  %1738 = vmatmul.mubr.bf16.gmra.mrb[152].mxu0 %v7506_v37  ;;  %v7773_v38 = vpack.c.bf16 %v2787_v43, %v2771_v26  ;;  %1931 = vmatmul.mubr.bf16.gmra.mrb[152].mxu1 %v7506_v37 }
 0x18d   :  { %1747 = vmatprep.mubr.bf16.mxu0 %v9158_v55  ;;  %v7777_v0 = vpack.c.bf16 %v2786_v46, %v2770_v18  ;;  %1940 = vmatprep.mubr.bf16.mxu1 %v9158_v55  ;;  %v7780_v9 = vpack.c.bf16 %v2788_v30, %v2772_v20 }
 0x18e   :  { %9171 = vst [vmem:[#allocation31_spill] sm:$0xff] %v7770_v19  ;;  %9172 = vst [vmem:[#allocation32_spill] sm:$0xff] %v7773_v38 }
 0x18f   :  { %9173 = vst [vmem:[#allocation33_spill] sm:$0xff] %v7777_v0  ;;  %9174 = vst [vmem:[#allocation34_spill] sm:$0xff] %v7780_v9  ;;  %v1027_v15 = vpop.f32.mrb[48].mxu0  ;;  %v1220_v50 = vpop.f32.mrb[48].mxu1 }
 0x190   :  { %v1029_v13 = vpop.f32.mrb[49].mxu0  ;;  %v2803_v40 = vmax.f32 %v1220_v50, 0.0  ;;  %v1222_v6 = vpop.f32.mrb[49].mxu1  ;;  %v2801_v47 = vmax.f32 %v1027_v15, 0.0 }
 0x191   :  { %v1031_v12 = vpop.f32.mrb[50].mxu0  ;;  %v2804_v23 = vmax.f32 %v1222_v6, 0.0  ;;  %v1224_v43 = vpop.f32.mrb[50].mxu1  ;;  %v2802_v38 = vmax.f32 %v1029_v13, 0.0 }
 0x192   :  { %v2817_v26 = vmax.f32 %v1031_v12, 0.0  ;;  %v1033_v44 = vpop.f32.mrb[51].mxu0  ;;  %v2819_v19 = vmax.f32 %v1224_v43, 0.0  ;;  %v1226_v18 = vpop.f32.mrb[51].mxu1 }
 0x193   :  { %v2818_v49 = vmax.f32 %v1033_v44, 0.0  ;;  %v2820_v0 = vmax.f32 %v1226_v18, 0.0 }
 0x194   :  { %v7782_v46 = vpack.c.bf16 %v2817_v26, %v2801_v47  ;;  %1748 = vmatmul.mubr.bf16.gmra.mrb[156].mxu0 %v7512_v42  ;;  %v7785_v20 = vpack.c.bf16 %v2819_v19, %v2803_v40  ;;  %1941 = vmatmul.mubr.bf16.gmra.mrb[156].mxu1 %v7512_v42 }
 0x195   :  { %1757 = vmatprep.mubr.bf16.mxu0 %v9158_v55  ;;  %v7789_v30 = vpack.c.bf16 %v2818_v49, %v2802_v38  ;;  %1950 = vmatprep.mubr.bf16.mxu1 %v9158_v55  ;;  %v7792_v15 = vpack.c.bf16 %v2820_v0, %v2804_v23 }
 0x196   :  { %9175 = vst [vmem:[#allocation35_spill] sm:$0xff] %v7782_v46  ;;  %9176 = vst [vmem:[#allocation36_spill] sm:$0xff] %v7785_v20 }
 0x197   :  { %9177 = vst [vmem:[#allocation37_spill] sm:$0xff] %v7789_v30  ;;  %9178 = vst [vmem:[#allocation38_spill] sm:$0xff] %v7792_v15  ;;  %v1037_v50 = vpop.f32.mrb[52].mxu0  ;;  %v1230_v13 = vpop.f32.mrb[52].mxu1 }
 0x198   :  { %v1039_v6 = vpop.f32.mrb[53].mxu0  ;;  %v2835_v12 = vmax.f32 %v1230_v13, 0.0  ;;  %v1232_v47 = vpop.f32.mrb[53].mxu1  ;;  %v2833_v43 = vmax.f32 %v1037_v50, 0.0 }
 0x199   :  { %v1041_v26 = vpop.f32.mrb[54].mxu0  ;;  %v2836_v44 = vmax.f32 %v1232_v47, 0.0  ;;  %v1234_v40 = vpop.f32.mrb[54].mxu1  ;;  %v2834_v20 = vmax.f32 %v1039_v6, 0.0 }
 0x19a   :  { %v2849_v19 = vmax.f32 %v1041_v26, 0.0  ;;  %v1043_v18 = vpop.f32.mrb[55].mxu0  ;;  %v2851_v46 = vmax.f32 %v1234_v40, 0.0  ;;  %v1236_v49 = vpop.f32.mrb[55].mxu1 }
 0x19b   :  { %v2850_v9 = vmax.f32 %v1043_v18, 0.0  ;;  %v2852_v30 = vmax.f32 %v1236_v49, 0.0 }
 0x19c   :  { %v7794_v38 = vpack.c.bf16 %v2849_v19, %v2833_v43  ;;  %1758 = vmatmul.mubr.bf16.gmra.mrb[160].mxu0 %v7518_v45  ;;  %v7797_v0 = vpack.c.bf16 %v2851_v46, %v2835_v12  ;;  %1951 = vmatmul.mubr.bf16.gmra.mrb[160].mxu1 %v7518_v45 }
 0x19d   :  { %1767 = vmatprep.mubr.bf16.mxu0 %v9158_v55  ;;  %v7801_v23 = vpack.c.bf16 %v2850_v9, %v2834_v20  ;;  %1960 = vmatprep.mubr.bf16.mxu1 %v9158_v55  ;;  %v7804_v50 = vpack.c.bf16 %v2852_v30, %v2836_v44 }
 0x19e   :  { %9179 = vst [vmem:[#allocation39_spill] sm:$0xff] %v7794_v38  ;;  %9180 = vst [vmem:[#allocation40_spill] sm:$0xff] %v7797_v0 }
 0x19f   :  { %9181 = vst [vmem:[#allocation41_spill] sm:$0xff] %v7801_v23  ;;  %9182 = vst [vmem:[#allocation42_spill] sm:$0xff] %v7804_v50  ;;  %v1047_v13 = vpop.f32.mrb[56].mxu0  ;;  %v1240_v6 = vpop.f32.mrb[56].mxu1 }
 0x1a0   :  { %v1049_v47 = vpop.f32.mrb[57].mxu0  ;;  %v2867_v26 = vmax.f32 %v1240_v6, 0.0  ;;  %v1242_v43 = vpop.f32.mrb[57].mxu1  ;;  %v2865_v40 = vmax.f32 %v1047_v13, 0.0 }
 0x1a1   :  { %v1051_v19 = vpop.f32.mrb[58].mxu0  ;;  %v2868_v18 = vmax.f32 %v1242_v43, 0.0  ;;  %v1244_v12 = vpop.f32.mrb[58].mxu1  ;;  %v2866_v0 = vmax.f32 %v1049_v47, 0.0 }
 0x1a2   :  { %v2881_v46 = vmax.f32 %v1051_v19, 0.0  ;;  %v1053_v49 = vpop.f32.mrb[59].mxu0  ;;  %v2883_v38 = vmax.f32 %v1244_v12, 0.0  ;;  %v1246_v9 = vpop.f32.mrb[59].mxu1 }
 0x1a3   :  { %v2882_v15 = vmax.f32 %v1053_v49, 0.0  ;;  %v2884_v23 = vmax.f32 %v1246_v9, 0.0 }
 0x1a4   :  { %v7806_v20 = vpack.c.bf16 %v2881_v46, %v2865_v40  ;;  %1768 = vmatmul.mubr.bf16.gmra.mrb[164].mxu0 %v7524_v48  ;;  %v7809_v30 = vpack.c.bf16 %v2883_v38, %v2867_v26  ;;  %1961 = vmatmul.mubr.bf16.gmra.mrb[164].mxu1 %v7524_v48 }
 0x1a5   :  { %1777 = vmatprep.mubr.bf16.mxu0 %v9158_v55  ;;  %v7813_v44 = vpack.c.bf16 %v2882_v15, %v2866_v0  ;;  %1970 = vmatprep.mubr.bf16.mxu1 %v9158_v55  ;;  %v7816_v13 = vpack.c.bf16 %v2884_v23, %v2868_v18 }
 0x1a6   :  { %9183 = vst [vmem:[#allocation43_spill] sm:$0xff] %v7806_v20  ;;  %9184 = vst [vmem:[#allocation44_spill] sm:$0xff] %v7809_v30 }
 0x1a7   :  { %9185 = vst [vmem:[#allocation45_spill] sm:$0xff] %v7813_v44  ;;  %9186 = vst [vmem:[#allocation46_spill] sm:$0xff] %v7816_v13  ;;  %v1057_v6 = vpop.f32.mrb[60].mxu0  ;;  %v1250_v47 = vpop.f32.mrb[60].mxu1 }
 0x1a8   :  { %v1059_v43 = vpop.f32.mrb[61].mxu0  ;;  %v2899_v19 = vmax.f32 %v1250_v47, 0.0  ;;  %v1252_v40 = vpop.f32.mrb[61].mxu1  ;;  %v2897_v12 = vmax.f32 %v1057_v6, 0.0 }
 0x1a9   :  { %v1061_v46 = vpop.f32.mrb[62].mxu0  ;;  %v2900_v49 = vmax.f32 %v1252_v40, 0.0  ;;  %v1254_v26 = vpop.f32.mrb[62].mxu1  ;;  %v2898_v30 = vmax.f32 %v1059_v43, 0.0 }
 0x1aa   :  { %v2913_v38 = vmax.f32 %v1061_v46, 0.0  ;;  %v1063_v9 = vpop.f32.mrb[63].mxu0  ;;  %v2915_v20 = vmax.f32 %v1254_v26, 0.0  ;;  %v1256_v15 = vpop.f32.mrb[63].mxu1 }
 0x1ab   :  { %v2914_v50 = vmax.f32 %v1063_v9, 0.0  ;;  %v2916_v44 = vmax.f32 %v1256_v15, 0.0 }
 0x1ac   :  { %v7818_v0 = vpack.c.bf16 %v2913_v38, %v2897_v12  ;;  %1778 = vmatmul.mubr.bf16.gmra.mrb[168].mxu0 %v7530_v51  ;;  %v7821_v23 = vpack.c.bf16 %v2915_v20, %v2899_v19  ;;  %1971 = vmatmul.mubr.bf16.gmra.mrb[168].mxu1 %v7530_v51 }
 0x1ad   :  { %1787 = vmatprep.mubr.bf16.mxu0 %v9158_v55  ;;  %v7825_v18 = vpack.c.bf16 %v2914_v50, %v2898_v30  ;;  %1980 = vmatprep.mubr.bf16.mxu1 %v9158_v55  ;;  %v7828_v6 = vpack.c.bf16 %v2916_v44, %v2900_v49 }
 0x1ae   :  { %9187 = vst [vmem:[#allocation47_spill] sm:$0xff] %v7818_v0  ;;  %9188 = vst [vmem:[#allocation48_spill] sm:$0xff] %v7821_v23 }
 0x1af   :  { %9189 = vst [vmem:[#allocation49_spill] sm:$0xff] %v7825_v18  ;;  %9190 = vst [vmem:[#allocation50_spill] sm:$0xff] %v7828_v6  ;;  %v1293_v47 = vpop.f32.mrb[64].mxu0  ;;  %v1486_v43 = vpop.f32.mrb[64].mxu1 }
 0x1b0   :  { %v1295_v40 = vpop.f32.mrb[65].mxu0  ;;  %v2423_v46 = vmax.f32 %v1486_v43, 0.0  ;;  %v1488_v12 = vpop.f32.mrb[65].mxu1  ;;  %v2421_v26 = vmax.f32 %v1293_v47, 0.0 }
 0x1b1   :  { %v1297_v38 = vpop.f32.mrb[66].mxu0  ;;  %v2424_v9 = vmax.f32 %v1488_v12, 0.0  ;;  %v1490_v19 = vpop.f32.mrb[66].mxu1  ;;  %v2422_v23 = vmax.f32 %v1295_v40, 0.0 }
 0x1b2   :  { %v2437_v20 = vmax.f32 %v1297_v38, 0.0  ;;  %v1299_v15 = vpop.f32.mrb[67].mxu0  ;;  %v2439_v0 = vmax.f32 %v1490_v19, 0.0  ;;  %v1492_v50 = vpop.f32.mrb[67].mxu1 }
 0x1b3   :  { %v2438_v13 = vmax.f32 %v1299_v15, 0.0  ;;  %v2440_v18 = vmax.f32 %v1492_v50, 0.0 }
 0x1b4   :  { %v7830_v30 = vpack.c.bf16 %v2437_v20, %v2421_v26  ;;  %1788 = vmatmul.mubr.bf16.gmra.mrb[172].mxu0 %v7536_v54  ;;  %v7833_v44 = vpack.c.bf16 %v2439_v0, %v2423_v46  ;;  %1981 = vmatmul.mubr.bf16.gmra.mrb[172].mxu1 %v7536_v54 }
 0x1b5   :  { %1797 = vmatprep.mubr.bf16.mxu0 %v9158_v55  ;;  %v7837_v49 = vpack.c.bf16 %v2438_v13, %v2422_v23  ;;  %1990 = vmatprep.mubr.bf16.mxu1 %v9158_v55  ;;  %v7840_v47 = vpack.c.bf16 %v2440_v18, %v2424_v9 }
 0x1b6   :  { %9191 = vst [vmem:[#allocation51_spill] sm:$0xff] %v7830_v30  ;;  %9192 = vst [vmem:[#allocation52_spill] sm:$0xff] %v7833_v44 }
 0x1b7   :  { %9193 = vst [vmem:[#allocation53_spill] sm:$0xff] %v7837_v49  ;;  %9194 = vst [vmem:[#allocation54_spill] sm:$0xff] %v7840_v47  ;;  %v1303_v43 = vpop.f32.mrb[68].mxu0  ;;  %v1496_v40 = vpop.f32.mrb[68].mxu1 }
 0x1b8   :  { %v1305_v12 = vpop.f32.mrb[69].mxu0  ;;  %v2455_v38 = vmax.f32 %v1496_v40, 0.0  ;;  %v1498_v26 = vpop.f32.mrb[69].mxu1  ;;  %v2453_v19 = vmax.f32 %v1303_v43, 0.0 }
 0x1b9   :  { %v1307_v20 = vpop.f32.mrb[70].mxu0  ;;  %v2456_v15 = vmax.f32 %v1498_v26, 0.0  ;;  %v1500_v46 = vpop.f32.mrb[70].mxu1  ;;  %v2454_v44 = vmax.f32 %v1305_v12, 0.0 }
 0x1ba   :  { %v2469_v0 = vmax.f32 %v1307_v20, 0.0  ;;  %v1309_v50 = vpop.f32.mrb[71].mxu0  ;;  %v2471_v30 = vmax.f32 %v1500_v46, 0.0  ;;  %v1502_v13 = vpop.f32.mrb[71].mxu1 }
 0x1bb   :  { %v2470_v6 = vmax.f32 %v1309_v50, 0.0  ;;  %v2472_v49 = vmax.f32 %v1502_v13, 0.0 }
 0x1bc   :  { %v7842_v23 = vpack.c.bf16 %v2469_v0, %v2453_v19  ;;  %1798 = vmatmul.mubr.bf16.gmra.mrb[176].mxu0 %v7542_v58  ;;  %v7845_v18 = vpack.c.bf16 %v2471_v30, %v2455_v38  ;;  %1991 = vmatmul.mubr.bf16.gmra.mrb[176].mxu1 %v7542_v58 }
 0x1bd   :  { %1807 = vmatprep.mubr.bf16.mxu0 %v9158_v55  ;;  %v7849_v9 = vpack.c.bf16 %v2470_v6, %v2454_v44  ;;  %2000 = vmatprep.mubr.bf16.mxu1 %v9158_v55  ;;  %v7852_v43 = vpack.c.bf16 %v2472_v49, %v2456_v15 }
 0x1be   :  { %9195 = vst [vmem:[#allocation55_spill] sm:$0xff] %v7842_v23  ;;  %9196 = vst [vmem:[#allocation56_spill] sm:$0xff] %v7845_v18 }
 0x1bf   :  { %9197 = vst [vmem:[#allocation57_spill] sm:$0xff] %v7849_v9  ;;  %9198 = vst [vmem:[#allocation58_spill] sm:$0xff] %v7852_v43  ;;  %v1313_v40 = vpop.f32.mrb[72].mxu0  ;;  %v1506_v12 = vpop.f32.mrb[72].mxu1 }
 0x1c0   :  { %v1315_v26 = vpop.f32.mrb[73].mxu0  ;;  %v2487_v20 = vmax.f32 %v1506_v12, 0.0  ;;  %v1508_v19 = vpop.f32.mrb[73].mxu1  ;;  %v2485_v46 = vmax.f32 %v1313_v40, 0.0 }
 0x1c1   :  { %v1317_v0 = vpop.f32.mrb[74].mxu0  ;;  %v2488_v50 = vmax.f32 %v1508_v19, 0.0  ;;  %v1510_v38 = vpop.f32.mrb[74].mxu1  ;;  %v2486_v18 = vmax.f32 %v1315_v26, 0.0 }
 0x1c2   :  { %v2501_v30 = vmax.f32 %v1317_v0, 0.0  ;;  %v1319_v13 = vpop.f32.mrb[75].mxu0  ;;  %v2503_v23 = vmax.f32 %v1510_v38, 0.0  ;;  %v1512_v6 = vpop.f32.mrb[75].mxu1 }
 0x1c3   :  { %v2502_v47 = vmax.f32 %v1319_v13, 0.0  ;;  %v2504_v9 = vmax.f32 %v1512_v6, 0.0 }
 0x1c4   :  { %v7854_v44 = vpack.c.bf16 %v2501_v30, %v2485_v46  ;;  %1808 = vmatmul.mubr.bf16.gmra.mrb[180].mxu0 %v7548_v61  ;;  %v7857_v49 = vpack.c.bf16 %v2503_v23, %v2487_v20  ;;  %2001 = vmatmul.mubr.bf16.gmra.mrb[180].mxu1 %v7548_v61 }
 0x1c5   :  { %1817 = vmatprep.mubr.bf16.mxu0 %v9158_v55  ;;  %v7861_v15 = vpack.c.bf16 %v2502_v47, %v2486_v18  ;;  %2010 = vmatprep.mubr.bf16.mxu1 %v9158_v55  ;;  %v7864_v40 = vpack.c.bf16 %v2504_v9, %v2488_v50 }
 0x1c6   :  { %9199 = vst [vmem:[#allocation59_spill] sm:$0xff] %v7854_v44  ;;  %9200 = vst [vmem:[#allocation60_spill] sm:$0xff] %v7857_v49 }
 0x1c7   :  { %9201 = vst [vmem:[#allocation61_spill] sm:$0xff] %v7861_v15  ;;  %9202 = vst [vmem:[#allocation62_spill] sm:$0xff] %v7864_v40  ;;  %v1323_v12 = vpop.f32.mrb[76].mxu0  ;;  %v1516_v26 = vpop.f32.mrb[76].mxu1 }
 0x1c8   :  { %v1325_v19 = vpop.f32.mrb[77].mxu0  ;;  %v2519_v0 = vmax.f32 %v1516_v26, 0.0  ;;  %v1518_v46 = vpop.f32.mrb[77].mxu1  ;;  %v2517_v38 = vmax.f32 %v1323_v12, 0.0 }
 0x1c9   :  { %v1327_v30 = vpop.f32.mrb[78].mxu0  ;;  %v2520_v13 = vmax.f32 %v1518_v46, 0.0  ;;  %v1520_v20 = vpop.f32.mrb[78].mxu1  ;;  %v2518_v49 = vmax.f32 %v1325_v19, 0.0 }
 0x1ca   :  { %v2533_v23 = vmax.f32 %v1327_v30, 0.0  ;;  %v1329_v6 = vpop.f32.mrb[79].mxu0  ;;  %v2535_v44 = vmax.f32 %v1520_v20, 0.0  ;;  %v1522_v47 = vpop.f32.mrb[79].mxu1 }
 0x1cb   :  { %v2534_v43 = vmax.f32 %v1329_v6, 0.0  ;;  %v2536_v15 = vmax.f32 %v1522_v47, 0.0 }
 0x1cc   :  { %v7866_v18 = vpack.c.bf16 %v2533_v23, %v2517_v38  ;;  %1818 = vmatmul.mubr.bf16.gmra.mrb[184].mxu0 %v7554_v1  ;;  %v7869_v9 = vpack.c.bf16 %v2535_v44, %v2519_v0  ;;  %2011 = vmatmul.mubr.bf16.gmra.mrb[184].mxu1 %v7554_v1 }
 0x1cd   :  { %1827 = vmatprep.mubr.bf16.mxu0 %v9158_v55  ;;  %v7873_v50 = vpack.c.bf16 %v2534_v43, %v2518_v49  ;;  %2020 = vmatprep.mubr.bf16.mxu1 %v9158_v55  ;;  %v7876_v12 = vpack.c.bf16 %v2536_v15, %v2520_v13 }
 0x1ce   :  { %9203 = vst [vmem:[#allocation63_spill] sm:$0xff] %v7866_v18  ;;  %9204 = vst [vmem:[#allocation64_spill] sm:$0xff] %v7869_v9 }
 0x1cf   :  { %9205 = vst [vmem:[#allocation65_spill] sm:$0xff] %v7873_v50  ;;  %9206 = vst [vmem:[#allocation66_spill] sm:$0xff] %v7876_v12  ;;  %v1333_v26 = vpop.f32.mrb[80].mxu0  ;;  %v1526_v19 = vpop.f32.mrb[80].mxu1 }
 0x1d0   :  { %v1335_v46 = vpop.f32.mrb[81].mxu0  ;;  %v2551_v30 = vmax.f32 %v1526_v19, 0.0  ;;  %v1528_v38 = vpop.f32.mrb[81].mxu1  ;;  %v2549_v20 = vmax.f32 %v1333_v26, 0.0 }
 0x1d1   :  { %v1337_v23 = vpop.f32.mrb[82].mxu0  ;;  %v2552_v6 = vmax.f32 %v1528_v38, 0.0  ;;  %v1530_v0 = vpop.f32.mrb[82].mxu1  ;;  %v2550_v9 = vmax.f32 %v1335_v46, 0.0 }
 0x1d2   :  { %v2565_v44 = vmax.f32 %v1337_v23, 0.0  ;;  %v1339_v47 = vpop.f32.mrb[83].mxu0  ;;  %v2567_v18 = vmax.f32 %v1530_v0, 0.0  ;;  %v1532_v43 = vpop.f32.mrb[83].mxu1  ;;  %v7063_v0 = vld [vmem:[#allocation7] sm:$0xff]  }
 0x1d3   :  { %v2566_v40 = vmax.f32 %v1339_v47, 0.0  ;;  %v2568_v50 = vmax.f32 %v1532_v43, 0.0 }
 0x1d4   :  { %v7878_v49 = vpack.c.bf16 %v2565_v44, %v2549_v20  ;;  %1828 = vmatmul.mubr.bf16.gmra.mrb[188].mxu0 %v7560_v4  ;;  %v7881_v15 = vpack.c.bf16 %v2567_v18, %v2551_v30  ;;  %2021 = vmatmul.mubr.bf16.gmra.mrb[188].mxu1 %v7560_v4 }
 0x1d5   :  { %2063 = vmatprep.mubr.bf16.mxu0 %v9158_v55  ;;  %v7885_v13 = vpack.c.bf16 %v2566_v40, %v2550_v9  ;;  %2256 = vmatprep.mubr.bf16.mxu1 %v9158_v55  ;;  %v7888_v26 = vpack.c.bf16 %v2568_v50, %v2552_v6 }
 0x1d6   :  { %9207 = vst [vmem:[#allocation67_spill] sm:$0xff] %v7878_v49  ;;  %9208 = vst [vmem:[#allocation68_spill] sm:$0xff] %v7881_v15  ;;  %v7065_v49 = vld [vmem:[#allocation7 + $0x80] sm:$0xff]  }
 0x1d7   :  { %9209 = vst [vmem:[#allocation69_spill] sm:$0xff] %v7885_v13  ;;  %9210 = vst [vmem:[#allocation70_spill] sm:$0xff] %v7888_v26  ;;  %v1343_v19 = vpop.f32.mrb[84].mxu0  ;;  %v1536_v46 = vpop.f32.mrb[84].mxu1 }
 0x1d8   :  { %v1345_v38 = vpop.f32.mrb[85].mxu0  ;;  %v2583_v23 = vmax.f32 %v1536_v46, 0.0  ;;  %v1538_v20 = vpop.f32.mrb[85].mxu1  ;;  %v2581_v47 = vmax.f32 %v1343_v19, 0.0  ;;  %v7068_v46 = vld [vmem:[#allocation7 + $0xc8] sm:$0xff]  }
 0x1d9   :  { %v1347_v44 = vpop.f32.mrb[86].mxu0  ;;  %v2584_v18 = vmax.f32 %v1538_v20, 0.0  ;;  %v1540_v43 = vpop.f32.mrb[86].mxu1  ;;  %v2582_v12 = vmax.f32 %v1345_v38, 0.0  ;;  %v7067_v19 = vld [vmem:[#allocation7 + $0x8] sm:$0xff]   ;;  %v7070_v38 = vld [vmem:[#allocation7 + $0x50] sm:$0xff]  }
 0x1da   :  { %v2597_v30 = vmax.f32 %v1347_v44, 0.0  ;;  %v1349_v15 = vpop.f32.mrb[87].mxu0  ;;  %v2599_v40 = vmax.f32 %v1540_v43, 0.0  ;;  %v1542_v13 = vpop.f32.mrb[87].mxu1 }
 0x1db   :  { %v2598_v9 = vmax.f32 %v1349_v15, 0.0  ;;  %v2600_v6 = vmax.f32 %v1542_v13, 0.0  ;;  %v7069_v15 = vld [vmem:[#allocation7 + $0x88] sm:$0xff]   ;;  %v7072_v13 = vld [vmem:[#allocation7 + $0xd0] sm:$0xff]  }
 0x1dc   :  { %v7890_v50 = vpack.c.bf16 %v2597_v30, %v2581_v47  ;;  %2064 = vmatmul.mubr.bf16.vlgmr.msra.gmra.mrb[192].mxu0 %v7454_v11  ;;  %v7893_v26 = vpack.c.bf16 %v2599_v40, %v2583_v23  ;;  %2257 = vmatmul.mubr.bf16.vlgmr.msra.gmra.mrb[192].mxu1 %v7454_v11 }
 0x1dd   :  { %6157 = vmatpush3.bf16.msra.mxu0 %v7063_v0  ;;  %v7896_v20 = vpack.c.bf16 %v2598_v9, %v2582_v12  ;;  %6269 = vmatpush3.bf16.msra.mxu1 %v7065_v49  ;;  %v7899_v44 = vpack.c.bf16 %v2600_v6, %v2584_v18  ;;  %v7071_v18 = vld [vmem:[#allocation7 + $0x10] sm:$0xff]  }
 0x1de   :  { %9211 = vst [vmem:[#allocation71_spill] sm:$0xff] %v7890_v50  ;;  %9212 = vst [vmem:[#allocation72_spill] sm:$0xff] %v7893_v26  ;;  %2073 = vmatprep.mubr.bf16.mxu0 %v9158_v55  ;;  %2266 = vmatprep.mubr.bf16.mxu1 %v9158_v55 }
 0x1df   :  { %9213 = vst [vmem:[#allocation73_spill] sm:$0xff] %v7896_v20  ;;  %9214 = vst [vmem:[#allocation74_spill] sm:$0xff] %v7899_v44  ;;  %v1353_v47 = vpop.f32.mrb[88].mxu0  ;;  %6158 = vmatprep.subr.bf16.mxu0 %v7066_v34  ;;  %v1546_v23 = vpop.f32.mrb[88].mxu1  ;;  %6270 = vmatprep.subr.bf16.mxu1 %v7068_v46  ;;  %v7073_v20 = vld [vmem:[#allocation7 + $0x90] sm:$0xff]  }
 0x1e0   :  { %v1355_v30 = vpop.f32.mrb[89].mxu0  ;;  %v2615_v11 = vmax.f32 %v1546_v23, 0.0  ;;  %v1548_v0 = vpop.f32.mrb[89].mxu1  ;;  %v2613_v12 = vmax.f32 %v1353_v47, 0.0 }
 0x1e1   :  { %v1357_v43 = vpop.f32.mrb[90].mxu0  ;;  %6159 = vmatpush3.bf16.msra.mxu0 %v7067_v19  ;;  %v2616_v49 = vmax.f32 %v1548_v0, 0.0  ;;  %v1550_v9 = vpop.f32.mrb[90].mxu1  ;;  %6271 = vmatpush3.bf16.msra.mxu1 %v7069_v15  ;;  %v2614_v6 = vmax.f32 %v1355_v30, 0.0  ;;  %v7076_v19 = vld [vmem:[#allocation7 + $0xd8] sm:$0xff]   ;;  %v7078_v0 = vld [vmem:[#allocation7 + $0x60] sm:$0xff]  }
 0x1e2   :  { %v2629_v40 = vmax.f32 %v1357_v43, 0.0  ;;  %v1359_v26 = vpop.f32.mrb[91].mxu0  ;;  %6160 = vmatprep.subr.bf16.mxu0 %v7070_v38  ;;  %v2631_v50 = vmax.f32 %v1550_v9, 0.0  ;;  %v1552_v34 = vpop.f32.mrb[91].mxu1  ;;  %6272 = vmatprep.subr.bf16.mxu1 %v7072_v13  ;;  %v7077_v30 = vld [vmem:[#allocation7 + $0x98] sm:$0xff]  }
 0x1e3   :  { %v2630_v44 = vmax.f32 %v1359_v26, 0.0  ;;  %v2632_v23 = vmax.f32 %v1552_v34, 0.0  ;;  %v7075_v26 = vld [vmem:[#allocation7 + $0x18] sm:$0xff]  }
 0x1e4   :  { %v7902_v46 = vpack.c.bf16 %v2629_v40, %v2613_v12  ;;  %2074 = vmatmul.mubr.bf16.gmra.mrb[196].mxu0 %v7472_v39  ;;  %v7905_v47 = vpack.c.bf16 %v2631_v50, %v2615_v11  ;;  %2267 = vmatmul.mubr.bf16.gmra.mrb[196].mxu1 %v7472_v39  ;;  %v7080_v11 = vld [vmem:[#allocation7 + $0xe0] sm:$0xff]  }
 0x1e5   :  { %2083 = vmatprep.mubr.bf16.mxu0 %v9158_v55  ;;  %v7909_v15 = vpack.c.bf16 %v2630_v44, %v2614_v6  ;;  %2276 = vmatprep.mubr.bf16.mxu1 %v9158_v55  ;;  %v7912_v38 = vpack.c.bf16 %v2632_v23, %v2616_v49  ;;  %v7079_v49 = vld [vmem:[#allocation7 + $0x20] sm:$0xff]  }
 0x1e6   :  { %9215 = vst [vmem:[#allocation75_spill] sm:$0xff] %v7902_v46  ;;  %9216 = vst [vmem:[#allocation76_spill] sm:$0xff] %v7905_v47  ;;  %6161 = vmatpush3.bf16.msra.mxu0 %v7071_v18  ;;  %6273 = vmatpush3.bf16.msra.mxu1 %v7073_v20  ;;  %v7081_v46 = vld [vmem:[#allocation7 + $0xa0] sm:$0xff]  }
 0x1e7   :  { %9217 = vst [vmem:[#allocation77_spill] sm:$0xff] %v7912_v38  ;;  %v1363_v13 = vpop.f32.mrb[92].mxu0  ;;  %6162 = vmatprep.subr.bf16.mxu0 %v7074_v41  ;;  %v1556_v43 = vpop.f32.mrb[92].mxu1  ;;  %6274 = vmatprep.subr.bf16.mxu1 %v7076_v19  ;;  %v7082_v38 = vld [vmem:[#allocation7 + $0x68] sm:$0xff]  }
 0x1e8   :  { %v1365_v50 = vpop.f32.mrb[93].mxu0  ;;  %v2647_v39 = vmax.f32 %v1556_v43, 0.0  ;;  %v1558_v12 = vpop.f32.mrb[93].mxu1  ;;  %v2645_v44 = vmax.f32 %v1363_v13, 0.0  ;;  %v7084_v13 = vld [vmem:[#allocation7 + $0xe8] sm:$0xff]  }
 0x1e9   :  { %v1367_v40 = vpop.f32.mrb[94].mxu0  ;;  %v2648_v9 = vmax.f32 %v1558_v12, 0.0  ;;  %v1560_v34 = vpop.f32.mrb[94].mxu1  ;;  %v2646_v23 = vmax.f32 %v1365_v50, 0.0 }
 0x1ea   :  { %v2661_v6 = vmax.f32 %v1367_v40, 0.0  ;;  %v1369_v18 = vpop.f32.mrb[95].mxu0  ;;  %6163 = vmatpush3.bf16.msra.mxu0 %v7075_v26  ;;  %v2663_v47 = vmax.f32 %v1560_v34, 0.0  ;;  %v1562_v41 = vpop.f32.mrb[95].mxu1  ;;  %6275 = vmatpush3.bf16.msra.mxu1 %v7077_v30  ;;  %v7083_v30 = vld [vmem:[#allocation7 + $0x28] sm:$0xff]  }
 0x1eb   :  { %v2662_v20 = vmax.f32 %v1369_v18, 0.0  ;;  %6164 = vmatprep.subr.bf16.mxu0 %v7078_v0  ;;  %v2664_v43 = vmax.f32 %v1562_v41, 0.0  ;;  %6276 = vmatprep.subr.bf16.mxu1 %v7080_v11  ;;  %v7085_v40 = vld [vmem:[#allocation7 + $0xa8] sm:$0xff]   ;;  %v7086_v11 = vld [vmem:[#allocation7 + $0x70] sm:$0xff]  }
 0x1ec   :  { %v7914_v19 = vpack.c.bf16 %v2661_v6, %v2645_v44  ;;  %2084 = vmatmul.mubr.bf16.gmra.mrb[200].mxu0 %v7478_v57  ;;  %v7917_v12 = vpack.c.bf16 %v2663_v47, %v2647_v39  ;;  %2277 = vmatmul.mubr.bf16.gmra.mrb[200].mxu1 %v7478_v57  ;;  %v7088_v39 = vld [vmem:[#allocation7 + $0xf0] sm:$0xff]  }
 0x1ed   :  { %2093 = vmatprep.mubr.bf16.mxu0 %v9158_v55  ;;  %v7921_v26 = vpack.c.bf16 %v2662_v20, %v2646_v23  ;;  %2286 = vmatprep.mubr.bf16.mxu1 %v9158_v55  ;;  %v7924_v0 = vpack.c.bf16 %v2664_v43, %v2648_v9  ;;  %v7087_v9 = vld [vmem:[#allocation7 + $0x30] sm:$0xff]  }
 0x1ee   :  { %9218 = vst [vmem:[#allocation78_spill] sm:$0xff] %v7914_v19  ;;  %9219 = vst [vmem:[#allocation79_spill] sm:$0xff] %v7917_v12  ;;  %6165 = vmatpush3.bf16.msra.mxu0 %v7079_v49  ;;  %6277 = vmatpush3.bf16.msra.mxu1 %v7081_v46  ;;  %v7089_v19 = vld [vmem:[#allocation7 + $0xb0] sm:$0xff]  }
 0x1ef   :  { %9220 = vst [vmem:[#allocation80_spill] sm:$0xff] %v7924_v0  ;;  %v1373_v50 = vpop.f32.mrb[96].mxu0  ;;  %6166 = vmatprep.subr.bf16.mxu0 %v7082_v38  ;;  %v1566_v44 = vpop.f32.mrb[96].mxu1  ;;  %6278 = vmatprep.subr.bf16.mxu1 %v7084_v13  ;;  %v7090_v0 = vld [vmem:[#allocation7 + $0x78] sm:$0xff]  }
 0x1f0   :  { %v1375_v47 = vpop.f32.mrb[97].mxu0  ;;  %v2679_v57 = vmax.f32 %v1566_v44, 0.0  ;;  %v1568_v6 = vpop.f32.mrb[97].mxu1  ;;  %v2677_v18 = vmax.f32 %v1373_v50, 0.0  ;;  %v7092_v50 = vld [vmem:[#allocation7 + $0xf8] sm:$0xff]  }
 0x1f1   :  { %v1377_v34 = vpop.f32.mrb[98].mxu0  ;;  %v2680_v23 = vmax.f32 %v1568_v6, 0.0  ;;  %v1570_v41 = vpop.f32.mrb[98].mxu1  ;;  %v2678_v43 = vmax.f32 %v1375_v47, 0.0 }
 0x1f2   :  { %v2693_v20 = vmax.f32 %v1377_v34, 0.0  ;;  %v1379_v49 = vpop.f32.mrb[99].mxu0  ;;  %6167 = vmatpush3.bf16.msra.mxu0 %v7083_v30  ;;  %v2695_v12 = vmax.f32 %v1570_v41, 0.0  ;;  %v1572_v38 = vpop.f32.mrb[99].mxu1  ;;  %6279 = vmatpush3.bf16.msra.mxu1 %v7085_v40  ;;  %v7091_v40 = vld [vmem:[#allocation7 + $0x38] sm:$0xff]  }
 0x1f3   :  { %v2694_v46 = vmax.f32 %v1379_v49, 0.0  ;;  %6168 = vmatprep.subr.bf16.mxu0 %v7086_v11  ;;  %v2696_v44 = vmax.f32 %v1572_v38, 0.0  ;;  %6280 = vmatprep.subr.bf16.mxu1 %v7088_v39  ;;  %v7093_v34 = vld [vmem:[#allocation7 + $0xb8] sm:$0xff]   ;;  %v7094_v39 = vld [vmem:[#allocation7 + $0x140] sm:$0xff]  }
 0x1f4   :  { %v7926_v13 = vpack.c.bf16 %v2693_v20, %v2677_v18  ;;  %2094 = vmatmul.mubr.bf16.gmra.mrb[204].mxu0 %v7484_v14  ;;  %v7929_v6 = vpack.c.bf16 %v2695_v12, %v2679_v57  ;;  %2287 = vmatmul.mubr.bf16.gmra.mrb[204].mxu1 %v7484_v14  ;;  %v7096_v57 = vld [vmem:[#allocation7 + $0x1c0] sm:$0xff]  }
 0x1f5   :  { %2103 = vmatprep.mubr.bf16.mxu0 %v9158_v55  ;;  %v7933_v30 = vpack.c.bf16 %v2694_v46, %v2678_v43  ;;  %2296 = vmatprep.mubr.bf16.mxu1 %v9158_v55  ;;  %v7936_v11 = vpack.c.bf16 %v2696_v44, %v2680_v23 }
 0x1f6   :  { %9221 = vst [vmem:[#allocation81_spill] sm:$0xff] %v7926_v13  ;;  %9222 = vst [vmem:[#allocation82_spill] sm:$0xff] %v7929_v6  ;;  %6169 = vmatpush3.bf16.msra.mxu0 %v7087_v9  ;;  %6281 = vmatpush3.bf16.msra.mxu1 %v7089_v19 }
 0x1f7   :  { %v1383_v47 = vpop.f32.mrb[100].mxu0  ;;  %6170 = vmatprep.subr.bf16.mxu0 %v7090_v0  ;;  %v1576_v18 = vpop.f32.mrb[100].mxu1  ;;  %6282 = vmatprep.subr.bf16.mxu1 %v7092_v50 }
 0x1f8   :  { %v1385_v12 = vpop.f32.mrb[101].mxu0  ;;  %v2711_v14 = vmax.f32 %v1576_v18, 0.0  ;;  %v1578_v20 = vpop.f32.mrb[101].mxu1  ;;  %v2709_v49 = vmax.f32 %v1383_v47, 0.0 }
 0x1f9   :  { %v1387_v41 = vpop.f32.mrb[102].mxu0  ;;  %v2712_v43 = vmax.f32 %v1578_v20, 0.0  ;;  %v1580_v38 = vpop.f32.mrb[102].mxu1  ;;  %v2710_v23 = vmax.f32 %v1385_v12, 0.0 }
 0x1fa   :  { %v2725_v46 = vmax.f32 %v1387_v41, 0.0  ;;  %v1389_v9 = vpop.f32.mrb[103].mxu0  ;;  %6171 = vmatpush3.bf16.msra.mxu0 %v7091_v40  ;;  %v2727_v44 = vmax.f32 %v1580_v38, 0.0  ;;  %v1582_v19 = vpop.f32.mrb[103].mxu1  ;;  %6283 = vmatpush3.bf16.msra.mxu1 %v7093_v34 }
 0x1fb   :  { %v2726_v6 = vmax.f32 %v1389_v9, 0.0  ;;  %6380 = vmatprep.subr.bf16.mxu0 %v7094_v39  ;;  %v2728_v13 = vmax.f32 %v1582_v19, 0.0  ;;  %6492 = vmatprep.subr.bf16.mxu1 %v7096_v57 }
 0x1fc   :  { %v7938_v0 = vpack.c.bf16 %v2725_v46, %v2709_v49  ;;  %2104 = vmatmul.mubr.bf16.gmra.mrb[208].mxu0 %v7492_v25  ;;  %v7941_v50 = vpack.c.bf16 %v2727_v44, %v2711_v14  ;;  %2297 = vmatmul.mubr.bf16.gmra.mrb[208].mxu1 %v7492_v25 }
 0x1fd   :  { %2113 = vmatprep.mubr.bf16.mxu0 %v9158_v55  ;;  %v7945_v47 = vpack.c.bf16 %v2726_v6, %v2710_v23  ;;  %2306 = vmatprep.mubr.bf16.mxu1 %v9158_v55  ;;  %v7948_v40 = vpack.c.bf16 %v2728_v13, %v2712_v43 }
 0x1ff   :  { %v1393_v34 = vpop.f32.mrb[104].mxu0  ;;  %v1586_v39 = vpop.f32.mrb[104].mxu1 }
 0x200   :  { %v1395_v18 = vpop.f32.mrb[105].mxu0  ;;  %v2743_v12 = vmax.f32 %v1586_v39, 0.0  ;;  %v1588_v20 = vpop.f32.mrb[105].mxu1  ;;  %v2741_v49 = vmax.f32 %v1393_v34, 0.0 }
 0x201   :  { %v1397_v41 = vpop.f32.mrb[106].mxu0  ;;  %v2744_v57 = vmax.f32 %v1588_v20, 0.0  ;;  %v1590_v46 = vpop.f32.mrb[106].mxu1  ;;  %v2742_v25 = vmax.f32 %v1395_v18, 0.0 }
 0x202   :  { %v2757_v14 = vmax.f32 %v1397_v41, 0.0  ;;  %v1399_v38 = vpop.f32.mrb[107].mxu0  ;;  %v2759_v9 = vmax.f32 %v1590_v46, 0.0  ;;  %v1592_v6 = vpop.f32.mrb[107].mxu1 }
 0x203   :  { %v2758_v44 = vmax.f32 %v1399_v38, 0.0  ;;  %v2760_v19 = vmax.f32 %v1592_v6, 0.0 }
 0x204   :  { %v7950_v23 = vpack.c.bf16 %v2757_v14, %v2741_v49  ;;  %2114 = vmatmul.mubr.bf16.gmra.mrb[212].mxu0 %v7500_v32  ;;  %v7953_v13 = vpack.c.bf16 %v2759_v9, %v2743_v12  ;;  %2307 = vmatmul.mubr.bf16.gmra.mrb[212].mxu1 %v7500_v32 }
 0x205   :  { %2123 = vmatprep.mubr.bf16.mxu0 %v9158_v55  ;;  %v7957_v43 = vpack.c.bf16 %v2758_v44, %v2742_v25  ;;  %2316 = vmatprep.mubr.bf16.mxu1 %v9158_v55  ;;  %v7960_v34 = vpack.c.bf16 %v2760_v19, %v2744_v57 }
 0x206   :  { %9223 = vst [vmem:[#allocation83_spill] sm:$0xff] %v7950_v23  ;;  %9224 = vst [vmem:[#allocation84_spill] sm:$0xff] %v7953_v13 }
 0x207   :  { %9225 = vst [vmem:[#allocation85_spill] sm:$0xff] %v7957_v43  ;;  %v1403_v39 = vpop.f32.mrb[108].mxu0  ;;  %v1596_v18 = vpop.f32.mrb[108].mxu1 }
 0x208   :  { %v1405_v20 = vpop.f32.mrb[109].mxu0  ;;  %v2775_v41 = vmax.f32 %v1596_v18, 0.0  ;;  %v1598_v49 = vpop.f32.mrb[109].mxu1  ;;  %v2773_v46 = vmax.f32 %v1403_v39, 0.0 }
 0x209   :  { %v1407_v14 = vpop.f32.mrb[110].mxu0  ;;  %v2776_v38 = vmax.f32 %v1598_v49, 0.0  ;;  %v1600_v9 = vpop.f32.mrb[110].mxu1  ;;  %v2774_v32 = vmax.f32 %v1405_v20, 0.0 }
 0x20a   :  { %v2789_v12 = vmax.f32 %v1407_v14, 0.0  ;;  %v1409_v6 = vpop.f32.mrb[111].mxu0  ;;  %v2791_v13 = vmax.f32 %v1600_v9, 0.0  ;;  %v1602_v25 = vpop.f32.mrb[111].mxu1 }
 0x20b   :  { %v2790_v23 = vmax.f32 %v1409_v6, 0.0  ;;  %v2792_v43 = vmax.f32 %v1602_v25, 0.0 }
 0x20c   :  { %v7962_v44 = vpack.c.bf16 %v2789_v12, %v2773_v46  ;;  %2124 = vmatmul.mubr.bf16.gmra.mrb[216].mxu0 %v7506_v37  ;;  %v7965_v57 = vpack.c.bf16 %v2791_v13, %v2775_v41  ;;  %2317 = vmatmul.mubr.bf16.gmra.mrb[216].mxu1 %v7506_v37 }
 0x20d   :  { %2133 = vmatprep.mubr.bf16.mxu0 %v9158_v55  ;;  %v7969_v19 = vpack.c.bf16 %v2790_v23, %v2774_v32  ;;  %2326 = vmatprep.mubr.bf16.mxu1 %v9158_v55  ;;  %v7972_v39 = vpack.c.bf16 %v2792_v43, %v2776_v38 }
 0x20e   :  { %9226 = vst [vmem:[#allocation86_spill] sm:$0xff] %v7962_v44  ;;  %9227 = vst [vmem:[#allocation87_spill] sm:$0xff] %v7965_v57 }
 0x20f   :  { %9228 = vst [vmem:[#allocation88_spill] sm:$0xff] %v7969_v19  ;;  %v1413_v18 = vpop.f32.mrb[112].mxu0  ;;  %v1606_v20 = vpop.f32.mrb[112].mxu1 }
 0x210   :  { %v1415_v49 = vpop.f32.mrb[113].mxu0  ;;  %v2807_v14 = vmax.f32 %v1606_v20, 0.0  ;;  %v1608_v46 = vpop.f32.mrb[113].mxu1  ;;  %v2805_v9 = vmax.f32 %v1413_v18, 0.0 }
 0x211   :  { %v1417_v12 = vpop.f32.mrb[114].mxu0  ;;  %v2808_v6 = vmax.f32 %v1608_v46, 0.0  ;;  %v1610_v41 = vpop.f32.mrb[114].mxu1  ;;  %v2806_v37 = vmax.f32 %v1415_v49, 0.0 }
 0x212   :  { %v2821_v13 = vmax.f32 %v1417_v12, 0.0  ;;  %v1419_v25 = vpop.f32.mrb[115].mxu0  ;;  %v2823_v57 = vmax.f32 %v1610_v41, 0.0  ;;  %v1612_v23 = vpop.f32.mrb[115].mxu1 }
 0x213   :  { %v2822_v44 = vmax.f32 %v1419_v25, 0.0  ;;  %v2824_v19 = vmax.f32 %v1612_v23, 0.0 }
 0x214   :  { %v7974_v32 = vpack.c.bf16 %v2821_v13, %v2805_v9  ;;  %2134 = vmatmul.mubr.bf16.gmra.mrb[220].mxu0 %v7512_v42  ;;  %v7977_v43 = vpack.c.bf16 %v2823_v57, %v2807_v14  ;;  %2327 = vmatmul.mubr.bf16.gmra.mrb[220].mxu1 %v7512_v42 }
 0x215   :  { %2143 = vmatprep.mubr.bf16.mxu0 %v9158_v55  ;;  %v7981_v38 = vpack.c.bf16 %v2822_v44, %v2806_v37  ;;  %2336 = vmatprep.mubr.bf16.mxu1 %v9158_v55  ;;  %v7984_v18 = vpack.c.bf16 %v2824_v19, %v2808_v6 }
 0x216   :  { %9229 = vst [vmem:[#allocation89_spill] sm:$0xff] %v7974_v32  ;;  %9230 = vst [vmem:[#allocation90_spill] sm:$0xff] %v7977_v43 }
 0x217   :  { %9231 = vst [vmem:[#allocation91_spill] sm:$0xff] %v7981_v38  ;;  %v1423_v20 = vpop.f32.mrb[116].mxu0  ;;  %v1616_v49 = vpop.f32.mrb[116].mxu1 }
 0x218   :  { %v1425_v46 = vpop.f32.mrb[117].mxu0  ;;  %v2839_v12 = vmax.f32 %v1616_v49, 0.0  ;;  %v1618_v9 = vpop.f32.mrb[117].mxu1  ;;  %v2837_v41 = vmax.f32 %v1423_v20, 0.0 }
 0x219   :  { %v1427_v13 = vpop.f32.mrb[118].mxu0  ;;  %v2840_v25 = vmax.f32 %v1618_v9, 0.0  ;;  %v1620_v14 = vpop.f32.mrb[118].mxu1  ;;  %v2838_v42 = vmax.f32 %v1425_v46, 0.0 }
 0x21a   :  { %v2853_v57 = vmax.f32 %v1427_v13, 0.0  ;;  %v1429_v23 = vpop.f32.mrb[119].mxu0  ;;  %v2855_v43 = vmax.f32 %v1620_v14, 0.0  ;;  %v1622_v44 = vpop.f32.mrb[119].mxu1 }
 0x21b   :  { %v2854_v32 = vmax.f32 %v1429_v23, 0.0  ;;  %v2856_v38 = vmax.f32 %v1622_v44, 0.0 }
 0x21c   :  { %v7986_v37 = vpack.c.bf16 %v2853_v57, %v2837_v41  ;;  %2144 = vmatmul.mubr.bf16.gmra.mrb[224].mxu0 %v7518_v45  ;;  %v7989_v19 = vpack.c.bf16 %v2855_v43, %v2839_v12  ;;  %2337 = vmatmul.mubr.bf16.gmra.mrb[224].mxu1 %v7518_v45 }
 0x21d   :  { %2153 = vmatprep.mubr.bf16.mxu0 %v9158_v55  ;;  %v7993_v6 = vpack.c.bf16 %v2854_v32, %v2838_v42  ;;  %2346 = vmatprep.mubr.bf16.mxu1 %v9158_v55  ;;  %v7996_v20 = vpack.c.bf16 %v2856_v38, %v2840_v25 }
 0x21e   :  { %9232 = vst [vmem:[#allocation92_spill] sm:$0xff] %v7986_v37  ;;  %9233 = vst [vmem:[#allocation93_spill] sm:$0xff] %v7989_v19 }
 0x21f   :  { %9234 = vst [vmem:[#allocation94_spill] sm:$0xff] %v7993_v6  ;;  %v1433_v49 = vpop.f32.mrb[120].mxu0  ;;  %v1626_v46 = vpop.f32.mrb[120].mxu1 }
 0x220   :  { %v1435_v9 = vpop.f32.mrb[121].mxu0  ;;  %v2871_v13 = vmax.f32 %v1626_v46, 0.0  ;;  %v1628_v41 = vpop.f32.mrb[121].mxu1  ;;  %v2869_v14 = vmax.f32 %v1433_v49, 0.0 }
 0x221   :  { %v1437_v57 = vpop.f32.mrb[122].mxu0  ;;  %v2872_v23 = vmax.f32 %v1628_v41, 0.0  ;;  %v1630_v12 = vpop.f32.mrb[122].mxu1  ;;  %v2870_v45 = vmax.f32 %v1435_v9, 0.0 }
 0x222   :  { %v2885_v43 = vmax.f32 %v1437_v57, 0.0  ;;  %v1439_v44 = vpop.f32.mrb[123].mxu0  ;;  %v2887_v19 = vmax.f32 %v1630_v12, 0.0  ;;  %v1632_v32 = vpop.f32.mrb[123].mxu1 }
 0x223   :  { %v2886_v37 = vmax.f32 %v1439_v44, 0.0  ;;  %v2888_v6 = vmax.f32 %v1632_v32, 0.0 }
 0x224   :  { %v7998_v42 = vpack.c.bf16 %v2885_v43, %v2869_v14  ;;  %2154 = vmatmul.mubr.bf16.gmra.mrb[228].mxu0 %v7524_v48  ;;  %v8001_v38 = vpack.c.bf16 %v2887_v19, %v2871_v13  ;;  %2347 = vmatmul.mubr.bf16.gmra.mrb[228].mxu1 %v7524_v48 }
 0x225   :  { %2163 = vmatprep.mubr.bf16.mxu0 %v9158_v55  ;;  %v8005_v25 = vpack.c.bf16 %v2886_v37, %v2870_v45  ;;  %2356 = vmatprep.mubr.bf16.mxu1 %v9158_v55  ;;  %v8008_v49 = vpack.c.bf16 %v2888_v6, %v2872_v23 }
 0x226   :  { %9235 = vst [vmem:[#allocation95_spill] sm:$0xff] %v7998_v42  ;;  %9236 = vst [vmem:[#allocation96_spill] sm:$0xff] %v8001_v38 }
 0x227   :  { %9237 = vst [vmem:[#allocation97_spill] sm:$0xff] %v8005_v25  ;;  %v1443_v46 = vpop.f32.mrb[124].mxu0  ;;  %v1636_v9 = vpop.f32.mrb[124].mxu1 }
 0x228   :  { %v1445_v41 = vpop.f32.mrb[125].mxu0  ;;  %v2903_v57 = vmax.f32 %v1636_v9, 0.0  ;;  %v1638_v14 = vpop.f32.mrb[125].mxu1  ;;  %v2901_v12 = vmax.f32 %v1443_v46, 0.0 }
 0x229   :  { %v1447_v43 = vpop.f32.mrb[126].mxu0  ;;  %v2904_v44 = vmax.f32 %v1638_v14, 0.0  ;;  %v1640_v13 = vpop.f32.mrb[126].mxu1  ;;  %v2902_v48 = vmax.f32 %v1445_v41, 0.0 }
 0x22a   :  { %v2917_v19 = vmax.f32 %v1447_v43, 0.0  ;;  %v1449_v32 = vpop.f32.mrb[127].mxu0  ;;  %v2919_v38 = vmax.f32 %v1640_v13, 0.0  ;;  %v1642_v37 = vpop.f32.mrb[127].mxu1 }
 0x22b   :  { %v2918_v42 = vmax.f32 %v1449_v32, 0.0  ;;  %v2920_v25 = vmax.f32 %v1642_v37, 0.0 }
 0x22c   :  { %v8010_v45 = vpack.c.bf16 %v2917_v19, %v2901_v12  ;;  %2164 = vmatmul.mubr.bf16.gmra.mrb[232].mxu0 %v7530_v51  ;;  %v8013_v6 = vpack.c.bf16 %v2919_v38, %v2903_v57  ;;  %2357 = vmatmul.mubr.bf16.gmra.mrb[232].mxu1 %v7530_v51 }
 0x22d   :  { %2173 = vmatprep.mubr.bf16.mxu0 %v9158_v55  ;;  %v8017_v23 = vpack.c.bf16 %v2918_v42, %v2902_v48  ;;  %2366 = vmatprep.mubr.bf16.mxu1 %v9158_v55  ;;  %v8020_v46 = vpack.c.bf16 %v2920_v25, %v2904_v44 }
 0x22e   :  { %9238 = vst [vmem:[#allocation98_spill] sm:$0xff] %v8010_v45  ;;  %9239 = vst [vmem:[#allocation99_spill] sm:$0xff] %v8013_v6 }
 0x22f   :  { %9240 = vst [vmem:[#allocation100_spill] sm:$0xff] %v8017_v23  ;;  %v1679_v9 = vpop.f32.mrb[128].mxu0  ;;  %v1872_v41 = vpop.f32.mrb[128].mxu1 }
 0x230   :  { %v1681_v14 = vpop.f32.mrb[129].mxu0  ;;  %v2427_v43 = vmax.f32 %v1872_v41, 0.0  ;;  %v1874_v12 = vpop.f32.mrb[129].mxu1  ;;  %v2425_v13 = vmax.f32 %v1679_v9, 0.0 }
 0x231   :  { %v1683_v19 = vpop.f32.mrb[130].mxu0  ;;  %v2428_v32 = vmax.f32 %v1874_v12, 0.0  ;;  %v1876_v57 = vpop.f32.mrb[130].mxu1  ;;  %v2426_v51 = vmax.f32 %v1681_v14, 0.0 }
 0x232   :  { %v2441_v38 = vmax.f32 %v1683_v19, 0.0  ;;  %v1685_v37 = vpop.f32.mrb[131].mxu0  ;;  %v2443_v6 = vmax.f32 %v1876_v57, 0.0  ;;  %v1878_v42 = vpop.f32.mrb[131].mxu1 }
 0x233   :  { %v2442_v45 = vmax.f32 %v1685_v37, 0.0  ;;  %v2444_v23 = vmax.f32 %v1878_v42, 0.0 }
 0x234   :  { %v8022_v48 = vpack.c.bf16 %v2441_v38, %v2425_v13  ;;  %2174 = vmatmul.mubr.bf16.gmra.mrb[236].mxu0 %v7536_v54  ;;  %v8025_v25 = vpack.c.bf16 %v2443_v6, %v2427_v43  ;;  %2367 = vmatmul.mubr.bf16.gmra.mrb[236].mxu1 %v7536_v54 }
 0x235   :  { %2183 = vmatprep.mubr.bf16.mxu0 %v9158_v55  ;;  %v8029_v44 = vpack.c.bf16 %v2442_v45, %v2426_v51  ;;  %2376 = vmatprep.mubr.bf16.mxu1 %v9158_v55  ;;  %v8032_v9 = vpack.c.bf16 %v2444_v23, %v2428_v32 }
 0x236   :  { %9241 = vst [vmem:[#allocation101_spill] sm:$0xff] %v8022_v48  ;;  %9242 = vst [vmem:[#allocation102_spill] sm:$0xff] %v8025_v25 }
 0x237   :  { %9243 = vst [vmem:[#allocation103_spill] sm:$0xff] %v8029_v44  ;;  %v1689_v41 = vpop.f32.mrb[132].mxu0  ;;  %v1882_v14 = vpop.f32.mrb[132].mxu1 }
 0x238   :  { %v1691_v12 = vpop.f32.mrb[133].mxu0  ;;  %v2459_v19 = vmax.f32 %v1882_v14, 0.0  ;;  %v1884_v13 = vpop.f32.mrb[133].mxu1  ;;  %v2457_v57 = vmax.f32 %v1689_v41, 0.0 }
 0x239   :  { %v1693_v38 = vpop.f32.mrb[134].mxu0  ;;  %v2460_v37 = vmax.f32 %v1884_v13, 0.0  ;;  %v1886_v43 = vpop.f32.mrb[134].mxu1  ;;  %v2458_v54 = vmax.f32 %v1691_v12, 0.0 }
 0x23a   :  { %v2473_v6 = vmax.f32 %v1693_v38, 0.0  ;;  %v1695_v42 = vpop.f32.mrb[135].mxu0  ;;  %v2475_v25 = vmax.f32 %v1886_v43, 0.0  ;;  %v1888_v45 = vpop.f32.mrb[135].mxu1 }
 0x23b   :  { %v2474_v48 = vmax.f32 %v1695_v42, 0.0  ;;  %v2476_v44 = vmax.f32 %v1888_v45, 0.0 }
 0x23c   :  { %v8034_v51 = vpack.c.bf16 %v2473_v6, %v2457_v57  ;;  %2184 = vmatmul.mubr.bf16.gmra.mrb[240].mxu0 %v7542_v58  ;;  %v8037_v23 = vpack.c.bf16 %v2475_v25, %v2459_v19  ;;  %2377 = vmatmul.mubr.bf16.gmra.mrb[240].mxu1 %v7542_v58 }
 0x23d   :  { %2193 = vmatprep.mubr.bf16.mxu0 %v9158_v55  ;;  %v8041_v32 = vpack.c.bf16 %v2474_v48, %v2458_v54  ;;  %2386 = vmatprep.mubr.bf16.mxu1 %v9158_v55  ;;  %v8044_v41 = vpack.c.bf16 %v2476_v44, %v2460_v37 }
 0x23e   :  { %9244 = vst [vmem:[#allocation104_spill] sm:$0xff] %v8034_v51  ;;  %9245 = vst [vmem:[#allocation105_spill] sm:$0xff] %v8037_v23 }
 0x23f   :  { %9246 = vst [vmem:[#allocation106_spill] sm:$0xff] %v8041_v32  ;;  %v1699_v14 = vpop.f32.mrb[136].mxu0  ;;  %v1892_v12 = vpop.f32.mrb[136].mxu1 }
 0x240   :  { %v1701_v13 = vpop.f32.mrb[137].mxu0  ;;  %v2491_v38 = vmax.f32 %v1892_v12, 0.0  ;;  %v1894_v57 = vpop.f32.mrb[137].mxu1  ;;  %v2489_v43 = vmax.f32 %v1699_v14, 0.0 }
 0x241   :  { %v1703_v6 = vpop.f32.mrb[138].mxu0  ;;  %v2492_v42 = vmax.f32 %v1894_v57, 0.0  ;;  %v1896_v19 = vpop.f32.mrb[138].mxu1  ;;  %v2490_v58 = vmax.f32 %v1701_v13, 0.0 }
 0x242   :  { %v2505_v25 = vmax.f32 %v1703_v6, 0.0  ;;  %v1705_v45 = vpop.f32.mrb[139].mxu0  ;;  %v2507_v23 = vmax.f32 %v1896_v19, 0.0  ;;  %v1898_v48 = vpop.f32.mrb[139].mxu1 }
 0x243   :  { %v2506_v51 = vmax.f32 %v1705_v45, 0.0  ;;  %v2508_v32 = vmax.f32 %v1898_v48, 0.0 }
 0x244   :  { %v8046_v54 = vpack.c.bf16 %v2505_v25, %v2489_v43  ;;  %2194 = vmatmul.mubr.bf16.gmra.mrb[244].mxu0 %v7548_v61  ;;  %v8049_v44 = vpack.c.bf16 %v2507_v23, %v2491_v38  ;;  %2387 = vmatmul.mubr.bf16.gmra.mrb[244].mxu1 %v7548_v61 }
 0x245   :  { %2203 = vmatprep.mubr.bf16.mxu0 %v9158_v55  ;;  %v8053_v37 = vpack.c.bf16 %v2506_v51, %v2490_v58  ;;  %2396 = vmatprep.mubr.bf16.mxu1 %v9158_v55  ;;  %v8056_v14 = vpack.c.bf16 %v2508_v32, %v2492_v42 }
 0x246   :  { %9247 = vst [vmem:[#allocation107_spill] sm:$0xff] %v8046_v54  ;;  %9248 = vst [vmem:[#allocation108_spill] sm:$0xff] %v8049_v44 }
 0x247   :  { %9249 = vst [vmem:[#allocation109_spill] sm:$0xff] %v8053_v37  ;;  %v1709_v12 = vpop.f32.mrb[140].mxu0  ;;  %v1902_v13 = vpop.f32.mrb[140].mxu1 }
 0x248   :  { %v1711_v57 = vpop.f32.mrb[141].mxu0  ;;  %v2523_v6 = vmax.f32 %v1902_v13, 0.0  ;;  %v1904_v43 = vpop.f32.mrb[141].mxu1  ;;  %v2521_v19 = vmax.f32 %v1709_v12, 0.0 }
 0x249   :  { %v1713_v25 = vpop.f32.mrb[142].mxu0  ;;  %v2524_v45 = vmax.f32 %v1904_v43, 0.0  ;;  %v1906_v38 = vpop.f32.mrb[142].mxu1  ;;  %v2522_v61 = vmax.f32 %v1711_v57, 0.0 }
 0x24a   :  { %v2537_v23 = vmax.f32 %v1713_v25, 0.0  ;;  %v1715_v48 = vpop.f32.mrb[143].mxu0  ;;  %v2539_v44 = vmax.f32 %v1906_v38, 0.0  ;;  %v1908_v51 = vpop.f32.mrb[143].mxu1 }
 0x24b   :  { %v2538_v54 = vmax.f32 %v1715_v48, 0.0  ;;  %v2540_v37 = vmax.f32 %v1908_v51, 0.0 }
 0x24c   :  { %v8058_v58 = vpack.c.bf16 %v2537_v23, %v2521_v19  ;;  %2204 = vmatmul.mubr.bf16.gmra.mrb[248].mxu0 %v7554_v1  ;;  %v8061_v32 = vpack.c.bf16 %v2539_v44, %v2523_v6  ;;  %2397 = vmatmul.mubr.bf16.gmra.mrb[248].mxu1 %v7554_v1 }
 0x24d   :  { %2213 = vmatprep.mubr.bf16.mxu0 %v9158_v55  ;;  %v8065_v42 = vpack.c.bf16 %v2538_v54, %v2522_v61  ;;  %2406 = vmatprep.mubr.bf16.mxu1 %v9158_v55  ;;  %v8068_v12 = vpack.c.bf16 %v2540_v37, %v2524_v45 }
 0x24e   :  { %9250 = vst [vmem:[#allocation110_spill] sm:$0xff] %v8058_v58  ;;  %9251 = vst [vmem:[#allocation111_spill] sm:$0xff] %v8061_v32 }
 0x24f   :  { %v1719_v13 = vpop.f32.mrb[144].mxu0  ;;  %v1912_v57 = vpop.f32.mrb[144].mxu1 }
 0x250   :  { %v1721_v43 = vpop.f32.mrb[145].mxu0  ;;  %v2555_v25 = vmax.f32 %v1912_v57, 0.0  ;;  %v1914_v19 = vpop.f32.mrb[145].mxu1  ;;  %v2553_v38 = vmax.f32 %v1719_v13, 0.0 }
 0x251   :  { %v1723_v23 = vpop.f32.mrb[146].mxu0  ;;  %v2556_v48 = vmax.f32 %v1914_v19, 0.0  ;;  %v1916_v6 = vpop.f32.mrb[146].mxu1  ;;  %v2554_v1 = vmax.f32 %v1721_v43, 0.0 }
 0x252   :  { %v2569_v44 = vmax.f32 %v1723_v23, 0.0  ;;  %v1725_v51 = vpop.f32.mrb[147].mxu0  ;;  %v2571_v32 = vmax.f32 %v1916_v6, 0.0  ;;  %v1918_v54 = vpop.f32.mrb[147].mxu1 }
 0x253   :  { %v2570_v58 = vmax.f32 %v1725_v51, 0.0  ;;  %v2572_v55 = vmax.f32 %v1918_v54, 0.0 }
 0x254   :  { %v8070_v61 = vpack.c.bf16 %v2569_v44, %v2553_v38  ;;  %2214 = vmatmul.mubr.bf16.gmra.mrb[252].mxu0 %v7560_v4  ;;  %v8073_v37 = vpack.c.bf16 %v2571_v32, %v2555_v25  ;;  %2407 = vmatmul.mubr.bf16.gmra.mrb[252].mxu1 %v7560_v4  ;;  %v7095_v4 = vld [vmem:[#allocation7 + $0x100] sm:$0xff]  }
 0x255   :  { %4241 = vmatprep.mubr.bf16.mxu0 %v7639_v59  ;;  %v8077_v45 = vpack.c.bf16 %v2570_v58, %v2554_v1  ;;  %4402 = vmatprep.mubr.bf16.mxu1 %v7642_v60  ;;  %v8080_v13 = vpack.c.bf16 %v2572_v55, %v2556_v48  ;;  %v7098_v60 = vld [vmem:[#allocation7 + $0x148] sm:$0xff]  }
 0x256   :  { %9252 = vst [vmem:[#allocation112_spill] sm:$0xff] %v8070_v61  ;;  %9253 = vst [vmem:[#allocation113_spill] sm:$0xff] %v8073_v37  ;;  %v7097_v61 = vld [vmem:[#allocation7 + $0x180] sm:$0xff]  }
 0x257   :  { %9254 = vst [vmem:[#allocation114_spill] sm:$0xff] %v8080_v13  ;;  %v1729_v57 = vpop.f32.mrb[148].mxu0  ;;  %v1922_v43 = vpop.f32.mrb[148].mxu1 }
 0x258   :  { %v1731_v19 = vpop.f32.mrb[149].mxu0  ;;  %v2587_v23 = vmax.f32 %v1922_v43, 0.0  ;;  %v1924_v38 = vpop.f32.mrb[149].mxu1  ;;  %v2585_v6 = vmax.f32 %v1729_v57, 0.0  ;;  %v7100_v43 = vld [vmem:[#allocation7 + $0x1c8] sm:$0xff]  }
 0x259   :  { %v1733_v44 = vpop.f32.mrb[150].mxu0  ;;  %v2588_v51 = vmax.f32 %v1924_v38, 0.0  ;;  %v1926_v25 = vpop.f32.mrb[150].mxu1  ;;  %v2586_v37 = vmax.f32 %v1731_v19, 0.0  ;;  %v7099_v19 = vld [vmem:[#allocation7 + $0x108] sm:$0xff]  }
 0x25a   :  { %v2601_v32 = vmax.f32 %v1733_v44, 0.0  ;;  %v1735_v54 = vpop.f32.mrb[151].mxu0  ;;  %v2603_v59 = vmax.f32 %v1926_v25, 0.0  ;;  %v1928_v1 = vpop.f32.mrb[151].mxu1  ;;  %v7104_v25 = vld [vmem:[#allocation7 + $0x1d0] sm:$0xff]  }
 0x25b   :  { %v2602_v58 = vmax.f32 %v1735_v54, 0.0  ;;  %v2604_v55 = vmax.f32 %v1928_v1, 0.0 }
 0x25c   :  { %v8082_v48 = vpack.c.bf16 %v2601_v32, %v2585_v6  ;;  %4242 = vmatmul.mubr.bf16.vlgmr.msra.gmra.mrb[0].mxu0 %v7632_v53  ;;  %v8085_v13 = vpack.c.bf16 %v2603_v59, %v2587_v23  ;;  %4403 = vmatmul.mubr.bf16.vlgmr.msra.gmra.mrb[0].mxu1 %v7635_v56  ;;  %v7101_v6 = vld [vmem:[#allocation7 + $0x188] sm:$0xff]   ;;  %v7102_v53 = vld [vmem:[#allocation7 + $0x150] sm:$0xff]  }
 0x25d   :  { %4249 = vmatprep.mubr.bf16.mxu0 %v7651_v24  ;;  %v8089_v57 = vpack.c.bf16 %v2602_v58, %v2586_v37  ;;  %4410 = vmatprep.mubr.bf16.mxu1 %v7654_v28  ;;  %v8092_v38 = vpack.c.bf16 %v2604_v55, %v2588_v51  ;;  %v7103_v51 = vld [vmem:[#allocation7 + $0x110] sm:$0xff]  }
 0x25e   :  { %9255 = vst [vmem:[#allocation115_spill] sm:$0xff] %v8082_v48  ;;  %9256 = vst [vmem:[#allocation116_spill] sm:$0xff] %v8085_v13  ;;  %6381 = vmatpush3.bf16.msra.mxu0 %v7095_v4  ;;  %6493 = vmatpush3.bf16.msra.mxu1 %v7097_v61  ;;  %v7105_v13 = vld [vmem:[#allocation7 + $0x190] sm:$0xff]   ;;  %v7106_v48 = vld [vmem:[#allocation7 + $0x158] sm:$0xff]  }
 0x25f   :  { %v1739_v44 = vpop.f32.mrb[152].mxu0  ;;  %6382 = vmatprep.subr.bf16.mxu0 %v7098_v60  ;;  %v1932_v32 = vpop.f32.mrb[152].mxu1  ;;  %6494 = vmatprep.subr.bf16.mxu1 %v7100_v43 }
 0x260   :  { %v1741_v23 = vpop.f32.mrb[153].mxu0  ;;  %v2619_v56 = vmax.f32 %v1932_v32, 0.0  ;;  %v1934_v54 = vpop.f32.mrb[153].mxu1  ;;  %v2617_v37 = vmax.f32 %v1739_v44, 0.0  ;;  %v7108_v44 = vld [vmem:[#allocation7 + $0x1d8] sm:$0xff]  }
 0x261   :  { %v1743_v24 = vpop.f32.mrb[154].mxu0  ;;  %v2620_v59 = vmax.f32 %v1934_v54, 0.0  ;;  %v1936_v28 = vpop.f32.mrb[154].mxu1  ;;  %v2618_v1 = vmax.f32 %v1741_v23, 0.0 }
 0x262   :  { %v2633_v58 = vmax.f32 %v1743_v24, 0.0  ;;  %v1745_v4 = vpop.f32.mrb[155].mxu0  ;;  %6383 = vmatpush3.bf16.msra.mxu0 %v7099_v19  ;;  %v2635_v55 = vmax.f32 %v1936_v28, 0.0  ;;  %v1938_v60 = vpop.f32.mrb[155].mxu1  ;;  %6495 = vmatpush3.bf16.msra.mxu1 %v7101_v6  ;;  %v7107_v6 = vld [vmem:[#allocation7 + $0x118] sm:$0xff]  }
 0x263   :  { %v2634_v61 = vmax.f32 %v1745_v4, 0.0  ;;  %6384 = vmatprep.subr.bf16.mxu0 %v7102_v53  ;;  %v2636_v32 = vmax.f32 %v1938_v60, 0.0  ;;  %6496 = vmatprep.subr.bf16.mxu1 %v7104_v25  ;;  %v7110_v25 = vld [vmem:[#allocation7 + $0x160] sm:$0xff]  }
 0x264   :  { %v8094_v43 = vpack.c.bf16 %v2633_v58, %v2617_v37  ;;  %4250 = vmatmul.mubr.bf16.gmra.mrb[4].mxu0 %v7644_v21  ;;  %v8097_v54 = vpack.c.bf16 %v2635_v55, %v2619_v56  ;;  %4411 = vmatmul.mubr.bf16.gmra.mrb[4].mxu1 %v7647_v27  ;;  %v7109_v21 = vld [vmem:[#allocation7 + $0x198] sm:$0xff]   ;;  %v7112_v37 = vld [vmem:[#allocation7 + $0x1e0] sm:$0xff]  }
 0x265   :  { %4257 = vmatprep.mubr.bf16.mxu0 %v7663_v63  ;;  %v8101_v19 = vpack.c.bf16 %v2634_v61, %v2618_v1  ;;  %4418 = vmatprep.mubr.bf16.mxu1 %v7666_v2  ;;  %v8104_v53 = vpack.c.bf16 %v2636_v32, %v2620_v59  ;;  %v7111_v59 = vld [vmem:[#allocation7 + $0x120] sm:$0xff]   ;;  %v7114_v32 = vld [vmem:[#allocation7 + $0x168] sm:$0xff]  }
 0x266   :  { %6385 = vmatpush3.bf16.msra.mxu0 %v7103_v51  ;;  %6497 = vmatpush3.bf16.msra.mxu1 %v7105_v13  ;;  %v7113_v60 = vld [vmem:[#allocation7 + $0x1a0] sm:$0xff]  }
 0x267   :  { %v1749_v23 = vpop.f32.mrb[156].mxu0  ;;  %6386 = vmatprep.subr.bf16.mxu0 %v7106_v48  ;;  %v1942_v24 = vpop.f32.mrb[156].mxu1  ;;  %6498 = vmatprep.subr.bf16.mxu1 %v7108_v44 }
 0x268   :  { %v1751_v56 = vpop.f32.mrb[157].mxu0  ;;  %v2651_v27 = vmax.f32 %v1942_v24, 0.0  ;;  %v1944_v58 = vpop.f32.mrb[157].mxu1  ;;  %v2649_v28 = vmax.f32 %v1749_v23, 0.0  ;;  %v7116_v23 = vld [vmem:[#allocation7 + $0x1e8] sm:$0xff]  }
 0x269   :  { %v1753_v63 = vpop.f32.mrb[158].mxu0  ;;  %v2652_v4 = vmax.f32 %v1944_v58, 0.0  ;;  %v1946_v2 = vpop.f32.mrb[158].mxu1  ;;  %v2650_v55 = vmax.f32 %v1751_v56, 0.0 }
 0x26a   :  { %v2665_v1 = vmax.f32 %v1753_v63, 0.0  ;;  %v1755_v51 = vpop.f32.mrb[159].mxu0  ;;  %6387 = vmatpush3.bf16.msra.mxu0 %v7107_v6  ;;  %v2667_v61 = vmax.f32 %v1946_v2, 0.0  ;;  %v1948_v48 = vpop.f32.mrb[159].mxu1  ;;  %6499 = vmatpush3.bf16.msra.mxu1 %v7109_v21  ;;  %v7115_v21 = vld [vmem:[#allocation7 + $0x128] sm:$0xff]  }
 0x26b   :  { %v2666_v13 = vmax.f32 %v1755_v51, 0.0  ;;  %6388 = vmatprep.subr.bf16.mxu0 %v7110_v25  ;;  %v2668_v24 = vmax.f32 %v1948_v48, 0.0  ;;  %6500 = vmatprep.subr.bf16.mxu1 %v7112_v37  ;;  %v7118_v37 = vld [vmem:[#allocation7 + $0x170] sm:$0xff]  }
 0x26c   :  { %v8106_v44 = vpack.c.bf16 %v2665_v1, %v2649_v28  ;;  %4258 = vmatmul.mubr.bf16.gmra.mrb[8].mxu0 %v7656_v52  ;;  %v8109_v58 = vpack.c.bf16 %v2667_v61, %v2651_v27  ;;  %4419 = vmatmul.mubr.bf16.gmra.mrb[8].mxu1 %v7659_v62  ;;  %v7117_v52 = vld [vmem:[#allocation7 + $0x1a8] sm:$0xff]   ;;  %v7120_v28 = vld [vmem:[#allocation7 + $0x1f0] sm:$0xff]  }
 0x26d   :  { %4265 = vmatprep.mubr.bf16.mxu0 %v7675_v35  ;;  %v8113_v6 = vpack.c.bf16 %v2666_v13, %v2650_v55  ;;  %4426 = vmatprep.mubr.bf16.mxu1 %v7678_v36  ;;  %v8116_v25 = vpack.c.bf16 %v2668_v24, %v2652_v4  ;;  %v7119_v4 = vld [vmem:[#allocation7 + $0x130] sm:$0xff]   ;;  %v7122_v24 = vld [vmem:[#allocation7 + $0x178] sm:$0xff]  }
 0x26e   :  { %6389 = vmatpush3.bf16.msra.mxu0 %v7111_v59  ;;  %6501 = vmatpush3.bf16.msra.mxu1 %v7113_v60 }
 0x26f   :  { %v1759_v56 = vpop.f32.mrb[160].mxu0  ;;  %6390 = vmatprep.subr.bf16.mxu0 %v7114_v32  ;;  %v1952_v63 = vpop.f32.mrb[160].mxu1  ;;  %6502 = vmatprep.subr.bf16.mxu1 %v7116_v23  ;;  %v7121_v32 = vld [vmem:[#allocation7 + $0x1b0] sm:$0xff]  }
 0x270   :  { %v1761_v27 = vpop.f32.mrb[161].mxu0  ;;  %v2683_v62 = vmax.f32 %v1952_v63, 0.0  ;;  %v1954_v1 = vpop.f32.mrb[161].mxu1  ;;  %v2681_v2 = vmax.f32 %v1759_v56, 0.0  ;;  %v7124_v56 = vld [vmem:[#allocation7 + $0x1f8] sm:$0xff]  }
 0x271   :  { %v1763_v35 = vpop.f32.mrb[162].mxu0  ;;  %v2684_v51 = vmax.f32 %v1954_v1, 0.0  ;;  %v1956_v36 = vpop.f32.mrb[162].mxu1  ;;  %v2682_v61 = vmax.f32 %v1761_v27, 0.0 }
 0x272   :  { %v2697_v55 = vmax.f32 %v1763_v35, 0.0  ;;  %v1765_v59 = vpop.f32.mrb[163].mxu0  ;;  %6391 = vmatpush3.bf16.msra.mxu0 %v7115_v21  ;;  %v2699_v13 = vmax.f32 %v1956_v36, 0.0  ;;  %v1958_v60 = vpop.f32.mrb[163].mxu1  ;;  %6503 = vmatpush3.bf16.msra.mxu1 %v7117_v52  ;;  %v9258_v21 = vld [vmem:[#allocation14_spill] sm:$0xff]  ;;  %v9259_v35 = vld [vmem:[#allocation15_spill] sm:$0xff] }
 0x273   :  { %v2698_v48 = vmax.f32 %v1765_v59, 0.0  ;;  %6392 = vmatprep.subr.bf16.mxu0 %v7118_v37  ;;  %v2700_v63 = vmax.f32 %v1958_v60, 0.0  ;;  %6504 = vmatprep.subr.bf16.mxu1 %v7120_v28  ;;  %v7123_v52 = vld [vmem:[#allocation7 + $0x138] sm:$0xff]   ;;  %v7126_v28 = vld [vmem:[#allocation7 + $0x240] sm:$0xff]  }
 0x274   :  { %v8118_v23 = vpack.c.bf16 %v2697_v55, %v2681_v2  ;;  %4266 = vmatmul.mubr.bf16.gmra.mrb[12].mxu0 %v7668_v29  ;;  %v8121_v1 = vpack.c.bf16 %v2699_v13, %v2683_v62  ;;  %4427 = vmatmul.mubr.bf16.gmra.mrb[12].mxu1 %v7671_v31  ;;  %v7125_v29 = vld [vmem:[#allocation7 + $0x1b8] sm:$0xff]   ;;  %v7128_v36 = vld [vmem:[#allocation7 + $0x2c0] sm:$0xff]  }
 0x275   :  { %4273 = vmatprep.mubr.bf16.mxu0 %v9258_v21  ;;  %v8125_v27 = vpack.c.bf16 %v2698_v48, %v2682_v61  ;;  %4434 = vmatprep.mubr.bf16.mxu1 %v9259_v35  ;;  %v8128_v37 = vpack.c.bf16 %v2700_v63, %v2684_v51 }
 0x276   :  { %9257 = vst [vmem:[#allocation117_spill] sm:$0xff] %v8121_v1  ;;  %6393 = vmatpush3.bf16.msra.mxu0 %v7119_v4  ;;  %6505 = vmatpush3.bf16.msra.mxu1 %v7121_v32 }
 0x277   :  { %v1769_v2 = vpop.f32.mrb[164].mxu0  ;;  %6394 = vmatprep.subr.bf16.mxu0 %v7122_v24  ;;  %v1962_v55 = vpop.f32.mrb[164].mxu1  ;;  %6506 = vmatprep.subr.bf16.mxu1 %v7124_v56  ;;  %v9261_v56 = vld [vmem:[#allocation12_spill] sm:$0xff] }
 0x278   :  { %v1771_v62 = vpop.f32.mrb[165].mxu0  ;;  %v2715_v31 = vmax.f32 %v1962_v55, 0.0  ;;  %v1964_v59 = vpop.f32.mrb[165].mxu1  ;;  %v2713_v61 = vmax.f32 %v1769_v2, 0.0  ;;  %v9263_v2 = vld [vmem:[#allocation13_spill] sm:$0xff] }
 0x279   :  { %v1773_v13 = vpop.f32.mrb[166].mxu0  ;;  %v2716_v48 = vmax.f32 %v1964_v59, 0.0  ;;  %v1966_v21 = vpop.f32.mrb[166].mxu1  ;;  %v2714_v51 = vmax.f32 %v1771_v62, 0.0  ;;  %v9264_v59 = vld [vmem:[#allocation18_spill] sm:$0xff] }
 0x27a   :  { %v2729_v60 = vmax.f32 %v1773_v13, 0.0  ;;  %v1775_v4 = vpop.f32.mrb[167].mxu0  ;;  %6395 = vmatpush3.bf16.msra.mxu0 %v7123_v52  ;;  %v2731_v63 = vmax.f32 %v1966_v21, 0.0  ;;  %v1968_v32 = vpop.f32.mrb[167].mxu1  ;;  %6507 = vmatpush3.bf16.msra.mxu1 %v7125_v29  ;;  %v9265_v52 = vld [vmem:[#allocation19_spill] sm:$0xff] }
 0x27b   :  { %v2730_v35 = vmax.f32 %v1775_v4, 0.0  ;;  %6604 = vmatprep.subr.bf16.mxu0 %v7126_v28  ;;  %v2732_v1 = vmax.f32 %v1968_v32, 0.0  ;;  %6716 = vmatprep.subr.bf16.mxu1 %v7128_v36 }
 0x27c   :  { %v8130_v24 = vpack.c.bf16 %v2729_v60, %v2713_v61  ;;  %4274 = vmatmul.mubr.bf16.gmra.mrb[16].mxu0 %v9261_v56  ;;  %v8133_v55 = vpack.c.bf16 %v2731_v63, %v2715_v31  ;;  %4435 = vmatmul.mubr.bf16.gmra.mrb[16].mxu1 %v9263_v2 }
 0x27d   :  { %4281 = vmatprep.mubr.bf16.mxu0 %v9264_v59  ;;  %v8137_v13 = vpack.c.bf16 %v2730_v35, %v2714_v51  ;;  %4442 = vmatprep.mubr.bf16.mxu1 %v9265_v52  ;;  %v8140_v62 = vpack.c.bf16 %v2732_v1, %v2716_v48  ;;  %v9268_v1 = vld [vmem:[#allocation16_spill] sm:$0xff] }
 0x27e   :  { %9260 = vst [vmem:[#allocation14_spill] sm:$0xff] %v8130_v24  ;;  %9262 = vst [vmem:[#allocation15_spill] sm:$0xff] %v8133_v55  ;;  %v9270_v24 = vld [vmem:[#allocation17_spill] sm:$0xff] }
 0x27f   :  { %9266 = vst [vmem:[#allocation12_spill] sm:$0xff] %v8140_v62  ;;  %v1779_v29 = vpop.f32.mrb[168].mxu0  ;;  %v1972_v28 = vpop.f32.mrb[168].mxu1 }
 0x280   :  { %v1781_v61 = vpop.f32.mrb[169].mxu0  ;;  %v2747_v60 = vmax.f32 %v1972_v28, 0.0  ;;  %v1974_v21 = vpop.f32.mrb[169].mxu1  ;;  %v2745_v32 = vmax.f32 %v1779_v29, 0.0  ;;  %v9271_v28 = vld [vmem:[#allocation22_spill] sm:$0xff] }
 0x281   :  { %v1783_v4 = vpop.f32.mrb[170].mxu0  ;;  %v2748_v36 = vmax.f32 %v1974_v21, 0.0  ;;  %v1976_v63 = vpop.f32.mrb[170].mxu1  ;;  %v2746_v2 = vmax.f32 %v1781_v61, 0.0  ;;  %v9273_v21 = vld [vmem:[#allocation23_spill] sm:$0xff] }
 0x282   :  { %v2761_v31 = vmax.f32 %v1783_v4, 0.0  ;;  %v1785_v56 = vpop.f32.mrb[171].mxu0  ;;  %v2763_v55 = vmax.f32 %v1976_v63, 0.0  ;;  %v1978_v51 = vpop.f32.mrb[171].mxu1 }
 0x283   :  { %v2762_v59 = vmax.f32 %v1785_v56, 0.0  ;;  %v2764_v52 = vmax.f32 %v1978_v51, 0.0 }
 0x284   :  { %v8142_v35 = vpack.c.bf16 %v2761_v31, %v2745_v32  ;;  %4282 = vmatmul.mubr.bf16.gmra.mrb[20].mxu0 %v9268_v1  ;;  %v8145_v48 = vpack.c.bf16 %v2763_v55, %v2747_v60  ;;  %4443 = vmatmul.mubr.bf16.gmra.mrb[20].mxu1 %v9270_v24 }
 0x285   :  { %4289 = vmatprep.mubr.bf16.mxu0 %v9271_v28  ;;  %v8149_v29 = vpack.c.bf16 %v2762_v59, %v2746_v2  ;;  %4450 = vmatprep.mubr.bf16.mxu1 %v9273_v21  ;;  %v8152_v4 = vpack.c.bf16 %v2764_v52, %v2748_v36  ;;  %v9276_v36 = vld [vmem:[#allocation20_spill] sm:$0xff] }
 0x286   :  { %9267 = vst [vmem:[#allocation13_spill] sm:$0xff] %v8142_v35  ;;  %9269 = vst [vmem:[#allocation18_spill] sm:$0xff] %v8145_v48 }
 0x287   :  { %9272 = vst [vmem:[#allocation19_spill] sm:$0xff] %v8149_v29  ;;  %9274 = vst [vmem:[#allocation16_spill] sm:$0xff] %v8152_v4  ;;  %v1789_v61 = vpop.f32.mrb[172].mxu0  ;;  %v1982_v63 = vpop.f32.mrb[172].mxu1  ;;  %v9278_v4 = vld [vmem:[#allocation21_spill] sm:$0xff] }
 0x288   :  { %v1791_v56 = vpop.f32.mrb[173].mxu0  ;;  %v2779_v32 = vmax.f32 %v1982_v63, 0.0  ;;  %v1984_v31 = vpop.f32.mrb[173].mxu1  ;;  %v2777_v35 = vmax.f32 %v1789_v61, 0.0  ;;  %v9279_v63 = vld [vmem:[#allocation26_spill] sm:$0xff] }
 0x289   :  { %v1793_v51 = vpop.f32.mrb[174].mxu0  ;;  %v2780_v1 = vmax.f32 %v1984_v31, 0.0  ;;  %v1986_v60 = vpop.f32.mrb[174].mxu1  ;;  %v2778_v24 = vmax.f32 %v1791_v56, 0.0  ;;  %v9280_v31 = vld [vmem:[#allocation27_spill] sm:$0xff] }
 0x28a   :  { %v2793_v55 = vmax.f32 %v1793_v51, 0.0  ;;  %v1795_v48 = vpop.f32.mrb[175].mxu0  ;;  %v2795_v62 = vmax.f32 %v1986_v60, 0.0  ;;  %v1988_v2 = vpop.f32.mrb[175].mxu1 }
 0x28b   :  { %v2794_v28 = vmax.f32 %v1795_v48, 0.0  ;;  %v2796_v21 = vmax.f32 %v1988_v2, 0.0 }
 0x28c   :  { %v8154_v59 = vpack.c.bf16 %v2793_v55, %v2777_v35  ;;  %4290 = vmatmul.mubr.bf16.gmra.mrb[24].mxu0 %v9276_v36  ;;  %v8157_v52 = vpack.c.bf16 %v2795_v62, %v2779_v32  ;;  %4451 = vmatmul.mubr.bf16.gmra.mrb[24].mxu1 %v9278_v4 }
 0x28d   :  { %4297 = vmatprep.mubr.bf16.mxu0 %v9279_v63  ;;  %v8161_v61 = vpack.c.bf16 %v2794_v28, %v2778_v24  ;;  %4458 = vmatprep.mubr.bf16.mxu1 %v9280_v31  ;;  %v8164_v51 = vpack.c.bf16 %v2796_v21, %v2780_v1  ;;  %v9282_v1 = vld [vmem:[#allocation24_spill] sm:$0xff] }
 0x28e   :  { %9275 = vst [vmem:[#allocation17_spill] sm:$0xff] %v8154_v59  ;;  %9277 = vst [vmem:[#allocation22_spill] sm:$0xff] %v8157_v52 }
 0x28f   :  { %9281 = vst [vmem:[#allocation23_spill] sm:$0xff] %v8164_v51  ;;  %v1799_v56 = vpop.f32.mrb[176].mxu0  ;;  %v1992_v48 = vpop.f32.mrb[176].mxu1  ;;  %v9284_v51 = vld [vmem:[#allocation25_spill] sm:$0xff] }
 0x290   :  { %v1801_v60 = vpop.f32.mrb[177].mxu0  ;;  %v2811_v35 = vmax.f32 %v1992_v48, 0.0  ;;  %v1994_v55 = vpop.f32.mrb[177].mxu1  ;;  %v2809_v59 = vmax.f32 %v1799_v56, 0.0 }
 0x291   :  { %v1803_v2 = vpop.f32.mrb[178].mxu0  ;;  %v2812_v36 = vmax.f32 %v1994_v55, 0.0  ;;  %v1996_v32 = vpop.f32.mrb[178].mxu1  ;;  %v2810_v4 = vmax.f32 %v1801_v60, 0.0 }
 0x292   :  { %v2825_v62 = vmax.f32 %v1803_v2, 0.0  ;;  %v1805_v52 = vpop.f32.mrb[179].mxu0  ;;  %v2827_v29 = vmax.f32 %v1996_v32, 0.0  ;;  %v1998_v24 = vpop.f32.mrb[179].mxu1 }
 0x293   :  { %v2826_v63 = vmax.f32 %v1805_v52, 0.0  ;;  %v2828_v31 = vmax.f32 %v1998_v24, 0.0 }
 0x294   :  { %v8166_v28 = vpack.c.bf16 %v2825_v62, %v2809_v59  ;;  %4298 = vmatmul.mubr.bf16.gmra.mrb[28].mxu0 %v9282_v1  ;;  %v8169_v21 = vpack.c.bf16 %v2827_v29, %v2811_v35  ;;  %4459 = vmatmul.mubr.bf16.gmra.mrb[28].mxu1 %v9284_v51 }
 0x295   :  { %4305 = vmatprep.mubr.bf16.mxu0 %v7741_v10  ;;  %v8173_v56 = vpack.c.bf16 %v2826_v63, %v2810_v4  ;;  %4466 = vmatprep.mubr.bf16.mxu1 %v7744_v7  ;;  %v8176_v48 = vpack.c.bf16 %v2828_v31, %v2812_v36 }
 0x296   :  { %9283 = vst [vmem:[#allocation20_spill] sm:$0xff] %v8169_v21 }
 0x297   :  { %v1809_v60 = vpop.f32.mrb[180].mxu0  ;;  %v2002_v52 = vpop.f32.mrb[180].mxu1 }
 0x298   :  { %v1811_v55 = vpop.f32.mrb[181].mxu0  ;;  %v2843_v59 = vmax.f32 %v2002_v52, 0.0  ;;  %v2004_v2 = vpop.f32.mrb[181].mxu1  ;;  %v2841_v32 = vmax.f32 %v1809_v60, 0.0 }
 0x299   :  { %v1813_v62 = vpop.f32.mrb[182].mxu0  ;;  %v2844_v24 = vmax.f32 %v2004_v2, 0.0  ;;  %v2006_v35 = vpop.f32.mrb[182].mxu1  ;;  %v2842_v51 = vmax.f32 %v1811_v55, 0.0 }
 0x29a   :  { %v2857_v29 = vmax.f32 %v1813_v62, 0.0  ;;  %v1815_v1 = vpop.f32.mrb[183].mxu0  ;;  %v2859_v21 = vmax.f32 %v2006_v35, 0.0  ;;  %v2008_v4 = vpop.f32.mrb[183].mxu1 }
 0x29b   :  { %v2858_v10 = vmax.f32 %v1815_v1, 0.0  ;;  %v2860_v7 = vmax.f32 %v2008_v4, 0.0 }
 0x29c   :  { %v8178_v63 = vpack.c.bf16 %v2857_v29, %v2841_v32  ;;  %4306 = vmatmul.mubr.bf16.gmra.mrb[32].mxu0 %v7734_v22  ;;  %v8181_v36 = vpack.c.bf16 %v2859_v21, %v2843_v59  ;;  %4467 = vmatmul.mubr.bf16.gmra.mrb[32].mxu1 %v7737_v5 }
 0x29d   :  { %4313 = vmatprep.mubr.bf16.mxu0 %v7753_v16  ;;  %v8185_v31 = vpack.c.bf16 %v2858_v10, %v2842_v51  ;;  %4474 = vmatprep.mubr.bf16.mxu1 %v7756_v17  ;;  %v8188_v60 = vpack.c.bf16 %v2860_v7, %v2844_v24 }
 0x29e   :  { %9285 = vst [vmem:[#allocation21_spill] sm:$0xff] %v8178_v63  ;;  %9286 = vst [vmem:[#allocation26_spill] sm:$0xff] %v8181_v36  ;;  %v7138_v36 = vld [vmem:[#allocation7 + $0x258] sm:$0xff]  }
 0x29f   :  { %v1819_v52 = vpop.f32.mrb[184].mxu0  ;;  %v2012_v55 = vpop.f32.mrb[184].mxu1  ;;  %v9349_v63 = vld [vmem:[#allocation55_spill] sm:$0xff] }
 0x2a0   :  { %v1821_v2 = vpop.f32.mrb[185].mxu0  ;;  %v2875_v62 = vmax.f32 %v2012_v55, 0.0  ;;  %v2014_v32 = vpop.f32.mrb[185].mxu1  ;;  %v2873_v35 = vmax.f32 %v1819_v52, 0.0  ;;  %v9290_v52 = vld [vmem:[#allocation30_spill] sm:$0xff] }
 0x2a1   :  { %v1823_v29 = vpop.f32.mrb[186].mxu0  ;;  %v2876_v22 = vmax.f32 %v2014_v32, 0.0  ;;  %v2016_v59 = vpop.f32.mrb[186].mxu1  ;;  %v2874_v5 = vmax.f32 %v1821_v2, 0.0 }
 0x2a2   :  { %v2889_v21 = vmax.f32 %v1823_v29, 0.0  ;;  %v1825_v1 = vpop.f32.mrb[187].mxu0  ;;  %v2891_v4 = vmax.f32 %v2016_v59, 0.0  ;;  %v2018_v51 = vpop.f32.mrb[187].mxu1 }
 0x2a3   :  { %v2890_v16 = vmax.f32 %v1825_v1, 0.0  ;;  %v2892_v17 = vmax.f32 %v2018_v51, 0.0 }
 0x2a4   :  { %v8190_v10 = vpack.c.bf16 %v2889_v21, %v2873_v35  ;;  %4314 = vmatmul.mubr.bf16.gmra.mrb[36].mxu0 %v7746_v33  ;;  %v8193_v24 = vpack.c.bf16 %v2891_v4, %v2875_v62  ;;  %4475 = vmatmul.mubr.bf16.gmra.mrb[36].mxu1 %v7749_v8 }
 0x2a5   :  { %4321 = vmatprep.mubr.bf16.mxu0 %v7765_v3  ;;  %v8197_v7 = vpack.c.bf16 %v2890_v16, %v2874_v5  ;;  %4482 = vmatprep.mubr.bf16.mxu1 %v9290_v52  ;;  %v8200_v55 = vpack.c.bf16 %v2892_v17, %v2876_v22  ;;  %v9293_v22 = vld [vmem:[#allocation28_spill] sm:$0xff] }
 0x2a6   :  { %9287 = vst [vmem:[#allocation27_spill] sm:$0xff] %v8190_v10  ;;  %9288 = vst [vmem:[#allocation24_spill] sm:$0xff] %v8193_v24  ;;  %v9295_v10 = vld [vmem:[#allocation29_spill] sm:$0xff] }
 0x2a7   :  { %9289 = vst [vmem:[#allocation25_spill] sm:$0xff] %v8197_v7  ;;  %9291 = vst [vmem:[#allocation30_spill] sm:$0xff] %v8200_v55  ;;  %v1829_v2 = vpop.f32.mrb[188].mxu0  ;;  %v2022_v32 = vpop.f32.mrb[188].mxu1 }
 0x2a8   :  { %v1831_v29 = vpop.f32.mrb[189].mxu0  ;;  %v2907_v35 = vmax.f32 %v2022_v32, 0.0  ;;  %v2024_v21 = vpop.f32.mrb[189].mxu1  ;;  %v2905_v1 = vmax.f32 %v1829_v2, 0.0  ;;  %v9296_v32 = vld [vmem:[#allocation33_spill] sm:$0xff] }
 0x2a9   :  { %v1833_v59 = vpop.f32.mrb[190].mxu0  ;;  %v2908_v33 = vmax.f32 %v2024_v21, 0.0  ;;  %v2026_v4 = vpop.f32.mrb[190].mxu1  ;;  %v2906_v8 = vmax.f32 %v1831_v29, 0.0  ;;  %v9298_v21 = vld [vmem:[#allocation34_spill] sm:$0xff] }
 0x2aa   :  { %v2921_v62 = vmax.f32 %v1833_v59, 0.0  ;;  %v1835_v51 = vpop.f32.mrb[191].mxu0  ;;  %v2923_v24 = vmax.f32 %v2026_v4, 0.0  ;;  %v2028_v5 = vpop.f32.mrb[191].mxu1 }
 0x2ab   :  { %v2922_v3 = vmax.f32 %v1835_v51, 0.0  ;;  %v2924_v52 = vmax.f32 %v2028_v5, 0.0 }
 0x2ac   :  { %v8202_v16 = vpack.c.bf16 %v2921_v62, %v2905_v1  ;;  %4322 = vmatmul.mubr.bf16.gmra.mrb[40].mxu0 %v9293_v22  ;;  %v8205_v17 = vpack.c.bf16 %v2923_v24, %v2907_v35  ;;  %4483 = vmatmul.mubr.bf16.gmra.mrb[40].mxu1 %v9295_v10 }
 0x2ad   :  { %4329 = vmatprep.mubr.bf16.mxu0 %v9296_v32  ;;  %v8209_v2 = vpack.c.bf16 %v2922_v3, %v2906_v8  ;;  %4490 = vmatprep.mubr.bf16.mxu1 %v9298_v21  ;;  %v8212_v59 = vpack.c.bf16 %v2924_v52, %v2908_v33  ;;  %v9301_v33 = vld [vmem:[#allocation31_spill] sm:$0xff] }
 0x2ae   :  { %9292 = vst [vmem:[#allocation118_spill] sm:$0xff] %v8202_v16  ;;  %9294 = vst [vmem:[#allocation28_spill] sm:$0xff] %v8205_v17 }
 0x2af   :  { %9297 = vst [vmem:[#allocation29_spill] sm:$0xff] %v8209_v2  ;;  %9299 = vst [vmem:[#allocation33_spill] sm:$0xff] %v8212_v59  ;;  %v2065_v29 = vpop.f32.mrb[192].mxu0  ;;  %v2258_v4 = vpop.f32.mrb[192].mxu1  ;;  %v9303_v59 = vld [vmem:[#allocation32_spill] sm:$0xff] }
 0x2b0   :  { %v2067_v51 = vpop.f32.mrb[193].mxu0  ;;  %v2431_v1 = vmax.f32 %v2258_v4, 0.0  ;;  %v2260_v62 = vpop.f32.mrb[193].mxu1  ;;  %v2429_v16 = vmax.f32 %v2065_v29, 0.0  ;;  %v9304_v4 = vld [vmem:[#allocation37_spill] sm:$0xff] }
 0x2b1   :  { %v2069_v5 = vpop.f32.mrb[194].mxu0  ;;  %v2432_v22 = vmax.f32 %v2260_v62, 0.0  ;;  %v2262_v35 = vpop.f32.mrb[194].mxu1  ;;  %v2430_v10 = vmax.f32 %v2067_v51, 0.0  ;;  %v9306_v62 = vld [vmem:[#allocation38_spill] sm:$0xff] }
 0x2b2   :  { %v2445_v24 = vmax.f32 %v2069_v5, 0.0  ;;  %v2071_v17 = vpop.f32.mrb[195].mxu0  ;;  %v2447_v55 = vmax.f32 %v2262_v35, 0.0  ;;  %v2264_v8 = vpop.f32.mrb[195].mxu1 }
 0x2b3   :  { %v2446_v32 = vmax.f32 %v2071_v17, 0.0  ;;  %v2448_v21 = vmax.f32 %v2264_v8, 0.0 }
 0x2b4   :  { %v8214_v3 = vpack.c.bf16 %v2445_v24, %v2429_v16  ;;  %4330 = vmatmul.mubr.bf16.gmra.mrb[44].mxu0 %v9301_v33  ;;  %v8217_v52 = vpack.c.bf16 %v2447_v55, %v2431_v1  ;;  %4491 = vmatmul.mubr.bf16.gmra.mrb[44].mxu1 %v9303_v59 }
 0x2b5   :  { %4337 = vmatprep.mubr.bf16.mxu0 %v9304_v4  ;;  %v8221_v29 = vpack.c.bf16 %v2446_v32, %v2430_v10  ;;  %4498 = vmatprep.mubr.bf16.mxu1 %v9306_v62  ;;  %v8224_v5 = vpack.c.bf16 %v2448_v21, %v2432_v22  ;;  %v9309_v22 = vld [vmem:[#allocation35_spill] sm:$0xff] }
 0x2b6   :  { %9300 = vst [vmem:[#allocation34_spill] sm:$0xff] %v8214_v3  ;;  %9302 = vst [vmem:[#allocation31_spill] sm:$0xff] %v8217_v52 }
 0x2b7   :  { %9305 = vst [vmem:[#allocation32_spill] sm:$0xff] %v8221_v29  ;;  %9307 = vst [vmem:[#allocation37_spill] sm:$0xff] %v8224_v5  ;;  %v2075_v51 = vpop.f32.mrb[196].mxu0  ;;  %v2268_v17 = vpop.f32.mrb[196].mxu1  ;;  %v9311_v5 = vld [vmem:[#allocation36_spill] sm:$0xff] }
 0x2b8   :  { %v2077_v35 = vpop.f32.mrb[197].mxu0  ;;  %v2463_v16 = vmax.f32 %v2268_v17, 0.0  ;;  %v2270_v24 = vpop.f32.mrb[197].mxu1  ;;  %v2461_v3 = vmax.f32 %v2075_v51, 0.0  ;;  %v9312_v17 = vld [vmem:[#allocation41_spill] sm:$0xff] }
 0x2b9   :  { %v2079_v8 = vpop.f32.mrb[198].mxu0  ;;  %v2464_v33 = vmax.f32 %v2270_v24, 0.0  ;;  %v2272_v1 = vpop.f32.mrb[198].mxu1  ;;  %v2462_v59 = vmax.f32 %v2077_v35, 0.0  ;;  %v9314_v24 = vld [vmem:[#allocation42_spill] sm:$0xff] }
 0x2ba   :  { %v2477_v55 = vmax.f32 %v2079_v8, 0.0  ;;  %v2081_v52 = vpop.f32.mrb[199].mxu0  ;;  %v2479_v2 = vmax.f32 %v2272_v1, 0.0  ;;  %v2274_v10 = vpop.f32.mrb[199].mxu1 }
 0x2bb   :  { %v2478_v4 = vmax.f32 %v2081_v52, 0.0  ;;  %v2480_v62 = vmax.f32 %v2274_v10, 0.0 }
 0x2bc   :  { %v8226_v32 = vpack.c.bf16 %v2477_v55, %v2461_v3  ;;  %4338 = vmatmul.mubr.bf16.gmra.mrb[48].mxu0 %v9309_v22  ;;  %v8229_v21 = vpack.c.bf16 %v2479_v2, %v2463_v16  ;;  %4499 = vmatmul.mubr.bf16.gmra.mrb[48].mxu1 %v9311_v5 }
 0x2bd   :  { %4345 = vmatprep.mubr.bf16.mxu0 %v9312_v17  ;;  %v8233_v51 = vpack.c.bf16 %v2478_v4, %v2462_v59  ;;  %4506 = vmatprep.mubr.bf16.mxu1 %v9314_v24  ;;  %v8236_v8 = vpack.c.bf16 %v2480_v62, %v2464_v33  ;;  %v9317_v33 = vld [vmem:[#allocation39_spill] sm:$0xff] }
 0x2be   :  { %9308 = vst [vmem:[#allocation38_spill] sm:$0xff] %v8226_v32  ;;  %9310 = vst [vmem:[#allocation35_spill] sm:$0xff] %v8229_v21 }
 0x2bf   :  { %9313 = vst [vmem:[#allocation36_spill] sm:$0xff] %v8233_v51  ;;  %9315 = vst [vmem:[#allocation41_spill] sm:$0xff] %v8236_v8  ;;  %v2085_v35 = vpop.f32.mrb[200].mxu0  ;;  %v2278_v52 = vpop.f32.mrb[200].mxu1  ;;  %v9319_v8 = vld [vmem:[#allocation40_spill] sm:$0xff] }
 0x2c0   :  { %v2087_v1 = vpop.f32.mrb[201].mxu0  ;;  %v2495_v3 = vmax.f32 %v2278_v52, 0.0  ;;  %v2280_v55 = vpop.f32.mrb[201].mxu1  ;;  %v2493_v32 = vmax.f32 %v2085_v35, 0.0  ;;  %v9320_v52 = vld [vmem:[#allocation45_spill] sm:$0xff] }
 0x2c1   :  { %v2089_v10 = vpop.f32.mrb[202].mxu0  ;;  %v2496_v22 = vmax.f32 %v2280_v55, 0.0  ;;  %v2282_v16 = vpop.f32.mrb[202].mxu1  ;;  %v2494_v5 = vmax.f32 %v2087_v1, 0.0  ;;  %v9322_v55 = vld [vmem:[#allocation46_spill] sm:$0xff] }
 0x2c2   :  { %v2509_v2 = vmax.f32 %v2089_v10, 0.0  ;;  %v2091_v21 = vpop.f32.mrb[203].mxu0  ;;  %v2511_v29 = vmax.f32 %v2282_v16, 0.0  ;;  %v2284_v59 = vpop.f32.mrb[203].mxu1 }
 0x2c3   :  { %v2510_v17 = vmax.f32 %v2091_v21, 0.0  ;;  %v2512_v24 = vmax.f32 %v2284_v59, 0.0 }
 0x2c4   :  { %v8238_v4 = vpack.c.bf16 %v2509_v2, %v2493_v32  ;;  %4346 = vmatmul.mubr.bf16.gmra.mrb[52].mxu0 %v9317_v33  ;;  %v8241_v62 = vpack.c.bf16 %v2511_v29, %v2495_v3  ;;  %4507 = vmatmul.mubr.bf16.gmra.mrb[52].mxu1 %v9319_v8 }
 0x2c5   :  { %4353 = vmatprep.mubr.bf16.mxu0 %v9320_v52  ;;  %v8245_v35 = vpack.c.bf16 %v2510_v17, %v2494_v5  ;;  %4514 = vmatprep.mubr.bf16.mxu1 %v9322_v55  ;;  %v8248_v10 = vpack.c.bf16 %v2512_v24, %v2496_v22  ;;  %v9325_v22 = vld [vmem:[#allocation43_spill] sm:$0xff] }
 0x2c6   :  { %9316 = vst [vmem:[#allocation42_spill] sm:$0xff] %v8238_v4  ;;  %9318 = vst [vmem:[#allocation39_spill] sm:$0xff] %v8241_v62 }
 0x2c7   :  { %9321 = vst [vmem:[#allocation40_spill] sm:$0xff] %v8245_v35  ;;  %9323 = vst [vmem:[#allocation45_spill] sm:$0xff] %v8248_v10  ;;  %v2095_v1 = vpop.f32.mrb[204].mxu0  ;;  %v2288_v21 = vpop.f32.mrb[204].mxu1  ;;  %v9327_v10 = vld [vmem:[#allocation44_spill] sm:$0xff] }
 0x2c8   :  { %v2097_v16 = vpop.f32.mrb[205].mxu0  ;;  %v2527_v32 = vmax.f32 %v2288_v21, 0.0  ;;  %v2290_v2 = vpop.f32.mrb[205].mxu1  ;;  %v2525_v4 = vmax.f32 %v2095_v1, 0.0  ;;  %v9328_v21 = vld [vmem:[#allocation49_spill] sm:$0xff] }
 0x2c9   :  { %v2099_v59 = vpop.f32.mrb[206].mxu0  ;;  %v2528_v33 = vmax.f32 %v2290_v2, 0.0  ;;  %v2292_v3 = vpop.f32.mrb[206].mxu1  ;;  %v2526_v8 = vmax.f32 %v2097_v16, 0.0  ;;  %v9330_v2 = vld [vmem:[#allocation50_spill] sm:$0xff] }
 0x2ca   :  { %v2541_v29 = vmax.f32 %v2099_v59, 0.0  ;;  %v2101_v62 = vpop.f32.mrb[207].mxu0  ;;  %v2543_v51 = vmax.f32 %v2292_v3, 0.0  ;;  %v2294_v5 = vpop.f32.mrb[207].mxu1 }
 0x2cb   :  { %v2542_v52 = vmax.f32 %v2101_v62, 0.0  ;;  %v2544_v55 = vmax.f32 %v2294_v5, 0.0 }
 0x2cc   :  { %v8250_v17 = vpack.c.bf16 %v2541_v29, %v2525_v4  ;;  %4354 = vmatmul.mubr.bf16.gmra.mrb[56].mxu0 %v9325_v22  ;;  %v8253_v24 = vpack.c.bf16 %v2543_v51, %v2527_v32  ;;  %4515 = vmatmul.mubr.bf16.gmra.mrb[56].mxu1 %v9327_v10 }
 0x2cd   :  { %4361 = vmatprep.mubr.bf16.mxu0 %v9328_v21  ;;  %v8257_v1 = vpack.c.bf16 %v2542_v52, %v2526_v8  ;;  %4522 = vmatprep.mubr.bf16.mxu1 %v9330_v2  ;;  %v8260_v59 = vpack.c.bf16 %v2544_v55, %v2528_v33  ;;  %v9333_v33 = vld [vmem:[#allocation47_spill] sm:$0xff] }
 0x2ce   :  { %9324 = vst [vmem:[#allocation46_spill] sm:$0xff] %v8250_v17  ;;  %9326 = vst [vmem:[#allocation43_spill] sm:$0xff] %v8253_v24 }
 0x2cf   :  { %9329 = vst [vmem:[#allocation44_spill] sm:$0xff] %v8257_v1  ;;  %9331 = vst [vmem:[#allocation49_spill] sm:$0xff] %v8260_v59  ;;  %v2105_v16 = vpop.f32.mrb[208].mxu0  ;;  %v2298_v62 = vpop.f32.mrb[208].mxu1  ;;  %v9335_v59 = vld [vmem:[#allocation48_spill] sm:$0xff] }
 0x2d0   :  { %v2107_v3 = vpop.f32.mrb[209].mxu0  ;;  %v2559_v4 = vmax.f32 %v2298_v62, 0.0  ;;  %v2300_v29 = vpop.f32.mrb[209].mxu1  ;;  %v2557_v17 = vmax.f32 %v2105_v16, 0.0  ;;  %v9336_v62 = vld [vmem:[#allocation53_spill] sm:$0xff] }
 0x2d1   :  { %v2109_v5 = vpop.f32.mrb[210].mxu0  ;;  %v2560_v22 = vmax.f32 %v2300_v29, 0.0  ;;  %v2302_v32 = vpop.f32.mrb[210].mxu1  ;;  %v2558_v10 = vmax.f32 %v2107_v3, 0.0  ;;  %v9338_v29 = vld [vmem:[#allocation54_spill] sm:$0xff] }
 0x2d2   :  { %v2573_v51 = vmax.f32 %v2109_v5, 0.0  ;;  %v2111_v24 = vpop.f32.mrb[211].mxu0  ;;  %v2575_v35 = vmax.f32 %v2302_v32, 0.0  ;;  %v2304_v8 = vpop.f32.mrb[211].mxu1 }
 0x2d3   :  { %v2574_v21 = vmax.f32 %v2111_v24, 0.0  ;;  %v2576_v2 = vmax.f32 %v2304_v8, 0.0 }
 0x2d4   :  { %v8262_v52 = vpack.c.bf16 %v2573_v51, %v2557_v17  ;;  %4362 = vmatmul.mubr.bf16.gmra.mrb[60].mxu0 %v9333_v33  ;;  %v8265_v55 = vpack.c.bf16 %v2575_v35, %v2559_v4  ;;  %4523 = vmatmul.mubr.bf16.gmra.mrb[60].mxu1 %v9335_v59  ;;  %v7127_v59 = vld [vmem:[#allocation7 + $0x200] sm:$0xff]  }
 0x2d5   :  { %4563 = vmatprep.mubr.bf16.mxu0 %v9336_v62  ;;  %v8269_v16 = vpack.c.bf16 %v2574_v21, %v2558_v10  ;;  %4724 = vmatprep.mubr.bf16.mxu1 %v9338_v29  ;;  %v8272_v5 = vpack.c.bf16 %v2576_v2, %v2560_v22  ;;  %v7130_v29 = vld [vmem:[#allocation7 + $0x248] sm:$0xff]  }
 0x2d6   :  { %9332 = vst [vmem:[#allocation50_spill] sm:$0xff] %v8262_v52  ;;  %9334 = vst [vmem:[#allocation47_spill] sm:$0xff] %v8265_v55 }
 0x2d7   :  { %9337 = vst [vmem:[#allocation48_spill] sm:$0xff] %v8269_v16  ;;  %9339 = vst [vmem:[#allocation53_spill] sm:$0xff] %v8272_v5  ;;  %v2115_v3 = vpop.f32.mrb[212].mxu0  ;;  %v2308_v24 = vpop.f32.mrb[212].mxu1  ;;  %v7129_v16 = vld [vmem:[#allocation7 + $0x280] sm:$0xff]   ;;  %v9341_v5 = vld [vmem:[#allocation51_spill] sm:$0xff] }
 0x2d8   :  { %v2117_v32 = vpop.f32.mrb[213].mxu0  ;;  %v2591_v17 = vmax.f32 %v2308_v24, 0.0  ;;  %v2310_v51 = vpop.f32.mrb[213].mxu1  ;;  %v2589_v52 = vmax.f32 %v2115_v3, 0.0  ;;  %v7132_v24 = vld [vmem:[#allocation7 + $0x2c8] sm:$0xff]   ;;  %v9343_v3 = vld [vmem:[#allocation52_spill] sm:$0xff] }
 0x2d9   :  { %v2119_v8 = vpop.f32.mrb[214].mxu0  ;;  %v2592_v33 = vmax.f32 %v2310_v51, 0.0  ;;  %v2312_v4 = vpop.f32.mrb[214].mxu1  ;;  %v2590_v1 = vmax.f32 %v2117_v32, 0.0  ;;  %v9344_v51 = vld [vmem:[#allocation57_spill] sm:$0xff]  ;;  %v9346_v32 = vld [vmem:[#allocation58_spill] sm:$0xff] }
 0x2da   :  { %v2605_v35 = vmax.f32 %v2119_v8, 0.0  ;;  %v2121_v55 = vpop.f32.mrb[215].mxu0  ;;  %v2607_v62 = vmax.f32 %v2312_v4, 0.0  ;;  %v2314_v21 = vpop.f32.mrb[215].mxu1 }
 0x2db   :  { %v2606_v10 = vmax.f32 %v2121_v55, 0.0  ;;  %v2608_v2 = vmax.f32 %v2314_v21, 0.0  ;;  %v7131_v55 = vld [vmem:[#allocation7 + $0x208] sm:$0xff]  }
 0x2dc   :  { %v8274_v22 = vpack.c.bf16 %v2605_v35, %v2589_v52  ;;  %4564 = vmatmul.mubr.bf16.vlgmr.msra.gmra.mrb[64].mxu0 %v9341_v5  ;;  %v8277_v7 = vpack.c.bf16 %v2607_v62, %v2591_v17  ;;  %4725 = vmatmul.mubr.bf16.vlgmr.msra.gmra.mrb[64].mxu1 %v9343_v3  ;;  %v7133_v35 = vld [vmem:[#allocation7 + $0x288] sm:$0xff]   ;;  %v7134_v5 = vld [vmem:[#allocation7 + $0x250] sm:$0xff]  }
 0x2dd   :  { %4571 = vmatprep.mubr.bf16.mxu0 %v9344_v51  ;;  %v8281_v8 = vpack.c.bf16 %v2606_v10, %v2590_v1  ;;  %4732 = vmatprep.mubr.bf16.mxu1 %v9346_v32  ;;  %v8284_v4 = vpack.c.bf16 %v2608_v2, %v2592_v33  ;;  %v7136_v62 = vld [vmem:[#allocation7 + $0x2d0] sm:$0xff]  }
 0x2de   :  { %9340 = vst [vmem:[#allocation54_spill] sm:$0xff] %v8274_v22  ;;  %9342 = vst [vmem:[#allocation51_spill] sm:$0xff] %v8277_v7  ;;  %6605 = vmatpush3.bf16.msra.mxu0 %v7127_v59  ;;  %6717 = vmatpush3.bf16.msra.mxu1 %v7129_v16  ;;  %v7135_v33 = vld [vmem:[#allocation7 + $0x210] sm:$0xff]  }
 0x2df   :  { %9345 = vst [vmem:[#allocation52_spill] sm:$0xff] %v8281_v8  ;;  %9347 = vst [vmem:[#allocation57_spill] sm:$0xff] %v8284_v4  ;;  %v2125_v52 = vpop.f32.mrb[216].mxu0  ;;  %6606 = vmatprep.subr.bf16.mxu0 %v7130_v29  ;;  %v2318_v21 = vpop.f32.mrb[216].mxu1  ;;  %6718 = vmatprep.subr.bf16.mxu1 %v7132_v24  ;;  %v7137_v8 = vld [vmem:[#allocation7 + $0x290] sm:$0xff]  }
 0x2e0   :  { %v2127_v17 = vpop.f32.mrb[217].mxu0  ;;  %v2623_v3 = vmax.f32 %v2318_v21, 0.0  ;;  %v2320_v7 = vpop.f32.mrb[217].mxu1  ;;  %v2621_v1 = vmax.f32 %v2125_v52, 0.0 }
 0x2e1   :  { %v2129_v51 = vpop.f32.mrb[218].mxu0  ;;  %v2624_v10 = vmax.f32 %v2320_v7, 0.0  ;;  %v2322_v32 = vpop.f32.mrb[218].mxu1  ;;  %v2622_v2 = vmax.f32 %v2127_v17, 0.0  ;;  %v7140_v7 = vld [vmem:[#allocation7 + $0x2d8] sm:$0xff]  }
 0x2e2   :  { %v2637_v22 = vmax.f32 %v2129_v51, 0.0  ;;  %v2131_v59 = vpop.f32.mrb[219].mxu0  ;;  %6607 = vmatpush3.bf16.msra.mxu0 %v7131_v55  ;;  %v2639_v4 = vmax.f32 %v2322_v32, 0.0  ;;  %v2324_v29 = vpop.f32.mrb[219].mxu1  ;;  %6719 = vmatpush3.bf16.msra.mxu1 %v7133_v35  ;;  %v9351_v51 = vld [vmem:[#allocation56_spill] sm:$0xff]  ;;  %v9352_v55 = vld [vmem:[#allocation61_spill] sm:$0xff] }
 0x2e3   :  { %v2638_v16 = vmax.f32 %v2131_v59, 0.0  ;;  %6608 = vmatprep.subr.bf16.mxu0 %v7134_v5  ;;  %v2640_v21 = vmax.f32 %v2324_v29, 0.0  ;;  %6720 = vmatprep.subr.bf16.mxu1 %v7136_v62  ;;  %v9354_v32 = vld [vmem:[#allocation62_spill] sm:$0xff]  ;;  %v7139_v35 = vld [vmem:[#allocation7 + $0x218] sm:$0xff]   ;;  %v7142_v62 = vld [vmem:[#allocation7 + $0x260] sm:$0xff]  }
 0x2e4   :  { %v8286_v24 = vpack.c.bf16 %v2637_v22, %v2621_v1  ;;  %4572 = vmatmul.mubr.bf16.gmra.mrb[68].mxu0 %v9349_v63  ;;  %v8289_v52 = vpack.c.bf16 %v2639_v4, %v2623_v3  ;;  %4733 = vmatmul.mubr.bf16.gmra.mrb[68].mxu1 %v9351_v51  ;;  %v7141_v63 = vld [vmem:[#allocation7 + $0x298] sm:$0xff]   ;;  %v7144_v3 = vld [vmem:[#allocation7 + $0x2e0] sm:$0xff]  }
 0x2e5   :  { %4579 = vmatprep.mubr.bf16.mxu0 %v9352_v55  ;;  %v8293_v17 = vpack.c.bf16 %v2638_v16, %v2622_v2  ;;  %4740 = vmatprep.mubr.bf16.mxu1 %v9354_v32  ;;  %v8296_v5 = vpack.c.bf16 %v2640_v21, %v2624_v10  ;;  %v7143_v10 = vld [vmem:[#allocation7 + $0x220] sm:$0xff]  }
 0x2e6   :  { %9348 = vst [vmem:[#allocation58_spill] sm:$0xff] %v8286_v24  ;;  %9350 = vst [vmem:[#allocation55_spill] sm:$0xff] %v8289_v52  ;;  %6609 = vmatpush3.bf16.msra.mxu0 %v7135_v33  ;;  %6721 = vmatpush3.bf16.msra.mxu1 %v7137_v8  ;;  %v7145_v24 = vld [vmem:[#allocation7 + $0x2a0] sm:$0xff]  }
 0x2e7   :  { %9353 = vst [vmem:[#allocation56_spill] sm:$0xff] %v8293_v17  ;;  %9355 = vst [vmem:[#allocation61_spill] sm:$0xff] %v8296_v5  ;;  %v2135_v22 = vpop.f32.mrb[220].mxu0  ;;  %6610 = vmatprep.subr.bf16.mxu0 %v7138_v36  ;;  %v2328_v1 = vpop.f32.mrb[220].mxu1  ;;  %6722 = vmatprep.subr.bf16.mxu1 %v7140_v7  ;;  %v7146_v5 = vld [vmem:[#allocation7 + $0x268] sm:$0xff]   ;;  %v9357_v17 = vld [vmem:[#allocation59_spill] sm:$0xff] }
 0x2e8   :  { %v2137_v4 = vpop.f32.mrb[221].mxu0  ;;  %v2655_v59 = vmax.f32 %v2328_v1, 0.0  ;;  %v2330_v29 = vpop.f32.mrb[221].mxu1  ;;  %v2653_v2 = vmax.f32 %v2135_v22, 0.0  ;;  %v7148_v22 = vld [vmem:[#allocation7 + $0x2e8] sm:$0xff]  }
 0x2e9   :  { %v2139_v51 = vpop.f32.mrb[222].mxu0  ;;  %v2656_v16 = vmax.f32 %v2330_v29, 0.0  ;;  %v2332_v32 = vpop.f32.mrb[222].mxu1  ;;  %v2654_v21 = vmax.f32 %v2137_v4, 0.0 }
 0x2ea   :  { %v2669_v55 = vmax.f32 %v2139_v51, 0.0  ;;  %v2141_v33 = vpop.f32.mrb[223].mxu0  ;;  %6611 = vmatpush3.bf16.msra.mxu0 %v7139_v35  ;;  %v2671_v52 = vmax.f32 %v2332_v32, 0.0  ;;  %v2334_v36 = vpop.f32.mrb[223].mxu1  ;;  %6723 = vmatpush3.bf16.msra.mxu1 %v7141_v63  ;;  %v9359_v51 = vld [vmem:[#allocation60_spill] sm:$0xff]  ;;  %v9360_v35 = vld [vmem:[#allocation65_spill] sm:$0xff] }
 0x2eb   :  { %v2670_v8 = vmax.f32 %v2141_v33, 0.0  ;;  %6612 = vmatprep.subr.bf16.mxu0 %v7142_v62  ;;  %v2672_v1 = vmax.f32 %v2334_v36, 0.0  ;;  %6724 = vmatprep.subr.bf16.mxu1 %v7144_v3  ;;  %v9362_v32 = vld [vmem:[#allocation66_spill] sm:$0xff]  ;;  %v7147_v63 = vld [vmem:[#allocation7 + $0x228] sm:$0xff]  }
 0x2ec   :  { %v8298_v7 = vpack.c.bf16 %v2669_v55, %v2653_v2  ;;  %4580 = vmatmul.mubr.bf16.gmra.mrb[72].mxu0 %v9357_v17  ;;  %v8301_v29 = vpack.c.bf16 %v2671_v52, %v2655_v59  ;;  %4741 = vmatmul.mubr.bf16.gmra.mrb[72].mxu1 %v9359_v51  ;;  %v7149_v17 = vld [vmem:[#allocation7 + $0x2a8] sm:$0xff]   ;;  %v7150_v3 = vld [vmem:[#allocation7 + $0x270] sm:$0xff]  }
 0x2ed   :  { %4587 = vmatprep.mubr.bf16.mxu0 %v9360_v35  ;;  %v8305_v4 = vpack.c.bf16 %v2670_v8, %v2654_v21  ;;  %4748 = vmatprep.mubr.bf16.mxu1 %v9362_v32  ;;  %v8308_v62 = vpack.c.bf16 %v2672_v1, %v2656_v16  ;;  %v7152_v59 = vld [vmem:[#allocation7 + $0x2f0] sm:$0xff]  }
 0x2ee   :  { %9356 = vst [vmem:[#allocation62_spill] sm:$0xff] %v8298_v7  ;;  %9358 = vst [vmem:[#allocation59_spill] sm:$0xff] %v8301_v29  ;;  %6613 = vmatpush3.bf16.msra.mxu0 %v7143_v10  ;;  %6725 = vmatpush3.bf16.msra.mxu1 %v7145_v24  ;;  %v7151_v16 = vld [vmem:[#allocation7 + $0x230] sm:$0xff]  }
 0x2ef   :  { %9361 = vst [vmem:[#allocation60_spill] sm:$0xff] %v8305_v4  ;;  %9363 = vst [vmem:[#allocation65_spill] sm:$0xff] %v8308_v62  ;;  %v2145_v2 = vpop.f32.mrb[224].mxu0  ;;  %6614 = vmatprep.subr.bf16.mxu0 %v7146_v5  ;;  %v2338_v55 = vpop.f32.mrb[224].mxu1  ;;  %6726 = vmatprep.subr.bf16.mxu1 %v7148_v22  ;;  %v7153_v7 = vld [vmem:[#allocation7 + $0x2b0] sm:$0xff]   ;;  %v7154_v62 = vld [vmem:[#allocation7 + $0x278] sm:$0xff]  }
 0x2f0   :  { %v2147_v52 = vpop.f32.mrb[225].mxu0  ;;  %v2687_v33 = vmax.f32 %v2338_v55, 0.0  ;;  %v2340_v36 = vpop.f32.mrb[225].mxu1  ;;  %v2685_v21 = vmax.f32 %v2145_v2, 0.0  ;;  %v9365_v4 = vld [vmem:[#allocation63_spill] sm:$0xff] }
 0x2f1   :  { %v2149_v51 = vpop.f32.mrb[226].mxu0  ;;  %v2688_v8 = vmax.f32 %v2340_v36, 0.0  ;;  %v2342_v32 = vpop.f32.mrb[226].mxu1  ;;  %v2686_v1 = vmax.f32 %v2147_v52, 0.0  ;;  %v7156_v2 = vld [vmem:[#allocation7 + $0x2f8] sm:$0xff]  }
 0x2f2   :  { %v2701_v35 = vmax.f32 %v2149_v51, 0.0  ;;  %v2151_v10 = vpop.f32.mrb[227].mxu0  ;;  %6615 = vmatpush3.bf16.msra.mxu0 %v7147_v63  ;;  %v2703_v29 = vmax.f32 %v2342_v32, 0.0  ;;  %v2344_v5 = vpop.f32.mrb[227].mxu1  ;;  %6727 = vmatpush3.bf16.msra.mxu1 %v7149_v17  ;;  %v9367_v51 = vld [vmem:[#allocation64_spill] sm:$0xff]  ;;  %v9368_v63 = vld [vmem:[#allocation69_spill] sm:$0xff] }
 0x2f3   :  { %v2702_v24 = vmax.f32 %v2151_v10, 0.0  ;;  %6616 = vmatprep.subr.bf16.mxu0 %v7150_v3  ;;  %v2704_v55 = vmax.f32 %v2344_v5, 0.0  ;;  %6728 = vmatprep.subr.bf16.mxu1 %v7152_v59  ;;  %v9369_v32 = vld [vmem:[#allocation70_spill] sm:$0xff]  ;;  %v7155_v17 = vld [vmem:[#allocation7 + $0x238] sm:$0xff]   ;;  %v7158_v59 = vld [vmem:[#allocation7 + $0x340] sm:$0xff]  }
 0x2f4   :  { %v8310_v22 = vpack.c.bf16 %v2701_v35, %v2685_v21  ;;  %4588 = vmatmul.mubr.bf16.gmra.mrb[76].mxu0 %v9365_v4  ;;  %v8313_v36 = vpack.c.bf16 %v2703_v29, %v2687_v33  ;;  %4749 = vmatmul.mubr.bf16.gmra.mrb[76].mxu1 %v9367_v51  ;;  %v7157_v4 = vld [vmem:[#allocation7 + $0x2b8] sm:$0xff]   ;;  %v7160_v33 = vld [vmem:[#allocation7 + $0x3c0] sm:$0xff]  }
 0x2f5   :  { %4595 = vmatprep.mubr.bf16.mxu0 %v9368_v63  ;;  %v8317_v52 = vpack.c.bf16 %v2702_v24, %v2686_v1  ;;  %4756 = vmatprep.mubr.bf16.mxu1 %v9369_v32  ;;  %v8320_v3 = vpack.c.bf16 %v2704_v55, %v2688_v8 }
 0x2f6   :  { %9364 = vst [vmem:[#allocation66_spill] sm:$0xff] %v8310_v22  ;;  %9366 = vst [vmem:[#allocation63_spill] sm:$0xff] %v8313_v36  ;;  %6617 = vmatpush3.bf16.msra.mxu0 %v7151_v16  ;;  %6729 = vmatpush3.bf16.msra.mxu1 %v7153_v7 }
 0x2f7   :  { %v2155_v21 = vpop.f32.mrb[228].mxu0  ;;  %6618 = vmatprep.subr.bf16.mxu0 %v7154_v62  ;;  %v2348_v35 = vpop.f32.mrb[228].mxu1  ;;  %6730 = vmatprep.subr.bf16.mxu1 %v7156_v2  ;;  %v9371_v2 = vld [vmem:[#allocation67_spill] sm:$0xff] }
 0x2f8   :  { %v2157_v29 = vpop.f32.mrb[229].mxu0  ;;  %v2719_v10 = vmax.f32 %v2348_v35, 0.0  ;;  %v2350_v5 = vpop.f32.mrb[229].mxu1  ;;  %v2717_v1 = vmax.f32 %v2155_v21, 0.0  ;;  %v9373_v21 = vld [vmem:[#allocation68_spill] sm:$0xff] }
 0x2f9   :  { %v2159_v51 = vpop.f32.mrb[230].mxu0  ;;  %v2720_v24 = vmax.f32 %v2350_v5, 0.0  ;;  %v2352_v32 = vpop.f32.mrb[230].mxu1  ;;  %v2718_v8 = vmax.f32 %v2157_v29, 0.0  ;;  %v9374_v5 = vld [vmem:[#allocation73_spill] sm:$0xff] }
 0x2fa   :  { %v2733_v63 = vmax.f32 %v2159_v51, 0.0  ;;  %v2161_v16 = vpop.f32.mrb[231].mxu0  ;;  %6619 = vmatpush3.bf16.msra.mxu0 %v7155_v17  ;;  %v2735_v55 = vmax.f32 %v2352_v32, 0.0  ;;  %v2354_v7 = vpop.f32.mrb[231].mxu1  ;;  %6731 = vmatpush3.bf16.msra.mxu1 %v7157_v4  ;;  %v9375_v17 = vld [vmem:[#allocation74_spill] sm:$0xff] }
 0x2fb   :  { %v2734_v36 = vmax.f32 %v2161_v16, 0.0  ;;  %6828 = vmatprep.subr.bf16.mxu0 %v7158_v59  ;;  %v2736_v22 = vmax.f32 %v2354_v7, 0.0  ;;  %6940 = vmatprep.subr.bf16.mxu1 %v7160_v33 }
 0x2fc   :  { %v8322_v62 = vpack.c.bf16 %v2733_v63, %v2717_v1  ;;  %4596 = vmatmul.mubr.bf16.gmra.mrb[80].mxu0 %v9371_v2  ;;  %v8325_v35 = vpack.c.bf16 %v2735_v55, %v2719_v10  ;;  %4757 = vmatmul.mubr.bf16.gmra.mrb[80].mxu1 %v9373_v21 }
 0x2fd   :  { %4603 = vmatprep.mubr.bf16.mxu0 %v9374_v5  ;;  %v8329_v51 = vpack.c.bf16 %v2734_v36, %v2718_v8  ;;  %4764 = vmatprep.mubr.bf16.mxu1 %v9375_v17  ;;  %v8332_v29 = vpack.c.bf16 %v2736_v22, %v2720_v24  ;;  %v9377_v22 = vld [vmem:[#allocation71_spill] sm:$0xff] }
 0x2fe   :  { %9370 = vst [vmem:[#allocation64_spill] sm:$0xff] %v8322_v62  ;;  %9372 = vst [vmem:[#allocation69_spill] sm:$0xff] %v8325_v35  ;;  %v9379_v62 = vld [vmem:[#allocation72_spill] sm:$0xff] }
 0x2ff   :  { %v2165_v4 = vpop.f32.mrb[232].mxu0  ;;  %v2358_v59 = vpop.f32.mrb[232].mxu1 }
 0x300   :  { %v2167_v1 = vpop.f32.mrb[233].mxu0  ;;  %v2751_v63 = vmax.f32 %v2358_v59, 0.0  ;;  %v2360_v32 = vpop.f32.mrb[233].mxu1  ;;  %v2749_v7 = vmax.f32 %v2165_v4, 0.0  ;;  %v9381_v59 = vld [vmem:[#allocation77_spill] sm:$0xff] }
 0x301   :  { %v2169_v16 = vpop.f32.mrb[234].mxu0  ;;  %v2752_v33 = vmax.f32 %v2360_v32, 0.0  ;;  %v2362_v55 = vpop.f32.mrb[234].mxu1  ;;  %v2750_v21 = vmax.f32 %v2167_v1, 0.0 }
 0x302   :  { %v2765_v10 = vmax.f32 %v2169_v16, 0.0  ;;  %v2171_v2 = vpop.f32.mrb[235].mxu0  ;;  %v2767_v35 = vmax.f32 %v2362_v55, 0.0  ;;  %v2364_v36 = vpop.f32.mrb[235].mxu1 }
 0x303   :  { %v2766_v5 = vmax.f32 %v2171_v2, 0.0  ;;  %v2768_v17 = vmax.f32 %v2364_v36, 0.0 }
 0x304   :  { %v8334_v8 = vpack.c.bf16 %v2765_v10, %v2749_v7  ;;  %4604 = vmatmul.mubr.bf16.gmra.mrb[84].mxu0 %v9377_v22  ;;  %v8337_v24 = vpack.c.bf16 %v2767_v35, %v2751_v63  ;;  %4765 = vmatmul.mubr.bf16.gmra.mrb[84].mxu1 %v9379_v62 }
 0x305   :  { %4611 = vmatprep.mubr.bf16.mxu0 %v7909_v15  ;;  %v8341_v4 = vpack.c.bf16 %v2766_v5, %v2750_v21  ;;  %4772 = vmatprep.mubr.bf16.mxu1 %v9381_v59  ;;  %v8344_v32 = vpack.c.bf16 %v2768_v17, %v2752_v33  ;;  %v9384_v33 = vld [vmem:[#allocation75_spill] sm:$0xff] }
 0x306   :  { %9376 = vst [vmem:[#allocation70_spill] sm:$0xff] %v8334_v8  ;;  %9378 = vst [vmem:[#allocation67_spill] sm:$0xff] %v8337_v24 }
 0x307   :  { %9380 = vst [vmem:[#allocation68_spill] sm:$0xff] %v8341_v4  ;;  %9382 = vst [vmem:[#allocation73_spill] sm:$0xff] %v8344_v32  ;;  %v2175_v1 = vpop.f32.mrb[236].mxu0  ;;  %v2368_v16 = vpop.f32.mrb[236].mxu1  ;;  %v9386_v32 = vld [vmem:[#allocation76_spill] sm:$0xff]  ;;  %v9435_v4 = vld [vmem:[#allocation107_spill] sm:$0xff] }
 0x308   :  { %v2177_v55 = vpop.f32.mrb[237].mxu0  ;;  %v2783_v7 = vmax.f32 %v2368_v16, 0.0  ;;  %v2370_v10 = vpop.f32.mrb[237].mxu1  ;;  %v2781_v36 = vmax.f32 %v2175_v1, 0.0  ;;  %v9388_v16 = vld [vmem:[#allocation80_spill] sm:$0xff] }
 0x309   :  { %v2179_v2 = vpop.f32.mrb[238].mxu0  ;;  %v2784_v22 = vmax.f32 %v2370_v10, 0.0  ;;  %v2372_v63 = vpop.f32.mrb[238].mxu1  ;;  %v2782_v62 = vmax.f32 %v2177_v55, 0.0 }
 0x30a   :  { %v2797_v35 = vmax.f32 %v2179_v2, 0.0  ;;  %v2181_v24 = vpop.f32.mrb[239].mxu0  ;;  %v2799_v8 = vmax.f32 %v2372_v63, 0.0  ;;  %v2374_v21 = vpop.f32.mrb[239].mxu1 }
 0x30b   :  { %v2798_v15 = vmax.f32 %v2181_v24, 0.0  ;;  %v2800_v59 = vmax.f32 %v2374_v21, 0.0 }
 0x30c   :  { %v8346_v5 = vpack.c.bf16 %v2797_v35, %v2781_v36  ;;  %4612 = vmatmul.mubr.bf16.gmra.mrb[88].mxu0 %v9384_v33  ;;  %v8349_v17 = vpack.c.bf16 %v2799_v8, %v2783_v7  ;;  %4773 = vmatmul.mubr.bf16.gmra.mrb[88].mxu1 %v9386_v32 }
 0x30d   :  { %4619 = vmatprep.mubr.bf16.mxu0 %v7921_v26  ;;  %v8353_v1 = vpack.c.bf16 %v2798_v15, %v2782_v62  ;;  %4780 = vmatprep.mubr.bf16.mxu1 %v9388_v16  ;;  %v8356_v10 = vpack.c.bf16 %v2800_v59, %v2784_v22  ;;  %v9391_v22 = vld [vmem:[#allocation78_spill] sm:$0xff] }
 0x30e   :  { %9383 = vst [vmem:[#allocation74_spill] sm:$0xff] %v8346_v5  ;;  %9385 = vst [vmem:[#allocation71_spill] sm:$0xff] %v8349_v17 }
 0x30f   :  { %9387 = vst [vmem:[#allocation72_spill] sm:$0xff] %v8353_v1  ;;  %9389 = vst [vmem:[#allocation77_spill] sm:$0xff] %v8356_v10  ;;  %v2185_v55 = vpop.f32.mrb[240].mxu0  ;;  %v2378_v24 = vpop.f32.mrb[240].mxu1  ;;  %v9393_v10 = vld [vmem:[#allocation79_spill] sm:$0xff]  ;;  %v9432_v1 = vld [vmem:[#allocation104_spill] sm:$0xff] }
 0x310   :  { %v2187_v2 = vpop.f32.mrb[241].mxu0  ;;  %v2815_v36 = vmax.f32 %v2378_v24, 0.0  ;;  %v2380_v35 = vpop.f32.mrb[241].mxu1  ;;  %v2813_v21 = vmax.f32 %v2185_v55, 0.0 }
 0x311   :  { %v2189_v63 = vpop.f32.mrb[242].mxu0  ;;  %v2816_v33 = vmax.f32 %v2380_v35, 0.0  ;;  %v2382_v7 = vpop.f32.mrb[242].mxu1  ;;  %v2814_v32 = vmax.f32 %v2187_v2, 0.0 }
 0x312   :  { %v2829_v8 = vmax.f32 %v2189_v63, 0.0  ;;  %v2191_v17 = vpop.f32.mrb[243].mxu0  ;;  %v2831_v5 = vmax.f32 %v2382_v7, 0.0  ;;  %v2384_v62 = vpop.f32.mrb[243].mxu1 }
 0x313   :  { %v2830_v26 = vmax.f32 %v2191_v17, 0.0  ;;  %v2832_v16 = vmax.f32 %v2384_v62, 0.0 }
 0x314   :  { %v8358_v15 = vpack.c.bf16 %v2829_v8, %v2813_v21  ;;  %4620 = vmatmul.mubr.bf16.gmra.mrb[92].mxu0 %v9391_v22  ;;  %v8361_v59 = vpack.c.bf16 %v2831_v5, %v2815_v36  ;;  %4781 = vmatmul.mubr.bf16.gmra.mrb[92].mxu1 %v9393_v10 }
 0x315   :  { %4627 = vmatprep.mubr.bf16.mxu0 %v7933_v30  ;;  %v8365_v55 = vpack.c.bf16 %v2830_v26, %v2814_v32  ;;  %4788 = vmatprep.mubr.bf16.mxu1 %v7936_v11  ;;  %v8368_v24 = vpack.c.bf16 %v2832_v16, %v2816_v33  ;;  %v9397_v33 = vld [vmem:[#allocation81_spill] sm:$0xff] }
 0x316   :  { %9390 = vst [vmem:[#allocation75_spill] sm:$0xff] %v8358_v15  ;;  %9392 = vst [vmem:[#allocation76_spill] sm:$0xff] %v8361_v59  ;;  %v9399_v15 = vld [vmem:[#allocation82_spill] sm:$0xff] }
 0x317   :  { %9394 = vst [vmem:[#allocation80_spill] sm:$0xff] %v8365_v55  ;;  %9395 = vst [vmem:[#allocation78_spill] sm:$0xff] %v8368_v24  ;;  %v2195_v2 = vpop.f32.mrb[244].mxu0  ;;  %v2388_v17 = vpop.f32.mrb[244].mxu1 }
 0x318   :  { %v2197_v35 = vpop.f32.mrb[245].mxu0  ;;  %v2847_v63 = vmax.f32 %v2388_v17, 0.0  ;;  %v2390_v21 = vpop.f32.mrb[245].mxu1  ;;  %v2845_v7 = vmax.f32 %v2195_v2, 0.0 }
 0x319   :  { %v2199_v8 = vpop.f32.mrb[246].mxu0  ;;  %v2848_v62 = vmax.f32 %v2390_v21, 0.0  ;;  %v2392_v36 = vpop.f32.mrb[246].mxu1  ;;  %v2846_v10 = vmax.f32 %v2197_v35, 0.0 }
 0x31a   :  { %v2861_v5 = vmax.f32 %v2199_v8, 0.0  ;;  %v2201_v22 = vpop.f32.mrb[247].mxu0  ;;  %v2863_v59 = vmax.f32 %v2392_v36, 0.0  ;;  %v2394_v32 = vpop.f32.mrb[247].mxu1 }
 0x31b   :  { %v2862_v30 = vmax.f32 %v2201_v22, 0.0  ;;  %v2864_v11 = vmax.f32 %v2394_v32, 0.0 }
 0x31c   :  { %v8370_v26 = vpack.c.bf16 %v2861_v5, %v2845_v7  ;;  %4628 = vmatmul.mubr.bf16.gmra.mrb[96].mxu0 %v9397_v33  ;;  %v8373_v16 = vpack.c.bf16 %v2863_v59, %v2847_v63  ;;  %4789 = vmatmul.mubr.bf16.gmra.mrb[96].mxu1 %v9399_v15 }
 0x31d   :  { %4635 = vmatprep.mubr.bf16.mxu0 %v7945_v47  ;;  %v8377_v2 = vpack.c.bf16 %v2862_v30, %v2846_v10  ;;  %4796 = vmatprep.mubr.bf16.mxu1 %v7948_v40  ;;  %v8380_v17 = vpack.c.bf16 %v2864_v11, %v2848_v62  ;;  %v9404_v11 = vld [vmem:[#allocation85_spill] sm:$0xff] }
 0x31e   :  { %9396 = vst [vmem:[#allocation79_spill] sm:$0xff] %v8370_v26  ;;  %9398 = vst [vmem:[#allocation81_spill] sm:$0xff] %v8373_v16  ;;  %v9428_v26 = vld [vmem:[#allocation103_spill] sm:$0xff] }
 0x31f   :  { %9400 = vst [vmem:[#allocation82_spill] sm:$0xff] %v8377_v2  ;;  %9401 = vst [vmem:[#allocation119_spill] sm:$0xff] %v8380_v17  ;;  %v2205_v35 = vpop.f32.mrb[248].mxu0  ;;  %v2398_v21 = vpop.f32.mrb[248].mxu1  ;;  %v7265_v2 = vld [vmem:[#allocation2 + $0x58] sm:$0xff] }
 0x320   :  { %v2207_v8 = vpop.f32.mrb[249].mxu0  ;;  %v2879_v7 = vmax.f32 %v2398_v21, 0.0  ;;  %v2400_v5 = vpop.f32.mrb[249].mxu1  ;;  %v2877_v22 = vmax.f32 %v2205_v35, 0.0 }
 0x321   :  { %v2209_v36 = vpop.f32.mrb[250].mxu0  ;;  %v2880_v32 = vmax.f32 %v2400_v5, 0.0  ;;  %v2402_v63 = vpop.f32.mrb[250].mxu1  ;;  %v2878_v15 = vmax.f32 %v2207_v8, 0.0 }
 0x322   :  { %v2893_v59 = vmax.f32 %v2209_v36, 0.0  ;;  %v2211_v33 = vpop.f32.mrb[251].mxu0  ;;  %v2895_v16 = vmax.f32 %v2402_v63, 0.0  ;;  %v2404_v10 = vpop.f32.mrb[251].mxu1 }
 0x323   :  { %v2894_v47 = vmax.f32 %v2211_v33, 0.0  ;;  %v2896_v40 = vmax.f32 %v2404_v10, 0.0 }
 0x324   :  { %v8382_v30 = vpack.c.bf16 %v2893_v59, %v2877_v22  ;;  %4636 = vmatmul.mubr.bf16.gmra.mrb[100].mxu0 %v7938_v0  ;;  %v8385_v62 = vpack.c.bf16 %v2895_v16, %v2879_v7  ;;  %4797 = vmatmul.mubr.bf16.gmra.mrb[100].mxu1 %v7941_v50 }
 0x325   :  { %4643 = vmatprep.mubr.bf16.mxu0 %v9404_v11  ;;  %v8389_v35 = vpack.c.bf16 %v2894_v47, %v2878_v15  ;;  %4804 = vmatprep.mubr.bf16.mxu1 %v7960_v34  ;;  %v8392_v21 = vpack.c.bf16 %v2896_v40, %v2880_v32  ;;  %v9408_v32 = vld [vmem:[#allocation83_spill] sm:$0xff] }
 0x326   :  { %9402 = vst [vmem:[#allocation120_spill] sm:$0xff] %v8382_v30  ;;  %9403 = vst [vmem:[#allocation121_spill] sm:$0xff] %v8385_v62  ;;  %v9410_v30 = vld [vmem:[#allocation84_spill] sm:$0xff] }
 0x327   :  { %9405 = vst [vmem:[#allocation85_spill] sm:$0xff] %v8389_v35  ;;  %9406 = vst [vmem:[#allocation122_spill] sm:$0xff] %v8392_v21  ;;  %v2215_v8 = vpop.f32.mrb[252].mxu0  ;;  %v2408_v5 = vpop.f32.mrb[252].mxu1  ;;  %v9422_v21 = vld [vmem:[#allocation97_spill] sm:$0xff]  ;;  %v9425_v35 = vld [vmem:[#allocation100_spill] sm:$0xff] }
 0x328   :  { %v2217_v36 = vpop.f32.mrb[253].mxu0  ;;  %v2911_v22 = vmax.f32 %v2408_v5, 0.0  ;;  %v2410_v59 = vpop.f32.mrb[253].mxu1  ;;  %v2909_v33 = vmax.f32 %v2215_v8, 0.0  ;;  %v9411_v5 = vld [vmem:[#allocation88_spill] sm:$0xff] }
 0x329   :  { %v2219_v63 = vpop.f32.mrb[254].mxu0  ;;  %v2912_v0 = vmax.f32 %v2410_v59, 0.0  ;;  %v2412_v7 = vpop.f32.mrb[254].mxu1  ;;  %v2910_v50 = vmax.f32 %v2217_v36, 0.0 }
 0x32a   :  { %v2925_v16 = vmax.f32 %v2219_v63, 0.0  ;;  %v2221_v10 = vpop.f32.mrb[255].mxu0  ;;  %v2927_v62 = vmax.f32 %v2412_v7, 0.0  ;;  %v2414_v15 = vpop.f32.mrb[255].mxu1 }
 0x32b   :  { %v2926_v11 = vmax.f32 %v2221_v10, 0.0  ;;  %v2928_v34 = vmax.f32 %v2414_v15, 0.0 }
 0x32c   :  { %v8394_v47 = vpack.c.bf16 %v2925_v16, %v2909_v33  ;;  %4644 = vmatmul.mubr.bf16.gmra.mrb[104].mxu0 %v9408_v32  ;;  %v8397_v40 = vpack.c.bf16 %v2927_v62, %v2911_v22  ;;  %4805 = vmatmul.mubr.bf16.gmra.mrb[104].mxu1 %v9410_v30  ;;  %v7254_v22 = vld [vmem:[#allocation2] sm:$0xff] }
 0x32d   :  { %4651 = vmatprep.mubr.bf16.mxu0 %v9411_v5  ;;  %v8401_v8 = vpack.c.bf16 %v2926_v11, %v2910_v50  ;;  %4812 = vmatprep.mubr.bf16.mxu1 %v7972_v39  ;;  %v8404_v59 = vpack.c.bf16 %v2928_v34, %v2912_v0  ;;  %v9414_v50 = vld [vmem:[#allocation86_spill] sm:$0xff]  ;;  %v7255_v39 = vld [vmem:[#allocation2 + $0x8] sm:$0xff]  ;;  %v9415_v34 = vld [vmem:[#allocation87_spill] sm:$0xff] }
 0x32e   :  { %9407 = vst [vmem:[#allocation123_spill] sm:$0xff] %v8394_v47  ;;  %9409 = vst [vmem:[#allocation83_spill] sm:$0xff] %v8397_v40 }
 0x32f   :  { %9412 = vst [vmem:[#allocation84_spill] sm:$0xff] %v8401_v8  ;;  %9413 = vst [vmem:[#allocation88_spill] sm:$0xff] %v8404_v59  ;;  %v6172_v36 = vpop.f32.mrb[0].mxu0  ;;  %v6284_v63 = vpop.f32.mrb[0].mxu1  ;;  %v9416_v59 = vld [vmem:[#allocation91_spill] sm:$0xff]  ;;  %v9419_v8 = vld [vmem:[#allocation94_spill] sm:$0xff] }
 0x330   :  { %v6173_v7 = vpop.f32.mrb[1].mxu0  ;;  %v6285_v16 = vpop.f32.mrb[1].mxu1 }
 0x331   :  { %v6174_v33 = vadd.f32 %v6173_v7, %v6172_v36  ;;  %v6175_v10 = vpop.f32.mrb[2].mxu0  ;;  %v6286_v15 = vadd.f32 %v6285_v16, %v6284_v63  ;;  %v6287_v32 = vpop.f32.mrb[2].mxu1 }
 0x332   :  { %v6176_v62 = vpop.f32.mrb[3].mxu0  ;;  %v6288_v47 = vpop.f32.mrb[3].mxu1 }
 0x333   :  { %v4244_v40 = vadd.f32 %v7254_v22, %v6174_v33  ;;  %v6177_v30 = vadd.f32 %v6176_v62, %v6175_v10  ;;  %v6289_v5 = vadd.f32 %v6288_v47, %v6287_v32 }
 0x334   :  { %4652 = vmatmul.mubr.bf16.gmra.mrb[108].mxu0 %v9414_v50  ;;  %4813 = vmatmul.mubr.bf16.gmra.mrb[108].mxu1 %v9415_v34  ;;  %v9417_v34 = vld [vmem:[#allocation89_spill] sm:$0xff] }
 0x335   :  { %v8407_v11 = vadd.f32 %v6286_v15, %v4244_v40  ;;  %v4247_v0 = vadd.f32 %v7255_v39, %v6177_v30  ;;  %4659 = vmatprep.mubr.bf16.mxu0 %v9416_v59  ;;  %4820 = vmatprep.mubr.bf16.mxu1 %v7984_v18  ;;  %v7256_v15 = vld [vmem:[#allocation2 + $0x10] sm:$0xff]  ;;  %v7257_v18 = vld [vmem:[#allocation2 + $0x18] sm:$0xff] }
 0x337   :  { %v8412_v36 = vadd.f32 %v6289_v5, %v4247_v0  ;;  %v6178_v63 = vpop.f32.mrb[4].mxu0  ;;  %v6290_v7 = vpop.f32.mrb[4].mxu1  ;;  %v9418_v0 = vld [vmem:[#allocation90_spill] sm:$0xff] }
 0x338   :  { %v6179_v33 = vpop.f32.mrb[5].mxu0  ;;  %v6291_v10 = vpop.f32.mrb[5].mxu1 }
 0x339   :  { %v6180_v16 = vadd.f32 %v6179_v33, %v6178_v63  ;;  %v6181_v47 = vpop.f32.mrb[6].mxu0  ;;  %v6292_v32 = vadd.f32 %v6291_v10, %v6290_v7  ;;  %v6293_v62 = vpop.f32.mrb[6].mxu1 }
 0x33a   :  { %v6182_v40 = vpop.f32.mrb[7].mxu0  ;;  %v6294_v50 = vpop.f32.mrb[7].mxu1 }
 0x33b   :  { %v4252_v22 = vadd.f32 %v7256_v15, %v6180_v16  ;;  %v6183_v30 = vadd.f32 %v6182_v40, %v6181_v47  ;;  %v6295_v39 = vadd.f32 %v6294_v50, %v6293_v62 }
 0x33c   :  { %4660 = vmatmul.mubr.bf16.gmra.mrb[112].mxu0 %v9417_v34  ;;  %4821 = vmatmul.mubr.bf16.gmra.mrb[112].mxu1 %v9418_v0  ;;  %v9420_v0 = vld [vmem:[#allocation92_spill] sm:$0xff] }
 0x33d   :  { %v8415_v59 = vadd.f32 %v6292_v32, %v4252_v22  ;;  %v4255_v5 = vadd.f32 %v7257_v18, %v6183_v30  ;;  %4667 = vmatprep.mubr.bf16.mxu0 %v9419_v8  ;;  %4828 = vmatprep.mubr.bf16.mxu1 %v7996_v20  ;;  %v7258_v22 = vld [vmem:[#allocation2 + $0x20] sm:$0xff]  ;;  %v7259_v20 = vld [vmem:[#allocation2 + $0x28] sm:$0xff] }
 0x33f   :  { %v8420_v63 = vadd.f32 %v6295_v39, %v4255_v5  ;;  %v6184_v7 = vpop.f32.mrb[8].mxu0  ;;  %v6296_v33 = vpop.f32.mrb[8].mxu1  ;;  %v9421_v5 = vld [vmem:[#allocation93_spill] sm:$0xff] }
 0x340   :  { %v6185_v16 = vpop.f32.mrb[9].mxu0  ;;  %v6297_v47 = vpop.f32.mrb[9].mxu1 }
 0x341   :  { %v6186_v10 = vadd.f32 %v6185_v16, %v6184_v7  ;;  %v6187_v62 = vpop.f32.mrb[10].mxu0  ;;  %v6298_v40 = vadd.f32 %v6297_v47, %v6296_v33  ;;  %v6299_v15 = vpop.f32.mrb[10].mxu1 }
 0x342   :  { %v6188_v32 = vpop.f32.mrb[11].mxu0  ;;  %v6300_v34 = vpop.f32.mrb[11].mxu1 }
 0x343   :  { %v4260_v50 = vadd.f32 %v7258_v22, %v6186_v10  ;;  %v6189_v30 = vadd.f32 %v6188_v32, %v6187_v62  ;;  %v6301_v18 = vadd.f32 %v6300_v34, %v6299_v15 }
 0x344   :  { %4668 = vmatmul.mubr.bf16.gmra.mrb[116].mxu0 %v9420_v0  ;;  %4829 = vmatmul.mubr.bf16.gmra.mrb[116].mxu1 %v9421_v5  ;;  %v9423_v5 = vld [vmem:[#allocation95_spill] sm:$0xff] }
 0x345   :  { %v8423_v8 = vadd.f32 %v6298_v40, %v4260_v50  ;;  %v4263_v39 = vadd.f32 %v7259_v20, %v6189_v30  ;;  %4675 = vmatprep.mubr.bf16.mxu0 %v9422_v21  ;;  %4836 = vmatprep.mubr.bf16.mxu1 %v8008_v49  ;;  %v7260_v50 = vld [vmem:[#allocation2 + $0x30] sm:$0xff]  ;;  %v7261_v49 = vld [vmem:[#allocation2 + $0x38] sm:$0xff] }
 0x347   :  { %v8428_v7 = vadd.f32 %v6301_v18, %v4263_v39  ;;  %v6190_v33 = vpop.f32.mrb[12].mxu0  ;;  %v6302_v16 = vpop.f32.mrb[12].mxu1  ;;  %v9424_v39 = vld [vmem:[#allocation96_spill] sm:$0xff] }
 0x348   :  { %v6191_v10 = vpop.f32.mrb[13].mxu0  ;;  %v6303_v62 = vpop.f32.mrb[13].mxu1 }
 0x349   :  { %v6192_v47 = vadd.f32 %v6191_v10, %v6190_v33  ;;  %v6193_v15 = vpop.f32.mrb[14].mxu0  ;;  %v6304_v32 = vadd.f32 %v6303_v62, %v6302_v16  ;;  %v6305_v22 = vpop.f32.mrb[14].mxu1 }
 0x34a   :  { %v6194_v40 = vpop.f32.mrb[15].mxu0  ;;  %v6306_v0 = vpop.f32.mrb[15].mxu1 }
 0x34b   :  { %v4268_v34 = vadd.f32 %v7260_v50, %v6192_v47  ;;  %v6195_v30 = vadd.f32 %v6194_v40, %v6193_v15  ;;  %v6307_v20 = vadd.f32 %v6306_v0, %v6305_v22 }
 0x34c   :  { %4676 = vmatmul.mubr.bf16.gmra.mrb[120].mxu0 %v9423_v5  ;;  %4837 = vmatmul.mubr.bf16.gmra.mrb[120].mxu1 %v9424_v39  ;;  %v9426_v39 = vld [vmem:[#allocation98_spill] sm:$0xff] }
 0x34d   :  { %v8431_v21 = vadd.f32 %v6304_v32, %v4268_v34  ;;  %v4271_v18 = vadd.f32 %v7261_v49, %v6195_v30  ;;  %4683 = vmatprep.mubr.bf16.mxu0 %v9425_v35  ;;  %4844 = vmatprep.mubr.bf16.mxu1 %v8020_v46  ;;  %v7262_v34 = vld [vmem:[#allocation2 + $0x40] sm:$0xff]  ;;  %v7263_v46 = vld [vmem:[#allocation2 + $0x48] sm:$0xff] }
 0x34f   :  { %v8436_v33 = vadd.f32 %v6307_v20, %v4271_v18  ;;  %v6196_v16 = vpop.f32.mrb[16].mxu0  ;;  %v6308_v10 = vpop.f32.mrb[16].mxu1  ;;  %v9427_v18 = vld [vmem:[#allocation99_spill] sm:$0xff] }
 0x350   :  { %v6197_v47 = vpop.f32.mrb[17].mxu0  ;;  %v6309_v15 = vpop.f32.mrb[17].mxu1 }
 0x351   :  { %v6198_v62 = vadd.f32 %v6197_v47, %v6196_v16  ;;  %v6199_v22 = vpop.f32.mrb[18].mxu0  ;;  %v6310_v40 = vadd.f32 %v6309_v15, %v6308_v10  ;;  %v6311_v50 = vpop.f32.mrb[18].mxu1 }
 0x352   :  { %v6200_v32 = vpop.f32.mrb[19].mxu0  ;;  %v6312_v5 = vpop.f32.mrb[19].mxu1 }
 0x353   :  { %v4276_v0 = vadd.f32 %v7262_v34, %v6198_v62  ;;  %v6201_v30 = vadd.f32 %v6200_v32, %v6199_v22  ;;  %v6313_v49 = vadd.f32 %v6312_v5, %v6311_v50  ;;  %v7264_v5 = vld [vmem:[#allocation2 + $0x50] sm:$0xff] }
 0x354   :  { %4684 = vmatmul.mubr.bf16.gmra.mrb[124].mxu0 %v9426_v39  ;;  %4845 = vmatmul.mubr.bf16.gmra.mrb[124].mxu1 %v9427_v18  ;;  %v7161_v18 = vld [vmem:[#allocation7 + $0x380] sm:$0xff]  }
 0x355   :  { %v8439_v35 = vadd.f32 %v6310_v40, %v4276_v0  ;;  %v4279_v20 = vadd.f32 %v7263_v46, %v6201_v30  ;;  %4885 = vmatprep.mubr.bf16.mxu0 %v9428_v26  ;;  %5046 = vmatprep.mubr.bf16.mxu1 %v8032_v9  ;;  %v7159_v0 = vld [vmem:[#allocation7 + $0x300] sm:$0xff]   ;;  %v7162_v26 = vld [vmem:[#allocation7 + $0x348] sm:$0xff]  }
 0x356   :  { %v9429_v9 = vld [vmem:[#allocation101_spill] sm:$0xff] }
 0x357   :  { %v8444_v16 = vadd.f32 %v6313_v49, %v4279_v20  ;;  %v6202_v10 = vpop.f32.mrb[20].mxu0  ;;  %v6314_v47 = vpop.f32.mrb[20].mxu1  ;;  %v7164_v49 = vld [vmem:[#allocation7 + $0x3c8] sm:$0xff]  }
 0x358   :  { %v6203_v62 = vpop.f32.mrb[21].mxu0  ;;  %v6315_v22 = vpop.f32.mrb[21].mxu1 }
 0x359   :  { %v6204_v15 = vadd.f32 %v6203_v62, %v6202_v10  ;;  %v6205_v50 = vpop.f32.mrb[22].mxu0  ;;  %v6316_v32 = vadd.f32 %v6315_v22, %v6314_v47  ;;  %v6317_v34 = vpop.f32.mrb[22].mxu1  ;;  %v9430_v62 = vld [vmem:[#allocation102_spill] sm:$0xff] }
 0x35a   :  { %v6206_v40 = vpop.f32.mrb[23].mxu0  ;;  %v6318_v46 = vpop.f32.mrb[23].mxu1  ;;  %v9431_v47 = vld [vmem:[#allocation106_spill] sm:$0xff] }
 0x35b   :  { %v4284_v30 = vadd.f32 %v7264_v5, %v6204_v15  ;;  %v6207_v39 = vadd.f32 %v6206_v40, %v6205_v50  ;;  %v6319_v17 = vadd.f32 %v6318_v46, %v6317_v34  ;;  %v7163_v15 = vld [vmem:[#allocation7 + $0x308] sm:$0xff]   ;;  %v7166_v40 = vld [vmem:[#allocation7 + $0x350] sm:$0xff]  }
 0x35c   :  { %4886 = vmatmul.mubr.bf16.vlgmr.msra.gmra.mrb[128].mxu0 %v9429_v9  ;;  %5047 = vmatmul.mubr.bf16.vlgmr.msra.gmra.mrb[128].mxu1 %v9430_v62  ;;  %v7165_v34 = vld [vmem:[#allocation7 + $0x388] sm:$0xff]  }
 0x35d   :  { %v8447_v20 = vadd.f32 %v6316_v32, %v4284_v30  ;;  %v4287_v10 = vadd.f32 %v7265_v2, %v6207_v39  ;;  %4893 = vmatprep.mubr.bf16.mxu0 %v9431_v47  ;;  %5054 = vmatprep.mubr.bf16.mxu1 %v8044_v41  ;;  %v7168_v30 = vld [vmem:[#allocation7 + $0x3d0] sm:$0xff]  }
 0x35e   :  { %6829 = vmatpush3.bf16.msra.mxu0 %v7159_v0  ;;  %6941 = vmatpush3.bf16.msra.mxu1 %v7161_v18  ;;  %v7167_v41 = vld [vmem:[#allocation7 + $0x310] sm:$0xff]   ;;  %v7266_v0 = vld [vmem:[#allocation2 + $0x60] sm:$0xff] }
 0x35f   :  { %v8452_v22 = vadd.f32 %v6319_v17, %v4287_v10  ;;  %v6208_v50 = vpop.f32.mrb[24].mxu0  ;;  %6830 = vmatprep.subr.bf16.mxu0 %v7162_v26  ;;  %v6320_v5 = vpop.f32.mrb[24].mxu1  ;;  %6942 = vmatprep.subr.bf16.mxu1 %v7164_v49  ;;  %v7169_v18 = vld [vmem:[#allocation7 + $0x390] sm:$0xff]   ;;  %v7170_v26 = vld [vmem:[#allocation7 + $0x358] sm:$0xff]  }
 0x360   :  { %v6209_v32 = vpop.f32.mrb[25].mxu0  ;;  %v6321_v39 = vpop.f32.mrb[25].mxu1  ;;  %v7172_v49 = vld [vmem:[#allocation7 + $0x3d8] sm:$0xff]  }
 0x361   :  { %v6210_v2 = vadd.f32 %v6209_v32, %v6208_v50  ;;  %v6211_v46 = vpop.f32.mrb[26].mxu0  ;;  %v6322_v9 = vadd.f32 %v6321_v39, %v6320_v5  ;;  %v6323_v62 = vpop.f32.mrb[26].mxu1  ;;  %v7267_v5 = vld [vmem:[#allocation2 + $0x68] sm:$0xff] }
 0x362   :  { %v6212_v47 = vpop.f32.mrb[27].mxu0  ;;  %6831 = vmatpush3.bf16.msra.mxu0 %v7163_v15  ;;  %v6324_v24 = vpop.f32.mrb[27].mxu1  ;;  %6943 = vmatpush3.bf16.msra.mxu1 %v7165_v34  ;;  %v9433_v39 = vld [vmem:[#allocation105_spill] sm:$0xff]  ;;  %v7171_v34 = vld [vmem:[#allocation7 + $0x318] sm:$0xff]  }
 0x363   :  { %v4292_v17 = vadd.f32 %v7266_v0, %v6210_v2  ;;  %v6213_v10 = vadd.f32 %v6212_v47, %v6211_v46  ;;  %6832 = vmatprep.subr.bf16.mxu0 %v7166_v40  ;;  %v6325_v55 = vadd.f32 %v6324_v24, %v6323_v62  ;;  %6944 = vmatprep.subr.bf16.mxu1 %v7168_v30  ;;  %v9434_v15 = vld [vmem:[#allocation109_spill] sm:$0xff]  ;;  %v7174_v24 = vld [vmem:[#allocation7 + $0x360] sm:$0xff]  }
 0x364   :  { %4894 = vmatmul.mubr.bf16.gmra.mrb[132].mxu0 %v9432_v1  ;;  %5055 = vmatmul.mubr.bf16.gmra.mrb[132].mxu1 %v9433_v39  ;;  %v7173_v1 = vld [vmem:[#allocation7 + $0x398] sm:$0xff]  }
 0x365   :  { %v8455_v50 = vadd.f32 %v6322_v9, %v4292_v17  ;;  %v4295_v32 = vadd.f32 %v7267_v5, %v6213_v10  ;;  %4901 = vmatprep.mubr.bf16.mxu0 %v9434_v15  ;;  %5062 = vmatprep.mubr.bf16.mxu1 %v8056_v14  ;;  %v7176_v9 = vld [vmem:[#allocation7 + $0x3e0] sm:$0xff]  }
 0x366   :  { %6833 = vmatpush3.bf16.msra.mxu0 %v7167_v41  ;;  %6945 = vmatpush3.bf16.msra.mxu1 %v7169_v18  ;;  %v7175_v14 = vld [vmem:[#allocation7 + $0x320] sm:$0xff]   ;;  %v7268_v41 = vld [vmem:[#allocation2 + $0x70] sm:$0xff] }
 0x367   :  { %v8460_v40 = vadd.f32 %v6325_v55, %v4295_v32  ;;  %v6214_v2 = vpop.f32.mrb[28].mxu0  ;;  %6834 = vmatprep.subr.bf16.mxu0 %v7170_v26  ;;  %v6326_v30 = vpop.f32.mrb[28].mxu1  ;;  %6946 = vmatprep.subr.bf16.mxu1 %v7172_v49  ;;  %v7177_v18 = vld [vmem:[#allocation7 + $0x3a0] sm:$0xff]   ;;  %v7178_v26 = vld [vmem:[#allocation7 + $0x368] sm:$0xff]  }
 0x368   :  { %v6215_v46 = vpop.f32.mrb[29].mxu0  ;;  %v6327_v47 = vpop.f32.mrb[29].mxu1  ;;  %v7180_v49 = vld [vmem:[#allocation7 + $0x3e8] sm:$0xff]  }
 0x369   :  { %v6216_v62 = vadd.f32 %v6215_v46, %v6214_v2  ;;  %v6217_v0 = vpop.f32.mrb[30].mxu0  ;;  %v6328_v17 = vadd.f32 %v6327_v47, %v6326_v30  ;;  %v6329_v10 = vpop.f32.mrb[30].mxu1  ;;  %v7269_v30 = vld [vmem:[#allocation2 + $0x78] sm:$0xff]  ;;  %v9436_v47 = vld [vmem:[#allocation108_spill] sm:$0xff] }
 0x36a   :  { %v6218_v5 = vpop.f32.mrb[31].mxu0  ;;  %6835 = vmatpush3.bf16.msra.mxu0 %v7171_v34  ;;  %v6330_v39 = vpop.f32.mrb[31].mxu1  ;;  %6947 = vmatpush3.bf16.msra.mxu1 %v7173_v1  ;;  %v7179_v34 = vld [vmem:[#allocation7 + $0x328] sm:$0xff]  }
 0x36b   :  { %v4300_v55 = vadd.f32 %v7268_v41, %v6216_v62  ;;  %v6219_v32 = vadd.f32 %v6218_v5, %v6217_v0  ;;  %6836 = vmatprep.subr.bf16.mxu0 %v7174_v24  ;;  %v6331_v15 = vadd.f32 %v6330_v39, %v6329_v10  ;;  %6948 = vmatprep.subr.bf16.mxu1 %v7176_v9  ;;  %v7182_v9 = vld [vmem:[#allocation7 + $0x370] sm:$0xff]  }
 0x36c   :  { %4902 = vmatmul.mubr.bf16.gmra.mrb[136].mxu0 %v9435_v4  ;;  %5063 = vmatmul.mubr.bf16.gmra.mrb[136].mxu1 %v9436_v47  ;;  %v7181_v4 = vld [vmem:[#allocation7 + $0x3a8] sm:$0xff]   ;;  %v9437_v47 = vld [vmem:[#allocation110_spill] sm:$0xff] }
 0x36d   :  { %v8463_v2 = vadd.f32 %v6328_v17, %v4300_v55  ;;  %v4303_v46 = vadd.f32 %v7269_v30, %v6219_v32  ;;  %4909 = vmatprep.mubr.bf16.mxu0 %v8065_v42  ;;  %5070 = vmatprep.mubr.bf16.mxu1 %v8068_v12  ;;  %v7184_v17 = vld [vmem:[#allocation7 + $0x3f0] sm:$0xff]  }
 0x36e   :  { %6837 = vmatpush3.bf16.msra.mxu0 %v7175_v14  ;;  %6949 = vmatpush3.bf16.msra.mxu1 %v7177_v18  ;;  %v7183_v12 = vld [vmem:[#allocation7 + $0x330] sm:$0xff]   ;;  %v7270_v14 = vld [vmem:[#allocation2 + $0x80] sm:$0xff] }
 0x36f   :  { %v8468_v1 = vadd.f32 %v6331_v15, %v4303_v46  ;;  %v6220_v24 = vpop.f32.mrb[32].mxu0  ;;  %6838 = vmatprep.subr.bf16.mxu0 %v7178_v26  ;;  %v6332_v62 = vpop.f32.mrb[32].mxu1  ;;  %6950 = vmatprep.subr.bf16.mxu1 %v7180_v49  ;;  %v7185_v18 = vld [vmem:[#allocation7 + $0x3b0] sm:$0xff]   ;;  %v7186_v26 = vld [vmem:[#allocation7 + $0x378] sm:$0xff]  }
 0x370   :  { %v6221_v0 = vpop.f32.mrb[33].mxu0  ;;  %v6333_v5 = vpop.f32.mrb[33].mxu1  ;;  %v7188_v49 = vld [vmem:[#allocation7 + $0x3f8] sm:$0xff]  }
 0x371   :  { %v6222_v10 = vadd.f32 %v6221_v0, %v6220_v24  ;;  %v6223_v41 = vpop.f32.mrb[34].mxu0  ;;  %v6334_v55 = vadd.f32 %v6333_v5, %v6332_v62  ;;  %v6335_v42 = vpop.f32.mrb[34].mxu1  ;;  %v7271_v62 = vld [vmem:[#allocation2 + $0x88] sm:$0xff]  ;;  %v9438_v5 = vld [vmem:[#allocation111_spill] sm:$0xff] }
 0x372   :  { %v6224_v32 = vpop.f32.mrb[35].mxu0  ;;  %6839 = vmatpush3.bf16.msra.mxu0 %v7179_v34  ;;  %v6336_v30 = vpop.f32.mrb[35].mxu1  ;;  %6951 = vmatpush3.bf16.msra.mxu1 %v7181_v4  ;;  %v9439_v34 = vld [vmem:[#allocation114_spill] sm:$0xff]  ;;  %v7187_v4 = vld [vmem:[#allocation7 + $0x338] sm:$0xff]  }
 0x373   :  { %v4308_v39 = vadd.f32 %v7270_v14, %v6222_v10  ;;  %v6225_v15 = vadd.f32 %v6224_v32, %v6223_v41  ;;  %6840 = vmatprep.subr.bf16.mxu0 %v7182_v9  ;;  %v6337_v46 = vadd.f32 %v6336_v30, %v6335_v42  ;;  %6952 = vmatprep.subr.bf16.mxu1 %v7184_v17  ;;  %v7189_v41 = vld [vmem:[#allocation7 + $0x3b8] sm:$0xff]  }
 0x374   :  { %4910 = vmatmul.mubr.bf16.gmra.mrb[140].mxu0 %v9437_v47  ;;  %5071 = vmatmul.mubr.bf16.gmra.mrb[140].mxu1 %v9438_v5 }
 0x375   :  { %v8471_v24 = vadd.f32 %v6334_v55, %v4308_v39  ;;  %v4311_v0 = vadd.f32 %v7271_v62, %v6225_v15  ;;  %4917 = vmatprep.mubr.bf16.mxu0 %v8077_v45  ;;  %5078 = vmatprep.mubr.bf16.mxu1 %v9439_v34  ;;  %v7272_v45 = vld [vmem:[#allocation2 + $0x90] sm:$0xff] }
 0x376   :  { %6841 = vmatpush3.bf16.msra.mxu0 %v7183_v12  ;;  %6953 = vmatpush3.bf16.msra.mxu1 %v7185_v18 }
 0x377   :  { %v8476_v9 = vadd.f32 %v6337_v46, %v4311_v0  ;;  %v6226_v10 = vpop.f32.mrb[36].mxu0  ;;  %6842 = vmatprep.subr.bf16.mxu0 %v7186_v26  ;;  %v6338_v17 = vpop.f32.mrb[36].mxu1  ;;  %6954 = vmatprep.subr.bf16.mxu1 %v7188_v49  ;;  %v9440_v0 = vld [vmem:[#allocation112_spill] sm:$0xff]  ;;  %v7273_v26 = vld [vmem:[#allocation2 + $0x98] sm:$0xff]  ;;  %v9441_v49 = vld [vmem:[#allocation113_spill] sm:$0xff] }
 0x378   :  { %v6227_v42 = vpop.f32.mrb[37].mxu0  ;;  %v6339_v32 = vpop.f32.mrb[37].mxu1 }
 0x379   :  { %v6228_v55 = vadd.f32 %v6227_v42, %v6226_v10  ;;  %v6229_v14 = vpop.f32.mrb[38].mxu0  ;;  %v6340_v39 = vadd.f32 %v6339_v32, %v6338_v17  ;;  %v6341_v15 = vpop.f32.mrb[38].mxu1 }
 0x37a   :  { %v6230_v30 = vpop.f32.mrb[39].mxu0  ;;  %6843 = vmatpush3.bf16.msra.mxu0 %v7187_v4  ;;  %v6342_v62 = vpop.f32.mrb[39].mxu1  ;;  %6955 = vmatpush3.bf16.msra.mxu1 %v7189_v41 }
 0x37b   :  { %v4316_v47 = vadd.f32 %v7272_v45, %v6228_v55  ;;  %v6231_v12 = vadd.f32 %v6230_v30, %v6229_v14  ;;  %v6343_v46 = vadd.f32 %v6342_v62, %v6341_v15  ;;  %v7274_v15 = vld [vmem:[#allocation2 + $0xa0] sm:$0xff]  ;;  %v9442_v62 = vld [vmem:[#allocation115_spill] sm:$0xff] }
 0x37c   :  { %4918 = vmatmul.mubr.bf16.gmra.mrb[144].mxu0 %v9440_v0  ;;  %5079 = vmatmul.mubr.bf16.gmra.mrb[144].mxu1 %v9441_v49  ;;  %v9443_v0 = vld [vmem:[#allocation116_spill] sm:$0xff] }
 0x37d   :  { %v8479_v18 = vadd.f32 %v6340_v39, %v4316_v47  ;;  %v4319_v5 = vadd.f32 %v7273_v26, %v6231_v12  ;;  %4925 = vmatprep.mubr.bf16.mxu0 %v8089_v57  ;;  %5086 = vmatprep.mubr.bf16.mxu1 %v8092_v38  ;;  %v7275_v38 = vld [vmem:[#allocation2 + $0xa8] sm:$0xff] }
 0x37f   :  { %v8484_v34 = vadd.f32 %v6343_v46, %v4319_v5  ;;  %v6232_v4 = vpop.f32.mrb[40].mxu0  ;;  %v6344_v10 = vpop.f32.mrb[40].mxu1 }
 0x380   :  { %v6233_v17 = vpop.f32.mrb[41].mxu0  ;;  %v6345_v41 = vpop.f32.mrb[41].mxu1 }
 0x381   :  { %v6234_v42 = vadd.f32 %v6233_v17, %v6232_v4  ;;  %v6235_v55 = vpop.f32.mrb[42].mxu0  ;;  %v6346_v32 = vadd.f32 %v6345_v41, %v6344_v10  ;;  %v6347_v14 = vpop.f32.mrb[42].mxu1 }
 0x382   :  { %v6236_v39 = vpop.f32.mrb[43].mxu0  ;;  %v6348_v47 = vpop.f32.mrb[43].mxu1 }
 0x383   :  { %v4324_v30 = vadd.f32 %v7274_v15, %v6234_v42  ;;  %v6237_v45 = vadd.f32 %v6236_v39, %v6235_v55  ;;  %v6349_v12 = vadd.f32 %v6348_v47, %v6347_v14  ;;  %v7276_v14 = vld [vmem:[#allocation2 + $0xb0] sm:$0xff] }
 0x384   :  { %4926 = vmatmul.mubr.bf16.gmra.mrb[148].mxu0 %v9442_v62  ;;  %5087 = vmatmul.mubr.bf16.gmra.mrb[148].mxu1 %v9443_v0 }
 0x385   :  { %v8487_v57 = vadd.f32 %v6346_v32, %v4324_v30  ;;  %v4327_v46 = vadd.f32 %v7275_v38, %v6237_v45  ;;  %4933 = vmatprep.mubr.bf16.mxu0 %v8101_v19  ;;  %5094 = vmatprep.mubr.bf16.mxu1 %v8104_v53  ;;  %v7277_v53 = vld [vmem:[#allocation2 + $0xb8] sm:$0xff] }
 0x387   :  { %v8492_v26 = vadd.f32 %v6349_v12, %v4327_v46  ;;  %v6238_v5 = vpop.f32.mrb[44].mxu0  ;;  %v6350_v49 = vpop.f32.mrb[44].mxu1 }
 0x388   :  { %v6239_v4 = vpop.f32.mrb[45].mxu0  ;;  %v6351_v17 = vpop.f32.mrb[45].mxu1 }
 0x389   :  { %v6240_v10 = vadd.f32 %v6239_v4, %v6238_v5  ;;  %v6241_v42 = vpop.f32.mrb[46].mxu0  ;;  %v6352_v41 = vadd.f32 %v6351_v17, %v6350_v49  ;;  %v6353_v55 = vpop.f32.mrb[46].mxu1  ;;  %v7278_v17 = vld [vmem:[#allocation2 + $0xc0] sm:$0xff] }
 0x38a   :  { %v6242_v32 = vpop.f32.mrb[47].mxu0  ;;  %v6354_v30 = vpop.f32.mrb[47].mxu1 }
 0x38b   :  { %v4332_v39 = vadd.f32 %v7276_v14, %v6240_v10  ;;  %v6243_v15 = vadd.f32 %v6242_v32, %v6241_v42  ;;  %v6355_v45 = vadd.f32 %v6354_v30, %v6353_v55 }
 0x38c   :  { %4934 = vmatmul.mubr.bf16.gmra.mrb[152].mxu0 %v8094_v43  ;;  %5095 = vmatmul.mubr.bf16.gmra.mrb[152].mxu1 %v8097_v54 }
 0x38d   :  { %v8495_v19 = vadd.f32 %v6352_v41, %v4332_v39  ;;  %v4335_v47 = vadd.f32 %v7277_v53, %v6243_v15  ;;  %4941 = vmatprep.mubr.bf16.mxu0 %v8113_v6  ;;  %5102 = vmatprep.mubr.bf16.mxu1 %v8116_v25  ;;  %v7279_v25 = vld [vmem:[#allocation2 + $0xc8] sm:$0xff] }
 0x38f   :  { %v8500_v12 = vadd.f32 %v6355_v45, %v4335_v47  ;;  %v6244_v62 = vpop.f32.mrb[48].mxu0  ;;  %v6356_v38 = vpop.f32.mrb[48].mxu1 }
 0x390   :  { %v6245_v46 = vpop.f32.mrb[49].mxu0  ;;  %v6357_v5 = vpop.f32.mrb[49].mxu1 }
 0x391   :  { %v6246_v0 = vadd.f32 %v6245_v46, %v6244_v62  ;;  %v6247_v49 = vpop.f32.mrb[50].mxu0  ;;  %v6358_v4 = vadd.f32 %v6357_v5, %v6356_v38  ;;  %v6359_v43 = vpop.f32.mrb[50].mxu1  ;;  %v7280_v46 = vld [vmem:[#allocation2 + $0xd0] sm:$0xff] }
 0x392   :  { %v6248_v10 = vpop.f32.mrb[51].mxu0  ;;  %v6360_v55 = vpop.f32.mrb[51].mxu1 }
 0x393   :  { %v4340_v42 = vadd.f32 %v7278_v17, %v6246_v0  ;;  %v6249_v41 = vadd.f32 %v6248_v10, %v6247_v49  ;;  %v6361_v54 = vadd.f32 %v6360_v55, %v6359_v43  ;;  %v9444_v43 = vld [vmem:[#allocation117_spill] sm:$0xff]  ;;  %v9445_v10 = vld [vmem:[#allocation12_spill] sm:$0xff] }
 0x394   :  { %4942 = vmatmul.mubr.bf16.gmra.mrb[156].mxu0 %v8106_v44  ;;  %5103 = vmatmul.mubr.bf16.gmra.mrb[156].mxu1 %v8109_v58 }
 0x395   :  { %v8503_v6 = vadd.f32 %v6358_v4, %v4340_v42  ;;  %v4343_v32 = vadd.f32 %v7279_v25, %v6249_v41  ;;  %4949 = vmatprep.mubr.bf16.mxu0 %v8125_v27  ;;  %5110 = vmatprep.mubr.bf16.mxu1 %v8128_v37  ;;  %v7281_v37 = vld [vmem:[#allocation2 + $0xd8] sm:$0xff] }
 0x397   :  { %v8508_v14 = vadd.f32 %v6361_v54, %v4343_v32  ;;  %v6250_v39 = vpop.f32.mrb[52].mxu0  ;;  %v6362_v15 = vpop.f32.mrb[52].mxu1 }
 0x398   :  { %v6251_v30 = vpop.f32.mrb[53].mxu0  ;;  %v6363_v53 = vpop.f32.mrb[53].mxu1 }
 0x399   :  { %v6252_v45 = vadd.f32 %v6251_v30, %v6250_v39  ;;  %v6253_v47 = vpop.f32.mrb[54].mxu0  ;;  %v6364_v62 = vadd.f32 %v6363_v53, %v6362_v15  ;;  %v6365_v44 = vpop.f32.mrb[54].mxu1  ;;  %v7282_v30 = vld [vmem:[#allocation2 + $0xe0] sm:$0xff] }
 0x39a   :  { %v6254_v38 = vpop.f32.mrb[55].mxu0  ;;  %v6366_v49 = vpop.f32.mrb[55].mxu1 }
 0x39b   :  { %v4348_v0 = vadd.f32 %v7280_v46, %v6252_v45  ;;  %v6255_v5 = vadd.f32 %v6254_v38, %v6253_v47  ;;  %v6367_v58 = vadd.f32 %v6366_v49, %v6365_v44  ;;  %v9446_v44 = vld [vmem:[#allocation14_spill] sm:$0xff]  ;;  %v7283_v38 = vld [vmem:[#allocation2 + $0xe8] sm:$0xff]  ;;  %v9449_v49 = vld [vmem:[#allocation16_spill] sm:$0xff] }
 0x39c   :  { %4950 = vmatmul.mubr.bf16.gmra.mrb[160].mxu0 %v8118_v23  ;;  %5111 = vmatmul.mubr.bf16.gmra.mrb[160].mxu1 %v9444_v43 }
 0x39d   :  { %v8511_v27 = vadd.f32 %v6364_v62, %v4348_v0  ;;  %v4351_v4 = vadd.f32 %v7281_v37, %v6255_v5  ;;  %4957 = vmatprep.mubr.bf16.mxu0 %v8137_v13  ;;  %5118 = vmatprep.mubr.bf16.mxu1 %v9445_v10  ;;  %v9447_v0 = vld [vmem:[#allocation15_spill] sm:$0xff] }
 0x39e   :  { %v9448_v5 = vld [vmem:[#allocation19_spill] sm:$0xff] }
 0x39f   :  { %v8516_v17 = vadd.f32 %v6367_v58, %v4351_v4  ;;  %v6256_v42 = vpop.f32.mrb[56].mxu0  ;;  %v6368_v41 = vpop.f32.mrb[56].mxu1 }
 0x3a0   :  { %v6257_v55 = vpop.f32.mrb[57].mxu0  ;;  %v6369_v25 = vpop.f32.mrb[57].mxu1 }
 0x3a1   :  { %v6258_v54 = vadd.f32 %v6257_v55, %v6256_v42  ;;  %v6259_v32 = vpop.f32.mrb[58].mxu0  ;;  %v6370_v39 = vadd.f32 %v6369_v25, %v6368_v41  ;;  %v6371_v23 = vpop.f32.mrb[58].mxu1 }
 0x3a2   :  { %v6260_v15 = vpop.f32.mrb[59].mxu0  ;;  %v6372_v47 = vpop.f32.mrb[59].mxu1 }
 0x3a3   :  { %v4356_v45 = vadd.f32 %v7282_v30, %v6258_v54  ;;  %v6261_v53 = vadd.f32 %v6260_v15, %v6259_v32  ;;  %v6373_v62 = vadd.f32 %v6372_v47, %v6371_v23  ;;  %v7284_v32 = vld [vmem:[#allocation2 + $0xf0] sm:$0xff]  ;;  %v7285_v47 = vld [vmem:[#allocation2 + $0xf8] sm:$0xff] }
 0x3a4   :  { %4958 = vmatmul.mubr.bf16.gmra.mrb[164].mxu0 %v9446_v44  ;;  %5119 = vmatmul.mubr.bf16.gmra.mrb[164].mxu1 %v9447_v0  ;;  %v9451_v44 = vld [vmem:[#allocation18_spill] sm:$0xff] }
 0x3a5   :  { %v8519_v13 = vadd.f32 %v6370_v39, %v4356_v45  ;;  %v4359_v46 = vadd.f32 %v7283_v38, %v6261_v53  ;;  %4965 = vmatprep.mubr.bf16.mxu0 %v9448_v5  ;;  %5126 = vmatprep.mubr.bf16.mxu1 %v9449_v49  ;;  %v9450_v45 = vld [vmem:[#allocation13_spill] sm:$0xff]  ;;  %v9452_v38 = vld [vmem:[#allocation23_spill] sm:$0xff] }
 0x3a7   :  { %v8524_v58 = vadd.f32 %v6373_v62, %v4359_v46  ;;  %v6262_v37 = vpop.f32.mrb[60].mxu0  ;;  %v6374_v4 = vpop.f32.mrb[60].mxu1 }
 0x3a8   :  { %v6263_v43 = vpop.f32.mrb[61].mxu0  ;;  %v6375_v42 = vpop.f32.mrb[61].mxu1 }
 0x3a9   :  { %v6264_v10 = vadd.f32 %v6263_v43, %v6262_v37  ;;  %v6265_v41 = vpop.f32.mrb[62].mxu0  ;;  %v6376_v55 = vadd.f32 %v6375_v42, %v6374_v4  ;;  %v6377_v54 = vpop.f32.mrb[62].mxu1 }
 0x3aa   :  { %v6266_v25 = vpop.f32.mrb[63].mxu0  ;;  %v6378_v15 = vpop.f32.mrb[63].mxu1 }
 0x3ab   :  { %v4364_v39 = vadd.f32 %v7284_v32, %v6264_v10  ;;  %v6267_v23 = vadd.f32 %v6266_v25, %v6265_v41  ;;  %v6379_v30 = vadd.f32 %v6378_v15, %v6377_v54  ;;  %v9454_v15 = vld [vmem:[#allocation22_spill] sm:$0xff] }
 0x3ac   :  { %4966 = vmatmul.mubr.bf16.gmra.mrb[168].mxu0 %v9450_v45  ;;  %5127 = vmatmul.mubr.bf16.gmra.mrb[168].mxu1 %v9451_v44 }
 0x3ad   :  { %v8527_v53 = vadd.f32 %v6376_v55, %v4364_v39  ;;  %v4367_v62 = vadd.f32 %v7285_v47, %v6267_v23  ;;  %4973 = vmatprep.mubr.bf16.mxu0 %v8161_v61  ;;  %5134 = vmatprep.mubr.bf16.mxu1 %v9452_v38  ;;  %v9453_v39 = vld [vmem:[#allocation17_spill] sm:$0xff] }
 0x3af   :  { %v8532_v46 = vadd.f32 %v6379_v30, %v4367_v62  ;;  %v6396_v0 = vpop.f32.mrb[64].mxu0  ;;  %v6508_v5 = vpop.f32.mrb[64].mxu1 }
 0x3b0   :  { %v6397_v49 = vpop.f32.mrb[65].mxu0  ;;  %v6509_v4 = vpop.f32.mrb[65].mxu1 }
 0x3b1   :  { %v6398_v37 = vadd.f32 %v6397_v49, %v6396_v0  ;;  %v6399_v43 = vpop.f32.mrb[66].mxu0  ;;  %v6510_v10 = vadd.f32 %v6509_v4, %v6508_v5  ;;  %v6511_v42 = vpop.f32.mrb[66].mxu1 }
 0x3b2   :  { %v6400_v41 = vpop.f32.mrb[67].mxu0  ;;  %v6512_v25 = vpop.f32.mrb[67].mxu1 }
 0x3b3   :  { %v4566_v55 = vadd.f32 %v6398_v37, %v8407_v11  ;;  %v6401_v54 = vadd.f32 %v6400_v41, %v6399_v43  ;;  %v6513_v32 = vadd.f32 %v6512_v25, %v6511_v42 }
 0x3b4   :  { %4974 = vmatmul.mubr.bf16.gmra.mrb[172].mxu0 %v9453_v39  ;;  %5135 = vmatmul.mubr.bf16.gmra.mrb[172].mxu1 %v9454_v15 }
 0x3b5   :  { %v8536_v61 = vadd.f32 %v6510_v10, %v4566_v55  ;;  %v4569_v23 = vadd.f32 %v6401_v54, %v8412_v36  ;;  %4981 = vmatprep.mubr.bf16.mxu0 %v8173_v56  ;;  %5142 = vmatprep.mubr.bf16.mxu1 %v8176_v48  ;;  %v9455_v10 = vld [vmem:[#allocation20_spill] sm:$0xff] }
 0x3b7   :  { %v8542_v30 = vadd.f32 %v6513_v32, %v4569_v23  ;;  %v6402_v45 = vpop.f32.mrb[68].mxu0  ;;  %v6514_v47 = vpop.f32.mrb[68].mxu1 }
 0x3b8   :  { %v6403_v11 = vpop.f32.mrb[69].mxu0  ;;  %v6515_v44 = vpop.f32.mrb[69].mxu1 }
 0x3b9   :  { %v6404_v62 = vadd.f32 %v6403_v11, %v6402_v45  ;;  %v6405_v38 = vpop.f32.mrb[70].mxu0  ;;  %v6516_v0 = vadd.f32 %v6515_v44, %v6514_v47  ;;  %v6517_v5 = vpop.f32.mrb[70].mxu1  ;;  %v9456_v11 = vld [vmem:[#allocation21_spill] sm:$0xff] }
 0x3ba   :  { %v6406_v49 = vpop.f32.mrb[71].mxu0  ;;  %v6518_v4 = vpop.f32.mrb[71].mxu1  ;;  %v9458_v44 = vld [vmem:[#allocation25_spill] sm:$0xff] }
 0x3bb   :  { %v4574_v37 = vadd.f32 %v6404_v62, %v8415_v59  ;;  %v6407_v36 = vadd.f32 %v6406_v49, %v6405_v38  ;;  %v6519_v43 = vadd.f32 %v6518_v4, %v6517_v5  ;;  %v9457_v62 = vld [vmem:[#allocation26_spill] sm:$0xff] }
 0x3bc   :  { %4982 = vmatmul.mubr.bf16.gmra.mrb[176].mxu0 %v8166_v28  ;;  %5143 = vmatmul.mubr.bf16.gmra.mrb[176].mxu1 %v9455_v10  ;;  %v9459_v38 = vld [vmem:[#allocation30_spill] sm:$0xff] }
 0x3bd   :  { %v8546_v56 = vadd.f32 %v6516_v0, %v4574_v37  ;;  %v4577_v48 = vadd.f32 %v6407_v36, %v8420_v63  ;;  %4989 = vmatprep.mubr.bf16.mxu0 %v8185_v31  ;;  %5150 = vmatprep.mubr.bf16.mxu1 %v8188_v60 }
 0x3bf   :  { %v8552_v42 = vadd.f32 %v6519_v43, %v4577_v48  ;;  %v6408_v41 = vpop.f32.mrb[72].mxu0  ;;  %v6520_v55 = vpop.f32.mrb[72].mxu1 }
 0x3c0   :  { %v6409_v59 = vpop.f32.mrb[73].mxu0  ;;  %v6521_v25 = vpop.f32.mrb[73].mxu1 }
 0x3c1   :  { %v6410_v54 = vadd.f32 %v6409_v59, %v6408_v41  ;;  %v6411_v32 = vpop.f32.mrb[74].mxu0  ;;  %v6522_v39 = vadd.f32 %v6521_v25, %v6520_v55  ;;  %v6523_v28 = vpop.f32.mrb[74].mxu1 }
 0x3c2   :  { %v6412_v23 = vpop.f32.mrb[75].mxu0  ;;  %v6524_v45 = vpop.f32.mrb[75].mxu1 }
 0x3c3   :  { %v4582_v15 = vadd.f32 %v6410_v54, %v8423_v8  ;;  %v6413_v63 = vadd.f32 %v6412_v23, %v6411_v32  ;;  %v6525_v47 = vadd.f32 %v6524_v45, %v6523_v28  ;;  %v9460_v54 = vld [vmem:[#allocation27_spill] sm:$0xff]  ;;  %v9462_v28 = vld [vmem:[#allocation29_spill] sm:$0xff] }
 0x3c4   :  { %4990 = vmatmul.mubr.bf16.gmra.mrb[180].mxu0 %v9456_v11  ;;  %5151 = vmatmul.mubr.bf16.gmra.mrb[180].mxu1 %v9457_v62  ;;  %v9463_v23 = vld [vmem:[#allocation33_spill] sm:$0xff] }
 0x3c5   :  { %v8556_v31 = vadd.f32 %v6522_v39, %v4582_v15  ;;  %v4585_v60 = vadd.f32 %v6413_v63, %v8428_v7  ;;  %4997 = vmatprep.mubr.bf16.mxu0 %v9458_v44  ;;  %5158 = vmatprep.mubr.bf16.mxu1 %v9459_v38  ;;  %v9461_v39 = vld [vmem:[#allocation24_spill] sm:$0xff] }
 0x3c7   :  { %v8562_v0 = vadd.f32 %v6525_v47, %v4585_v60  ;;  %v6414_v5 = vpop.f32.mrb[76].mxu0  ;;  %v6526_v49 = vpop.f32.mrb[76].mxu1 }
 0x3c8   :  { %v6415_v8 = vpop.f32.mrb[77].mxu0  ;;  %v6527_v36 = vpop.f32.mrb[77].mxu1 }
 0x3c9   :  { %v6416_v37 = vadd.f32 %v6415_v8, %v6414_v5  ;;  %v6417_v4 = vpop.f32.mrb[78].mxu0  ;;  %v6528_v43 = vadd.f32 %v6527_v36, %v6526_v49  ;;  %v6529_v48 = vpop.f32.mrb[78].mxu1 }
 0x3ca   :  { %v6418_v10 = vpop.f32.mrb[79].mxu0  ;;  %v6530_v55 = vpop.f32.mrb[79].mxu1 }
 0x3cb   :  { %v4590_v41 = vadd.f32 %v6416_v37, %v8431_v21  ;;  %v6419_v7 = vadd.f32 %v6418_v10, %v6417_v4  ;;  %v6531_v59 = vadd.f32 %v6530_v55, %v6529_v48  ;;  %v9464_v37 = vld [vmem:[#allocation118_spill] sm:$0xff]  ;;  %v9466_v48 = vld [vmem:[#allocation32_spill] sm:$0xff]  ;;  %v9467_v10 = vld [vmem:[#allocation37_spill] sm:$0xff] }
 0x3cc   :  { %4998 = vmatmul.mubr.bf16.gmra.mrb[184].mxu0 %v9460_v54  ;;  %5159 = vmatmul.mubr.bf16.gmra.mrb[184].mxu1 %v9461_v39 }
 0x3cd   :  { %v8566_v25 = vadd.f32 %v6528_v43, %v4590_v41  ;;  %v4593_v32 = vadd.f32 %v6419_v7, %v8436_v33  ;;  %5005 = vmatprep.mubr.bf16.mxu0 %v9462_v28  ;;  %5166 = vmatprep.mubr.bf16.mxu1 %v9463_v23  ;;  %v9465_v43 = vld [vmem:[#allocation28_spill] sm:$0xff] }
 0x3cf   :  { %v8572_v15 = vadd.f32 %v6531_v59, %v4593_v32  ;;  %v6420_v63 = vpop.f32.mrb[80].mxu0  ;;  %v6532_v45 = vpop.f32.mrb[80].mxu1 }
 0x3d0   :  { %v6421_v21 = vpop.f32.mrb[81].mxu0  ;;  %v6533_v11 = vpop.f32.mrb[81].mxu1 }
 0x3d1   :  { %v6422_v47 = vadd.f32 %v6421_v21, %v6420_v63  ;;  %v6423_v60 = vpop.f32.mrb[82].mxu0  ;;  %v6534_v62 = vadd.f32 %v6533_v11, %v6532_v45  ;;  %v6535_v44 = vpop.f32.mrb[82].mxu1 }
 0x3d2   :  { %v6424_v38 = vpop.f32.mrb[83].mxu0  ;;  %v6536_v49 = vpop.f32.mrb[83].mxu1 }
 0x3d3   :  { %v4598_v5 = vadd.f32 %v6422_v47, %v8439_v35  ;;  %v6425_v33 = vadd.f32 %v6424_v38, %v6423_v60  ;;  %v6537_v8 = vadd.f32 %v6536_v49, %v6535_v44  ;;  %v9468_v47 = vld [vmem:[#allocation34_spill] sm:$0xff]  ;;  %v9470_v44 = vld [vmem:[#allocation36_spill] sm:$0xff]  ;;  %v9471_v38 = vld [vmem:[#allocation41_spill] sm:$0xff] }
 0x3d4   :  { %5006 = vmatmul.mubr.bf16.gmra.mrb[188].mxu0 %v9464_v37  ;;  %5167 = vmatmul.mubr.bf16.gmra.mrb[188].mxu1 %v9465_v43 }
 0x3d5   :  { %v8576_v36 = vadd.f32 %v6534_v62, %v4598_v5  ;;  %v4601_v4 = vadd.f32 %v6425_v33, %v8444_v16  ;;  %5207 = vmatprep.mubr.bf16.mxu0 %v9466_v48  ;;  %5368 = vmatprep.mubr.bf16.mxu1 %v9467_v10  ;;  %v9469_v62 = vld [vmem:[#allocation31_spill] sm:$0xff] }
 0x3d7   :  { %v8582_v41 = vadd.f32 %v6537_v8, %v4601_v4  ;;  %v6426_v7 = vpop.f32.mrb[84].mxu0  ;;  %v6538_v55 = vpop.f32.mrb[84].mxu1 }
 0x3d8   :  { %v6427_v35 = vpop.f32.mrb[85].mxu0  ;;  %v6539_v54 = vpop.f32.mrb[85].mxu1 }
 0x3d9   :  { %v6428_v59 = vadd.f32 %v6427_v35, %v6426_v7  ;;  %v6429_v32 = vpop.f32.mrb[86].mxu0  ;;  %v6540_v39 = vadd.f32 %v6539_v54, %v6538_v55  ;;  %v6541_v28 = vpop.f32.mrb[86].mxu1 }
 0x3da   :  { %v6430_v23 = vpop.f32.mrb[87].mxu0  ;;  %v6542_v45 = vpop.f32.mrb[87].mxu1 }
 0x3db   :  { %v4606_v63 = vadd.f32 %v6428_v59, %v8447_v20  ;;  %v6431_v16 = vadd.f32 %v6430_v23, %v6429_v32  ;;  %v6543_v21 = vadd.f32 %v6542_v45, %v6541_v28  ;;  %v9472_v59 = vld [vmem:[#allocation38_spill] sm:$0xff]  ;;  %v9474_v28 = vld [vmem:[#allocation40_spill] sm:$0xff]  ;;  %v9475_v23 = vld [vmem:[#allocation45_spill] sm:$0xff] }
 0x3dc   :  { %5208 = vmatmul.mubr.bf16.vlgmr.msra.gmra.mrb[192].mxu0 %v9468_v47  ;;  %5369 = vmatmul.mubr.bf16.vlgmr.msra.gmra.mrb[192].mxu1 %v9469_v62 }
 0x3dd   :  { %v8586_v11 = vadd.f32 %v6540_v39, %v4606_v63  ;;  %v4609_v60 = vadd.f32 %v6431_v16, %v8452_v22  ;;  %5215 = vmatprep.mubr.bf16.mxu0 %v9470_v44  ;;  %5376 = vmatprep.mubr.bf16.mxu1 %v9471_v38  ;;  %v9473_v39 = vld [vmem:[#allocation35_spill] sm:$0xff] }
 0x3df   :  { %v8592_v5 = vadd.f32 %v6543_v21, %v4609_v60  ;;  %v6432_v33 = vpop.f32.mrb[88].mxu0  ;;  %v6544_v49 = vpop.f32.mrb[88].mxu1 }
 0x3e0   :  { %v6433_v20 = vpop.f32.mrb[89].mxu0  ;;  %v6545_v37 = vpop.f32.mrb[89].mxu1 }
 0x3e1   :  { %v6434_v8 = vadd.f32 %v6433_v20, %v6432_v33  ;;  %v6435_v4 = vpop.f32.mrb[90].mxu0  ;;  %v6546_v43 = vadd.f32 %v6545_v37, %v6544_v49  ;;  %v6547_v48 = vpop.f32.mrb[90].mxu1 }
 0x3e2   :  { %v6436_v10 = vpop.f32.mrb[91].mxu0  ;;  %v6548_v55 = vpop.f32.mrb[91].mxu1 }
 0x3e3   :  { %v4614_v7 = vadd.f32 %v6434_v8, %v8455_v50  ;;  %v6437_v22 = vadd.f32 %v6436_v10, %v6435_v4  ;;  %v6549_v35 = vadd.f32 %v6548_v55, %v6547_v48  ;;  %v9476_v8 = vld [vmem:[#allocation42_spill] sm:$0xff]  ;;  %v9478_v48 = vld [vmem:[#allocation44_spill] sm:$0xff]  ;;  %v9479_v10 = vld [vmem:[#allocation49_spill] sm:$0xff] }
 0x3e4   :  { %5216 = vmatmul.mubr.bf16.gmra.mrb[196].mxu0 %v9472_v59  ;;  %5377 = vmatmul.mubr.bf16.gmra.mrb[196].mxu1 %v9473_v39 }
 0x3e5   :  { %v8596_v54 = vadd.f32 %v6546_v43, %v4614_v7  ;;  %v4617_v32 = vadd.f32 %v6437_v22, %v8460_v40  ;;  %5223 = vmatprep.mubr.bf16.mxu0 %v9474_v28  ;;  %5384 = vmatprep.mubr.bf16.mxu1 %v9475_v23  ;;  %v9477_v43 = vld [vmem:[#allocation39_spill] sm:$0xff] }
 0x3e7   :  { %v8602_v63 = vadd.f32 %v6549_v35, %v4617_v32  ;;  %v6438_v16 = vpop.f32.mrb[92].mxu0  ;;  %v6550_v45 = vpop.f32.mrb[92].mxu1 }
 0x3e8   :  { %v6439_v50 = vpop.f32.mrb[93].mxu0  ;;  %v6551_v47 = vpop.f32.mrb[93].mxu1 }
 0x3e9   :  { %v6440_v21 = vadd.f32 %v6439_v50, %v6438_v16  ;;  %v6441_v60 = vpop.f32.mrb[94].mxu0  ;;  %v6552_v62 = vadd.f32 %v6551_v47, %v6550_v45  ;;  %v6553_v44 = vpop.f32.mrb[94].mxu1 }
 0x3ea   :  { %v6442_v38 = vpop.f32.mrb[95].mxu0  ;;  %v6554_v49 = vpop.f32.mrb[95].mxu1 }
 0x3eb   :  { %v4622_v33 = vadd.f32 %v6440_v21, %v8463_v2  ;;  %v6443_v40 = vadd.f32 %v6442_v38, %v6441_v60  ;;  %v6555_v20 = vadd.f32 %v6554_v49, %v6553_v44  ;;  %v9480_v21 = vld [vmem:[#allocation46_spill] sm:$0xff]  ;;  %v9482_v44 = vld [vmem:[#allocation48_spill] sm:$0xff]  ;;  %v9483_v38 = vld [vmem:[#allocation53_spill] sm:$0xff] }
 0x3ec   :  { %5224 = vmatmul.mubr.bf16.gmra.mrb[200].mxu0 %v9476_v8  ;;  %5385 = vmatmul.mubr.bf16.gmra.mrb[200].mxu1 %v9477_v43 }
 0x3ed   :  { %v8606_v37 = vadd.f32 %v6552_v62, %v4622_v33  ;;  %v4625_v4 = vadd.f32 %v6443_v40, %v8468_v1  ;;  %5231 = vmatprep.mubr.bf16.mxu0 %v9478_v48  ;;  %5392 = vmatprep.mubr.bf16.mxu1 %v9479_v10  ;;  %v9481_v62 = vld [vmem:[#allocation43_spill] sm:$0xff] }
 0x3ef   :  { %v8612_v7 = vadd.f32 %v6555_v20, %v4625_v4  ;;  %v6444_v22 = vpop.f32.mrb[96].mxu0  ;;  %v6556_v55 = vpop.f32.mrb[96].mxu1 }
 0x3f0   :  { %v6445_v2 = vpop.f32.mrb[97].mxu0  ;;  %v6557_v59 = vpop.f32.mrb[97].mxu1 }
 0x3f1   :  { %v6446_v35 = vadd.f32 %v6445_v2, %v6444_v22  ;;  %v6447_v32 = vpop.f32.mrb[98].mxu0  ;;  %v6558_v39 = vadd.f32 %v6557_v59, %v6556_v55  ;;  %v6559_v28 = vpop.f32.mrb[98].mxu1 }
 0x3f2   :  { %v6448_v23 = vpop.f32.mrb[99].mxu0  ;;  %v6560_v45 = vpop.f32.mrb[99].mxu1 }
 0x3f3   :  { %v4630_v16 = vadd.f32 %v6446_v35, %v8471_v24  ;;  %v6449_v1 = vadd.f32 %v6448_v23, %v6447_v32  ;;  %v6561_v50 = vadd.f32 %v6560_v45, %v6559_v28  ;;  %v9484_v35 = vld [vmem:[#allocation50_spill] sm:$0xff]  ;;  %v9486_v28 = vld [vmem:[#allocation52_spill] sm:$0xff]  ;;  %v9487_v23 = vld [vmem:[#allocation57_spill] sm:$0xff] }
 0x3f4   :  { %5232 = vmatmul.mubr.bf16.gmra.mrb[204].mxu0 %v9480_v21  ;;  %5393 = vmatmul.mubr.bf16.gmra.mrb[204].mxu1 %v9481_v62 }
 0x3f5   :  { %v8616_v47 = vadd.f32 %v6558_v39, %v4630_v16  ;;  %v4633_v60 = vadd.f32 %v6449_v1, %v8476_v9  ;;  %5239 = vmatprep.mubr.bf16.mxu0 %v9482_v44  ;;  %5400 = vmatprep.mubr.bf16.mxu1 %v9483_v38  ;;  %v9485_v39 = vld [vmem:[#allocation47_spill] sm:$0xff] }
 0x3f7   :  { %v8622_v33 = vadd.f32 %v6561_v50, %v4633_v60  ;;  %v6450_v40 = vpop.f32.mrb[100].mxu0  ;;  %v6562_v49 = vpop.f32.mrb[100].mxu1 }
 0x3f8   :  { %v6451_v24 = vpop.f32.mrb[101].mxu0  ;;  %v6563_v8 = vpop.f32.mrb[101].mxu1 }
 0x3f9   :  { %v6452_v20 = vadd.f32 %v6451_v24, %v6450_v40  ;;  %v6453_v4 = vpop.f32.mrb[102].mxu0  ;;  %v6564_v43 = vadd.f32 %v6563_v8, %v6562_v49  ;;  %v6565_v48 = vpop.f32.mrb[102].mxu1 }
 0x3fa   :  { %v6454_v10 = vpop.f32.mrb[103].mxu0  ;;  %v6566_v55 = vpop.f32.mrb[103].mxu1 }
 0x3fb   :  { %v4638_v22 = vadd.f32 %v6452_v20, %v8479_v18  ;;  %v6455_v9 = vadd.f32 %v6454_v10, %v6453_v4  ;;  %v6567_v2 = vadd.f32 %v6566_v55, %v6565_v48  ;;  %v9488_v20 = vld [vmem:[#allocation54_spill] sm:$0xff]  ;;  %v9490_v48 = vld [vmem:[#allocation56_spill] sm:$0xff]  ;;  %v9491_v10 = vld [vmem:[#allocation61_spill] sm:$0xff] }
 0x3fc   :  { %5240 = vmatmul.mubr.bf16.gmra.mrb[208].mxu0 %v9484_v35  ;;  %5401 = vmatmul.mubr.bf16.gmra.mrb[208].mxu1 %v9485_v39 }
 0x3fd   :  { %v8626_v59 = vadd.f32 %v6564_v43, %v4638_v22  ;;  %v4641_v32 = vadd.f32 %v6455_v9, %v8484_v34  ;;  %5247 = vmatprep.mubr.bf16.mxu0 %v9486_v28  ;;  %5408 = vmatprep.mubr.bf16.mxu1 %v9487_v23  ;;  %v9489_v43 = vld [vmem:[#allocation51_spill] sm:$0xff] }
 0x3ff   :  { %v8632_v16 = vadd.f32 %v6567_v2, %v4641_v32  ;;  %v6456_v1 = vpop.f32.mrb[104].mxu0  ;;  %v6568_v45 = vpop.f32.mrb[104].mxu1 }
 0x400   :  { %v6457_v18 = vpop.f32.mrb[105].mxu0  ;;  %v6569_v21 = vpop.f32.mrb[105].mxu1 }
 0x401   :  { %v6458_v50 = vadd.f32 %v6457_v18, %v6456_v1  ;;  %v6459_v60 = vpop.f32.mrb[106].mxu0  ;;  %v6570_v62 = vadd.f32 %v6569_v21, %v6568_v45  ;;  %v6571_v44 = vpop.f32.mrb[106].mxu1 }
 0x402   :  { %v6460_v38 = vpop.f32.mrb[107].mxu0  ;;  %v6572_v49 = vpop.f32.mrb[107].mxu1 }
 0x403   :  { %v4646_v40 = vadd.f32 %v6458_v50, %v8487_v57  ;;  %v6461_v34 = vadd.f32 %v6460_v38, %v6459_v60  ;;  %v6573_v24 = vadd.f32 %v6572_v49, %v6571_v44  ;;  %v9492_v50 = vld [vmem:[#allocation58_spill] sm:$0xff]  ;;  %v9494_v44 = vld [vmem:[#allocation60_spill] sm:$0xff]  ;;  %v9495_v38 = vld [vmem:[#allocation65_spill] sm:$0xff] }
 0x404   :  { %5248 = vmatmul.mubr.bf16.gmra.mrb[212].mxu0 %v9488_v20  ;;  %5409 = vmatmul.mubr.bf16.gmra.mrb[212].mxu1 %v9489_v43 }
 0x405   :  { %v8636_v8 = vadd.f32 %v6570_v62, %v4646_v40  ;;  %v4649_v4 = vadd.f32 %v6461_v34, %v8492_v26  ;;  %5255 = vmatprep.mubr.bf16.mxu0 %v9490_v48  ;;  %5416 = vmatprep.mubr.bf16.mxu1 %v9491_v10  ;;  %v9493_v62 = vld [vmem:[#allocation55_spill] sm:$0xff] }
 0x407   :  { %v8642_v22 = vadd.f32 %v6573_v24, %v4649_v4  ;;  %v6462_v9 = vpop.f32.mrb[108].mxu0  ;;  %v6574_v55 = vpop.f32.mrb[108].mxu1 }
 0x408   :  { %v6463_v57 = vpop.f32.mrb[109].mxu0  ;;  %v6575_v35 = vpop.f32.mrb[109].mxu1 }
 0x409   :  { %v6464_v2 = vadd.f32 %v6463_v57, %v6462_v9  ;;  %v6465_v32 = vpop.f32.mrb[110].mxu0  ;;  %v6576_v39 = vadd.f32 %v6575_v35, %v6574_v55  ;;  %v6577_v28 = vpop.f32.mrb[110].mxu1 }
 0x40a   :  { %v6466_v23 = vpop.f32.mrb[111].mxu0  ;;  %v6578_v45 = vpop.f32.mrb[111].mxu1 }
 0x40b   :  { %v4654_v1 = vadd.f32 %v6464_v2, %v8495_v19  ;;  %v6467_v26 = vadd.f32 %v6466_v23, %v6465_v32  ;;  %v6579_v18 = vadd.f32 %v6578_v45, %v6577_v28  ;;  %v9496_v2 = vld [vmem:[#allocation62_spill] sm:$0xff] }
 0x40c   :  { %5256 = vmatmul.mubr.bf16.gmra.mrb[216].mxu0 %v9492_v50  ;;  %5417 = vmatmul.mubr.bf16.gmra.mrb[216].mxu1 %v9493_v62 }
 0x40d   :  { %v8646_v21 = vadd.f32 %v6576_v39, %v4654_v1  ;;  %v4657_v60 = vadd.f32 %v6467_v26, %v8500_v12  ;;  %5263 = vmatprep.mubr.bf16.mxu0 %v9494_v44  ;;  %5424 = vmatprep.mubr.bf16.mxu1 %v9495_v38  ;;  %v9497_v39 = vld [vmem:[#allocation59_spill] sm:$0xff] }
 0x40f   :  { %v8652_v40 = vadd.f32 %v6579_v18, %v4657_v60  ;;  %v6468_v34 = vpop.f32.mrb[112].mxu0  ;;  %v6580_v49 = vpop.f32.mrb[112].mxu1 }
 0x410   :  { %v6469_v19 = vpop.f32.mrb[113].mxu0  ;;  %v6581_v20 = vpop.f32.mrb[113].mxu1 }
 0x411   :  { %v6470_v24 = vadd.f32 %v6469_v19, %v6468_v34  ;;  %v6471_v4 = vpop.f32.mrb[114].mxu0  ;;  %v6582_v43 = vadd.f32 %v6581_v20, %v6580_v49  ;;  %v6583_v48 = vpop.f32.mrb[114].mxu1  ;;  %v9498_v49 = vld [vmem:[#allocation66_spill] sm:$0xff]  ;;  %v9499_v19 = vld [vmem:[#allocation63_spill] sm:$0xff] }
 0x412   :  { %v6472_v10 = vpop.f32.mrb[115].mxu0  ;;  %v6584_v55 = vpop.f32.mrb[115].mxu1 }
 0x413   :  { %v4662_v9 = vadd.f32 %v6470_v24, %v8503_v6  ;;  %v6473_v12 = vadd.f32 %v6472_v10, %v6471_v4  ;;  %v6585_v57 = vadd.f32 %v6584_v55, %v6583_v48 }
 0x414   :  { %5264 = vmatmul.mubr.bf16.gmra.mrb[220].mxu0 %v9496_v2  ;;  %5425 = vmatmul.mubr.bf16.gmra.mrb[220].mxu1 %v9497_v39  ;;  %v9500_v39 = vld [vmem:[#allocation64_spill] sm:$0xff] }
 0x415   :  { %v8656_v35 = vadd.f32 %v6582_v43, %v4662_v9  ;;  %v4665_v32 = vadd.f32 %v6473_v12, %v8508_v14  ;;  %5271 = vmatprep.mubr.bf16.mxu0 %v8317_v52  ;;  %5432 = vmatprep.mubr.bf16.mxu1 %v8320_v3 }
 0x417   :  { %v8662_v28 = vadd.f32 %v6585_v57, %v4665_v32  ;;  %v6474_v23 = vpop.f32.mrb[116].mxu0  ;;  %v6586_v1 = vpop.f32.mrb[116].mxu1 }
 0x418   :  { %v6475_v6 = vpop.f32.mrb[117].mxu0  ;;  %v6587_v45 = vpop.f32.mrb[117].mxu1 }
 0x419   :  { %v6476_v26 = vadd.f32 %v6475_v6, %v6474_v23  ;;  %v6477_v18 = vpop.f32.mrb[118].mxu0  ;;  %v6588_v50 = vadd.f32 %v6587_v45, %v6586_v1  ;;  %v6589_v60 = vpop.f32.mrb[118].mxu1  ;;  %v9501_v23 = vld [vmem:[#allocation69_spill] sm:$0xff]  ;;  %v9502_v1 = vld [vmem:[#allocation68_spill] sm:$0xff] }
 0x41a   :  { %v6478_v62 = vpop.f32.mrb[119].mxu0  ;;  %v6590_v38 = vpop.f32.mrb[119].mxu1  ;;  %v9503_v6 = vld [vmem:[#allocation73_spill] sm:$0xff] }
 0x41b   :  { %v4670_v44 = vadd.f32 %v6476_v26, %v8511_v27  ;;  %v6479_v14 = vadd.f32 %v6478_v62, %v6477_v18  ;;  %v6591_v34 = vadd.f32 %v6590_v38, %v6589_v60 }
 0x41c   :  { %5272 = vmatmul.mubr.bf16.gmra.mrb[224].mxu0 %v9498_v49  ;;  %5433 = vmatmul.mubr.bf16.gmra.mrb[224].mxu1 %v9499_v19  ;;  %v9504_v19 = vld [vmem:[#allocation70_spill] sm:$0xff] }
 0x41d   :  { %v8666_v52 = vadd.f32 %v6588_v50, %v4670_v44  ;;  %v4673_v3 = vadd.f32 %v6479_v14, %v8516_v17  ;;  %5279 = vmatprep.mubr.bf16.mxu0 %v8329_v51  ;;  %5440 = vmatprep.mubr.bf16.mxu1 %v8332_v29 }
 0x41f   :  { %v8672_v24 = vadd.f32 %v6591_v34, %v4673_v3  ;;  %v6480_v20 = vpop.f32.mrb[120].mxu0  ;;  %v6592_v4 = vpop.f32.mrb[120].mxu1 }
 0x420   :  { %v6481_v27 = vpop.f32.mrb[121].mxu0  ;;  %v6593_v48 = vpop.f32.mrb[121].mxu1 }
 0x421   :  { %v6482_v43 = vadd.f32 %v6481_v27, %v6480_v20  ;;  %v6483_v10 = vpop.f32.mrb[122].mxu0  ;;  %v6594_v9 = vadd.f32 %v6593_v48, %v6592_v4  ;;  %v6595_v12 = vpop.f32.mrb[122].mxu1  ;;  %v9505_v27 = vld [vmem:[#allocation67_spill] sm:$0xff]  ;;  %v9507_v48 = vld [vmem:[#allocation77_spill] sm:$0xff] }
 0x422   :  { %v6484_v55 = vpop.f32.mrb[123].mxu0  ;;  %v6596_v2 = vpop.f32.mrb[123].mxu1 }
 0x423   :  { %v4678_v57 = vadd.f32 %v6482_v43, %v8519_v13  ;;  %v6485_v17 = vadd.f32 %v6484_v55, %v6483_v10  ;;  %v6597_v32 = vadd.f32 %v6596_v2, %v6595_v12  ;;  %v9506_v43 = vld [vmem:[#allocation72_spill] sm:$0xff] }
 0x424   :  { %5280 = vmatmul.mubr.bf16.gmra.mrb[228].mxu0 %v9500_v39  ;;  %5441 = vmatmul.mubr.bf16.gmra.mrb[228].mxu1 %v9501_v23 }
 0x425   :  { %v8676_v51 = vadd.f32 %v6594_v9, %v4678_v57  ;;  %v4681_v29 = vadd.f32 %v6485_v17, %v8524_v58  ;;  %5287 = vmatprep.mubr.bf16.mxu0 %v9502_v1  ;;  %5448 = vmatprep.mubr.bf16.mxu1 %v9503_v6  ;;  %v9508_v6 = vld [vmem:[#allocation74_spill] sm:$0xff] }
 0x427   :  { %v8682_v26 = vadd.f32 %v6597_v32, %v4681_v29  ;;  %v6486_v45 = vpop.f32.mrb[124].mxu0  ;;  %v6598_v18 = vpop.f32.mrb[124].mxu1 }
 0x428   :  { %v6487_v13 = vpop.f32.mrb[125].mxu0  ;;  %v6599_v60 = vpop.f32.mrb[125].mxu1 }
 0x429   :  { %v6488_v50 = vadd.f32 %v6487_v13, %v6486_v45  ;;  %v6489_v62 = vpop.f32.mrb[126].mxu0  ;;  %v6600_v44 = vadd.f32 %v6599_v60, %v6598_v18  ;;  %v6601_v14 = vpop.f32.mrb[126].mxu1  ;;  %v9509_v13 = vld [vmem:[#allocation71_spill] sm:$0xff]  ;;  %v9511_v60 = vld [vmem:[#allocation78_spill] sm:$0xff] }
 0x42a   :  { %v6490_v38 = vpop.f32.mrb[127].mxu0  ;;  %v6602_v49 = vpop.f32.mrb[127].mxu1 }
 0x42b   :  { %v4686_v34 = vadd.f32 %v6488_v50, %v8527_v53  ;;  %v6491_v58 = vadd.f32 %v6490_v38, %v6489_v62  ;;  %v6603_v3 = vadd.f32 %v6602_v49, %v6601_v14  ;;  %v9510_v50 = vld [vmem:[#allocation80_spill] sm:$0xff] }
 0x42c   :  { %5288 = vmatmul.mubr.bf16.gmra.mrb[232].mxu0 %v9504_v19  ;;  %5449 = vmatmul.mubr.bf16.gmra.mrb[232].mxu1 %v9505_v27 }
 0x42d   :  { %v8686_v20 = vadd.f32 %v6600_v44, %v4686_v34  ;;  %v4689_v4 = vadd.f32 %v6491_v58, %v8532_v46  ;;  %5295 = vmatprep.mubr.bf16.mxu0 %v9506_v43  ;;  %5456 = vmatprep.mubr.bf16.mxu1 %v9507_v48  ;;  %v9512_v48 = vld [vmem:[#allocation75_spill] sm:$0xff] }
 0x42f   :  { %v8692_v10 = vadd.f32 %v6603_v3, %v4689_v4  ;;  %v6620_v9 = vpop.f32.mrb[128].mxu0  ;;  %v6732_v12 = vpop.f32.mrb[128].mxu1 }
 0x430   :  { %v6621_v53 = vpop.f32.mrb[129].mxu0  ;;  %v6733_v57 = vpop.f32.mrb[129].mxu1 }
 0x431   :  { %v6622_v55 = vadd.f32 %v6621_v53, %v6620_v9  ;;  %v6623_v17 = vpop.f32.mrb[130].mxu0  ;;  %v6734_v2 = vadd.f32 %v6733_v57, %v6732_v12  ;;  %v6735_v32 = vpop.f32.mrb[130].mxu1  ;;  %v9513_v53 = vld [vmem:[#allocation76_spill] sm:$0xff]  ;;  %v9515_v57 = vld [vmem:[#allocation119_spill] sm:$0xff] }
 0x432   :  { %v6624_v39 = vpop.f32.mrb[131].mxu0  ;;  %v6736_v23 = vpop.f32.mrb[131].mxu1 }
 0x433   :  { %v4888_v29 = vadd.f32 %v6622_v55, %v8536_v61  ;;  %v6625_v46 = vadd.f32 %v6624_v39, %v6623_v17  ;;  %v6737_v1 = vadd.f32 %v6736_v23, %v6735_v32  ;;  %v9514_v55 = vld [vmem:[#allocation82_spill] sm:$0xff] }
 0x434   :  { %5296 = vmatmul.mubr.bf16.gmra.mrb[236].mxu0 %v9508_v6  ;;  %5457 = vmatmul.mubr.bf16.gmra.mrb[236].mxu1 %v9509_v13 }
 0x435   :  { %v8696_v45 = vadd.f32 %v6734_v2, %v4888_v29  ;;  %v4891_v18 = vadd.f32 %v6625_v46, %v8542_v30  ;;  %5303 = vmatprep.mubr.bf16.mxu0 %v9510_v50  ;;  %5464 = vmatprep.mubr.bf16.mxu1 %v9511_v60  ;;  %v9516_v60 = vld [vmem:[#allocation79_spill] sm:$0xff] }
 0x437   :  { %v8702_v62 = vadd.f32 %v6737_v1, %v4891_v18  ;;  %v6626_v44 = vpop.f32.mrb[132].mxu0  ;;  %v6738_v14 = vpop.f32.mrb[132].mxu1 }
 0x438   :  { %v6627_v61 = vpop.f32.mrb[133].mxu0  ;;  %v6739_v34 = vpop.f32.mrb[133].mxu1 }
 0x439   :  { %v6628_v38 = vadd.f32 %v6627_v61, %v6626_v44  ;;  %v6629_v58 = vpop.f32.mrb[134].mxu0  ;;  %v6740_v49 = vadd.f32 %v6739_v34, %v6738_v14  ;;  %v6741_v3 = vpop.f32.mrb[134].mxu1  ;;  %v9517_v61 = vld [vmem:[#allocation81_spill] sm:$0xff]  ;;  %v9519_v34 = vld [vmem:[#allocation122_spill] sm:$0xff] }
 0x43a   :  { %v6630_v19 = vpop.f32.mrb[135].mxu0  ;;  %v6742_v27 = vpop.f32.mrb[135].mxu1 }
 0x43b   :  { %v4896_v4 = vadd.f32 %v6628_v38, %v8546_v56  ;;  %v6631_v30 = vadd.f32 %v6630_v19, %v6629_v58  ;;  %v6743_v43 = vadd.f32 %v6742_v27, %v6741_v3  ;;  %v9518_v38 = vld [vmem:[#allocation85_spill] sm:$0xff] }
 0x43c   :  { %5304 = vmatmul.mubr.bf16.gmra.mrb[240].mxu0 %v9512_v48  ;;  %5465 = vmatmul.mubr.bf16.gmra.mrb[240].mxu1 %v9513_v53 }
 0x43d   :  { %v8706_v9 = vadd.f32 %v6740_v49, %v4896_v4  ;;  %v4899_v12 = vadd.f32 %v6631_v30, %v8552_v42  ;;  %5311 = vmatprep.mubr.bf16.mxu0 %v9514_v55  ;;  %5472 = vmatprep.mubr.bf16.mxu1 %v9515_v57  ;;  %v9520_v57 = vld [vmem:[#allocation120_spill] sm:$0xff] }
 0x43f   :  { %v8712_v17 = vadd.f32 %v6743_v43, %v4899_v12  ;;  %v6632_v2 = vpop.f32.mrb[136].mxu0  ;;  %v6744_v32 = vpop.f32.mrb[136].mxu1 }
 0x440   :  { %v6633_v56 = vpop.f32.mrb[137].mxu0  ;;  %v6745_v29 = vpop.f32.mrb[137].mxu1 }
 0x441   :  { %v6634_v39 = vadd.f32 %v6633_v56, %v6632_v2  ;;  %v6635_v46 = vpop.f32.mrb[138].mxu0  ;;  %v6746_v23 = vadd.f32 %v6745_v29, %v6744_v32  ;;  %v6747_v1 = vpop.f32.mrb[138].mxu1  ;;  %v9521_v56 = vld [vmem:[#allocation121_spill] sm:$0xff]  ;;  %v9523_v29 = vld [vmem:[#allocation88_spill] sm:$0xff] }
 0x442   :  { %v6636_v6 = vpop.f32.mrb[139].mxu0  ;;  %v6748_v13 = vpop.f32.mrb[139].mxu1 }
 0x443   :  { %v4904_v18 = vadd.f32 %v6634_v39, %v8556_v31  ;;  %v6637_v42 = vadd.f32 %v6636_v6, %v6635_v46  ;;  %v6749_v50 = vadd.f32 %v6748_v13, %v6747_v1  ;;  %v9522_v39 = vld [vmem:[#allocation84_spill] sm:$0xff] }
 0x444   :  { %5312 = vmatmul.mubr.bf16.gmra.mrb[244].mxu0 %v9516_v60  ;;  %5473 = vmatmul.mubr.bf16.gmra.mrb[244].mxu1 %v9517_v61 }
 0x445   :  { %v8716_v44 = vadd.f32 %v6746_v23, %v4904_v18  ;;  %v4907_v14 = vadd.f32 %v6637_v42, %v8562_v0  ;;  %5319 = vmatprep.mubr.bf16.mxu0 %v9518_v38  ;;  %5480 = vmatprep.mubr.bf16.mxu1 %v9519_v34  ;;  %v9524_v34 = vld [vmem:[#allocation123_spill] sm:$0xff] }
 0x447   :  { %v8722_v58 = vadd.f32 %v6749_v50, %v4907_v14  ;;  %v6638_v49 = vpop.f32.mrb[140].mxu0  ;;  %v6750_v3 = vpop.f32.mrb[140].mxu1 }
 0x448   :  { %v6639_v31 = vpop.f32.mrb[141].mxu0  ;;  %v6751_v4 = vpop.f32.mrb[141].mxu1 }
 0x449   :  { %v6640_v19 = vadd.f32 %v6639_v31, %v6638_v49  ;;  %v6641_v30 = vpop.f32.mrb[142].mxu0  ;;  %v6752_v27 = vadd.f32 %v6751_v4, %v6750_v3  ;;  %v6753_v43 = vpop.f32.mrb[142].mxu1  ;;  %v9525_v31 = vld [vmem:[#allocation83_spill] sm:$0xff] }
 0x44a   :  { %v6642_v48 = vpop.f32.mrb[143].mxu0  ;;  %v6754_v53 = vpop.f32.mrb[143].mxu1 }
 0x44b   :  { %v4912_v12 = vadd.f32 %v6640_v19, %v8566_v25  ;;  %v6643_v0 = vadd.f32 %v6642_v48, %v6641_v30  ;;  %v6755_v55 = vadd.f32 %v6754_v53, %v6753_v43 }
 0x44c   :  { %5320 = vmatmul.mubr.bf16.gmra.mrb[248].mxu0 %v9520_v57  ;;  %5481 = vmatmul.mubr.bf16.gmra.mrb[248].mxu1 %v9521_v56 }
 0x44d   :  { %v8726_v2 = vadd.f32 %v6752_v27, %v4912_v12  ;;  %v4915_v32 = vadd.f32 %v6643_v0, %v8572_v15  ;;  %5327 = vmatprep.mubr.bf16.mxu0 %v9522_v39  ;;  %5488 = vmatprep.mubr.bf16.mxu1 %v9523_v29 }
 0x44f   :  { %v8732_v46 = vadd.f32 %v6755_v55, %v4915_v32  ;;  %v6644_v23 = vpop.f32.mrb[144].mxu0  ;;  %v6756_v1 = vpop.f32.mrb[144].mxu1 }
 0x450   :  { %v6645_v25 = vpop.f32.mrb[145].mxu0  ;;  %v6757_v18 = vpop.f32.mrb[145].mxu1 }
 0x451   :  { %v6646_v6 = vadd.f32 %v6645_v25, %v6644_v23  ;;  %v6647_v42 = vpop.f32.mrb[146].mxu0  ;;  %v6758_v13 = vadd.f32 %v6757_v18, %v6756_v1  ;;  %v6759_v50 = vpop.f32.mrb[146].mxu1 }
 0x452   :  { %v6648_v60 = vpop.f32.mrb[147].mxu0  ;;  %v6760_v61 = vpop.f32.mrb[147].mxu1 }
 0x453   :  { %v4920_v14 = vadd.f32 %v6646_v6, %v8576_v36  ;;  %v6649_v15 = vadd.f32 %v6648_v60, %v6647_v42  ;;  %v6761_v38 = vadd.f32 %v6760_v61, %v6759_v50 }
 0x454   :  { %5328 = vmatmul.mubr.bf16.gmra.mrb[252].mxu0 %v9524_v34  ;;  %5489 = vmatmul.mubr.bf16.gmra.mrb[252].mxu1 %v9525_v31 }
 0x455   :  { %v8736_v49 = vadd.f32 %v6758_v13, %v4920_v14  ;;  %v4923_v3 = vadd.f32 %v6649_v15, %v8582_v41 }
 0x457   :  { %v8740_v19 = vadd.f32 %v6761_v38, %v4923_v3  ;;  %v6650_v4 = vpop.f32.mrb[148].mxu0  ;;  %v6762_v30 = vpop.f32.mrb[148].mxu1 }
 0x458   :  { %v6651_v27 = vpop.f32.mrb[149].mxu0  ;;  %v6763_v48 = vpop.f32.mrb[149].mxu1 }
 0x459   :  { %v6652_v43 = vadd.f32 %v6651_v27, %v6650_v4  ;;  %v6653_v12 = vpop.f32.mrb[150].mxu0  ;;  %v6764_v36 = vadd.f32 %v6763_v48, %v6762_v30  ;;  %v6765_v0 = vpop.f32.mrb[150].mxu1 }
 0x45a   :  { %v6654_v53 = vpop.f32.mrb[151].mxu0  ;;  %v6766_v32 = vpop.f32.mrb[151].mxu1 }
 0x45b   :  { %v4928_v55 = vadd.f32 %v6652_v43, %v8586_v11  ;;  %v6655_v57 = vadd.f32 %v6654_v53, %v6653_v12  ;;  %v6767_v56 = vadd.f32 %v6766_v32, %v6765_v0 }
 0x45d   :  { %v8743_v39 = vadd.f32 %v6764_v36, %v4928_v55  ;;  %v4931_v41 = vadd.f32 %v6655_v57, %v8592_v5 }
 0x45f   :  { %v8746_v29 = vadd.f32 %v6767_v56, %v4931_v41  ;;  %v6656_v23 = vpop.f32.mrb[152].mxu0  ;;  %v6768_v1 = vpop.f32.mrb[152].mxu1 }
 0x460   :  { %v6657_v25 = vpop.f32.mrb[153].mxu0  ;;  %v6769_v18 = vpop.f32.mrb[153].mxu1 }
 0x461   :  { %v6658_v6 = vadd.f32 %v6657_v25, %v6656_v23  ;;  %v6659_v42 = vpop.f32.mrb[154].mxu0  ;;  %v6770_v13 = vadd.f32 %v6769_v18, %v6768_v1  ;;  %v6771_v50 = vpop.f32.mrb[154].mxu1 }
 0x462   :  { %v6660_v60 = vpop.f32.mrb[155].mxu0  ;;  %v6772_v15 = vpop.f32.mrb[155].mxu1 }
 0x463   :  { %v4936_v11 = vadd.f32 %v6658_v6, %v8596_v54  ;;  %v6661_v14 = vadd.f32 %v6660_v60, %v6659_v42  ;;  %v6773_v61 = vadd.f32 %v6772_v15, %v6771_v50 }
 0x465   :  { %v8749_v38 = vadd.f32 %v6770_v13, %v4936_v11  ;;  %v4939_v5 = vadd.f32 %v6661_v14, %v8602_v63 }
 0x467   :  { %v8752_v34 = vadd.f32 %v6773_v61, %v4939_v5  ;;  %v6662_v3 = vpop.f32.mrb[156].mxu0  ;;  %v6774_v31 = vpop.f32.mrb[156].mxu1 }
 0x468   :  { %v6663_v4 = vpop.f32.mrb[157].mxu0  ;;  %v6775_v27 = vpop.f32.mrb[157].mxu1 }
 0x469   :  { %v6664_v30 = vadd.f32 %v6663_v4, %v6662_v3  ;;  %v6665_v43 = vpop.f32.mrb[158].mxu0  ;;  %v6776_v48 = vadd.f32 %v6775_v27, %v6774_v31  ;;  %v6777_v12 = vpop.f32.mrb[158].mxu1 }
 0x46a   :  { %v6666_v36 = vpop.f32.mrb[159].mxu0  ;;  %v6778_v53 = vpop.f32.mrb[159].mxu1 }
 0x46b   :  { %v4944_v54 = vadd.f32 %v6664_v30, %v8606_v37  ;;  %v6667_v0 = vadd.f32 %v6666_v36, %v6665_v43  ;;  %v6779_v55 = vadd.f32 %v6778_v53, %v6777_v12 }
 0x46d   :  { %v8755_v57 = vadd.f32 %v6776_v48, %v4944_v54  ;;  %v4947_v63 = vadd.f32 %v6667_v0, %v8612_v7 }
 0x46f   :  { %v8758_v32 = vadd.f32 %v6779_v55, %v4947_v63  ;;  %v6668_v56 = vpop.f32.mrb[160].mxu0  ;;  %v6780_v41 = vpop.f32.mrb[160].mxu1 }
 0x470   :  { %v6669_v23 = vpop.f32.mrb[161].mxu0  ;;  %v6781_v25 = vpop.f32.mrb[161].mxu1 }
 0x471   :  { %v6670_v1 = vadd.f32 %v6669_v23, %v6668_v56  ;;  %v6671_v6 = vpop.f32.mrb[162].mxu0  ;;  %v6782_v18 = vadd.f32 %v6781_v25, %v6780_v41  ;;  %v6783_v42 = vpop.f32.mrb[162].mxu1 }
 0x472   :  { %v6672_v13 = vpop.f32.mrb[163].mxu0  ;;  %v6784_v60 = vpop.f32.mrb[163].mxu1 }
 0x473   :  { %v4952_v37 = vadd.f32 %v6670_v1, %v8616_v47  ;;  %v6673_v50 = vadd.f32 %v6672_v13, %v6671_v6  ;;  %v6785_v11 = vadd.f32 %v6784_v60, %v6783_v42 }
 0x475   :  { %v8761_v14 = vadd.f32 %v6782_v18, %v4952_v37  ;;  %v4955_v7 = vadd.f32 %v6673_v50, %v8622_v33 }
 0x477   :  { %v8764_v15 = vadd.f32 %v6785_v11, %v4955_v7  ;;  %v6674_v61 = vpop.f32.mrb[164].mxu0  ;;  %v6786_v5 = vpop.f32.mrb[164].mxu1 }
 0x478   :  { %v6675_v3 = vpop.f32.mrb[165].mxu0  ;;  %v6787_v4 = vpop.f32.mrb[165].mxu1 }
 0x479   :  { %v6676_v31 = vadd.f32 %v6675_v3, %v6674_v61  ;;  %v6677_v30 = vpop.f32.mrb[166].mxu0  ;;  %v6788_v27 = vadd.f32 %v6787_v4, %v6786_v5  ;;  %v6789_v43 = vpop.f32.mrb[166].mxu1 }
 0x47a   :  { %v6678_v48 = vpop.f32.mrb[167].mxu0  ;;  %v6790_v36 = vpop.f32.mrb[167].mxu1 }
 0x47b   :  { %v4960_v47 = vadd.f32 %v6676_v31, %v8626_v59  ;;  %v6679_v12 = vadd.f32 %v6678_v48, %v6677_v30  ;;  %v6791_v54 = vadd.f32 %v6790_v36, %v6789_v43 }
 0x47d   :  { %v8767_v0 = vadd.f32 %v6788_v27, %v4960_v47  ;;  %v4963_v33 = vadd.f32 %v6679_v12, %v8632_v16 }
 0x47f   :  { %v8770_v53 = vadd.f32 %v6791_v54, %v4963_v33  ;;  %v6680_v55 = vpop.f32.mrb[168].mxu0  ;;  %v6792_v63 = vpop.f32.mrb[168].mxu1 }
 0x480   :  { %v6681_v56 = vpop.f32.mrb[169].mxu0  ;;  %v6793_v23 = vpop.f32.mrb[169].mxu1 }
 0x481   :  { %v6682_v41 = vadd.f32 %v6681_v56, %v6680_v55  ;;  %v6683_v1 = vpop.f32.mrb[170].mxu0  ;;  %v6794_v25 = vadd.f32 %v6793_v23, %v6792_v63  ;;  %v6795_v6 = vpop.f32.mrb[170].mxu1 }
 0x482   :  { %v6684_v18 = vpop.f32.mrb[171].mxu0  ;;  %v6796_v13 = vpop.f32.mrb[171].mxu1 }
 0x483   :  { %v4968_v59 = vadd.f32 %v6682_v41, %v8636_v8  ;;  %v6685_v42 = vadd.f32 %v6684_v18, %v6683_v1  ;;  %v6797_v37 = vadd.f32 %v6796_v13, %v6795_v6 }
 0x485   :  { %v8773_v50 = vadd.f32 %v6794_v25, %v4968_v59  ;;  %v4971_v16 = vadd.f32 %v6685_v42, %v8642_v22 }
 0x487   :  { %v8776_v60 = vadd.f32 %v6797_v37, %v4971_v16  ;;  %v6686_v11 = vpop.f32.mrb[172].mxu0  ;;  %v6798_v7 = vpop.f32.mrb[172].mxu1 }
 0x488   :  { %v6687_v61 = vpop.f32.mrb[173].mxu0  ;;  %v6799_v3 = vpop.f32.mrb[173].mxu1 }
 0x489   :  { %v6688_v5 = vadd.f32 %v6687_v61, %v6686_v11  ;;  %v6689_v31 = vpop.f32.mrb[174].mxu0  ;;  %v6800_v4 = vadd.f32 %v6799_v3, %v6798_v7  ;;  %v6801_v30 = vpop.f32.mrb[174].mxu1 }
 0x48a   :  { %v6690_v27 = vpop.f32.mrb[175].mxu0  ;;  %v6802_v48 = vpop.f32.mrb[175].mxu1 }
 0x48b   :  { %v4976_v8 = vadd.f32 %v6688_v5, %v8646_v21  ;;  %v6691_v43 = vadd.f32 %v6690_v27, %v6689_v31  ;;  %v6803_v47 = vadd.f32 %v6802_v48, %v6801_v30 }
 0x48d   :  { %v8779_v12 = vadd.f32 %v6800_v4, %v4976_v8  ;;  %v4979_v22 = vadd.f32 %v6691_v43, %v8652_v40 }
 0x48f   :  { %v8782_v36 = vadd.f32 %v6803_v47, %v4979_v22  ;;  %v6692_v54 = vpop.f32.mrb[176].mxu0  ;;  %v6804_v33 = vpop.f32.mrb[176].mxu1 }
 0x490   :  { %v6693_v55 = vpop.f32.mrb[177].mxu0  ;;  %v6805_v56 = vpop.f32.mrb[177].mxu1 }
 0x491   :  { %v6694_v63 = vadd.f32 %v6693_v55, %v6692_v54  ;;  %v6695_v41 = vpop.f32.mrb[178].mxu0  ;;  %v6806_v23 = vadd.f32 %v6805_v56, %v6804_v33  ;;  %v6807_v1 = vpop.f32.mrb[178].mxu1 }
 0x492   :  { %v6696_v25 = vpop.f32.mrb[179].mxu0  ;;  %v6808_v18 = vpop.f32.mrb[179].mxu1 }
 0x493   :  { %v4984_v21 = vadd.f32 %v6694_v63, %v8656_v35  ;;  %v6697_v6 = vadd.f32 %v6696_v25, %v6695_v41  ;;  %v6809_v59 = vadd.f32 %v6808_v18, %v6807_v1 }
 0x495   :  { %v8785_v42 = vadd.f32 %v6806_v23, %v4984_v21  ;;  %v4987_v40 = vadd.f32 %v6697_v6, %v8662_v28 }
 0x497   :  { %v8788_v13 = vadd.f32 %v6809_v59, %v4987_v40  ;;  %v6698_v37 = vpop.f32.mrb[180].mxu0  ;;  %v6810_v16 = vpop.f32.mrb[180].mxu1 }
 0x498   :  { %v6699_v11 = vpop.f32.mrb[181].mxu0  ;;  %v6811_v61 = vpop.f32.mrb[181].mxu1 }
 0x499   :  { %v6700_v7 = vadd.f32 %v6699_v11, %v6698_v37  ;;  %v6701_v5 = vpop.f32.mrb[182].mxu0  ;;  %v6812_v3 = vadd.f32 %v6811_v61, %v6810_v16  ;;  %v6813_v31 = vpop.f32.mrb[182].mxu1 }
 0x49a   :  { %v6702_v4 = vpop.f32.mrb[183].mxu0  ;;  %v6814_v27 = vpop.f32.mrb[183].mxu1 }
 0x49b   :  { %v4992_v35 = vadd.f32 %v6700_v7, %v8666_v52  ;;  %v6703_v30 = vadd.f32 %v6702_v4, %v6701_v5  ;;  %v6815_v8 = vadd.f32 %v6814_v27, %v6813_v31 }
 0x49d   :  { %v8791_v43 = vadd.f32 %v6812_v3, %v4992_v35  ;;  %v4995_v28 = vadd.f32 %v6703_v30, %v8672_v24 }
 0x49f   :  { %v8794_v48 = vadd.f32 %v6815_v8, %v4995_v28  ;;  %v6704_v47 = vpop.f32.mrb[184].mxu0  ;;  %v6816_v22 = vpop.f32.mrb[184].mxu1 }
 0x4a0   :  { %v6705_v54 = vpop.f32.mrb[185].mxu0  ;;  %v6817_v55 = vpop.f32.mrb[185].mxu1 }
 0x4a1   :  { %v6706_v33 = vadd.f32 %v6705_v54, %v6704_v47  ;;  %v6707_v63 = vpop.f32.mrb[186].mxu0  ;;  %v6818_v56 = vadd.f32 %v6817_v55, %v6816_v22  ;;  %v6819_v41 = vpop.f32.mrb[186].mxu1 }
 0x4a2   :  { %v6708_v23 = vpop.f32.mrb[187].mxu0  ;;  %v6820_v25 = vpop.f32.mrb[187].mxu1 }
 0x4a3   :  { %v5000_v52 = vadd.f32 %v6706_v33, %v8676_v51  ;;  %v6709_v1 = vadd.f32 %v6708_v23, %v6707_v63  ;;  %v6821_v21 = vadd.f32 %v6820_v25, %v6819_v41 }
 0x4a5   :  { %v8797_v6 = vadd.f32 %v6818_v56, %v5000_v52  ;;  %v5003_v24 = vadd.f32 %v6709_v1, %v8682_v26 }
 0x4a7   :  { %v8800_v18 = vadd.f32 %v6821_v21, %v5003_v24  ;;  %v6710_v59 = vpop.f32.mrb[188].mxu0  ;;  %v6822_v40 = vpop.f32.mrb[188].mxu1 }
 0x4a8   :  { %v6711_v37 = vpop.f32.mrb[189].mxu0  ;;  %v6823_v11 = vpop.f32.mrb[189].mxu1 }
 0x4a9   :  { %v6712_v16 = vadd.f32 %v6711_v37, %v6710_v59  ;;  %v6713_v7 = vpop.f32.mrb[190].mxu0  ;;  %v6824_v61 = vadd.f32 %v6823_v11, %v6822_v40  ;;  %v6825_v5 = vpop.f32.mrb[190].mxu1 }
 0x4aa   :  { %v6714_v3 = vpop.f32.mrb[191].mxu0  ;;  %v6826_v4 = vpop.f32.mrb[191].mxu1 }
 0x4ab   :  { %v5008_v51 = vadd.f32 %v6712_v16, %v8686_v20  ;;  %v6715_v31 = vadd.f32 %v6714_v3, %v6713_v7  ;;  %v6827_v35 = vadd.f32 %v6826_v4, %v6825_v5 }
 0x4ad   :  { %v8803_v30 = vadd.f32 %v6824_v61, %v5008_v51  ;;  %v5011_v26 = vadd.f32 %v6715_v31, %v8692_v10 }
 0x4af   :  { %v8806_v27 = vadd.f32 %v6827_v35, %v5011_v26  ;;  %v6844_v8 = vpop.f32.mrb[192].mxu0  ;;  %v6956_v28 = vpop.f32.mrb[192].mxu1 }
 0x4b0   :  { %v6845_v47 = vpop.f32.mrb[193].mxu0  ;;  %v6957_v54 = vpop.f32.mrb[193].mxu1 }
 0x4b1   :  { %v6846_v22 = vadd.f32 %v6845_v47, %v6844_v8  ;;  %v6847_v33 = vpop.f32.mrb[194].mxu0  ;;  %v6958_v55 = vadd.f32 %v6957_v54, %v6956_v28  ;;  %v6959_v63 = vpop.f32.mrb[194].mxu1 }
 0x4b2   :  { %v6848_v56 = vpop.f32.mrb[195].mxu0  ;;  %v6960_v23 = vpop.f32.mrb[195].mxu1 }
 0x4b3   :  { %v5210_v20 = vadd.f32 %v6846_v22, %v8696_v45  ;;  %v6849_v41 = vadd.f32 %v6848_v56, %v6847_v33  ;;  %v6961_v52 = vadd.f32 %v6960_v23, %v6959_v63 }
 0x4b5   :  { %v5213_v1 = vadd.f32 %v6849_v41, %v8702_v62  ;;  %v8810_v25 = vadd.f32 %v6958_v55, %v5210_v20 }
 0x4b7   :  { %v6850_v10 = vpop.f32.mrb[196].mxu0  ;;  %5497 = vadd.xlane.f32.xlu0 %v8810_v25  ;;  %v8813_v21 = vadd.f32 %v6961_v52, %v5213_v1  ;;  %v6962_v24 = vpop.f32.mrb[196].mxu1 }
 0x4b8   :  { %v6851_v59 = vpop.f32.mrb[197].mxu0  ;;  %v6963_v37 = vpop.f32.mrb[197].mxu1 }
 0x4b9   :  { %v6852_v40 = vadd.f32 %v6851_v59, %v6850_v10  ;;  %v6853_v16 = vpop.f32.mrb[198].mxu0  ;;  %v6964_v11 = vadd.f32 %v6963_v37, %v6962_v24  ;;  %v6965_v7 = vpop.f32.mrb[198].mxu1 }
 0x4ba   :  { %v6854_v45 = vpop.f32.mrb[199].mxu0  ;;  %v6966_v3 = vpop.f32.mrb[199].mxu1 }
 0x4bb   :  { %v5218_v61 = vadd.f32 %v6852_v40, %v8706_v9  ;;  %v6855_v5 = vadd.f32 %v6854_v45, %v6853_v16  ;;  %5499 = vadd.xlane.f32.xlu0 %v8813_v21  ;;  %v6967_v62 = vadd.f32 %v6966_v3, %v6965_v7 }
 0x4bd   :  { %v5221_v51 = vadd.f32 %v6855_v5, %v8712_v17  ;;  %v8818_v31 = vadd.f32 %v6964_v11, %v5218_v61 }
 0x4bf   :  { %v6856_v4 = vpop.f32.mrb[200].mxu0  ;;  %5501 = vadd.xlane.f32.xlu1 %v8818_v31  ;;  %v8821_v35 = vadd.f32 %v6967_v62, %v5221_v51  ;;  %v6968_v26 = vpop.f32.mrb[200].mxu1 }
 0x4c0   :  { %v6857_v8 = vpop.f32.mrb[201].mxu0  ;;  %v6969_v47 = vpop.f32.mrb[201].mxu1 }
 0x4c1   :  { %v6858_v28 = vadd.f32 %v6857_v8, %v6856_v4  ;;  %v6859_v22 = vpop.f32.mrb[202].mxu0  ;;  %v6970_v9 = vadd.f32 %v6969_v47, %v6968_v26  ;;  %v6971_v54 = vpop.f32.mrb[202].mxu1 }
 0x4c2   :  { %v6860_v33 = vpop.f32.mrb[203].mxu0  ;;  %v6972_v56 = vpop.f32.mrb[203].mxu1 }
 0x4c3   :  { %v5226_v55 = vadd.f32 %v6858_v28, %v8716_v44  ;;  %v6861_v63 = vadd.f32 %v6860_v33, %v6859_v22  ;;  %5503 = vadd.xlane.f32.xlu1 %v8821_v35  ;;  %v6973_v17 = vadd.f32 %v6972_v56, %v6971_v54 }
 0x4c5   :  { %v5229_v20 = vadd.f32 %v6861_v63, %v8722_v58  ;;  %v8826_v41 = vadd.f32 %v6970_v9, %v5226_v55 }
 0x4c7   :  { %v6862_v23 = vpop.f32.mrb[204].mxu0  ;;  %5505 = vadd.xlane.f32.xlu0 %v8826_v41  ;;  %v8829_v52 = vadd.f32 %v6973_v17, %v5229_v20  ;;  %v6974_v1 = vpop.f32.mrb[204].mxu1 }
 0x4c8   :  { %v6863_v10 = vpop.f32.mrb[205].mxu0  ;;  %v6975_v59 = vpop.f32.mrb[205].mxu1 }
 0x4c9   :  { %v6864_v24 = vadd.f32 %v6863_v10, %v6862_v23  ;;  %v6865_v40 = vpop.f32.mrb[206].mxu0  ;;  %5507 = vadd.xlane.f32.xlu1 %v8829_v52  ;;  %v6976_v44 = vadd.f32 %v6975_v59, %v6974_v1  ;;  %v6977_v37 = vpop.f32.mrb[206].mxu1 }
 0x4ca   :  { %v6866_v16 = vpop.f32.mrb[207].mxu0  ;;  %v6978_v7 = vpop.f32.mrb[207].mxu1 }
 0x4cb   :  { %v5234_v11 = vadd.f32 %v6864_v24, %v8726_v2  ;;  %v6867_v58 = vadd.f32 %v6866_v16, %v6865_v40  ;;  %v6979_v45 = vadd.f32 %v6978_v7, %v6977_v37 }
 0x4cd   :  { %v5237_v61 = vadd.f32 %v6867_v58, %v8732_v46  ;;  %v8834_v5 = vadd.f32 %v6976_v44, %v5234_v11 }
 0x4cf   :  { %v6868_v3 = vpop.f32.mrb[208].mxu0  ;;  %5509 = vadd.xlane.f32.xlu0 %v8834_v5  ;;  %v8837_v62 = vadd.f32 %v6979_v45, %v5237_v61  ;;  %v6980_v51 = vpop.f32.mrb[208].mxu1 }
 0x4d0   :  { %v6869_v4 = vpop.f32.mrb[209].mxu0  ;;  %v6981_v8 = vpop.f32.mrb[209].mxu1 }
 0x4d1   :  { %v6870_v26 = vadd.f32 %v6869_v4, %v6868_v3  ;;  %v6871_v28 = vpop.f32.mrb[210].mxu0  ;;  %5511 = vadd.xlane.f32.xlu1 %v8837_v62  ;;  %v6982_v2 = vadd.f32 %v6981_v8, %v6980_v51  ;;  %v6983_v47 = vpop.f32.mrb[210].mxu1 }
 0x4d2   :  { %v6872_v22 = vpop.f32.mrb[211].mxu0  ;;  %v6984_v54 = vpop.f32.mrb[211].mxu1 }
 0x4d3   :  { %v5242_v9 = vadd.f32 %v6870_v26, %v8736_v49  ;;  %v6873_v46 = vadd.f32 %v6872_v22, %v6871_v28  ;;  %v6985_v33 = vadd.f32 %v6984_v54, %v6983_v47 }
 0x4d5   :  { %v5245_v55 = vadd.f32 %v6873_v46, %v8740_v19  ;;  %v8842_v63 = vadd.f32 %v6982_v2, %v5242_v9 }
 0x4d7   :  { %v6874_v56 = vpop.f32.mrb[212].mxu0  ;;  %5513 = vadd.xlane.f32.xlu0 %v8842_v63  ;;  %v8845_v17 = vadd.f32 %v6985_v33, %v5245_v55  ;;  %v6986_v20 = vpop.f32.mrb[212].mxu1 }
 0x4d8   :  { %v6875_v23 = vpop.f32.mrb[213].mxu0  ;;  %v6987_v10 = vpop.f32.mrb[213].mxu1 }
 0x4d9   :  { %v6876_v1 = vadd.f32 %v6875_v23, %v6874_v56  ;;  %v6877_v24 = vpop.f32.mrb[214].mxu0  ;;  %5515 = vadd.xlane.f32.xlu1 %v8845_v17  ;;  %v6988_v49 = vadd.f32 %v6987_v10, %v6986_v20  ;;  %v6989_v59 = vpop.f32.mrb[214].mxu1 }
 0x4da   :  { %v6878_v40 = vpop.f32.mrb[215].mxu0  ;;  %v6990_v37 = vpop.f32.mrb[215].mxu1 }
 0x4db   :  { %v5250_v44 = vadd.f32 %v6876_v1, %v8743_v39  ;;  %v6879_v19 = vadd.f32 %v6878_v40, %v6877_v24  ;;  %v6991_v16 = vadd.f32 %v6990_v37, %v6989_v59 }
 0x4dd   :  { %v5253_v11 = vadd.f32 %v6879_v19, %v8746_v29  ;;  %v8850_v58 = vadd.f32 %v6988_v49, %v5250_v44 }
 0x4df   :  { %v6880_v7 = vpop.f32.mrb[216].mxu0  ;;  %5517 = vadd.xlane.f32.xlu0 %v8850_v58  ;;  %v8853_v45 = vadd.f32 %v6991_v16, %v5253_v11  ;;  %v6992_v61 = vpop.f32.mrb[216].mxu1 }
 0x4e0   :  { %v6881_v3 = vpop.f32.mrb[217].mxu0  ;;  %v6993_v4 = vpop.f32.mrb[217].mxu1 }
 0x4e1   :  { %v6882_v51 = vadd.f32 %v6881_v3, %v6880_v7  ;;  %v6883_v26 = vpop.f32.mrb[218].mxu0  ;;  %5519 = vadd.xlane.f32.xlu1 %v8853_v45  ;;  %v6994_v39 = vadd.f32 %v6993_v4, %v6992_v61  ;;  %v6995_v8 = vpop.f32.mrb[218].mxu1 }
 0x4e2   :  { %v6884_v28 = vpop.f32.mrb[219].mxu0  ;;  %v6996_v47 = vpop.f32.mrb[219].mxu1 }
 0x4e3   :  { %v5258_v2 = vadd.f32 %v6882_v51, %v8749_v38  ;;  %v6885_v29 = vadd.f32 %v6884_v28, %v6883_v26  ;;  %v6997_v22 = vadd.f32 %v6996_v47, %v6995_v8 }
 0x4e5   :  { %v5261_v9 = vadd.f32 %v6885_v29, %v8752_v34  ;;  %v8858_v46 = vadd.f32 %v6994_v39, %v5258_v2 }
 0x4e7   :  { %v6886_v54 = vpop.f32.mrb[220].mxu0  ;;  %5521 = vadd.xlane.f32.xlu0 %v8858_v46  ;;  %v8861_v33 = vadd.f32 %v6997_v22, %v5261_v9  ;;  %v6998_v55 = vpop.f32.mrb[220].mxu1 }
 0x4e8   :  { %v6887_v56 = vpop.f32.mrb[221].mxu0  ;;  %v6999_v23 = vpop.f32.mrb[221].mxu1 }
 0x4e9   :  { %v6888_v20 = vadd.f32 %v6887_v56, %v6886_v54  ;;  %v6889_v1 = vpop.f32.mrb[222].mxu0  ;;  %5523 = vadd.xlane.f32.xlu1 %v8861_v33  ;;  %v7000_v38 = vadd.f32 %v6999_v23, %v6998_v55  ;;  %v7001_v10 = vpop.f32.mrb[222].mxu1 }
 0x4ea   :  { %v6890_v24 = vpop.f32.mrb[223].mxu0  ;;  %v7002_v59 = vpop.f32.mrb[223].mxu1 }
 0x4eb   :  { %v5266_v49 = vadd.f32 %v6888_v20, %v8755_v57  ;;  %v6891_v34 = vadd.f32 %v6890_v24, %v6889_v1  ;;  %v7003_v40 = vadd.f32 %v7002_v59, %v7001_v10 }
 0x4ed   :  { %v5269_v44 = vadd.f32 %v6891_v34, %v8758_v32  ;;  %v8866_v19 = vadd.f32 %v7000_v38, %v5266_v49 }
 0x4ef   :  { %v6892_v37 = vpop.f32.mrb[224].mxu0  ;;  %5525 = vadd.xlane.f32.xlu0 %v8866_v19  ;;  %v8869_v16 = vadd.f32 %v7003_v40, %v5269_v44  ;;  %v7004_v11 = vpop.f32.mrb[224].mxu1 }
 0x4f0   :  { %v6893_v7 = vpop.f32.mrb[225].mxu0  ;;  %v7005_v3 = vpop.f32.mrb[225].mxu1 }
 0x4f1   :  { %v6894_v61 = vadd.f32 %v6893_v7, %v6892_v37  ;;  %v6895_v51 = vpop.f32.mrb[226].mxu0  ;;  %5527 = vadd.xlane.f32.xlu1 %v8869_v16  ;;  %v7006_v57 = vadd.f32 %v7005_v3, %v7004_v11  ;;  %v7007_v4 = vpop.f32.mrb[226].mxu1 }
 0x4f2   :  { %v6896_v26 = vpop.f32.mrb[227].mxu0  ;;  %v7008_v8 = vpop.f32.mrb[227].mxu1 }
 0x4f3   :  { %v5274_v39 = vadd.f32 %v6894_v61, %v8761_v14  ;;  %v6897_v32 = vadd.f32 %v6896_v26, %v6895_v51  ;;  %v7009_v28 = vadd.f32 %v7008_v8, %v7007_v4 }
 0x4f5   :  { %v5277_v2 = vadd.f32 %v6897_v32, %v8764_v15  ;;  %v8874_v29 = vadd.f32 %v7006_v57, %v5274_v39 }
 0x4f7   :  { %v6898_v47 = vpop.f32.mrb[228].mxu0  ;;  %5529 = vadd.xlane.f32.xlu0 %v8874_v29  ;;  %v8877_v22 = vadd.f32 %v7009_v28, %v5277_v2  ;;  %v7010_v9 = vpop.f32.mrb[228].mxu1 }
 0x4f8   :  { %v6899_v54 = vpop.f32.mrb[229].mxu0  ;;  %v7011_v56 = vpop.f32.mrb[229].mxu1 }
 0x4f9   :  { %v6900_v55 = vadd.f32 %v6899_v54, %v6898_v47  ;;  %v6901_v20 = vpop.f32.mrb[230].mxu0  ;;  %5531 = vadd.xlane.f32.xlu1 %v8877_v22  ;;  %v7012_v14 = vadd.f32 %v7011_v56, %v7010_v9  ;;  %v7013_v23 = vpop.f32.mrb[230].mxu1 }
 0x4fa   :  { %v6902_v1 = vpop.f32.mrb[231].mxu0  ;;  %v7014_v10 = vpop.f32.mrb[231].mxu1 }
 0x4fb   :  { %v5282_v38 = vadd.f32 %v6900_v55, %v8767_v0  ;;  %v6903_v15 = vadd.f32 %v6902_v1, %v6901_v20  ;;  %v7015_v24 = vadd.f32 %v7014_v10, %v7013_v23 }
 0x4fd   :  { %v5285_v49 = vadd.f32 %v6903_v15, %v8770_v53  ;;  %v8882_v34 = vadd.f32 %v7012_v14, %v5282_v38 }
 0x4ff   :  { %v6904_v59 = vpop.f32.mrb[232].mxu0  ;;  %5533 = vadd.xlane.f32.xlu0 %v8882_v34  ;;  %v8885_v40 = vadd.f32 %v7015_v24, %v5285_v49  ;;  %v7016_v44 = vpop.f32.mrb[232].mxu1 }
 0x500   :  { %v6905_v37 = vpop.f32.mrb[233].mxu0  ;;  %v7017_v7 = vpop.f32.mrb[233].mxu1 }
 0x501   :  { %v6906_v11 = vadd.f32 %v6905_v37, %v6904_v59  ;;  %v6907_v61 = vpop.f32.mrb[234].mxu0  ;;  %5535 = vadd.xlane.f32.xlu1 %v8885_v40  ;;  %v7018_v0 = vadd.f32 %v7017_v7, %v7016_v44  ;;  %v7019_v3 = vpop.f32.mrb[234].mxu1 }
 0x502   :  { %v6908_v51 = vpop.f32.mrb[235].mxu0  ;;  %v7020_v4 = vpop.f32.mrb[235].mxu1 }
 0x503   :  { %v5290_v57 = vadd.f32 %v6906_v11, %v8773_v50  ;;  %v6909_v53 = vadd.f32 %v6908_v51, %v6907_v61  ;;  %v7021_v26 = vadd.f32 %v7020_v4, %v7019_v3 }
 0x505   :  { %v5293_v39 = vadd.f32 %v6909_v53, %v8776_v60  ;;  %v8890_v32 = vadd.f32 %v7018_v0, %v5290_v57 }
 0x507   :  { %v6910_v8 = vpop.f32.mrb[236].mxu0  ;;  %5537 = vadd.xlane.f32.xlu0 %v8890_v32  ;;  %v8893_v28 = vadd.f32 %v7021_v26, %v5293_v39  ;;  %v7022_v2 = vpop.f32.mrb[236].mxu1 }
 0x508   :  { %v6911_v47 = vpop.f32.mrb[237].mxu0  ;;  %v7023_v54 = vpop.f32.mrb[237].mxu1 }
 0x509   :  { %v6912_v9 = vadd.f32 %v6911_v47, %v6910_v8  ;;  %v6913_v55 = vpop.f32.mrb[238].mxu0  ;;  %5539 = vadd.xlane.f32.xlu1 %v8893_v28  ;;  %v7024_v50 = vadd.f32 %v7023_v54, %v7022_v2  ;;  %v7025_v56 = vpop.f32.mrb[238].mxu1 }
 0x50a   :  { %v6914_v20 = vpop.f32.mrb[239].mxu0  ;;  %v7026_v23 = vpop.f32.mrb[239].mxu1 }
 0x50b   :  { %v5298_v14 = vadd.f32 %v6912_v9, %v8779_v12  ;;  %v6915_v60 = vadd.f32 %v6914_v20, %v6913_v55  ;;  %v7027_v1 = vadd.f32 %v7026_v23, %v7025_v56 }
 0x50d   :  { %v5301_v38 = vadd.f32 %v6915_v60, %v8782_v36  ;;  %v8898_v15 = vadd.f32 %v7024_v50, %v5298_v14 }
 0x50f   :  { %v6916_v10 = vpop.f32.mrb[240].mxu0  ;;  %5541 = vadd.xlane.f32.xlu0 %v8898_v15  ;;  %v8901_v24 = vadd.f32 %v7027_v1, %v5301_v38  ;;  %v7028_v49 = vpop.f32.mrb[240].mxu1 }
 0x510   :  { %v6917_v59 = vpop.f32.mrb[241].mxu0  ;;  %v7029_v37 = vpop.f32.mrb[241].mxu1 }
 0x511   :  { %v6918_v44 = vadd.f32 %v6917_v59, %v6916_v10  ;;  %v6919_v11 = vpop.f32.mrb[242].mxu0  ;;  %5543 = vadd.xlane.f32.xlu1 %v8901_v24  ;;  %v7030_v12 = vadd.f32 %v7029_v37, %v7028_v49  ;;  %v7031_v7 = vpop.f32.mrb[242].mxu1 }
 0x512   :  { %v6920_v61 = vpop.f32.mrb[243].mxu0  ;;  %v7032_v3 = vpop.f32.mrb[243].mxu1 }
 0x513   :  { %v5306_v0 = vadd.f32 %v6918_v44, %v8785_v42  ;;  %v6921_v36 = vadd.f32 %v6920_v61, %v6919_v11  ;;  %v7033_v51 = vadd.f32 %v7032_v3, %v7031_v7 }
 0x515   :  { %v5309_v57 = vadd.f32 %v6921_v36, %v8788_v13  ;;  %v8906_v53 = vadd.f32 %v7030_v12, %v5306_v0 }
 0x517   :  { %v6922_v4 = vpop.f32.mrb[244].mxu0  ;;  %5545 = vadd.xlane.f32.xlu0 %v8906_v53  ;;  %v8909_v26 = vadd.f32 %v7033_v51, %v5309_v57  ;;  %v7034_v39 = vpop.f32.mrb[244].mxu1 }
 0x518   :  { %v6923_v8 = vpop.f32.mrb[245].mxu0  ;;  %v7035_v47 = vpop.f32.mrb[245].mxu1 }
 0x519   :  { %v6924_v2 = vadd.f32 %v6923_v8, %v6922_v4  ;;  %v6925_v9 = vpop.f32.mrb[246].mxu0  ;;  %5547 = vadd.xlane.f32.xlu1 %v8909_v26  ;;  %v7036_v42 = vadd.f32 %v7035_v47, %v7034_v39  ;;  %v7037_v54 = vpop.f32.mrb[246].mxu1 }
 0x51a   :  { %v6926_v55 = vpop.f32.mrb[247].mxu0  ;;  %v7038_v56 = vpop.f32.mrb[247].mxu1 }
 0x51b   :  { %v5314_v50 = vadd.f32 %v6924_v2, %v8791_v43  ;;  %v6927_v13 = vadd.f32 %v6926_v55, %v6925_v9  ;;  %v7039_v20 = vadd.f32 %v7038_v56, %v7037_v54 }
 0x51d   :  { %v5317_v14 = vadd.f32 %v6927_v13, %v8794_v48  ;;  %v8914_v60 = vadd.f32 %v7036_v42, %v5314_v50 }
 0x51f   :  { %v6928_v23 = vpop.f32.mrb[248].mxu0  ;;  %5549 = vadd.xlane.f32.xlu0 %v8914_v60  ;;  %v8917_v1 = vadd.f32 %v7039_v20, %v5317_v14  ;;  %v7040_v38 = vpop.f32.mrb[248].mxu1 }
 0x520   :  { %v6929_v10 = vpop.f32.mrb[249].mxu0  ;;  %v7041_v59 = vpop.f32.mrb[249].mxu1 }
 0x521   :  { %v6930_v49 = vadd.f32 %v6929_v10, %v6928_v23  ;;  %v6931_v44 = vpop.f32.mrb[250].mxu0  ;;  %5551 = vadd.xlane.f32.xlu1 %v8917_v1  ;;  %v7042_v43 = vadd.f32 %v7041_v59, %v7040_v38  ;;  %v7043_v37 = vpop.f32.mrb[250].mxu1 }
 0x522   :  { %v6932_v11 = vpop.f32.mrb[251].mxu0  ;;  %v7044_v7 = vpop.f32.mrb[251].mxu1 }
 0x523   :  { %v5322_v12 = vadd.f32 %v6930_v49, %v8797_v6  ;;  %v6933_v48 = vadd.f32 %v6932_v11, %v6931_v44  ;;  %v7045_v61 = vadd.f32 %v7044_v7, %v7043_v37 }
 0x525   :  { %v5325_v0 = vadd.f32 %v6933_v48, %v8800_v18  ;;  %v8922_v36 = vadd.f32 %v7042_v43, %v5322_v12 }
 0x527   :  { %5553 = vadd.xlane.f32.xlu0 %v8922_v36  ;;  %v6934_v3 = vpop.f32.mrb[252].mxu0  ;;  %v8925_v51 = vadd.f32 %v7045_v61, %v5325_v0  ;;  %v7046_v57 = vpop.f32.mrb[252].mxu1 }
 0x528   :  { %v6935_v4 = vpop.f32.mrb[253].mxu0  ;;  %v7047_v8 = vpop.f32.mrb[253].mxu1 }
 0x529   :  { %v6936_v39 = vadd.f32 %v6935_v4, %v6934_v3  ;;  %5555 = vadd.xlane.f32.xlu1 %v8925_v51  ;;  %v6937_v2 = vpop.f32.mrb[254].mxu0  ;;  %v7048_v6 = vadd.f32 %v7047_v8, %v7046_v57  ;;  %v7049_v47 = vpop.f32.mrb[254].mxu1 }
 0x52a   :  { %v6938_v9 = vpop.f32.mrb[255].mxu0  ;;  %v7050_v54 = vpop.f32.mrb[255].mxu1 }
 0x52b   :  { %v5330_v42 = vadd.f32 %v6936_v39, %v8803_v30  ;;  %v6939_v18 = vadd.f32 %v6938_v9, %v6937_v2  ;;  %v7051_v55 = vadd.f32 %v7050_v54, %v7049_v47 }
 0x52d   :  { %v5333_v50 = vadd.f32 %v6939_v18, %v8806_v27  ;;  %v8930_v13 = vadd.f32 %v7048_v6, %v5330_v42 }
 0x52f   :  { %5557 = vadd.xlane.f32.xlu0 %v8930_v13  ;;  %v8933_v56 = vadd.f32 %v7051_v55, %v5333_v50 }
 0x531   :  { %5559 = vadd.xlane.f32.xlu1 %v8933_v56 }
 0x544   :  { %v5498_v20 = vpop.xlane.xlu0 %5497 }
 0x545   :  { %v5562_v14 = vmul.f32 0.0078125, %v5498_v20 }
 0x547   :  { %v8937_v23 = vsub.f32 %v8810_v25, %v5562_v14 }
 0x548   :  { %v5500_v38 = vpop.xlane.xlu0 %5499 }
 0x549   :  { %v5563_v30 = vmul.f32 0.0078125, %v5500_v38  ;;  %v5626_v10 = vmul.f32 %v8937_v23, %v8937_v23 }
 0x54b   :  { %v8942_v27 = vsub.f32 %v8813_v21, %v5563_v30  ;;  %5658 = vadd.xlane.f32.xlu0 %v5626_v10 }
 0x54c   :  { %v5502_v49 = vpop.xlane.xlu1 %5501 }
 0x54d   :  { %v5564_v59 = vmul.f32 0.0078125, %v5502_v49  ;;  %v5627_v44 = vmul.f32 %v8942_v27, %v8942_v27 }
 0x54f   :  { %v8947_v43 = vsub.f32 %v8818_v31, %v5564_v59  ;;  %5660 = vadd.xlane.f32.xlu1 %v5627_v44 }
 0x550   :  { %v5504_v25 = vpop.xlane.xlu1 %5503 }
 0x551   :  { %v5565_v37 = vmul.f32 0.0078125, %v5504_v25  ;;  %v5628_v11 = vmul.f32 %v8947_v43, %v8947_v43 }
 0x553   :  { %v8952_v12 = vsub.f32 %v8821_v35, %v5565_v37  ;;  %5662 = vadd.xlane.f32.xlu0 %v5628_v11 }
 0x554   :  { %v5506_v21 = vpop.xlane.xlu0 %5505 }
 0x555   :  { %v5566_v48 = vmul.f32 0.0078125, %v5506_v21  ;;  %v5629_v7 = vmul.f32 %v8952_v12, %v8952_v12 }
 0x556   :  { %v5508_v61 = vpop.xlane.xlu1 %5507 }
 0x557   :  { %v8957_v0 = vsub.f32 %v8826_v41, %v5566_v48  ;;  %v5567_v31 = vmul.f32 0.0078125, %v5508_v61  ;;  %5664 = vadd.xlane.f32.xlu1 %v5629_v7 }
 0x559   :  { %v8960_v3 = vsub.f32 %v8829_v52, %v5567_v31  ;;  %v5630_v57 = vmul.f32 %v8957_v0, %v8957_v0 }
 0x55b   :  { %5666 = vadd.xlane.f32.xlu0 %v5630_v57  ;;  %v5631_v35 = vmul.f32 %v8960_v3, %v8960_v3 }
 0x55c   :  { %v5510_v4 = vpop.xlane.xlu0 %5509 }
 0x55d   :  { %v5568_v39 = vmul.f32 0.0078125, %v5510_v4  ;;  %5668 = vadd.xlane.f32.xlu1 %v5631_v35 }
 0x55e   :  { %v5512_v8 = vpop.xlane.xlu1 %5511 }
 0x55f   :  { %v8967_v2 = vsub.f32 %v8834_v5, %v5568_v39  ;;  %v5569_v41 = vmul.f32 0.0078125, %v5512_v8 }
 0x561   :  { %v8970_v6 = vsub.f32 %v8837_v62, %v5569_v41  ;;  %v5632_v52 = vmul.f32 %v8967_v2, %v8967_v2 }
 0x563   :  { %5670 = vadd.xlane.f32.xlu0 %v5632_v52  ;;  %v5633_v47 = vmul.f32 %v8970_v6, %v8970_v6 }
 0x564   :  { %v5514_v9 = vpop.xlane.xlu0 %5513 }
 0x565   :  { %v5570_v42 = vmul.f32 0.0078125, %v5514_v9  ;;  %5672 = vadd.xlane.f32.xlu1 %v5633_v47 }
 0x566   :  { %v5516_v18 = vpop.xlane.xlu1 %5515 }
 0x567   :  { %v8977_v54 = vsub.f32 %v8842_v63, %v5570_v42  ;;  %v5571_v5 = vmul.f32 0.0078125, %v5516_v18 }
 0x569   :  { %v8980_v55 = vsub.f32 %v8845_v17, %v5571_v5  ;;  %v5634_v62 = vmul.f32 %v8977_v54, %v8977_v54 }
 0x56b   :  { %5674 = vadd.xlane.f32.xlu0 %v5634_v62  ;;  %v5635_v50 = vmul.f32 %v8980_v55, %v8980_v55 }
 0x56c   :  { %v5518_v20 = vpop.xlane.xlu0 %5517 }
 0x56d   :  { %v5572_v14 = vmul.f32 0.0078125, %v5518_v20  ;;  %5676 = vadd.xlane.f32.xlu1 %v5635_v50 }
 0x56e   :  { %v5520_v38 = vpop.xlane.xlu1 %5519 }
 0x56f   :  { %v8987_v30 = vsub.f32 %v8850_v58, %v5572_v14  ;;  %v5573_v63 = vmul.f32 0.0078125, %v5520_v38 }
 0x571   :  { %v8990_v10 = vsub.f32 %v8853_v45, %v5573_v63  ;;  %v5636_v17 = vmul.f32 %v8987_v30, %v8987_v30 }
 0x573   :  { %5678 = vadd.xlane.f32.xlu0 %v5636_v17  ;;  %v5637_v49 = vmul.f32 %v8990_v10, %v8990_v10 }
 0x574   :  { %v5522_v59 = vpop.xlane.xlu0 %5521 }
 0x575   :  { %v5574_v44 = vmul.f32 0.0078125, %v5522_v59  ;;  %5680 = vadd.xlane.f32.xlu1 %v5637_v49 }
 0x576   :  { %v5524_v25 = vpop.xlane.xlu1 %5523 }
 0x577   :  { %v8997_v37 = vsub.f32 %v8858_v46, %v5574_v44  ;;  %v5575_v58 = vmul.f32 0.0078125, %v5524_v25 }
 0x579   :  { %v9000_v11 = vsub.f32 %v8861_v33, %v5575_v58  ;;  %v5638_v45 = vmul.f32 %v8997_v37, %v8997_v37 }
 0x57b   :  { %5682 = vadd.xlane.f32.xlu0 %v5638_v45  ;;  %v5639_v21 = vmul.f32 %v9000_v11, %v9000_v11 }
 0x57c   :  { %v5526_v48 = vpop.xlane.xlu0 %5525 }
 0x57d   :  { %v5576_v7 = vmul.f32 0.0078125, %v5526_v48  ;;  %5684 = vadd.xlane.f32.xlu1 %v5639_v21 }
 0x57e   :  { %v5528_v61 = vpop.xlane.xlu1 %5527 }
 0x57f   :  { %v9007_v31 = vsub.f32 %v8866_v19, %v5576_v7  ;;  %v5577_v46 = vmul.f32 0.0078125, %v5528_v61 }
 0x581   :  { %v9010_v57 = vsub.f32 %v8869_v16, %v5577_v46  ;;  %v5640_v33 = vmul.f32 %v9007_v31, %v9007_v31 }
 0x583   :  { %5686 = vadd.xlane.f32.xlu0 %v5640_v33  ;;  %v5641_v35 = vmul.f32 %v9010_v57, %v9010_v57 }
 0x584   :  { %v5530_v4 = vpop.xlane.xlu0 %5529 }
 0x585   :  { %v5578_v39 = vmul.f32 0.0078125, %v5530_v4  ;;  %5688 = vadd.xlane.f32.xlu1 %v5641_v35 }
 0x586   :  { %v5532_v8 = vpop.xlane.xlu1 %5531 }
 0x587   :  { %v9017_v41 = vsub.f32 %v8874_v29, %v5578_v39  ;;  %v5579_v19 = vmul.f32 0.0078125, %v5532_v8 }
 0x589   :  { %v9020_v52 = vsub.f32 %v8877_v22, %v5579_v19  ;;  %v5642_v16 = vmul.f32 %v9017_v41, %v9017_v41 }
 0x58b   :  { %5690 = vadd.xlane.f32.xlu0 %v5642_v16  ;;  %v5643_v47 = vmul.f32 %v9020_v52, %v9020_v52 }
 0x58c   :  { %v5534_v9 = vpop.xlane.xlu0 %5533 }
 0x58d   :  { %v5580_v42 = vmul.f32 0.0078125, %v5534_v9  ;;  %5692 = vadd.xlane.f32.xlu1 %v5643_v47 }
 0x58e   :  { %v5536_v18 = vpop.xlane.xlu1 %5535 }
 0x58f   :  { %v9027_v5 = vsub.f32 %v8882_v34, %v5580_v42  ;;  %v5581_v29 = vmul.f32 0.0078125, %v5536_v18 }
 0x591   :  { %v9030_v62 = vsub.f32 %v8885_v40, %v5581_v29  ;;  %v5644_v22 = vmul.f32 %v9027_v5, %v9027_v5 }
 0x593   :  { %5694 = vadd.xlane.f32.xlu0 %v5644_v22  ;;  %v5645_v50 = vmul.f32 %v9030_v62, %v9030_v62 }
 0x594   :  { %v5538_v20 = vpop.xlane.xlu0 %5537 }
 0x595   :  { %v5582_v14 = vmul.f32 0.0078125, %v5538_v20  ;;  %5696 = vadd.xlane.f32.xlu1 %v5645_v50 }
 0x596   :  { %v5540_v38 = vpop.xlane.xlu1 %5539 }
 0x597   :  { %v9037_v63 = vsub.f32 %v8890_v32, %v5582_v14  ;;  %v5583_v34 = vmul.f32 0.0078125, %v5540_v38 }
 0x599   :  { %v9040_v17 = vsub.f32 %v8893_v28, %v5583_v34  ;;  %v5646_v40 = vmul.f32 %v9037_v63, %v9037_v63 }
 0x59b   :  { %5698 = vadd.xlane.f32.xlu0 %v5646_v40  ;;  %v5647_v49 = vmul.f32 %v9040_v17, %v9040_v17 }
 0x59c   :  { %v5542_v59 = vpop.xlane.xlu0 %5541 }
 0x59d   :  { %v5584_v44 = vmul.f32 0.0078125, %v5542_v59  ;;  %5700 = vadd.xlane.f32.xlu1 %v5647_v49 }
 0x59e   :  { %v5544_v25 = vpop.xlane.xlu1 %5543 }
 0x59f   :  { %v9047_v58 = vsub.f32 %v8898_v15, %v5584_v44  ;;  %v5585_v32 = vmul.f32 0.0078125, %v5544_v25 }
 0x5a1   :  { %v9050_v45 = vsub.f32 %v8901_v24, %v5585_v32  ;;  %v5648_v28 = vmul.f32 %v9047_v58, %v9047_v58 }
 0x5a3   :  { %5702 = vadd.xlane.f32.xlu0 %v5648_v28  ;;  %v5649_v21 = vmul.f32 %v9050_v45, %v9050_v45 }
 0x5a4   :  { %v5546_v48 = vpop.xlane.xlu0 %5545 }
 0x5a5   :  { %v5586_v7 = vmul.f32 0.0078125, %v5546_v48  ;;  %5704 = vadd.xlane.f32.xlu1 %v5649_v21 }
 0x5a6   :  { %v5548_v61 = vpop.xlane.xlu1 %5547 }
 0x5a7   :  { %v9057_v46 = vsub.f32 %v8906_v53, %v5586_v7  ;;  %v5587_v15 = vmul.f32 0.0078125, %v5548_v61 }
 0x5a9   :  { %v9060_v33 = vsub.f32 %v8909_v26, %v5587_v15  ;;  %v5650_v24 = vmul.f32 %v9057_v46, %v9057_v46 }
 0x5ab   :  { %5706 = vadd.xlane.f32.xlu0 %v5650_v24  ;;  %v5651_v35 = vmul.f32 %v9060_v33, %v9060_v33 }
 0x5ac   :  { %v5550_v4 = vpop.xlane.xlu0 %5549 }
 0x5ad   :  { %v5588_v39 = vmul.f32 0.0078125, %v5550_v4  ;;  %5708 = vadd.xlane.f32.xlu1 %v5651_v35 }
 0x5ae   :  { %v5552_v8 = vpop.xlane.xlu1 %5551 }
 0x5af   :  { %v9067_v19 = vsub.f32 %v8914_v60, %v5588_v39  ;;  %v5589_v53 = vmul.f32 0.0078125, %v5552_v8 }
 0x5b1   :  { %v9070_v16 = vsub.f32 %v8917_v1, %v5589_v53  ;;  %v5652_v26 = vmul.f32 %v9067_v19, %v9067_v19 }
 0x5b3   :  { %5710 = vadd.xlane.f32.xlu0 %v5652_v26  ;;  %v5653_v47 = vmul.f32 %v9070_v16, %v9070_v16 }
 0x5b4   :  { %v5554_v9 = vpop.xlane.xlu0 %5553 }
 0x5b5   :  { %v5590_v42 = vmul.f32 0.0078125, %v5554_v9  ;;  %5712 = vadd.xlane.f32.xlu1 %v5653_v47 }
 0x5b6   :  { %v5556_v18 = vpop.xlane.xlu1 %5555 }
 0x5b7   :  { %v9077_v29 = vsub.f32 %v8922_v36, %v5590_v42  ;;  %v5591_v60 = vmul.f32 0.0078125, %v5556_v18 }
 0x5b9   :  { %v9080_v22 = vsub.f32 %v8925_v51, %v5591_v60  ;;  %v5654_v1 = vmul.f32 %v9077_v29, %v9077_v29 }
 0x5bb   :  { %5714 = vadd.xlane.f32.xlu0 %v5654_v1  ;;  %v5655_v50 = vmul.f32 %v9080_v22, %v9080_v22 }
 0x5bc   :  { %v5558_v20 = vpop.xlane.xlu0 %5557 }
 0x5bd   :  { %v5592_v14 = vmul.f32 0.0078125, %v5558_v20  ;;  %5716 = vadd.xlane.f32.xlu1 %v5655_v50 }
 0x5be   :  { %v5560_v38 = vpop.xlane.xlu1 %5559 }
 0x5bf   :  { %v9087_v34 = vsub.f32 %v8930_v13, %v5592_v14  ;;  %v5593_v36 = vmul.f32 0.0078125, %v5560_v38 }
 0x5c1   :  { %v9090_v40 = vsub.f32 %v8933_v56, %v5593_v36  ;;  %v5656_v51 = vmul.f32 %v9087_v34, %v9087_v34 }
 0x5c3   :  { %5718 = vadd.xlane.f32.xlu0 %v5656_v51  ;;  %v5657_v49 = vmul.f32 %v9090_v40, %v9090_v40 }
 0x5c5   :  { %5720 = vadd.xlane.f32.xlu1 %v5657_v49 }
 0x5d8   :  { %v5659_v59 = vpop.xlane.xlu0 %5658 }
 0x5d9   :  { %v5722_v44 = vmul.f32 0.0078125, %v5659_v59 }
 0x5db   :  { %v5754_v25 = vadd.f32 1e-05, %v5722_v44 }
 0x5dc   :  { %v5661_v32 = vpop.xlane.xlu1 %5660 }
 0x5dd   :  { %7190 = vrsqrt.f32 %v5754_v25  ;;  %v5723_v28 = vmul.f32 0.0078125, %v5661_v32 }
 0x5df   :  { %v5755_v13 = vadd.f32 1e-05, %v5723_v28 }
 0x5e0   :  { %v5663_v21 = vpop.xlane.xlu0 %5662 }
 0x5e1   :  { %7192 = vrsqrt.f32 %v5755_v13  ;;  %v5724_v48 = vmul.f32 0.0078125, %v5663_v21 }
 0x5e3   :  { %v5756_v56 = vadd.f32 1e-05, %v5724_v48 }
 0x5e4   :  { %v5665_v7 = vpop.xlane.xlu1 %5664 }
 0x5e5   :  { %7194 = vrsqrt.f32 %v5756_v56  ;;  %v5725_v61 = vmul.f32 0.0078125, %v5665_v7 }
 0x5e7   :  { %v7191_v15 = vpop.eup %7190  ;;  %v5757_v24 = vadd.f32 1e-05, %v5725_v61 }
 0x5e8   :  { %v5818_v35 = vmul.f32 %v7191_v15, %v8937_v23  ;;  %v5667_v4 = vpop.xlane.xlu0 %5666 }
 0x5e9   :  { %7196 = vrsqrt.f32 %v5757_v24  ;;  %v5726_v39 = vmul.f32 0.0078125, %v5667_v4 }
 0x5ea   :  { %5850 = vst [vmem:[#allocation8] sm:$0xff] %v5818_v35  ;;  %v5669_v8 = vpop.xlane.xlu1 %5668 }
 0x5eb   :  { %v7193_v53 = vpop.eup %7192  ;;  %v5758_v26 = vadd.f32 1e-05, %v5726_v39  ;;  %v5727_v47 = vmul.f32 0.0078125, %v5669_v8 }
 0x5ec   :  { %v5819_v9 = vmul.f32 %v7193_v53, %v8942_v27 }
 0x5ed   :  { %7198 = vrsqrt.f32 %v5758_v26  ;;  %v5759_v42 = vadd.f32 1e-05, %v5727_v47 }
 0x5ee   :  { %5851 = vst [vmem:[#allocation8 + $0x8] sm:$0xff] %v5819_v9 }
 0x5ef   :  { %v7195_v18 = vpop.eup %7194  ;;  %7200 = vrsqrt.f32 %v5759_v42 }
 0x5f0   :  { %v5820_v60 = vmul.f32 %v7195_v18, %v8947_v43  ;;  %v5671_v1 = vpop.xlane.xlu0 %5670 }
 0x5f1   :  { %v5728_v50 = vmul.f32 0.0078125, %v5671_v1 }
 0x5f2   :  { %5852 = vst [vmem:[#allocation8 + $0x10] sm:$0xff] %v5820_v60  ;;  %v5673_v23 = vpop.xlane.xlu1 %5672 }
 0x5f3   :  { %v7197_v20 = vpop.eup %7196  ;;  %v5760_v14 = vadd.f32 1e-05, %v5728_v50  ;;  %v5729_v38 = vmul.f32 0.0078125, %v5673_v23 }
 0x5f4   :  { %v5821_v36 = vmul.f32 %v7197_v20, %v8952_v12 }
 0x5f5   :  { %7202 = vrsqrt.f32 %v5760_v14  ;;  %v5761_v51 = vadd.f32 1e-05, %v5729_v38 }
 0x5f6   :  { %5853 = vst [vmem:[#allocation8 + $0x18] sm:$0xff] %v5821_v36 }
 0x5f7   :  { %v7199_v27 = vpop.eup %7198  ;;  %7204 = vrsqrt.f32 %v5761_v51 }
 0x5f8   :  { %v5822_v49 = vmul.f32 %v7199_v27, %v8957_v0  ;;  %v5675_v59 = vpop.xlane.xlu0 %5674 }
 0x5f9   :  { %v7201_v44 = vpop.eup %7200  ;;  %v5730_v25 = vmul.f32 0.0078125, %v5675_v59 }
 0x5fa   :  { %5854 = vst [vmem:[#allocation8 + $0x20] sm:$0xff] %v5822_v49  ;;  %v5823_v43 = vmul.f32 %v7201_v44, %v8960_v3  ;;  %v5677_v32 = vpop.xlane.xlu1 %5676 }
 0x5fb   :  { %v5762_v28 = vadd.f32 1e-05, %v5730_v25  ;;  %v5731_v13 = vmul.f32 0.0078125, %v5677_v32 }
 0x5fc   :  { %5855 = vst [vmem:[#allocation8 + $0x28] sm:$0xff] %v5823_v43 }
 0x5fd   :  { %7206 = vrsqrt.f32 %v5762_v28  ;;  %v5763_v21 = vadd.f32 1e-05, %v5731_v13 }
 0x5ff   :  { %v7203_v12 = vpop.eup %7202  ;;  %7208 = vrsqrt.f32 %v5763_v21 }
 0x600   :  { %v5824_v48 = vmul.f32 %v7203_v12, %v8967_v2  ;;  %v5679_v56 = vpop.xlane.xlu0 %5678 }
 0x601   :  { %v7205_v7 = vpop.eup %7204  ;;  %v5732_v61 = vmul.f32 0.0078125, %v5679_v56 }
 0x602   :  { %5856 = vst [vmem:[#allocation8 + $0x30] sm:$0xff] %v5824_v48  ;;  %v5825_v0 = vmul.f32 %v7205_v7, %v8970_v6  ;;  %v5681_v15 = vpop.xlane.xlu1 %5680 }
 0x603   :  { %v5764_v24 = vadd.f32 1e-05, %v5732_v61  ;;  %v5733_v35 = vmul.f32 0.0078125, %v5681_v15 }
 0x604   :  { %5857 = vst [vmem:[#allocation8 + $0x38] sm:$0xff] %v5825_v0 }
 0x605   :  { %7210 = vrsqrt.f32 %v5764_v24  ;;  %v5765_v3 = vadd.f32 1e-05, %v5733_v35 }
 0x607   :  { %v7207_v4 = vpop.eup %7206  ;;  %7212 = vrsqrt.f32 %v5765_v3 }
 0x608   :  { %v5826_v39 = vmul.f32 %v7207_v4, %v8977_v54  ;;  %v5683_v8 = vpop.xlane.xlu0 %5682 }
 0x609   :  { %v7209_v53 = vpop.eup %7208  ;;  %v5734_v26 = vmul.f32 0.0078125, %v5683_v8 }
 0x60a   :  { %5858 = vst [vmem:[#allocation8 + $0x40] sm:$0xff] %v5826_v39  ;;  %v5827_v2 = vmul.f32 %v7209_v53, %v8980_v55  ;;  %v5685_v47 = vpop.xlane.xlu1 %5684 }
 0x60b   :  { %v5766_v9 = vadd.f32 1e-05, %v5734_v26  ;;  %v5735_v42 = vmul.f32 0.0078125, %v5685_v47 }
 0x60c   :  { %5859 = vst [vmem:[#allocation8 + $0x48] sm:$0xff] %v5827_v2 }
 0x60d   :  { %7214 = vrsqrt.f32 %v5766_v9  ;;  %v5767_v6 = vadd.f32 1e-05, %v5735_v42 }
 0x60f   :  { %v7211_v18 = vpop.eup %7210  ;;  %7216 = vrsqrt.f32 %v5767_v6 }
 0x610   :  { %v5828_v60 = vmul.f32 %v7211_v18, %v8987_v30  ;;  %v5687_v1 = vpop.xlane.xlu0 %5686 }
 0x611   :  { %v7213_v50 = vpop.eup %7212  ;;  %v5736_v23 = vmul.f32 0.0078125, %v5687_v1 }
 0x612   :  { %5860 = vst [vmem:[#allocation8 + $0x50] sm:$0xff] %v5828_v60  ;;  %v5829_v54 = vmul.f32 %v7213_v50, %v8990_v10  ;;  %v5689_v20 = vpop.xlane.xlu1 %5688 }
 0x613   :  { %v5768_v14 = vadd.f32 1e-05, %v5736_v23  ;;  %v5737_v38 = vmul.f32 0.0078125, %v5689_v20 }
 0x614   :  { %5861 = vst [vmem:[#allocation8 + $0x58] sm:$0xff] %v5829_v54 }
 0x615   :  { %7218 = vrsqrt.f32 %v5768_v14  ;;  %v5769_v55 = vadd.f32 1e-05, %v5737_v38 }
 0x617   :  { %v7215_v36 = vpop.eup %7214  ;;  %7220 = vrsqrt.f32 %v5769_v55 }
 0x618   :  { %v5830_v51 = vmul.f32 %v7215_v36, %v8997_v37  ;;  %v5691_v27 = vpop.xlane.xlu0 %5690 }
 0x619   :  { %v7217_v49 = vpop.eup %7216  ;;  %v5738_v59 = vmul.f32 0.0078125, %v5691_v27 }
 0x61a   :  { %5862 = vst [vmem:[#allocation8 + $0x60] sm:$0xff] %v5830_v51  ;;  %v5831_v30 = vmul.f32 %v7217_v49, %v9000_v11  ;;  %v5693_v44 = vpop.xlane.xlu1 %5692 }
 0x61b   :  { %v5770_v25 = vadd.f32 1e-05, %v5738_v59  ;;  %v5739_v43 = vmul.f32 0.0078125, %v5693_v44 }
 0x61c   :  { %5863 = vst [vmem:[#allocation8 + $0x68] sm:$0xff] %v5831_v30 }
 0x61d   :  { %7222 = vrsqrt.f32 %v5770_v25  ;;  %v5771_v10 = vadd.f32 1e-05, %v5739_v43 }
 0x61f   :  { %v7219_v32 = vpop.eup %7218  ;;  %7224 = vrsqrt.f32 %v5771_v10 }
 0x620   :  { %v5832_v28 = vmul.f32 %v7219_v32, %v9007_v31  ;;  %v5695_v13 = vpop.xlane.xlu0 %5694 }
 0x621   :  { %v7221_v21 = vpop.eup %7220  ;;  %v5740_v12 = vmul.f32 0.0078125, %v5695_v13 }
 0x622   :  { %5864 = vst [vmem:[#allocation8 + $0x70] sm:$0xff] %v5832_v28  ;;  %v5833_v37 = vmul.f32 %v7221_v21, %v9010_v57  ;;  %v5697_v48 = vpop.xlane.xlu1 %5696 }
 0x623   :  { %v5772_v56 = vadd.f32 1e-05, %v5740_v12  ;;  %v5741_v7 = vmul.f32 0.0078125, %v5697_v48 }
 0x624   :  { %5865 = vst [vmem:[#allocation8 + $0x78] sm:$0xff] %v5833_v37 }
 0x625   :  { %7226 = vrsqrt.f32 %v5772_v56  ;;  %v5773_v11 = vadd.f32 1e-05, %v5741_v7 }
 0x627   :  { %v7223_v61 = vpop.eup %7222  ;;  %7228 = vrsqrt.f32 %v5773_v11 }
 0x628   :  { %v5834_v0 = vmul.f32 %v7223_v61, %v9017_v41  ;;  %v5699_v15 = vpop.xlane.xlu0 %5698 }
 0x629   :  { %v7225_v24 = vpop.eup %7224  ;;  %v5742_v35 = vmul.f32 0.0078125, %v5699_v15 }
 0x62a   :  { %5866 = vst [vmem:[#allocation8 + $0x80] sm:$0xff] %v5834_v0  ;;  %v5835_v31 = vmul.f32 %v7225_v24, %v9020_v52  ;;  %v5701_v3 = vpop.xlane.xlu1 %5700 }
 0x62b   :  { %v5774_v4 = vadd.f32 1e-05, %v5742_v35  ;;  %v5743_v39 = vmul.f32 0.0078125, %v5701_v3 }
 0x62c   :  { %5867 = vst [vmem:[#allocation8 + $0x88] sm:$0xff] %v5835_v31 }
 0x62d   :  { %7230 = vrsqrt.f32 %v5774_v4  ;;  %v5775_v57 = vadd.f32 1e-05, %v5743_v39 }
 0x62f   :  { %v7227_v8 = vpop.eup %7226  ;;  %7232 = vrsqrt.f32 %v5775_v57 }
 0x630   :  { %v5836_v53 = vmul.f32 %v7227_v8, %v9027_v5  ;;  %v5703_v26 = vpop.xlane.xlu0 %5702 }
 0x631   :  { %v7229_v2 = vpop.eup %7228  ;;  %v5744_v47 = vmul.f32 0.0078125, %v5703_v26 }
 0x632   :  { %5868 = vst [vmem:[#allocation8 + $0x90] sm:$0xff] %v5836_v53  ;;  %v5837_v41 = vmul.f32 %v7229_v2, %v9030_v62  ;;  %v5705_v9 = vpop.xlane.xlu1 %5704 }
 0x633   :  { %v5776_v42 = vadd.f32 1e-05, %v5744_v47  ;;  %v5745_v6 = vmul.f32 0.0078125, %v5705_v9 }
 0x634   :  { %5869 = vst [vmem:[#allocation8 + $0x98] sm:$0xff] %v5837_v41 }
 0x635   :  { %7234 = vrsqrt.f32 %v5776_v42  ;;  %v5777_v52 = vadd.f32 1e-05, %v5745_v6 }
 0x637   :  { %v7231_v18 = vpop.eup %7230  ;;  %7236 = vrsqrt.f32 %v5777_v52 }
 0x638   :  { %v5838_v60 = vmul.f32 %v7231_v18, %v9037_v63  ;;  %v5707_v1 = vpop.xlane.xlu0 %5706 }
 0x639   :  { %v7233_v50 = vpop.eup %7232  ;;  %v5746_v23 = vmul.f32 0.0078125, %v5707_v1 }
 0x63a   :  { %5870 = vst [vmem:[#allocation8 + $0xa0] sm:$0xff] %v5838_v60  ;;  %v5839_v5 = vmul.f32 %v7233_v50, %v9040_v17  ;;  %v5709_v54 = vpop.xlane.xlu1 %5708 }
 0x63b   :  { %v5778_v20 = vadd.f32 1e-05, %v5746_v23  ;;  %v5747_v14 = vmul.f32 0.0078125, %v5709_v54 }
 0x63c   :  { %5871 = vst [vmem:[#allocation8 + $0xa8] sm:$0xff] %v5839_v5 }
 0x63d   :  { %7238 = vrsqrt.f32 %v5778_v20  ;;  %v5779_v62 = vadd.f32 1e-05, %v5747_v14 }
 0x63f   :  { %v7235_v38 = vpop.eup %7234  ;;  %7240 = vrsqrt.f32 %v5779_v62 }
 0x640   :  { %v5840_v55 = vmul.f32 %v7235_v38, %v9047_v58  ;;  %v5711_v36 = vpop.xlane.xlu0 %5710 }
 0x641   :  { %v7237_v51 = vpop.eup %7236  ;;  %v5748_v27 = vmul.f32 0.0078125, %v5711_v36 }
 0x642   :  { %5872 = vst [vmem:[#allocation8 + $0xb0] sm:$0xff] %v5840_v55  ;;  %v5841_v63 = vmul.f32 %v7237_v51, %v9050_v45  ;;  %v5713_v49 = vpop.xlane.xlu1 %5712 }
 0x643   :  { %v5780_v59 = vadd.f32 1e-05, %v5748_v27  ;;  %v5749_v30 = vmul.f32 0.0078125, %v5713_v49 }
 0x644   :  { %5873 = vst [vmem:[#allocation8 + $0xb8] sm:$0xff] %v5841_v63 }
 0x645   :  { %7242 = vrsqrt.f32 %v5780_v59  ;;  %v5781_v17 = vadd.f32 1e-05, %v5749_v30 }
 0x647   :  { %v7239_v44 = vpop.eup %7238  ;;  %7244 = vrsqrt.f32 %v5781_v17 }
 0x648   :  { %v5842_v25 = vmul.f32 %v7239_v44, %v9057_v46  ;;  %v5715_v43 = vpop.xlane.xlu0 %5714 }
 0x649   :  { %v7241_v10 = vpop.eup %7240  ;;  %v5750_v32 = vmul.f32 0.0078125, %v5715_v43 }
 0x64a   :  { %5874 = vst [vmem:[#allocation8 + $0xc0] sm:$0xff] %v5842_v25  ;;  %v5843_v58 = vmul.f32 %v7241_v10, %v9060_v33  ;;  %v5717_v28 = vpop.xlane.xlu1 %5716 }
 0x64b   :  { %v5782_v13 = vadd.f32 1e-05, %v5750_v32  ;;  %v5751_v21 = vmul.f32 0.0078125, %v5717_v28 }
 0x64c   :  { %5875 = vst [vmem:[#allocation8 + $0xc8] sm:$0xff] %v5843_v58 }
 0x64d   :  { %7246 = vrsqrt.f32 %v5782_v13  ;;  %v5783_v45 = vadd.f32 1e-05, %v5751_v21 }
 0x64f   :  { %v7243_v12 = vpop.eup %7242  ;;  %7248 = vrsqrt.f32 %v5783_v45 }
 0x650   :  { %v5844_v37 = vmul.f32 %v7243_v12, %v9067_v19  ;;  %v5719_v48 = vpop.xlane.xlu0 %5718 }
 0x651   :  { %v7245_v56 = vpop.eup %7244  ;;  %v5752_v7 = vmul.f32 0.0078125, %v5719_v48 }
 0x652   :  { %5876 = vst [vmem:[#allocation8 + $0xd0] sm:$0xff] %v5844_v37  ;;  %v5845_v46 = vmul.f32 %v7245_v56, %v9070_v16  ;;  %v5721_v11 = vpop.xlane.xlu1 %5720 }
 0x653   :  { %v5784_v61 = vadd.f32 1e-05, %v5752_v7  ;;  %v5753_v0 = vmul.f32 0.0078125, %v5721_v11 }
 0x654   :  { %5877 = vst [vmem:[#allocation8 + $0xd8] sm:$0xff] %v5845_v46 }
 0x655   :  { %7250 = vrsqrt.f32 %v5784_v61  ;;  %v5785_v33 = vadd.f32 1e-05, %v5753_v0 }
 0x657   :  { %v7247_v15 = vpop.eup %7246  ;;  %7252 = vrsqrt.f32 %v5785_v33 }
 0x658   :  { %v5846_v24 = vmul.f32 %v7247_v15, %v9077_v29 }
 0x659   :  { %v7249_v35 = vpop.eup %7248 }
 0x65a   :  { %5878 = vst [vmem:[#allocation8 + $0xe0] sm:$0xff] %v5846_v24  ;;  %v5847_v19 = vmul.f32 %v7249_v35, %v9080_v22 }
 0x65c   :  { %5879 = vst [vmem:[#allocation8 + $0xe8] sm:$0xff] %v5847_v19 }
 0x65f   :  { %v7251_v31 = vpop.eup %7250 }
 0x660   :  { %v5848_v16 = vmul.f32 %v7251_v31, %v9087_v34 }
 0x661   :  { %v7253_v3 = vpop.eup %7252 }
 0x662   :  { %5880 = vst [vmem:[#allocation8 + $0xf0] sm:$0xff] %v5848_v16  ;;  %v5849_v4 = vmul.f32 %v7253_v3, %v9090_v40 }
 0x664   :  { %5881 = vst [vmem:[#allocation8 + $0xf8] sm:$0xff] %v5849_v4 }
 0x665   :  { %7363 = shalt.err (!%p7360_p0)
}
 0x666   :  { %s7364_s28 = scalar_lea.hbm %s9146_s3, 4096 }
 0x667   :  { %p7365_p1 = scmp.ne.s32.totalorder %s9146_s3, %s7364_s28  ;;  %p7368_p2 = scmp.lt.u32.totalorder %s7364_s28, %s9146_s3 }
 0x669   :  { %p7370_p3 = pnand %p7368_p2, %p7365_p1 }
 0x66b   :  { %7373 = shalt.err (!%p7370_p3)
}
 0x66c   :  { %5893 = dma.vmem_to_hbm [thread:$0]  %s5888_s23, 4096, %s9146_s3, [#allocation4], %s7384_s1, %s7384_s1, %s7385_s9  }
 0x66d   :  { %7378 = dma.done.wait [#allocation4], 4096  }
 0x66e   :  { %7379 = vsyncadd [#allocation4], 4294963200 }
 0x66f   :  { %5897 = vsyncpa [#allocation3], 1 }
 0x670   :  { %5898 = vsyncpa [#allocation6], 1 }
 0x671   :  { %5899 = vsyncpa [#allocation4], 1 }

</bundles_post_ra>
